<compile_context>
chip_gen: v7x
topology: tpu7x:2x2x1
jax: 0.10.0
libtpu: 0.0.40
codegen_flags: <defaults>
</compile_context>

<pallas_src>
import functools

import jax
import jax.numpy as jnp
from jax.experimental import pallas as pl
from jax.experimental.pallas import tpu as pltpu


def _sigmoid(x):
    # exact logistic (parity with torch.sigmoid); exp rides the EUP slot.
    return 1.0 / (1.0 + jnp.exp(-x))


# ----------------------------------------------------------------------------
# K1: 3x3 conv (single fused K=9*Cin_p matmul) + per-batch BN partial stats
# ----------------------------------------------------------------------------
def _k1_conv_kernel(x_ref, w_ref, cb_ref, mask_ref,
                    conv_ref, sum_ref, ssq_ref, *, S, Wp, ext):
    # x_ref   : [1, Cin_p, S + 2*ext]  bf16 framed input (zero ring, tap-extended)
    # w_ref   : [Cout, 9*Cin_p]        fused per-tap weight matrix (f32)
    # cb_ref  : [Cout, 1]              conv bias
    # mask_ref: [1, S]                 1.0 at valid (interior image) lanes
    # conv_ref: [1, Cout, S] bf16      raw conv, streamed per batch
    # sum_ref / ssq_ref: [1, Cout, 1]  per-batch partial BN statistics (f32)
    xb = x_ref[0].astype(jnp.float32)                     # [Cin_p, S+2*ext]
    taps = []
    for t in range(9):                                    # 3x3 taps, ky-major
        ky, kx = t // 3, t % 3
        a = ext + (ky - 1) * Wp + (kx - 1)                # static, >= 0
        taps.append(xb[:, a:a + S])
    stacked = jnp.concatenate(taps, axis=0)               # [9*Cin_p, S]
    # one MXU matmul with K = 9*Cin_p instead of 9 K=Cin_p matmuls
    acc = jnp.dot(w_ref[...], stacked,
                  preferred_element_type=jnp.float32) + cb_ref[...]
    mask = mask_ref[...]                                  # [1, S]
    masked = acc * mask
    sum_ref[0] = jnp.sum(masked, axis=1, keepdims=True)   # [Cout, 1]
    ssq_ref[0] = jnp.sum(masked * acc, axis=1, keepdims=True)
    conv_ref[0] = acc.astype(conv_ref.dtype)              # bf16 HBM intermediate


# ----------------------------------------------------------------------------
# K2: BN (batch stats, applied) + ReLU + border mask + global max/avg pool
# ----------------------------------------------------------------------------
def _k2_bn_relu_pool_kernel(conv_ref, scale_ref, shift_ref, mask_ref,
                            mx_ref, av_ref, *, inv_hw):
    c = conv_ref[0].astype(jnp.float32)                               # [Cout, S]
    y = jnp.maximum(c * scale_ref[...] + shift_ref[...], 0.0) * mask_ref[...]
    # border/pad lanes are exactly 0 and y >= 0 after ReLU, so lane-wide pools
    # equal pools over the valid H*W region.
    mx_ref[0] = jnp.max(y, axis=1, keepdims=True)                     # [Cout, 1]
    av_ref[0] = jnp.sum(y, axis=1, keepdims=True) * inv_hw            # [Cout, 1]


# ----------------------------------------------------------------------------
# K23 (fused): BN/ReLU prologue + channel gate + channel max/mean + 7x7
#              spatial conv (XLU lane rolls) + sigmoid + final gate.
# ----------------------------------------------------------------------------
def _k23_attention_kernel(conv_ref, scale_ref, shift_ref, mask_ref, catt_ref,
                          wsp_ref, out_ref, *, S, Wp):
    # conv_ref: [1, Cout, S] bf16 raw conv
    # catt_ref: [1, Cout, 1] pre-sigmoid channel-attention logits
    # wsp_ref : [2, 49] f32 in SMEM (row0 = max-map weights, row1 = avg-map)
    c = conv_ref[0].astype(jnp.float32)
    y = jnp.maximum(c * scale_ref[...] + shift_ref[...], 0.0) * mask_ref[...]
    x1 = y * _sigmoid(catt_ref[0])                        # channel attention

    maxc = jnp.max(x1, axis=0, keepdims=True)             # [1, S]
    avgc = jnp.mean(x1, axis=0, keepdims=True)            # [1, S]

    # 7x7 conv, padding=3: tap (dr,dc) needs map[p + dr*Wp + dc].  Each tap is
    # a lane rotation (pltpu.roll follows jnp.roll: out[i] = in[(i-shift)%S],
    # so shift = -(dr*Wp + dc) mod S).  Wrap-around only touches non-interior
    # lanes, where x1 == 0, so it never reaches the output.  Weights are SMEM
    # scalars (no per-tap lane-slice / broadcast).
    acc = jnp.zeros((1, S), jnp.float32)
    for dr in range(-3, 4):
        for dc in range(-3, 4):
            t = (dr + 3) * 7 + (dc + 3)
            sh = (-(dr * Wp + dc)) % S
            tm = pltpu.roll(maxc, sh, axis=1) if sh else maxc
            ta = pltpu.roll(avgc, sh, axis=1) if sh else avgc
            acc = acc + tm * wsp_ref[0, t] + ta * wsp_ref[1, t]

    out_ref[0] = x1 * _sigmoid(acc)                       # spatial gate


# ----------------------------------------------------------------------------
# Plain-JAX glue: tiny causal dilated TCN (sequence length = out_channel)
# TODO(synk): the [B,1,C] 1-D TCN convs stay in plain JAX (lax.conv); they are
# negligible-size and lane-hostile on TPU (C = 24, width <= 8).
# ----------------------------------------------------------------------------
def _conv1d(x, w, b, dilation, pad_left):
    # causal: left-pad then valid conv == torch Conv1d(padding=p) + Chomp1d(p)
    out = jax.lax.conv_general_dilated(
        x, w, window_strides=(1,), padding=[(pad_left, 0)],
        rhs_dilation=(dilation,), dimension_numbers=("NCH", "OIH", "NCH"))
    return out + b[None, :, None]


def _temporal_block(x, blk, dilation):
    k = blk["w1"].shape[-1]
    p = (k - 1) * dilation
    h = jax.nn.relu(_conv1d(x, blk["w1"], blk["b1"], dilation, p))
    h = jax.nn.relu(_conv1d(h, blk["w2"], blk["b2"], dilation, p))
    res = x if blk["wd"] is None else _conv1d(x, blk["wd"], blk["bd"], 1, 0)
    return jax.nn.relu(h + res)


def _tcn_apply(blocks, x):
    for i, blk in enumerate(blocks):
        x = _temporal_block(x, blk, 2 ** i)
    return x


# ----------------------------------------------------------------------------
# Parameter construction (deterministic, synthetic)
# ----------------------------------------------------------------------------
def _normal(key, shape, scale=0.05):
    return scale * jax.random.normal(key, shape, dtype=jnp.float32)


def _make_tcn(key, num_inputs, num_channels, kernel_size):
    blocks = []
    in_c = num_inputs
    for out_c in num_channels:
        key, k1, k2, k3, k4, k5, k6 = jax.random.split(key, 7)
        blocks.append({
            # weight_norm is a reparametrization; effective weight drawn directly
            "w1": _normal(k1, (out_c, in_c, kernel_size)),
            "b1": _normal(k2, (out_c,)),
            "w2": _normal(k3, (out_c, out_c, kernel_size)),
            "b2": _normal(k4, (out_c,)),
            "wd": _normal(k5, (out_c, in_c, 1)) if in_c != out_c else None,
            "bd": _normal(k6, (out_c,)) if in_c != out_c else None,
        })
        in_c = out_c
    return blocks


def make_params(key, in_channel, out_channel):
    assert out_channel // 12 >= 1, "TSAM requires channels >= 12 (torch would build k=0 conv)"
    k_tcn = out_channel // 12
    keys = jax.random.split(key, 12)
    return {
        "w_conv": _normal(keys[0], (out_channel, in_channel, 3, 3), 0.1),
        "b_conv": _normal(keys[1], (out_channel,), 0.1),
        "bn_gamma": jnp.ones((out_channel,), jnp.float32),
        "bn_beta": jnp.zeros((out_channel,), jnp.float32),
        "max_tcn1": _make_tcn(keys[2], 1, [8, 8, 8], k_tcn),
        "max_tcn2": _make_tcn(keys[3], 8, [8, 8, 8], k_tcn),
        "max_tcn3": _make_tcn(keys[4], 8, [1, 1], 1),
        "avg_tcn1": _make_tcn(keys[5], 1, [8, 8, 8], k_tcn),
        "avg_tcn2": _make_tcn(keys[6], 8, [8, 8, 8], k_tcn),
        "avg_tcn3": _make_tcn(keys[7], 8, [1, 1], 1),
        "w_spatial": _normal(keys[8], (1, 2, 7, 7), 0.1),
    }


# ----------------------------------------------------------------------------
# Forward pass
# ----------------------------------------------------------------------------
def cnntsam_forward(params, x_nchw):
    B, Cin, H, W = x_nchw.shape
    Cout = params["w_conv"].shape[0]
    assert Cout % 8 == 0, "out_channel must be a sublane multiple"

    P = 3                                      # frame pad (covers 3x3/p1 & 7x7/p3)
    Hp, Wp = H + 2 * P, W + 2 * P
    S_real = Hp * Wp
    S = ((S_real + 127) // 128) * 128          # lane-padded to a 128 multiple
    EXT1 = Wp + 1                              # max |tap offset| of the 3x3 conv
    SXT = S + 2 * EXT1
    Cin_p = ((Cin + 7) // 8) * 8

    # framed, lane-padded, tap-extended input (bf16 halves HBM traffic)
    xf = jnp.pad(x_nchw.astype(jnp.float32),
                 ((0, 0), (0, 0), (P, P), (P, P))).reshape(B, Cin, S_real)
    xf = jnp.pad(xf, ((0, 0), (0, Cin_p - Cin), (EXT1, SXT - S_real - EXT1)))
    xf = xf.astype(jnp.bfloat16)               # [B, Cin_p, SXT]

    # fused tap weights: column t*Cin_p + c matches the stacked-slice row order
    w72 = jnp.transpose(params["w_conv"], (0, 2, 3, 1)).reshape(Cout, 9, Cin)
    w72 = jnp.pad(w72, ((0, 0), (0, 0), (0, Cin_p - Cin)))
    w72 = w72.reshape(Cout, 9 * Cin_p).astype(jnp.float32)
    cb = params["b_conv"].reshape(Cout, 1).astype(jnp.float32)

    # valid-interior mask of the (lane-padded) frame
    rows = jax.lax.broadcasted_iota(jnp.int32, (Hp, Wp), 0)
    cols = jax.lax.broadcasted_iota(jnp.int32, (Hp, Wp), 1)
    mask = ((rows >= P) & (rows < P + H) & (cols >= P) & (cols < P + W))
    mask = jnp.pad(mask.astype(jnp.float32).reshape(1, S_real),
                   ((0, 0), (0, S - S_real)))

    # --- K1: 3x3 conv + per-batch BN partial stats (streamed, parallel) ------
    k1 = functools.partial(_k1_conv_kernel, S=S, Wp=Wp, ext=EXT1)
    conv, psum, pssq = pl.pallas_call(
        k1,
        out_shape=(jax.ShapeDtypeStruct((B, Cout, S), jnp.bfloat16),
                   jax.ShapeDtypeStruct((B, Cout, 1), jnp.float32),
                   jax.ShapeDtypeStruct((B, Cout, 1), jnp.float32)),
        grid=(B,),
        in_specs=[pl.BlockSpec((1, Cin_p, SXT), lambda b: (b, 0, 0)),
                  pl.BlockSpec((Cout, 9 * Cin_p), lambda b: (0, 0)),
                  pl.BlockSpec((Cout, 1), lambda b: (0, 0)),
                  pl.BlockSpec((1, S), lambda b: (0, 0))],
        out_specs=(pl.BlockSpec((1, Cout, S), lambda b: (b, 0, 0)),
                   pl.BlockSpec((1, Cout, 1), lambda b: (b, 0, 0)),
                   pl.BlockSpec((1, Cout, 1), lambda b: (b, 0, 0))),
        compiler_params=pltpu.CompilerParams(
            dimension_semantics=("parallel",)),
    )(xf, w72, cb, mask)

    # --- tiny BN statistic reduction (training-mode batch stats, biased var) --
    # Stats come from the exact f32 conv; BN is applied to the bf16-stored conv
    # (~2^-9 relative rounding).  Running-stat buffers are not produced.
    n_valid = float(B * H * W)
    mean = jnp.sum(psum[:, :, 0], axis=0) / n_valid
    var = jnp.sum(pssq[:, :, 0], axis=0) / n_valid - mean * mean
    scale = params["bn_gamma"] * jax.lax.rsqrt(var + 1e-5)
    shift = params["bn_beta"] - mean * scale
    scale2 = scale.reshape(Cout, 1).astype(jnp.float32)
    shift2 = shift.reshape(Cout, 1).astype(jnp.float32)

    # --- K2: BN + ReLU + global max/avg pool (per batch, parallel) -----------
    k2 = functools.partial(_k2_bn_relu_pool_kernel, inv_hw=1.0 / float(H * W))
    mxp, avp = pl.pallas_call(
        k2,
        out_shape=(jax.ShapeDtypeStruct((B, Cout, 1), jnp.float32),
                   jax.ShapeDtypeStruct((B, Cout, 1), jnp.float32)),
        grid=(B,),
        in_specs=[pl.BlockSpec((1, Cout, S), lambda b: (b, 0, 0)),
                  pl.BlockSpec((Cout, 1), lambda b: (0, 0)),
                  pl.BlockSpec((Cout, 1), lambda b: (0, 0)),
                  pl.BlockSpec((1, S), lambda b: (0, 0))],
        out_specs=(pl.BlockSpec((1, Cout, 1), lambda b: (b, 0, 0)),
                   pl.BlockSpec((1, Cout, 1), lambda b: (b, 0, 0))),
        compiler_params=pltpu.CompilerParams(
            dimension_semantics=("parallel",)),
    )(conv, scale2, shift2, mask)

    # --- TCN channel-attention branches (tiny; plain-JAX glue) ---------------
    def branch(pooled, t1, t2, t3):
        s = pooled[:, None, :]                               # [B, 1, C]
        s = _tcn_apply(params[t3], _tcn_apply(params[t2],
                                              _tcn_apply(params[t1], s)))
        return s[:, 0, :]                                    # [B, C]

    catt = (branch(mxp[:, :, 0], "max_tcn1", "max_tcn2", "max_tcn3")
            + branch(avp[:, :, 0], "avg_tcn1", "avg_tcn2", "avg_tcn3"))
    catt3 = catt[:, :, None].astype(jnp.float32)             # [B, Cout, 1]
    # row0 = max map, row1 = avg map (matches torch.cat([max, avg], dim=1))
    wsp = params["w_spatial"].reshape(2, 49).astype(jnp.float32)

    # --- K23: fused channel gate + channel pools + 7x7 conv + spatial gate ---
    k23 = functools.partial(_k23_attention_kernel, S=S, Wp=Wp)
    out_f = pl.pallas_call(
        k23,
        out_shape=jax.ShapeDtypeStruct((B, Cout, S), jnp.float32),
        grid=(B,),
        in_specs=[pl.BlockSpec((1, Cout, S), lambda b: (b, 0, 0)),
                  pl.BlockSpec((Cout, 1), lambda b: (0, 0)),
                  pl.BlockSpec((Cout, 1), lambda b: (0, 0)),
                  pl.BlockSpec((1, S), lambda b: (0, 0)),
                  pl.BlockSpec((1, Cout, 1), lambda b: (b, 0, 0)),
                  pl.BlockSpec(memory_space=pltpu.MemorySpace.SMEM)],
        out_specs=pl.BlockSpec((1, Cout, S), lambda b: (b, 0, 0)),
        compiler_params=pltpu.CompilerParams(
            dimension_semantics=("parallel",)),
    )(conv, scale2, shift2, mask, catt3, wsp)

    # crop the frame back to the valid H x W region -> NCHW
    out = out_f[:, :, :S_real].reshape(B, Cout, Hp, Wp)[:, :, P:P + H, P:P + W]
    return out


# ----------------------------------------------------------------------------
if __name__ == "__main__":
    IN_CH, OUT_CH, Hs, Ws, Bs = 4, 24, 16, 16, 2   # OUT_CH // 12 = 2 (valid TCN k)

    params = make_params(jax.random.PRNGKey(42), IN_CH, OUT_CH)
    x = jax.random.normal(jax.random.PRNGKey(0), (Bs, IN_CH, Hs, Ws), jnp.float32)

    fwd = jax.jit(cnntsam_forward)
    y = jax.block_until_ready(fwd(params, x))

    assert y.shape == (Bs, OUT_CH, Hs, Ws), y.shape
    assert bool(jnp.all(jnp.isfinite(y)))
    print("KERNEL_OK")
</pallas_src>

<mosaic_0001>
module attributes {stable_mosaic.version = 11 : i64} {
  func.func @_k2_bn_relu_pool_kernel(%arg0: i32, %arg1: memref<1x24x512xbf16, #tpu.memory_space<vmem>>, %arg2: memref<24x1xf32, #tpu.memory_space<vmem>>, %arg3: memref<24x1xf32, #tpu.memory_space<vmem>>, %arg4: memref<1x512xf32, #tpu.memory_space<vmem>>, %arg5: memref<1x24x1xf32, #tpu.memory_space<vmem>>, %arg6: memref<1x24x1xf32, #tpu.memory_space<vmem>>) attributes {dimension_semantics = [#tpu.dimension_semantics<parallel>], iteration_bounds = array<i64: 2>, scalar_prefetch = 0 : i64, scratch_operands = 0 : i64, tpu.core_type = #tpu.core_type<tc>, window_params = [{transform_indices = @transform_0, window_bounds = array<i64: 1, 24, 512>}, {pipeline_mode = #tpu.pipeline_mode<synchronous>, transform_indices = @transform_1, window_bounds = array<i64: 24, 1>}, {pipeline_mode = #tpu.pipeline_mode<synchronous>, transform_indices = @transform_2, window_bounds = array<i64: 24, 1>}, {pipeline_mode = #tpu.pipeline_mode<synchronous>, transform_indices = @transform_3, window_bounds = array<i64: 1, 512>}, {transform_indices = @transform_4, window_bounds = array<i64: 1, 24, 1>}, {transform_indices = @transform_5, window_bounds = array<i64: 1, 24, 1>}]} {
    %c0 = arith.constant 0 : index
    %c0_0 = arith.constant 0 : index
    %c0_1 = arith.constant 0 : index
    %0 = vector.load %arg1[%c0, %c0_0, %c0_1] : memref<1x24x512xbf16, #tpu.memory_space<vmem>>, vector<1x24x512xbf16>
    %1 = vector.shape_cast %0 : vector<1x24x512xbf16> to vector<24x512xbf16>
    %2 = arith.extf %1 : vector<24x512xbf16> to vector<24x512xf32>
    %c0_2 = arith.constant 0 : index
    %c0_3 = arith.constant 0 : index
    %3 = vector.load %arg2[%c0_2, %c0_3] : memref<24x1xf32, #tpu.memory_space<vmem>>, vector<24x1xf32>
    %4 = vector.broadcast %3 : vector<24x1xf32> to vector<24x512xf32>
    %5 = arith.mulf %2, %4 : vector<24x512xf32>
    %c0_4 = arith.constant 0 : index
    %c0_5 = arith.constant 0 : index
    %6 = vector.load %arg3[%c0_4, %c0_5] : memref<24x1xf32, #tpu.memory_space<vmem>>, vector<24x1xf32>
    %7 = vector.broadcast %6 : vector<24x1xf32> to vector<24x512xf32>
    %8 = arith.addf %5, %7 : vector<24x512xf32>
    %cst = arith.constant 0.000000e+00 : f32
    %9 = vector.broadcast %cst : f32 to vector<24x512xf32>
    %10 = arith.maximumf %8, %9 : vector<24x512xf32>
    %c0_6 = arith.constant 0 : index
    %c0_7 = arith.constant 0 : index
    %11 = vector.load %arg4[%c0_6, %c0_7] : memref<1x512xf32, #tpu.memory_space<vmem>>, vector<1x512xf32>
    %12 = vector.broadcast %11 : vector<1x512xf32> to vector<24x512xf32>
    %13 = arith.mulf %10, %12 : vector<24x512xf32>
    %cst_8 = arith.constant dense<0xFF800000> : vector<24xf32>
    %14 = vector.multi_reduction <maximumf>, %13, %cst_8 [1] : vector<24x512xf32> to vector<24xf32>
    %15 = vector.shape_cast %14 : vector<24xf32> to vector<24x1xf32>
    %c0_9 = arith.constant 0 : index
    %c0_10 = arith.constant 0 : index
    %c0_11 = arith.constant 0 : index
    %16 = vector.load %arg5[%c0_9, %c0_10, %c0_11] : memref<1x24x1xf32, #tpu.memory_space<vmem>>, vector<1x24x1xf32>
    %17 = vector.shape_cast %16 : vector<1x24x1xf32> to vector<24x1xf32>
    %18 = vector.shape_cast %15 : vector<24x1xf32> to vector<1x24x1xf32>
    tpu.vector_store %arg5[%c0_9, %c0_10, %c0_11], %18 {strides = array<i32>} : memref<1x24x1xf32, #tpu.memory_space<vmem>>, vector<1x24x1xf32>,
    %cst_12 = arith.constant dense<0.000000e+00> : vector<24xf32>
    %19 = vector.multi_reduction <add>, %13, %cst_12 [1] : vector<24x512xf32> to vector<24xf32>
    %20 = vector.shape_cast %19 : vector<24xf32> to vector<24x1xf32>
    %cst_13 = arith.constant 3.906250e-03 : f32
    %21 = vector.broadcast %cst_13 : f32 to vector<24x1xf32>
    %22 = arith.mulf %20, %21 : vector<24x1xf32>
    %c0_14 = arith.constant 0 : index
    %c0_15 = arith.constant 0 : index
    %c0_16 = arith.constant 0 : index
    %23 = vector.load %arg6[%c0_14, %c0_15, %c0_16] : memref<1x24x1xf32, #tpu.memory_space<vmem>>, vector<1x24x1xf32>
    %24 = vector.shape_cast %23 : vector<1x24x1xf32> to vector<24x1xf32>
    %25 = vector.shape_cast %22 : vector<24x1xf32> to vector<1x24x1xf32>
    tpu.vector_store %arg6[%c0_14, %c0_15, %c0_16], %25 {strides = array<i32>} : memref<1x24x1xf32, #tpu.memory_space<vmem>>, vector<1x24x1xf32>,
    return
  }
  func.func @transform_0(%arg0: i32) -> (i32, i32, i32) {
    %c0_i32 = arith.constant 0 : i32
    %c0_i32_0 = arith.constant 0 : i32
    %c0_i32_1 = arith.constant 0 : i32
    return %arg0, %c0_i32, %c0_i32_0 : i32, i32, i32
  }
  func.func @transform_1(%arg0: i32) -> (i32, i32) {
    %c0_i32 = arith.constant 0 : i32
    %c0_i32_0 = arith.constant 0 : i32
    %c0_i32_1 = arith.constant 0 : i32
    return %c0_i32, %c0_i32_0 : i32, i32
  }
  func.func @transform_2(%arg0: i32) -> (i32, i32) {
    %c0_i32 = arith.constant 0 : i32
    %c0_i32_0 = arith.constant 0 : i32
    %c0_i32_1 = arith.constant 0 : i32
    return %c0_i32, %c0_i32_0 : i32, i32
  }
  func.func @transform_3(%arg0: i32) -> (i32, i32) {
    %c0_i32 = arith.constant 0 : i32
    %c0_i32_0 = arith.constant 0 : i32
    %c0_i32_1 = arith.constant 0 : i32
    return %c0_i32, %c0_i32_0 : i32, i32
  }
  func.func @transform_4(%arg0: i32) -> (i32, i32, i32) {
    %c0_i32 = arith.constant 0 : i32
    %c0_i32_0 = arith.constant 0 : i32
    %c0_i32_1 = arith.constant 0 : i32
    return %arg0, %c0_i32, %c0_i32_0 : i32, i32, i32
  }
  func.func @transform_5(%arg0: i32) -> (i32, i32, i32) {
    %c0_i32 = arith.constant 0 : i32
    %c0_i32_0 = arith.constant 0 : i32
    %c0_i32_1 = arith.constant 0 : i32
    return %arg0, %c0_i32, %c0_i32_0 : i32, i32, i32
  }
}

module attributes {stable_mosaic.version = 11 : i64} {
  func.func @_k1_conv_kernel(%arg0: i32, %arg1: memref<1x8x558xbf16, #tpu.memory_space<vmem>>, %arg2: memref<24x72xf32, #tpu.memory_space<vmem>>, %arg3: memref<24x1xf32, #tpu.memory_space<vmem>>, %arg4: memref<1x512xf32, #tpu.memory_space<vmem>>, %arg5: memref<1x24x512xbf16, #tpu.memory_space<vmem>>, %arg6: memref<1x24x1xf32, #tpu.memory_space<vmem>>, %arg7: memref<1x24x1xf32, #tpu.memory_space<vmem>>) attributes {dimension_semantics = [#tpu.dimension_semantics<parallel>], iteration_bounds = array<i64: 2>, scalar_prefetch = 0 : i64, scratch_operands = 0 : i64, tpu.core_type = #tpu.core_type<tc>, window_params = [{transform_indices = @transform_0, window_bounds = array<i64: 1, 8, 558>}, {pipeline_mode = #tpu.pipeline_mode<synchronous>, transform_indices = @transform_1, window_bounds = array<i64: 24, 72>}, {pipeline_mode = #tpu.pipeline_mode<synchronous>, transform_indices = @transform_2, window_bounds = array<i64: 24, 1>}, {pipeline_mode = #tpu.pipeline_mode<synchronous>, transform_indices = @transform_3, window_bounds = array<i64: 1, 512>}, {transform_indices = @transform_4, window_bounds = array<i64: 1, 24, 512>}, {transform_indices = @transform_5, window_bounds = array<i64: 1, 24, 1>}, {transform_indices = @transform_6, window_bounds = array<i64: 1, 24, 1>}]} {
    %c0 = arith.constant 0 : index
    %c0_0 = arith.constant 0 : index
    %c0_1 = arith.constant 0 : index
    %0 = vector.load %arg1[%c0, %c0_0, %c0_1] : memref<1x8x558xbf16, #tpu.memory_space<vmem>>, vector<1x8x558xbf16>
    %1 = vector.shape_cast %0 : vector<1x8x558xbf16> to vector<8x558xbf16>
    %2 = arith.extf %1 : vector<8x558xbf16> to vector<8x558xf32>
    %3 = vector.extract_strided_slice %2 {offsets = [0, 0], sizes = [8, 512], strides = [1, 1]} : vector<8x558xf32> to vector<8x512xf32>
    %4 = vector.extract_strided_slice %2 {offsets = [0, 1], sizes = [8, 512], strides = [1, 1]} : vector<8x558xf32> to vector<8x512xf32>
    %5 = vector.extract_strided_slice %2 {offsets = [0, 2], sizes = [8, 512], strides = [1, 1]} : vector<8x558xf32> to vector<8x512xf32>
    %6 = vector.extract_strided_slice %2 {offsets = [0, 22], sizes = [8, 512], strides = [1, 1]} : vector<8x558xf32> to vector<8x512xf32>
    %7 = vector.extract_strided_slice %2 {offsets = [0, 23], sizes = [8, 512], strides = [1, 1]} : vector<8x558xf32> to vector<8x512xf32>
    %8 = vector.extract_strided_slice %2 {offsets = [0, 24], sizes = [8, 512], strides = [1, 1]} : vector<8x558xf32> to vector<8x512xf32>
    %9 = vector.extract_strided_slice %2 {offsets = [0, 44], sizes = [8, 512], strides = [1, 1]} : vector<8x558xf32> to vector<8x512xf32>
    %10 = vector.extract_strided_slice %2 {offsets = [0, 45], sizes = [8, 512], strides = [1, 1]} : vector<8x558xf32> to vector<8x512xf32>
    %11 = vector.extract_strided_slice %2 {offsets = [0, 46], sizes = [8, 512], strides = [1, 1]} : vector<8x558xf32> to vector<8x512xf32>
    %12 = tpu.concatenate %3, %4, %5, %6, %7, %8, %9, %10, %11 in 0 : vector<8x512xf32>, vector<8x512xf32>, vector<8x512xf32>, vector<8x512xf32>, vector<8x512xf32>, vector<8x512xf32>, vector<8x512xf32>, vector<8x512xf32>, vector<8x512xf32> -> vector<72x512xf32>
    %c0_2 = arith.constant 0 : index
    %c0_3 = arith.constant 0 : index
    %13 = vector.load %arg2[%c0_2, %c0_3] : memref<24x72xf32, #tpu.memory_space<vmem>>, vector<24x72xf32>
    %cst = arith.constant dense<0.000000e+00> : vector<24x512xf32>
    %14 = tpu.matmul %13, %12, %cst {dimension_numbers = #tpu.dot_dimension_numbers<[1], [0], [0], [1], [0, 0, 1, 1], [], []>} : vector<24x72xf32>, vector<72x512xf32>, vector<24x512xf32> -> vector<24x512xf32>
    %c0_4 = arith.constant 0 : index
    %c0_5 = arith.constant 0 : index
    %15 = vector.load %arg3[%c0_4, %c0_5] : memref<24x1xf32, #tpu.memory_space<vmem>>, vector<24x1xf32>
    %16 = vector.broadcast %15 : vector<24x1xf32> to vector<24x512xf32>
    %17 = arith.addf %14, %16 : vector<24x512xf32>
    %c0_6 = arith.constant 0 : index
    %c0_7 = arith.constant 0 : index
    %18 = vector.load %arg4[%c0_6, %c0_7] : memref<1x512xf32, #tpu.memory_space<vmem>>, vector<1x512xf32>
    %19 = vector.broadcast %18 : vector<1x512xf32> to vector<24x512xf32>
    %20 = arith.mulf %17, %19 : vector<24x512xf32>
    %cst_8 = arith.constant dense<0.000000e+00> : vector<24xf32>
    %21 = vector.multi_reduction <add>, %20, %cst_8 [1] : vector<24x512xf32> to vector<24xf32>
    %22 = vector.shape_cast %21 : vector<24xf32> to vector<24x1xf32>
    %c0_9 = arith.constant 0 : index
    %c0_10 = arith.constant 0 : index
    %c0_11 = arith.constant 0 : index
    %23 = vector.load %arg6[%c0_9, %c0_10, %c0_11] : memref<1x24x1xf32, #tpu.memory_space<vmem>>, vector<1x24x1xf32>
    %24 = vector.shape_cast %23 : vector<1x24x1xf32> to vector<24x1xf32>
    %25 = vector.shape_cast %22 : vector<24x1xf32> to vector<1x24x1xf32>
    tpu.vector_store %arg6[%c0_9, %c0_10, %c0_11], %25 {strides = array<i32>} : memref<1x24x1xf32, #tpu.memory_space<vmem>>, vector<1x24x1xf32>,
    %26 = arith.mulf %20, %17 : vector<24x512xf32>
    %cst_12 = arith.constant dense<0.000000e+00> : vector<24xf32>
    %27 = vector.multi_reduction <add>, %26, %cst_12 [1] : vector<24x512xf32> to vector<24xf32>
    %28 = vector.shape_cast %27 : vector<24xf32> to vector<24x1xf32>
    %c0_13 = arith.constant 0 : index
    %c0_14 = arith.constant 0 : index
    %c0_15 = arith.constant 0 : index
    %29 = vector.load %arg7[%c0_13, %c0_14, %c0_15] : memref<1x24x1xf32, #tpu.memory_space<vmem>>, vector<1x24x1xf32>
    %30 = vector.shape_cast %29 : vector<1x24x1xf32> to vector<24x1xf32>
    %31 = vector.shape_cast %28 : vector<24x1xf32> to vector<1x24x1xf32>
    tpu.vector_store %arg7[%c0_13, %c0_14, %c0_15], %31 {strides = array<i32>} : memref<1x24x1xf32, #tpu.memory_space<vmem>>, vector<1x24x1xf32>,
    %32 = arith.truncf %17 : vector<24x512xf32> to vector<24x512xbf16>
    %c0_16 = arith.constant 0 : index
    %c0_17 = arith.constant 0 : index
    %c0_18 = arith.constant 0 : index
    %33 = vector.load %arg5[%c0_16, %c0_17, %c0_18] : memref<1x24x512xbf16, #tpu.memory_space<vmem>>, vector<1x24x512xbf16>
    %34 = vector.shape_cast %33 : vector<1x24x512xbf16> to vector<24x512xbf16>
    %35 = vector.shape_cast %32 : vector<24x512xbf16> to vector<1x24x512xbf16>
    tpu.vector_store %arg5[%c0_16, %c0_17, %c0_18], %35 {strides = array<i32>} : memref<1x24x512xbf16, #tpu.memory_space<vmem>>, vector<1x24x512xbf16>,
    return
  }
  func.func @transform_0(%arg0: i32) -> (i32, i32, i32) {
    %c0_i32 = arith.constant 0 : i32
    %c0_i32_0 = arith.constant 0 : i32
    %c0_i32_1 = arith.constant 0 : i32
    return %arg0, %c0_i32, %c0_i32_0 : i32, i32, i32
  }
  func.func @transform_1(%arg0: i32) -> (i32, i32) {
    %c0_i32 = arith.constant 0 : i32
    %c0_i32_0 = arith.constant 0 : i32
    %c0_i32_1 = arith.constant 0 : i32
    return %c0_i32, %c0_i32_0 : i32, i32
  }
  func.func @transform_2(%arg0: i32) -> (i32, i32) {
    %c0_i32 = arith.constant 0 : i32
    %c0_i32_0 = arith.constant 0 : i32
    %c0_i32_1 = arith.constant 0 : i32
    return %c0_i32, %c0_i32_0 : i32, i32
  }
  func.func @transform_3(%arg0: i32) -> (i32, i32) {
    %c0_i32 = arith.constant 0 : i32
    %c0_i32_0 = arith.constant 0 : i32
    %c0_i32_1 = arith.constant 0 : i32
    return %c0_i32, %c0_i32_0 : i32, i32
  }
  func.func @transform_4(%arg0: i32) -> (i32, i32, i32) {
    %c0_i32 = arith.constant 0 : i32
    %c0_i32_0 = arith.constant 0 : i32
    %c0_i32_1 = arith.constant 0 : i32
    return %arg0, %c0_i32, %c0_i32_0 : i32, i32, i32
  }
  func.func @transform_5(%arg0: i32) -> (i32, i32, i32) {
    %c0_i32 = arith.constant 0 : i32
    %c0_i32_0 = arith.constant 0 : i32
    %c0_i32_1 = arith.constant 0 : i32
    return %arg0, %c0_i32, %c0_i32_0 : i32, i32, i32
  }
  func.func @transform_6(%arg0: i32) -> (i32, i32, i32) {
    %c0_i32 = arith.constant 0 : i32
    %c0_i32_0 = arith.constant 0 : i32
    %c0_i32_1 = arith.constant 0 : i32
    return %arg0, %c0_i32, %c0_i32_0 : i32, i32, i32
  }
}

module attributes {stable_mosaic.version = 11 : i64} {
  func.func @_k23_attention_kernel(%arg0: i32, %arg1: memref<1x24x512xbf16, #tpu.memory_space<vmem>>, %arg2: memref<24x1xf32, #tpu.memory_space<vmem>>, %arg3: memref<24x1xf32, #tpu.memory_space<vmem>>, %arg4: memref<1x512xf32, #tpu.memory_space<vmem>>, %arg5: memref<1x24x1xf32, #tpu.memory_space<vmem>>, %arg6: memref<2x49xf32, #tpu.memory_space<smem>>, %arg7: memref<1x24x512xf32, #tpu.memory_space<vmem>>) attributes {dimension_semantics = [#tpu.dimension_semantics<parallel>], iteration_bounds = array<i64: 2>, scalar_prefetch = 0 : i64, scratch_operands = 0 : i64, tpu.core_type = #tpu.core_type<tc>, window_params = [{transform_indices = @transform_0, window_bounds = array<i64: 1, 24, 512>}, {pipeline_mode = #tpu.pipeline_mode<synchronous>, transform_indices = @transform_1, window_bounds = array<i64: 24, 1>}, {pipeline_mode = #tpu.pipeline_mode<synchronous>, transform_indices = @transform_2, window_bounds = array<i64: 24, 1>}, {pipeline_mode = #tpu.pipeline_mode<synchronous>, transform_indices = @transform_3, window_bounds = array<i64: 1, 512>}, {transform_indices = @transform_4, window_bounds = array<i64: 1, 24, 1>}, {transform_indices = @transform_5, window_bounds = array<i64: 2, 49>}, {transform_indices = @transform_6, window_bounds = array<i64: 1, 24, 512>}]} {
    %c0 = arith.constant 0 : index
    %c0_0 = arith.constant 0 : index
    %c0_1 = arith.constant 0 : index
    %0 = vector.load %arg1[%c0, %c0_0, %c0_1] : memref<1x24x512xbf16, #tpu.memory_space<vmem>>, vector<1x24x512xbf16>
    %1 = vector.shape_cast %0 : vector<1x24x512xbf16> to vector<24x512xbf16>
    %2 = arith.extf %1 : vector<24x512xbf16> to vector<24x512xf32>
    %c0_2 = arith.constant 0 : index
    %c0_3 = arith.constant 0 : index
    %3 = vector.load %arg2[%c0_2, %c0_3] : memref<24x1xf32, #tpu.memory_space<vmem>>, vector<24x1xf32>
    %4 = vector.broadcast %3 : vector<24x1xf32> to vector<24x512xf32>
    %5 = arith.mulf %2, %4 : vector<24x512xf32>
    %c0_4 = arith.constant 0 : index
    %c0_5 = arith.constant 0 : index
    %6 = vector.load %arg3[%c0_4, %c0_5] : memref<24x1xf32, #tpu.memory_space<vmem>>, vector<24x1xf32>
    %7 = vector.broadcast %6 : vector<24x1xf32> to vector<24x512xf32>
    %8 = arith.addf %5, %7 : vector<24x512xf32>
    %cst = arith.constant 0.000000e+00 : f32
    %9 = vector.broadcast %cst : f32 to vector<24x512xf32>
    %10 = arith.maximumf %8, %9 : vector<24x512xf32>
    %c0_6 = arith.constant 0 : index
    %c0_7 = arith.constant 0 : index
    %11 = vector.load %arg4[%c0_6, %c0_7] : memref<1x512xf32, #tpu.memory_space<vmem>>, vector<1x512xf32>
    %12 = vector.broadcast %11 : vector<1x512xf32> to vector<24x512xf32>
    %13 = arith.mulf %10, %12 : vector<24x512xf32>
    %c0_8 = arith.constant 0 : index
    %c0_9 = arith.constant 0 : index
    %c0_10 = arith.constant 0 : index
    %14 = vector.load %arg5[%c0_8, %c0_9, %c0_10] : memref<1x24x1xf32, #tpu.memory_space<vmem>>, vector<1x24x1xf32>
    %15 = vector.shape_cast %14 : vector<1x24x1xf32> to vector<24x1xf32>
    %cst_11 = arith.constant 0.000000e+00 : f32
    %16 = vector.broadcast %cst_11 : f32 to vector<24x1xf32>
    %17 = arith.subf %16, %15 : vector<24x1xf32>
    %18 = math.exp %17 : vector<24x1xf32>
    %cst_12 = arith.constant 1.000000e+00 : f32
    %19 = vector.broadcast %cst_12 : f32 to vector<24x1xf32>
    %20 = arith.addf %19, %18 : vector<24x1xf32>
    %cst_13 = arith.constant 1.000000e+00 : f32
    %21 = vector.broadcast %cst_13 : f32 to vector<24x1xf32>
    %22 = arith.divf %21, %20 : vector<24x1xf32>
    %23 = vector.broadcast %22 : vector<24x1xf32> to vector<24x512xf32>
    %24 = arith.mulf %13, %23 : vector<24x512xf32>
    %cst_14 = arith.constant dense<0xFF800000> : vector<512xf32>
    %25 = vector.multi_reduction <maximumf>, %24, %cst_14 [0] : vector<24x512xf32> to vector<512xf32>
    %26 = vector.shape_cast %25 : vector<512xf32> to vector<1x512xf32>
    %cst_15 = arith.constant dense<0.000000e+00> : vector<512xf32>
    %27 = vector.multi_reduction <add>, %24, %cst_15 [0] : vector<24x512xf32> to vector<512xf32>
    %28 = vector.shape_cast %27 : vector<512xf32> to vector<1x512xf32>
    %cst_16 = arith.constant 2.400000e+01 : f32
    %29 = vector.broadcast %cst_16 : f32 to vector<1x512xf32>
    %30 = arith.divf %28, %29 : vector<1x512xf32>
    %cst_17 = arith.constant 0.000000e+00 : f32
    %31 = vector.broadcast %cst_17 : f32 to vector<1x512xf32>
    %c69_i32 = arith.constant 69 : i32
    %32 = tpu.dynamic_rotate %26 by %c69_i32 dim 1 : vector<1x512xf32>, i32 -> vector<1x512xf32>
    %c69_i32_18 = arith.constant 69 : i32
    %33 = tpu.dynamic_rotate %30 by %c69_i32_18 dim 1 : vector<1x512xf32>, i32 -> vector<1x512xf32>
    %c0_19 = arith.constant 0 : index
    %c0_20 = arith.constant 0 : index
    %34 = memref.load %arg6[%c0_19, %c0_20] : memref<2x49xf32, #tpu.memory_space<smem>>
    %35 = vector.broadcast %34 : f32 to vector<1x512xf32>
    %36 = arith.mulf %32, %35 : vector<1x512xf32>
    %37 = arith.addf %31, %36 : vector<1x512xf32>
    %c1 = arith.constant 1 : index
    %c0_21 = arith.constant 0 : index
    %38 = memref.load %arg6[%c1, %c0_21] : memref<2x49xf32, #tpu.memory_space<smem>>
    %39 = vector.broadcast %38 : f32 to vector<1x512xf32>
    %40 = arith.mulf %33, %39 : vector<1x512xf32>
    %41 = arith.addf %37, %40 : vector<1x512xf32>
    %c68_i32 = arith.constant 68 : i32
    %42 = tpu.dynamic_rotate %26 by %c68_i32 dim 1 : vector<1x512xf32>, i32 -> vector<1x512xf32>
    %c68_i32_22 = arith.constant 68 : i32
    %43 = tpu.dynamic_rotate %30 by %c68_i32_22 dim 1 : vector<1x512xf32>, i32 -> vector<1x512xf32>
    %c0_23 = arith.constant 0 : index
    %c1_24 = arith.constant 1 : index
    %44 = memref.load %arg6[%c0_23, %c1_24] : memref<2x49xf32, #tpu.memory_space<smem>>
    %45 = vector.broadcast %44 : f32 to vector<1x512xf32>
    %46 = arith.mulf %42, %45 : vector<1x512xf32>
    %47 = arith.addf %41, %46 : vector<1x512xf32>
    %c1_25 = arith.constant 1 : index
    %c1_26 = arith.constant 1 : index
    %48 = memref.load %arg6[%c1_25, %c1_26] : memref<2x49xf32, #tpu.memory_space<smem>>
    %49 = vector.broadcast %48 : f32 to vector<1x512xf32>
    %50 = arith.mulf %43, %49 : vector<1x512xf32>
    %51 = arith.addf %47, %50 : vector<1x512xf32>
    %c67_i32 = arith.constant 67 : i32
    %52 = tpu.dynamic_rotate %26 by %c67_i32 dim 1 : vector<1x512xf32>, i32 -> vector<1x512xf32>
    %c67_i32_27 = arith.constant 67 : i32
    %53 = tpu.dynamic_rotate %30 by %c67_i32_27 dim 1 : vector<1x512xf32>, i32 -> vector<1x512xf32>
    %c0_28 = arith.constant 0 : index
    %c2 = arith.constant 2 : index
    %54 = memref.load %arg6[%c0_28, %c2] : memref<2x49xf32, #tpu.memory_space<smem>>
    %55 = vector.broadcast %54 : f32 to vector<1x512xf32>
    %56 = arith.mulf %52, %55 : vector<1x512xf32>
    %57 = arith.addf %51, %56 : vector<1x512xf32>
    %c1_29 = arith.constant 1 : index
    %c2_30 = arith.constant 2 : index
    %58 = memref.load %arg6[%c1_29, %c2_30] : memref<2x49xf32, #tpu.memory_space<smem>>
    %59 = vector.broadcast %58 : f32 to vector<1x512xf32>
    %60 = arith.mulf %53, %59 : vector<1x512xf32>
    %61 = arith.addf %57, %60 : vector<1x512xf32>
    %c66_i32 = arith.constant 66 : i32
    %62 = tpu.dynamic_rotate %26 by %c66_i32 dim 1 : vector<1x512xf32>, i32 -> vector<1x512xf32>
    %c66_i32_31 = arith.constant 66 : i32
    %63 = tpu.dynamic_rotate %30 by %c66_i32_31 dim 1 : vector<1x512xf32>, i32 -> vector<1x512xf32>
    %c0_32 = arith.constant 0 : index
    %c3 = arith.constant 3 : index
    %64 = memref.load %arg6[%c0_32, %c3] : memref<2x49xf32, #tpu.memory_space<smem>>
    %65 = vector.broadcast %64 : f32 to vector<1x512xf32>
    %66 = arith.mulf %62, %65 : vector<1x512xf32>
    %67 = arith.addf %61, %66 : vector<1x512xf32>
    %c1_33 = arith.constant 1 : index
    %c3_34 = arith.constant 3 : index
    %68 = memref.load %arg6[%c1_33, %c3_34] : memref<2x49xf32, #tpu.memory_space<smem>>
    %69 = vector.broadcast %68 : f32 to vector<1x512xf32>
    %70 = arith.mulf %63, %69 : vector<1x512xf32>
    %71 = arith.addf %67, %70 : vector<1x512xf32>
    %c65_i32 = arith.constant 65 : i32
    %72 = tpu.dynamic_rotate %26 by %c65_i32 dim 1 : vector<1x512xf32>, i32 -> vector<1x512xf32>
    %c65_i32_35 = arith.constant 65 : i32
    %73 = tpu.dynamic_rotate %30 by %c65_i32_35 dim 1 : vector<1x512xf32>, i32 -> vector<1x512xf32>
    %c0_36 = arith.constant 0 : index
    %c4 = arith.constant 4 : index
    %74 = memref.load %arg6[%c0_36, %c4] : memref<2x49xf32, #tpu.memory_space<smem>>
    %75 = vector.broadcast %74 : f32 to vector<1x512xf32>
    %76 = arith.mulf %72, %75 : vector<1x512xf32>
    %77 = arith.addf %71, %76 : vector<1x512xf32>
    %c1_37 = arith.constant 1 : index
    %c4_38 = arith.constant 4 : index
    %78 = memref.load %arg6[%c1_37, %c4_38] : memref<2x49xf32, #tpu.memory_space<smem>>
    %79 = vector.broadcast %78 : f32 to vector<1x512xf32>
    %80 = arith.mulf %73, %79 : vector<1x512xf32>
    %81 = arith.addf %77, %80 : vector<1x512xf32>
    %c64_i32 = arith.constant 64 : i32
    %82 = tpu.dynamic_rotate %26 by %c64_i32 dim 1 : vector<1x512xf32>, i32 -> vector<1x512xf32>
    %c64_i32_39 = arith.constant 64 : i32
    %83 = tpu.dynamic_rotate %30 by %c64_i32_39 dim 1 : vector<1x512xf32>, i32 -> vector<1x512xf32>
    %c0_40 = arith.constant 0 : index
    %c5 = arith.constant 5 : index
    %84 = memref.load %arg6[%c0_40, %c5] : memref<2x49xf32, #tpu.memory_space<smem>>
    %85 = vector.broadcast %84 : f32 to vector<1x512xf32>
    %86 = arith.mulf %82, %85 : vector<1x512xf32>
    %87 = arith.addf %81, %86 : vector<1x512xf32>
    %c1_41 = arith.constant 1 : index
    %c5_42 = arith.constant 5 : index
    %88 = memref.load %arg6[%c1_41, %c5_42] : memref<2x49xf32, #tpu.memory_space<smem>>
    %89 = vector.broadcast %88 : f32 to vector<1x512xf32>
    %90 = arith.mulf %83, %89 : vector<1x512xf32>
    %91 = arith.addf %87, %90 : vector<1x512xf32>
    %c63_i32 = arith.constant 63 : i32
    %92 = tpu.dynamic_rotate %26 by %c63_i32 dim 1 : vector<1x512xf32>, i32 -> vector<1x512xf32>
    %c63_i32_43 = arith.constant 63 : i32
    %93 = tpu.dynamic_rotate %30 by %c63_i32_43 dim 1 : vector<1x512xf32>, i32 -> vector<1x512xf32>
    %c0_44 = arith.constant 0 : index
    %c6 = arith.constant 6 : index
    %94 = memref.load %arg6[%c0_44, %c6] : memref<2x49xf32, #tpu.memory_space<smem>>
    %95 = vector.broadcast %94 : f32 to vector<1x512xf32>
    %96 = arith.mulf %92, %95 : vector<1x512xf32>
    %97 = arith.addf %91, %96 : vector<1x512xf32>
    %c1_45 = arith.constant 1 : index
    %c6_46 = arith.constant 6 : index
    %98 = memref.load %arg6[%c1_45, %c6_46] : memref<2x49xf32, #tpu.memory_space<smem>>
    %99 = vector.broadcast %98 : f32 to vector<1x512xf32>
    %100 = arith.mulf %93, %99 : vector<1x512xf32>
    %101 = arith.addf %97, %100 : vector<1x512xf32>
    %c47_i32 = arith.constant 47 : i32
    %102 = tpu.dynamic_rotate %26 by %c47_i32 dim 1 : vector<1x512xf32>, i32 -> vector<1x512xf32>
    %c47_i32_47 = arith.constant 47 : i32
    %103 = tpu.dynamic_rotate %30 by %c47_i32_47 dim 1 : vector<1x512xf32>, i32 -> vector<1x512xf32>
    %c0_48 = arith.constant 0 : index
    %c7 = arith.constant 7 : index
    %104 = memref.load %arg6[%c0_48, %c7] : memref<2x49xf32, #tpu.memory_space<smem>>
    %105 = vector.broadcast %104 : f32 to vector<1x512xf32>
    %106 = arith.mulf %102, %105 : vector<1x512xf32>
    %107 = arith.addf %101, %106 : vector<1x512xf32>
    %c1_49 = arith.constant 1 : index
    %c7_50 = arith.constant 7 : index
    %108 = memref.load %arg6[%c1_49, %c7_50] : memref<2x49xf32, #tpu.memory_space<smem>>
    %109 = vector.broadcast %108 : f32 to vector<1x512xf32>
    %110 = arith.mulf %103, %109 : vector<1x512xf32>
    %111 = arith.addf %107, %110 : vector<1x512xf32>
    %c46_i32 = arith.constant 46 : i32
    %112 = tpu.dynamic_rotate %26 by %c46_i32 dim 1 : vector<1x512xf32>, i32 -> vector<1x512xf32>
    %c46_i32_51 = arith.constant 46 : i32
    %113 = tpu.dynamic_rotate %30 by %c46_i32_51 dim 1 : vector<1x512xf32>, i32 -> vector<1x512xf32>
    %c0_52 = arith.constant 0 : index
    %c8 = arith.constant 8 : index
    %114 = memref.load %arg6[%c0_52, %c8] : memref<2x49xf32, #tpu.memory_space<smem>>
    %115 = vector.broadcast %114 : f32 to vector<1x512xf32>
    %116 = arith.mulf %112, %115 : vector<1x512xf32>
    %117 = arith.addf %111, %116 : vector<1x512xf32>
    %c1_53 = arith.constant 1 : index
    %c8_54 = arith.constant 8 : index
    %118 = memref.load %arg6[%c1_53, %c8_54] : memref<2x49xf32, #tpu.memory_space<smem>>
    %119 = vector.broadcast %118 : f32 to vector<1x512xf32>
    %120 = arith.mulf %113, %119 : vector<1x512xf32>
    %121 = arith.addf %117, %120 : vector<1x512xf32>
    %c45_i32 = arith.constant 45 : i32
    %122 = tpu.dynamic_rotate %26 by %c45_i32 dim 1 : vector<1x512xf32>, i32 -> vector<1x512xf32>
    %c45_i32_55 = arith.constant 45 : i32
    %123 = tpu.dynamic_rotate %30 by %c45_i32_55 dim 1 : vector<1x512xf32>, i32 -> vector<1x512xf32>
    %c0_56 = arith.constant 0 : index
    %c9 = arith.constant 9 : index
    %124 = memref.load %arg6[%c0_56, %c9] : memref<2x49xf32, #tpu.memory_space<smem>>
    %125 = vector.broadcast %124 : f32 to vector<1x512xf32>
    %126 = arith.mulf %122, %125 : vector<1x512xf32>
    %127 = arith.addf %121, %126 : vector<1x512xf32>
    %c1_57 = arith.constant 1 : index
    %c9_58 = arith.constant 9 : index
    %128 = memref.load %arg6[%c1_57, %c9_58] : memref<2x49xf32, #tpu.memory_space<smem>>
    %129 = vector.broadcast %128 : f32 to vector<1x512xf32>
    %130 = arith.mulf %123, %129 : vector<1x512xf32>
    %131 = arith.addf %127, %130 : vector<1x512xf32>
    %c44_i32 = arith.constant 44 : i32
    %132 = tpu.dynamic_rotate %26 by %c44_i32 dim 1 : vector<1x512xf32>, i32 -> vector<1x512xf32>
    %c44_i32_59 = arith.constant 44 : i32
    %133 = tpu.dynamic_rotate %30 by %c44_i32_59 dim 1 : vector<1x512xf32>, i32 -> vector<1x512xf32>
    %c0_60 = arith.constant 0 : index
    %c10 = arith.constant 10 : index
    %134 = memref.load %arg6[%c0_60, %c10] : memref<2x49xf32, #tpu.memory_space<smem>>
    %135 = vector.broadcast %134 : f32 to vector<1x512xf32>
    %136 = arith.mulf %132, %135 : vector<1x512xf32>
    %137 = arith.addf %131, %136 : vector<1x512xf32>
    %c1_61 = arith.constant 1 : index
    %c10_62 = arith.constant 10 : index
    %138 = memref.load %arg6[%c1_61, %c10_62] : memref<2x49xf32, #tpu.memory_space<smem>>
    %139 = vector.broadcast %138 : f32 to vector<1x512xf32>
    %140 = arith.mulf %133, %139 : vector<1x512xf32>
    %141 = arith.addf %137, %140 : vector<1x512xf32>
    %c43_i32 = arith.constant 43 : i32
    %142 = tpu.dynamic_rotate %26 by %c43_i32 dim 1 : vector<1x512xf32>, i32 -> vector<1x512xf32>
    %c43_i32_63 = arith.constant 43 : i32
    %143 = tpu.dynamic_rotate %30 by %c43_i32_63 dim 1 : vector<1x512xf32>, i32 -> vector<1x512xf32>
    %c0_64 = arith.constant 0 : index
    %c11 = arith.constant 11 : index
    %144 = memref.load %arg6[%c0_64, %c11] : memref<2x49xf32, #tpu.memory_space<smem>>
    %145 = vector.broadcast %144 : f32 to vector<1x512xf32>
    %146 = arith.mulf %142, %145 : vector<1x512xf32>
    %147 = arith.addf %141, %146 : vector<1x512xf32>
    %c1_65 = arith.constant 1 : index
    %c11_66 = arith.constant 11 : index
    %148 = memref.load %arg6[%c1_65, %c11_66] : memref<2x49xf32, #tpu.memory_space<smem>>
    %149 = vector.broadcast %148 : f32 to vector<1x512xf32>
    %150 = arith.mulf %143, %149 : vector<1x512xf32>
    %151 = arith.addf %147, %150 : vector<1x512xf32>
    %c42_i32 = arith.constant 42 : i32
    %152 = tpu.dynamic_rotate %26 by %c42_i32 dim 1 : vector<1x512xf32>, i32 -> vector<1x512xf32>
    %c42_i32_67 = arith.constant 42 : i32
    %153 = tpu.dynamic_rotate %30 by %c42_i32_67 dim 1 : vector<1x512xf32>, i32 -> vector<1x512xf32>
    %c0_68 = arith.constant 0 : index
    %c12 = arith.constant 12 : index
    %154 = memref.load %arg6[%c0_68, %c12] : memref<2x49xf32, #tpu.memory_space<smem>>
    %155 = vector.broadcast %154 : f32 to vector<1x512xf32>
    %156 = arith.mulf %152, %155 : vector<1x512xf32>
    %157 = arith.addf %151, %156 : vector<1x512xf32>
    %c1_69 = arith.constant 1 : index
    %c12_70 = arith.constant 12 : index
    %158 = memref.load %arg6[%c1_69, %c12_70] : memref<2x49xf32, #tpu.memory_space<smem>>
    %159 = vector.broadcast %158 : f32 to vector<1x512xf32>
    %160 = arith.mulf %153, %159 : vector<1x512xf32>
    %161 = arith.addf %157, %160 : vector<1x512xf32>
    %c41_i32 = arith.constant 41 : i32
    %162 = tpu.dynamic_rotate %26 by %c41_i32 dim 1 : vector<1x512xf32>, i32 -> vector<1x512xf32>
    %c41_i32_71 = arith.constant 41 : i32
    %163 = tpu.dynamic_rotate %30 by %c41_i32_71 dim 1 : vector<1x512xf32>, i32 -> vector<1x512xf32>
    %c0_72 = arith.constant 0 : index
    %c13 = arith.constant 13 : index
    %164 = memref.load %arg6[%c0_72, %c13] : memref<2x49xf32, #tpu.memory_space<smem>>
    %165 = vector.broadcast %164 : f32 to vector<1x512xf32>
    %166 = arith.mulf %162, %165 : vector<1x512xf32>
    %167 = arith.addf %161, %166 : vector<1x512xf32>
    %c1_73 = arith.constant 1 : index
    %c13_74 = arith.constant 13 : index
    %168 = memref.load %arg6[%c1_73, %c13_74] : memref<2x49xf32, #tpu.memory_space<smem>>
    %169 = vector.broadcast %168 : f32 to vector<1x512xf32>
    %170 = arith.mulf %163, %169 : vector<1x512xf32>
    %171 = arith.addf %167, %170 : vector<1x512xf32>
    %c25_i32 = arith.constant 25 : i32
    %172 = tpu.dynamic_rotate %26 by %c25_i32 dim 1 : vector<1x512xf32>, i32 -> vector<1x512xf32>
    %c25_i32_75 = arith.constant 25 : i32
    %173 = tpu.dynamic_rotate %30 by %c25_i32_75 dim 1 : vector<1x512xf32>, i32 -> vector<1x512xf32>
    %c0_76 = arith.constant 0 : index
    %c14 = arith.constant 14 : index
    %174 = memref.load %arg6[%c0_76, %c14] : memref<2x49xf32, #tpu.memory_space<smem>>
    %175 = vector.broadcast %174 : f32 to vector<1x512xf32>
    %176 = arith.mulf %172, %175 : vector<1x512xf32>
    %177 = arith.addf %171, %176 : vector<1x512xf32>
    %c1_77 = arith.constant 1 : index
    %c14_78 = arith.constant 14 : index
    %178 = memref.load %arg6[%c1_77, %c14_78] : memref<2x49xf32, #tpu.memory_space<smem>>
    %179 = vector.broadcast %178 : f32 to vector<1x512xf32>
    %180 = arith.mulf %173, %179 : vector<1x512xf32>
    %181 = arith.addf %177, %180 : vector<1x512xf32>
    %c24_i32 = arith.constant 24 : i32
    %182 = tpu.dynamic_rotate %26 by %c24_i32 dim 1 : vector<1x512xf32>, i32 -> vector<1x512xf32>
    %c24_i32_79 = arith.constant 24 : i32
    %183 = tpu.dynamic_rotate %30 by %c24_i32_79 dim 1 : vector<1x512xf32>, i32 -> vector<1x512xf32>
    %c0_80 = arith.constant 0 : index
    %c15 = arith.constant 15 : index
    %184 = memref.load %arg6[%c0_80, %c15] : memref<2x49xf32, #tpu.memory_space<smem>>
    %185 = vector.broadcast %184 : f32 to vector<1x512xf32>
    %186 = arith.mulf %182, %185 : vector<1x512xf32>
    %187 = arith.addf %181, %186 : vector<1x512xf32>
    %c1_81 = arith.constant 1 : index
    %c15_82 = arith.constant 15 : index
    %188 = memref.load %arg6[%c1_81, %c15_82] : memref<2x49xf32, #tpu.memory_space<smem>>
    %189 = vector.broadcast %188 : f32 to vector<1x512xf32>
    %190 = arith.mulf %183, %189 : vector<1x512xf32>
    %191 = arith.addf %187, %190 : vector<1x512xf32>
    %c23_i32 = arith.constant 23 : i32
    %192 = tpu.dynamic_rotate %26 by %c23_i32 dim 1 : vector<1x512xf32>, i32 -> vector<1x512xf32>
    %c23_i32_83 = arith.constant 23 : i32
    %193 = tpu.dynamic_rotate %30 by %c23_i32_83 dim 1 : vector<1x512xf32>, i32 -> vector<1x512xf32>
    %c0_84 = arith.constant 0 : index
    %c16 = arith.constant 16 : index
    %194 = memref.load %arg6[%c0_84, %c16] : memref<2x49xf32, #tpu.memory_space<smem>>
    %195 = vector.broadcast %194 : f32 to vector<1x512xf32>
    %196 = arith.mulf %192, %195 : vector<1x512xf32>
    %197 = arith.addf %191, %196 : vector<1x512xf32>
    %c1_85 = arith.constant 1 : index
    %c16_86 = arith.constant 16 : index
    %198 = memref.load %arg6[%c1_85, %c16_86] : memref<2x49xf32, #tpu.memory_space<smem>>
    %199 = vector.broadcast %198 : f32 to vector<1x512xf32>
    %200 = arith.mulf %193, %199 : vector<1x512xf32>
    %201 = arith.addf %197, %200 : vector<1x512xf32>
    %c22_i32 = arith.constant 22 : i32
    %202 = tpu.dynamic_rotate %26 by %c22_i32 dim 1 : vector<1x512xf32>, i32 -> vector<1x512xf32>
    %c22_i32_87 = arith.constant 22 : i32
    %203 = tpu.dynamic_rotate %30 by %c22_i32_87 dim 1 : vector<1x512xf32>, i32 -> vector<1x512xf32>
    %c0_88 = arith.constant 0 : index
    %c17 = arith.constant 17 : index
    %204 = memref.load %arg6[%c0_88, %c17] : memref<2x49xf32, #tpu.memory_space<smem>>
    %205 = vector.broadcast %204 : f32 to vector<1x512xf32>
    %206 = arith.mulf %202, %205 : vector<1x512xf32>
    %207 = arith.addf %201, %206 : vector<1x512xf32>
    %c1_89 = arith.constant 1 : index
    %c17_90 = arith.constant 17 : index
    %208 = memref.load %arg6[%c1_89, %c17_90] : memref<2x49xf32, #tpu.memory_space<smem>>
    %209 = vector.broadcast %208 : f32 to vector<1x512xf32>
    %210 = arith.mulf %203, %209 : vector<1x512xf32>
    %211 = arith.addf %207, %210 : vector<1x512xf32>
    %c21_i32 = arith.constant 21 : i32
    %212 = tpu.dynamic_rotate %26 by %c21_i32 dim 1 : vector<1x512xf32>, i32 -> vector<1x512xf32>
    %c21_i32_91 = arith.constant 21 : i32
    %213 = tpu.dynamic_rotate %30 by %c21_i32_91 dim 1 : vector<1x512xf32>, i32 -> vector<1x512xf32>
    %c0_92 = arith.constant 0 : index
    %c18 = arith.constant 18 : index
    %214 = memref.load %arg6[%c0_92, %c18] : memref<2x49xf32, #tpu.memory_space<smem>>
    %215 = vector.broadcast %214 : f32 to vector<1x512xf32>
    %216 = arith.mulf %212, %215 : vector<1x512xf32>
    %217 = arith.addf %211, %216 : vector<1x512xf32>
    %c1_93 = arith.constant 1 : index
    %c18_94 = arith.constant 18 : index
    %218 = memref.load %arg6[%c1_93, %c18_94] : memref<2x49xf32, #tpu.memory_space<smem>>
    %219 = vector.broadcast %218 : f32 to vector<1x512xf32>
    %220 = arith.mulf %213, %219 : vector<1x512xf32>
    %221 = arith.addf %217, %220 : vector<1x512xf32>
    %c20_i32 = arith.constant 20 : i32
    %222 = tpu.dynamic_rotate %26 by %c20_i32 dim 1 : vector<1x512xf32>, i32 -> vector<1x512xf32>
    %c20_i32_95 = arith.constant 20 : i32
    %223 = tpu.dynamic_rotate %30 by %c20_i32_95 dim 1 : vector<1x512xf32>, i32 -> vector<1x512xf32>
    %c0_96 = arith.constant 0 : index
    %c19 = arith.constant 19 : index
    %224 = memref.load %arg6[%c0_96, %c19] : memref<2x49xf32, #tpu.memory_space<smem>>
    %225 = vector.broadcast %224 : f32 to vector<1x512xf32>
    %226 = arith.mulf %222, %225 : vector<1x512xf32>
    %227 = arith.addf %221, %226 : vector<1x512xf32>
    %c1_97 = arith.constant 1 : index
    %c19_98 = arith.constant 19 : index
    %228 = memref.load %arg6[%c1_97, %c19_98] : memref<2x49xf32, #tpu.memory_space<smem>>
    %229 = vector.broadcast %228 : f32 to vector<1x512xf32>
    %230 = arith.mulf %223, %229 : vector<1x512xf32>
    %231 = arith.addf %227, %230 : vector<1x512xf32>
    %c19_i32 = arith.constant 19 : i32
    %232 = tpu.dynamic_rotate %26 by %c19_i32 dim 1 : vector<1x512xf32>, i32 -> vector<1x512xf32>
    %c19_i32_99 = arith.constant 19 : i32
    %233 = tpu.dynamic_rotate %30 by %c19_i32_99 dim 1 : vector<1x512xf32>, i32 -> vector<1x512xf32>
    %c0_100 = arith.constant 0 : index
    %c20 = arith.constant 20 : index
    %234 = memref.load %arg6[%c0_100, %c20] : memref<2x49xf32, #tpu.memory_space<smem>>
    %235 = vector.broadcast %234 : f32 to vector<1x512xf32>
    %236 = arith.mulf %232, %235 : vector<1x512xf32>
    %237 = arith.addf %231, %236 : vector<1x512xf32>
    %c1_101 = arith.constant 1 : index
    %c20_102 = arith.constant 20 : index
    %238 = memref.load %arg6[%c1_101, %c20_102] : memref<2x49xf32, #tpu.memory_space<smem>>
    %239 = vector.broadcast %238 : f32 to vector<1x512xf32>
    %240 = arith.mulf %233, %239 : vector<1x512xf32>
    %241 = arith.addf %237, %240 : vector<1x512xf32>
    %c3_i32 = arith.constant 3 : i32
    %242 = tpu.dynamic_rotate %26 by %c3_i32 dim 1 : vector<1x512xf32>, i32 -> vector<1x512xf32>
    %c3_i32_103 = arith.constant 3 : i32
    %243 = tpu.dynamic_rotate %30 by %c3_i32_103 dim 1 : vector<1x512xf32>, i32 -> vector<1x512xf32>
    %c0_104 = arith.constant 0 : index
    %c21 = arith.constant 21 : index
    %244 = memref.load %arg6[%c0_104, %c21] : memref<2x49xf32, #tpu.memory_space<smem>>
    %245 = vector.broadcast %244 : f32 to vector<1x512xf32>
    %246 = arith.mulf %242, %245 : vector<1x512xf32>
    %247 = arith.addf %241, %246 : vector<1x512xf32>
    %c1_105 = arith.constant 1 : index
    %c21_106 = arith.constant 21 : index
    %248 = memref.load %arg6[%c1_105, %c21_106] : memref<2x49xf32, #tpu.memory_space<smem>>
    %249 = vector.broadcast %248 : f32 to vector<1x512xf32>
    %250 = arith.mulf %243, %249 : vector<1x512xf32>
    %251 = arith.addf %247, %250 : vector<1x512xf32>
    %c2_i32 = arith.constant 2 : i32
    %252 = tpu.dynamic_rotate %26 by %c2_i32 dim 1 : vector<1x512xf32>, i32 -> vector<1x512xf32>
    %c2_i32_107 = arith.constant 2 : i32
    %253 = tpu.dynamic_rotate %30 by %c2_i32_107 dim 1 : vector<1x512xf32>, i32 -> vector<1x512xf32>
    %c0_108 = arith.constant 0 : index
    %c22 = arith.constant 22 : index
    %254 = memref.load %arg6[%c0_108, %c22] : memref<2x49xf32, #tpu.memory_space<smem>>
    %255 = vector.broadcast %254 : f32 to vector<1x512xf32>
    %256 = arith.mulf %252, %255 : vector<1x512xf32>
    %257 = arith.addf %251, %256 : vector<1x512xf32>
    %c1_109 = arith.constant 1 : index
    %c22_110 = arith.constant 22 : index
    %258 = memref.load %arg6[%c1_109, %c22_110] : memref<2x49xf32, #tpu.memory_space<smem>>
    %259 = vector.broadcast %258 : f32 to vector<1x512xf32>
    %260 = arith.mulf %253, %259 : vector<1x512xf32>
    %261 = arith.addf %257, %260 : vector<1x512xf32>
    %c1_i32 = arith.constant 1 : i32
    %262 = tpu.dynamic_rotate %26 by %c1_i32 dim 1 : vector<1x512xf32>, i32 -> vector<1x512xf32>
    %c1_i32_111 = arith.constant 1 : i32
    %263 = tpu.dynamic_rotate %30 by %c1_i32_111 dim 1 : vector<1x512xf32>, i32 -> vector<1x512xf32>
    %c0_112 = arith.constant 0 : index
    %c23 = arith.constant 23 : index
    %264 = memref.load %arg6[%c0_112, %c23] : memref<2x49xf32, #tpu.memory_space<smem>>
    %265 = vector.broadcast %264 : f32 to vector<1x512xf32>
    %266 = arith.mulf %262, %265 : vector<1x512xf32>
    %267 = arith.addf %261, %266 : vector<1x512xf32>
    %c1_113 = arith.constant 1 : index
    %c23_114 = arith.constant 23 : index
    %268 = memref.load %arg6[%c1_113, %c23_114] : memref<2x49xf32, #tpu.memory_space<smem>>
    %269 = vector.broadcast %268 : f32 to vector<1x512xf32>
    %270 = arith.mulf %263, %269 : vector<1x512xf32>
    %271 = arith.addf %267, %270 : vector<1x512xf32>
    %c0_115 = arith.constant 0 : index
    %c24 = arith.constant 24 : index
    %272 = memref.load %arg6[%c0_115, %c24] : memref<2x49xf32, #tpu.memory_space<smem>>
    %273 = vector.broadcast %272 : f32 to vector<1x512xf32>
    %274 = arith.mulf %26, %273 : vector<1x512xf32>
    %275 = arith.addf %271, %274 : vector<1x512xf32>
    %c1_116 = arith.constant 1 : index
    %c24_117 = arith.constant 24 : index
    %276 = memref.load %arg6[%c1_116, %c24_117] : memref<2x49xf32, #tpu.memory_space<smem>>
    %277 = vector.broadcast %276 : f32 to vector<1x512xf32>
    %278 = arith.mulf %30, %277 : vector<1x512xf32>
    %279 = arith.addf %275, %278 : vector<1x512xf32>
    %c511_i32 = arith.constant 511 : i32
    %280 = tpu.dynamic_rotate %26 by %c511_i32 dim 1 : vector<1x512xf32>, i32 -> vector<1x512xf32>
    %c511_i32_118 = arith.constant 511 : i32
    %281 = tpu.dynamic_rotate %30 by %c511_i32_118 dim 1 : vector<1x512xf32>, i32 -> vector<1x512xf32>
    %c0_119 = arith.constant 0 : index
    %c25 = arith.constant 25 : index
    %282 = memref.load %arg6[%c0_119, %c25] : memref<2x49xf32, #tpu.memory_space<smem>>
    %283 = vector.broadcast %282 : f32 to vector<1x512xf32>
    %284 = arith.mulf %280, %283 : vector<1x512xf32>
    %285 = arith.addf %279, %284 : vector<1x512xf32>
    %c1_120 = arith.constant 1 : index
    %c25_121 = arith.constant 25 : index
    %286 = memref.load %arg6[%c1_120, %c25_121] : memref<2x49xf32, #tpu.memory_space<smem>>
    %287 = vector.broadcast %286 : f32 to vector<1x512xf32>
    %288 = arith.mulf %281, %287 : vector<1x512xf32>
    %289 = arith.addf %285, %288 : vector<1x512xf32>
    %c510_i32 = arith.constant 510 : i32
    %290 = tpu.dynamic_rotate %26 by %c510_i32 dim 1 : vector<1x512xf32>, i32 -> vector<1x512xf32>
    %c510_i32_122 = arith.constant 510 : i32
    %291 = tpu.dynamic_rotate %30 by %c510_i32_122 dim 1 : vector<1x512xf32>, i32 -> vector<1x512xf32>
    %c0_123 = arith.constant 0 : index
    %c26 = arith.constant 26 : index
    %292 = memref.load %arg6[%c0_123, %c26] : memref<2x49xf32, #tpu.memory_space<smem>>
    %293 = vector.broadcast %292 : f32 to vector<1x512xf32>
    %294 = arith.mulf %290, %293 : vector<1x512xf32>
    %295 = arith.addf %289, %294 : vector<1x512xf32>
    %c1_124 = arith.constant 1 : index
    %c26_125 = arith.constant 26 : index
    %296 = memref.load %arg6[%c1_124, %c26_125] : memref<2x49xf32, #tpu.memory_space<smem>>
    %297 = vector.broadcast %296 : f32 to vector<1x512xf32>
    %298 = arith.mulf %291, %297 : vector<1x512xf32>
    %299 = arith.addf %295, %298 : vector<1x512xf32>
    %c509_i32 = arith.constant 509 : i32
    %300 = tpu.dynamic_rotate %26 by %c509_i32 dim 1 : vector<1x512xf32>, i32 -> vector<1x512xf32>
    %c509_i32_126 = arith.constant 509 : i32
    %301 = tpu.dynamic_rotate %30 by %c509_i32_126 dim 1 : vector<1x512xf32>, i32 -> vector<1x512xf32>
    %c0_127 = arith.constant 0 : index
    %c27 = arith.constant 27 : index
    %302 = memref.load %arg6[%c0_127, %c27] : memref<2x49xf32, #tpu.memory_space<smem>>
    %303 = vector.broadcast %302 : f32 to vector<1x512xf32>
    %304 = arith.mulf %300, %303 : vector<1x512xf32>
    %305 = arith.addf %299, %304 : vector<1x512xf32>
    %c1_128 = arith.constant 1 : index
    %c27_129 = arith.constant 27 : index
    %306 = memref.load %arg6[%c1_128, %c27_129] : memref<2x49xf32, #tpu.memory_space<smem>>
    %307 = vector.broadcast %306 : f32 to vector<1x512xf32>
    %308 = arith.mulf %301, %307 : vector<1x512xf32>
    %309 = arith.addf %305, %308 : vector<1x512xf32>
    %c493_i32 = arith.constant 493 : i32
    %310 = tpu.dynamic_rotate %26 by %c493_i32 dim 1 : vector<1x512xf32>, i32 -> vector<1x512xf32>
    %c493_i32_130 = arith.constant 493 : i32
    %311 = tpu.dynamic_rotate %30 by %c493_i32_130 dim 1 : vector<1x512xf32>, i32 -> vector<1x512xf32>
    %c0_131 = arith.constant 0 : index
    %c28 = arith.constant 28 : index
    %312 = memref.load %arg6[%c0_131, %c28] : memref<2x49xf32, #tpu.memory_space<smem>>
    %313 = vector.broadcast %312 : f32 to vector<1x512xf32>
    %314 = arith.mulf %310, %313 : vector<1x512xf32>
    %315 = arith.addf %309, %314 : vector<1x512xf32>
    %c1_132 = arith.constant 1 : index
    %c28_133 = arith.constant 28 : index
    %316 = memref.load %arg6[%c1_132, %c28_133] : memref<2x49xf32, #tpu.memory_space<smem>>
    %317 = vector.broadcast %316 : f32 to vector<1x512xf32>
    %318 = arith.mulf %311, %317 : vector<1x512xf32>
    %319 = arith.addf %315, %318 : vector<1x512xf32>
    %c492_i32 = arith.constant 492 : i32
    %320 = tpu.dynamic_rotate %26 by %c492_i32 dim 1 : vector<1x512xf32>, i32 -> vector<1x512xf32>
    %c492_i32_134 = arith.constant 492 : i32
    %321 = tpu.dynamic_rotate %30 by %c492_i32_134 dim 1 : vector<1x512xf32>, i32 -> vector<1x512xf32>
    %c0_135 = arith.constant 0 : index
    %c29 = arith.constant 29 : index
    %322 = memref.load %arg6[%c0_135, %c29] : memref<2x49xf32, #tpu.memory_space<smem>>
    %323 = vector.broadcast %322 : f32 to vector<1x512xf32>
    %324 = arith.mulf %320, %323 : vector<1x512xf32>
    %325 = arith.addf %319, %324 : vector<1x512xf32>
    %c1_136 = arith.constant 1 : index
    %c29_137 = arith.constant 29 : index
    %326 = memref.load %arg6[%c1_136, %c29_137] : memref<2x49xf32, #tpu.memory_space<smem>>
    %327 = vector.broadcast %326 : f32 to vector<1x512xf32>
    %328 = arith.mulf %321, %327 : vector<1x512xf32>
    %329 = arith.addf %325, %328 : vector<1x512xf32>
    %c491_i32 = arith.constant 491 : i32
    %330 = tpu.dynamic_rotate %26 by %c491_i32 dim 1 : vector<1x512xf32>, i32 -> vector<1x512xf32>
    %c491_i32_138 = arith.constant 491 : i32
    %331 = tpu.dynamic_rotate %30 by %c491_i32_138 dim 1 : vector<1x512xf32>, i32 -> vector<1x512xf32>
    %c0_139 = arith.constant 0 : index
    %c30 = arith.constant 30 : index
    %332 = memref.load %arg6[%c0_139, %c30] : memref<2x49xf32, #tpu.memory_space<smem>>
    %333 = vector.broadcast %332 : f32 to vector<1x512xf32>
    %334 = arith.mulf %330, %333 : vector<1x512xf32>
    %335 = arith.addf %329, %334 : vector<1x512xf32>
    %c1_140 = arith.constant 1 : index
    %c30_141 = arith.constant 30 : index
    %336 = memref.load %arg6[%c1_140, %c30_141] : memref<2x49xf32, #tpu.memory_space<smem>>
    %337 = vector.broadcast %336 : f32 to vector<1x512xf32>
    %338 = arith.mulf %331, %337 : vector<1x512xf32>
    %339 = arith.addf %335, %338 : vector<1x512xf32>
    %c490_i32 = arith.constant 490 : i32
    %340 = tpu.dynamic_rotate %26 by %c490_i32 dim 1 : vector<1x512xf32>, i32 -> vector<1x512xf32>
    %c490_i32_142 = arith.constant 490 : i32
    %341 = tpu.dynamic_rotate %30 by %c490_i32_142 dim 1 : vector<1x512xf32>, i32 -> vector<1x512xf32>
    %c0_143 = arith.constant 0 : index
    %c31 = arith.constant 31 : index
    %342 = memref.load %arg6[%c0_143, %c31] : memref<2x49xf32, #tpu.memory_space<smem>>
    %343 = vector.broadcast %342 : f32 to vector<1x512xf32>
    %344 = arith.mulf %340, %343 : vector<1x512xf32>
    %345 = arith.addf %339, %344 : vector<1x512xf32>
    %c1_144 = arith.constant 1 : index
    %c31_145 = arith.constant 31 : index
    %346 = memref.load %arg6[%c1_144, %c31_145] : memref<2x49xf32, #tpu.memory_space<smem>>
    %347 = vector.broadcast %346 : f32 to vector<1x512xf32>
    %348 = arith.mulf %341, %347 : vector<1x512xf32>
    %349 = arith.addf %345, %348 : vector<1x512xf32>
    %c489_i32 = arith.constant 489 : i32
    %350 = tpu.dynamic_rotate %26 by %c489_i32 dim 1 : vector<1x512xf32>, i32 -> vector<1x512xf32>
    %c489_i32_146 = arith.constant 489 : i32
    %351 = tpu.dynamic_rotate %30 by %c489_i32_146 dim 1 : vector<1x512xf32>, i32 -> vector<1x512xf32>
    %c0_147 = arith.constant 0 : index
    %c32 = arith.constant 32 : index
    %352 = memref.load %arg6[%c0_147, %c32] : memref<2x49xf32, #tpu.memory_space<smem>>
    %353 = vector.broadcast %352 : f32 to vector<1x512xf32>
    %354 = arith.mulf %350, %353 : vector<1x512xf32>
    %355 = arith.addf %349, %354 : vector<1x512xf32>
    %c1_148 = arith.constant 1 : index
    %c32_149 = arith.constant 32 : index
    %356 = memref.load %arg6[%c1_148, %c32_149] : memref<2x49xf32, #tpu.memory_space<smem>>
    %357 = vector.broadcast %356 : f32 to vector<1x512xf32>
    %358 = arith.mulf %351, %357 : vector<1x512xf32>
    %359 = arith.addf %355, %358 : vector<1x512xf32>
    %c488_i32 = arith.constant 488 : i32
    %360 = tpu.dynamic_rotate %26 by %c488_i32 dim 1 : vector<1x512xf32>, i32 -> vector<1x512xf32>
    %c488_i32_150 = arith.constant 488 : i32
    %361 = tpu.dynamic_rotate %30 by %c488_i32_150 dim 1 : vector<1x512xf32>, i32 -> vector<1x512xf32>
    %c0_151 = arith.constant 0 : index
    %c33 = arith.constant 33 : index
    %362 = memref.load %arg6[%c0_151, %c33] : memref<2x49xf32, #tpu.memory_space<smem>>
    %363 = vector.broadcast %362 : f32 to vector<1x512xf32>
    %364 = arith.mulf %360, %363 : vector<1x512xf32>
    %365 = arith.addf %359, %364 : vector<1x512xf32>
    %c1_152 = arith.constant 1 : index
    %c33_153 = arith.constant 33 : index
    %366 = memref.load %arg6[%c1_152, %c33_153] : memref<2x49xf32, #tpu.memory_space<smem>>
    %367 = vector.broadcast %366 : f32 to vector<1x512xf32>
    %368 = arith.mulf %361, %367 : vector<1x512xf32>
    %369 = arith.addf %365, %368 : vector<1x512xf32>
    %c487_i32 = arith.constant 487 : i32
    %370 = tpu.dynamic_rotate %26 by %c487_i32 dim 1 : vector<1x512xf32>, i32 -> vector<1x512xf32>
    %c487_i32_154 = arith.constant 487 : i32
    %371 = tpu.dynamic_rotate %30 by %c487_i32_154 dim 1 : vector<1x512xf32>, i32 -> vector<1x512xf32>
    %c0_155 = arith.constant 0 : index
    %c34 = arith.constant 34 : index
    %372 = memref.load %arg6[%c0_155, %c34] : memref<2x49xf32, #tpu.memory_space<smem>>
    %373 = vector.broadcast %372 : f32 to vector<1x512xf32>
    %374 = arith.mulf %370, %373 : vector<1x512xf32>
    %375 = arith.addf %369, %374 : vector<1x512xf32>
    %c1_156 = arith.constant 1 : index
    %c34_157 = arith.constant 34 : index
    %376 = memref.load %arg6[%c1_156, %c34_157] : memref<2x49xf32, #tpu.memory_space<smem>>
    %377 = vector.broadcast %376 : f32 to vector<1x512xf32>
    %378 = arith.mulf %371, %377 : vector<1x512xf32>
    %379 = arith.addf %375, %378 : vector<1x512xf32>
    %c471_i32 = arith.constant 471 : i32
    %380 = tpu.dynamic_rotate %26 by %c471_i32 dim 1 : vector<1x512xf32>, i32 -> vector<1x512xf32>
    %c471_i32_158 = arith.constant 471 : i32
    %381 = tpu.dynamic_rotate %30 by %c471_i32_158 dim 1 : vector<1x512xf32>, i32 -> vector<1x512xf32>
    %c0_159 = arith.constant 0 : index
    %c35 = arith.constant 35 : index
    %382 = memref.load %arg6[%c0_159, %c35] : memref<2x49xf32, #tpu.memory_space<smem>>
    %383 = vector.broadcast %382 : f32 to vector<1x512xf32>
    %384 = arith.mulf %380, %383 : vector<1x512xf32>
    %385 = arith.addf %379, %384 : vector<1x512xf32>
    %c1_160 = arith.constant 1 : index
    %c35_161 = arith.constant 35 : index
    %386 = memref.load %arg6[%c1_160, %c35_161] : memref<2x49xf32, #tpu.memory_space<smem>>
    %387 = vector.broadcast %386 : f32 to vector<1x512xf32>
    %388 = arith.mulf %381, %387 : vector<1x512xf32>
    %389 = arith.addf %385, %388 : vector<1x512xf32>
    %c470_i32 = arith.constant 470 : i32
    %390 = tpu.dynamic_rotate %26 by %c470_i32 dim 1 : vector<1x512xf32>, i32 -> vector<1x512xf32>
    %c470_i32_162 = arith.constant 470 : i32
    %391 = tpu.dynamic_rotate %30 by %c470_i32_162 dim 1 : vector<1x512xf32>, i32 -> vector<1x512xf32>
    %c0_163 = arith.constant 0 : index
    %c36 = arith.constant 36 : index
    %392 = memref.load %arg6[%c0_163, %c36] : memref<2x49xf32, #tpu.memory_space<smem>>
    %393 = vector.broadcast %392 : f32 to vector<1x512xf32>
    %394 = arith.mulf %390, %393 : vector<1x512xf32>
    %395 = arith.addf %389, %394 : vector<1x512xf32>
    %c1_164 = arith.constant 1 : index
    %c36_165 = arith.constant 36 : index
    %396 = memref.load %arg6[%c1_164, %c36_165] : memref<2x49xf32, #tpu.memory_space<smem>>
    %397 = vector.broadcast %396 : f32 to vector<1x512xf32>
    %398 = arith.mulf %391, %397 : vector<1x512xf32>
    %399 = arith.addf %395, %398 : vector<1x512xf32>
    %c469_i32 = arith.constant 469 : i32
    %400 = tpu.dynamic_rotate %26 by %c469_i32 dim 1 : vector<1x512xf32>, i32 -> vector<1x512xf32>
    %c469_i32_166 = arith.constant 469 : i32
    %401 = tpu.dynamic_rotate %30 by %c469_i32_166 dim 1 : vector<1x512xf32>, i32 -> vector<1x512xf32>
    %c0_167 = arith.constant 0 : index
    %c37 = arith.constant 37 : index
    %402 = memref.load %arg6[%c0_167, %c37] : memref<2x49xf32, #tpu.memory_space<smem>>
    %403 = vector.broadcast %402 : f32 to vector<1x512xf32>
    %404 = arith.mulf %400, %403 : vector<1x512xf32>
    %405 = arith.addf %399, %404 : vector<1x512xf32>
    %c1_168 = arith.constant 1 : index
    %c37_169 = arith.constant 37 : index
    %406 = memref.load %arg6[%c1_168, %c37_169] : memref<2x49xf32, #tpu.memory_space<smem>>
    %407 = vector.broadcast %406 : f32 to vector<1x512xf32>
    %408 = arith.mulf %401, %407 : vector<1x512xf32>
    %409 = arith.addf %405, %408 : vector<1x512xf32>
    %c468_i32 = arith.constant 468 : i32
    %410 = tpu.dynamic_rotate %26 by %c468_i32 dim 1 : vector<1x512xf32>, i32 -> vector<1x512xf32>
    %c468_i32_170 = arith.constant 468 : i32
    %411 = tpu.dynamic_rotate %30 by %c468_i32_170 dim 1 : vector<1x512xf32>, i32 -> vector<1x512xf32>
    %c0_171 = arith.constant 0 : index
    %c38 = arith.constant 38 : index
    %412 = memref.load %arg6[%c0_171, %c38] : memref<2x49xf32, #tpu.memory_space<smem>>
    %413 = vector.broadcast %412 : f32 to vector<1x512xf32>
    %414 = arith.mulf %410, %413 : vector<1x512xf32>
    %415 = arith.addf %409, %414 : vector<1x512xf32>
    %c1_172 = arith.constant 1 : index
    %c38_173 = arith.constant 38 : index
    %416 = memref.load %arg6[%c1_172, %c38_173] : memref<2x49xf32, #tpu.memory_space<smem>>
    %417 = vector.broadcast %416 : f32 to vector<1x512xf32>
    %418 = arith.mulf %411, %417 : vector<1x512xf32>
    %419 = arith.addf %415, %418 : vector<1x512xf32>
    %c467_i32 = arith.constant 467 : i32
    %420 = tpu.dynamic_rotate %26 by %c467_i32 dim 1 : vector<1x512xf32>, i32 -> vector<1x512xf32>
    %c467_i32_174 = arith.constant 467 : i32
    %421 = tpu.dynamic_rotate %30 by %c467_i32_174 dim 1 : vector<1x512xf32>, i32 -> vector<1x512xf32>
    %c0_175 = arith.constant 0 : index
    %c39 = arith.constant 39 : index
    %422 = memref.load %arg6[%c0_175, %c39] : memref<2x49xf32, #tpu.memory_space<smem>>
    %423 = vector.broadcast %422 : f32 to vector<1x512xf32>
    %424 = arith.mulf %420, %423 : vector<1x512xf32>
    %425 = arith.addf %419, %424 : vector<1x512xf32>
    %c1_176 = arith.constant 1 : index
    %c39_177 = arith.constant 39 : index
    %426 = memref.load %arg6[%c1_176, %c39_177] : memref<2x49xf32, #tpu.memory_space<smem>>
    %427 = vector.broadcast %426 : f32 to vector<1x512xf32>
    %428 = arith.mulf %421, %427 : vector<1x512xf32>
    %429 = arith.addf %425, %428 : vector<1x512xf32>
    %c466_i32 = arith.constant 466 : i32
    %430 = tpu.dynamic_rotate %26 by %c466_i32 dim 1 : vector<1x512xf32>, i32 -> vector<1x512xf32>
    %c466_i32_178 = arith.constant 466 : i32
    %431 = tpu.dynamic_rotate %30 by %c466_i32_178 dim 1 : vector<1x512xf32>, i32 -> vector<1x512xf32>
    %c0_179 = arith.constant 0 : index
    %c40 = arith.constant 40 : index
    %432 = memref.load %arg6[%c0_179, %c40] : memref<2x49xf32, #tpu.memory_space<smem>>
    %433 = vector.broadcast %432 : f32 to vector<1x512xf32>
    %434 = arith.mulf %430, %433 : vector<1x512xf32>
    %435 = arith.addf %429, %434 : vector<1x512xf32>
    %c1_180 = arith.constant 1 : index
    %c40_181 = arith.constant 40 : index
    %436 = memref.load %arg6[%c1_180, %c40_181] : memref<2x49xf32, #tpu.memory_space<smem>>
    %437 = vector.broadcast %436 : f32 to vector<1x512xf32>
    %438 = arith.mulf %431, %437 : vector<1x512xf32>
    %439 = arith.addf %435, %438 : vector<1x512xf32>
    %c465_i32 = arith.constant 465 : i32
    %440 = tpu.dynamic_rotate %26 by %c465_i32 dim 1 : vector<1x512xf32>, i32 -> vector<1x512xf32>
    %c465_i32_182 = arith.constant 465 : i32
    %441 = tpu.dynamic_rotate %30 by %c465_i32_182 dim 1 : vector<1x512xf32>, i32 -> vector<1x512xf32>
    %c0_183 = arith.constant 0 : index
    %c41 = arith.constant 41 : index
    %442 = memref.load %arg6[%c0_183, %c41] : memref<2x49xf32, #tpu.memory_space<smem>>
    %443 = vector.broadcast %442 : f32 to vector<1x512xf32>
    %444 = arith.mulf %440, %443 : vector<1x512xf32>
    %445 = arith.addf %439, %444 : vector<1x512xf32>
    %c1_184 = arith.constant 1 : index
    %c41_185 = arith.constant 41 : index
    %446 = memref.load %arg6[%c1_184, %c41_185] : memref<2x49xf32, #tpu.memory_space<smem>>
    %447 = vector.broadcast %446 : f32 to vector<1x512xf32>
    %448 = arith.mulf %441, %447 : vector<1x512xf32>
    %449 = arith.addf %445, %448 : vector<1x512xf32>
    %c449_i32 = arith.constant 449 : i32
    %450 = tpu.dynamic_rotate %26 by %c449_i32 dim 1 : vector<1x512xf32>, i32 -> vector<1x512xf32>
    %c449_i32_186 = arith.constant 449 : i32
    %451 = tpu.dynamic_rotate %30 by %c449_i32_186 dim 1 : vector<1x512xf32>, i32 -> vector<1x512xf32>
    %c0_187 = arith.constant 0 : index
    %c42 = arith.constant 42 : index
    %452 = memref.load %arg6[%c0_187, %c42] : memref<2x49xf32, #tpu.memory_space<smem>>
    %453 = vector.broadcast %452 : f32 to vector<1x512xf32>
    %454 = arith.mulf %450, %453 : vector<1x512xf32>
    %455 = arith.addf %449, %454 : vector<1x512xf32>
    %c1_188 = arith.constant 1 : index
    %c42_189 = arith.constant 42 : index
    %456 = memref.load %arg6[%c1_188, %c42_189] : memref<2x49xf32, #tpu.memory_space<smem>>
    %457 = vector.broadcast %456 : f32 to vector<1x512xf32>
    %458 = arith.mulf %451, %457 : vector<1x512xf32>
    %459 = arith.addf %455, %458 : vector<1x512xf32>
    %c448_i32 = arith.constant 448 : i32
    %460 = tpu.dynamic_rotate %26 by %c448_i32 dim 1 : vector<1x512xf32>, i32 -> vector<1x512xf32>
    %c448_i32_190 = arith.constant 448 : i32
    %461 = tpu.dynamic_rotate %30 by %c448_i32_190 dim 1 : vector<1x512xf32>, i32 -> vector<1x512xf32>
    %c0_191 = arith.constant 0 : index
    %c43 = arith.constant 43 : index
    %462 = memref.load %arg6[%c0_191, %c43] : memref<2x49xf32, #tpu.memory_space<smem>>
    %463 = vector.broadcast %462 : f32 to vector<1x512xf32>
    %464 = arith.mulf %460, %463 : vector<1x512xf32>
    %465 = arith.addf %459, %464 : vector<1x512xf32>
    %c1_192 = arith.constant 1 : index
    %c43_193 = arith.constant 43 : index
    %466 = memref.load %arg6[%c1_192, %c43_193] : memref<2x49xf32, #tpu.memory_space<smem>>
    %467 = vector.broadcast %466 : f32 to vector<1x512xf32>
    %468 = arith.mulf %461, %467 : vector<1x512xf32>
    %469 = arith.addf %465, %468 : vector<1x512xf32>
    %c447_i32 = arith.constant 447 : i32
    %470 = tpu.dynamic_rotate %26 by %c447_i32 dim 1 : vector<1x512xf32>, i32 -> vector<1x512xf32>
    %c447_i32_194 = arith.constant 447 : i32
    %471 = tpu.dynamic_rotate %30 by %c447_i32_194 dim 1 : vector<1x512xf32>, i32 -> vector<1x512xf32>
    %c0_195 = arith.constant 0 : index
    %c44 = arith.constant 44 : index
    %472 = memref.load %arg6[%c0_195, %c44] : memref<2x49xf32, #tpu.memory_space<smem>>
    %473 = vector.broadcast %472 : f32 to vector<1x512xf32>
    %474 = arith.mulf %470, %473 : vector<1x512xf32>
    %475 = arith.addf %469, %474 : vector<1x512xf32>
    %c1_196 = arith.constant 1 : index
    %c44_197 = arith.constant 44 : index
    %476 = memref.load %arg6[%c1_196, %c44_197] : memref<2x49xf32, #tpu.memory_space<smem>>
    %477 = vector.broadcast %476 : f32 to vector<1x512xf32>
    %478 = arith.mulf %471, %477 : vector<1x512xf32>
    %479 = arith.addf %475, %478 : vector<1x512xf32>
    %c446_i32 = arith.constant 446 : i32
    %480 = tpu.dynamic_rotate %26 by %c446_i32 dim 1 : vector<1x512xf32>, i32 -> vector<1x512xf32>
    %c446_i32_198 = arith.constant 446 : i32
    %481 = tpu.dynamic_rotate %30 by %c446_i32_198 dim 1 : vector<1x512xf32>, i32 -> vector<1x512xf32>
    %c0_199 = arith.constant 0 : index
    %c45 = arith.constant 45 : index
    %482 = memref.load %arg6[%c0_199, %c45] : memref<2x49xf32, #tpu.memory_space<smem>>
    %483 = vector.broadcast %482 : f32 to vector<1x512xf32>
    %484 = arith.mulf %480, %483 : vector<1x512xf32>
    %485 = arith.addf %479, %484 : vector<1x512xf32>
    %c1_200 = arith.constant 1 : index
    %c45_201 = arith.constant 45 : index
    %486 = memref.load %arg6[%c1_200, %c45_201] : memref<2x49xf32, #tpu.memory_space<smem>>
    %487 = vector.broadcast %486 : f32 to vector<1x512xf32>
    %488 = arith.mulf %481, %487 : vector<1x512xf32>
    %489 = arith.addf %485, %488 : vector<1x512xf32>
    %c445_i32 = arith.constant 445 : i32
    %490 = tpu.dynamic_rotate %26 by %c445_i32 dim 1 : vector<1x512xf32>, i32 -> vector<1x512xf32>
    %c445_i32_202 = arith.constant 445 : i32
    %491 = tpu.dynamic_rotate %30 by %c445_i32_202 dim 1 : vector<1x512xf32>, i32 -> vector<1x512xf32>
    %c0_203 = arith.constant 0 : index
    %c46 = arith.constant 46 : index
    %492 = memref.load %arg6[%c0_203, %c46] : memref<2x49xf32, #tpu.memory_space<smem>>
    %493 = vector.broadcast %492 : f32 to vector<1x512xf32>
    %494 = arith.mulf %490, %493 : vector<1x512xf32>
    %495 = arith.addf %489, %494 : vector<1x512xf32>
    %c1_204 = arith.constant 1 : index
    %c46_205 = arith.constant 46 : index
    %496 = memref.load %arg6[%c1_204, %c46_205] : memref<2x49xf32, #tpu.memory_space<smem>>
    %497 = vector.broadcast %496 : f32 to vector<1x512xf32>
    %498 = arith.mulf %491, %497 : vector<1x512xf32>
    %499 = arith.addf %495, %498 : vector<1x512xf32>
    %c444_i32 = arith.constant 444 : i32
    %500 = tpu.dynamic_rotate %26 by %c444_i32 dim 1 : vector<1x512xf32>, i32 -> vector<1x512xf32>
    %c444_i32_206 = arith.constant 444 : i32
    %501 = tpu.dynamic_rotate %30 by %c444_i32_206 dim 1 : vector<1x512xf32>, i32 -> vector<1x512xf32>
    %c0_207 = arith.constant 0 : index
    %c47 = arith.constant 47 : index
    %502 = memref.load %arg6[%c0_207, %c47] : memref<2x49xf32, #tpu.memory_space<smem>>
    %503 = vector.broadcast %502 : f32 to vector<1x512xf32>
    %504 = arith.mulf %500, %503 : vector<1x512xf32>
    %505 = arith.addf %499, %504 : vector<1x512xf32>
    %c1_208 = arith.constant 1 : index
    %c47_209 = arith.constant 47 : index
    %506 = memref.load %arg6[%c1_208, %c47_209] : memref<2x49xf32, #tpu.memory_space<smem>>
    %507 = vector.broadcast %506 : f32 to vector<1x512xf32>
    %508 = arith.mulf %501, %507 : vector<1x512xf32>
    %509 = arith.addf %505, %508 : vector<1x512xf32>
    %c443_i32 = arith.constant 443 : i32
    %510 = tpu.dynamic_rotate %26 by %c443_i32 dim 1 : vector<1x512xf32>, i32 -> vector<1x512xf32>
    %c443_i32_210 = arith.constant 443 : i32
    %511 = tpu.dynamic_rotate %30 by %c443_i32_210 dim 1 : vector<1x512xf32>, i32 -> vector<1x512xf32>
    %c0_211 = arith.constant 0 : index
    %c48 = arith.constant 48 : index
    %512 = memref.load %arg6[%c0_211, %c48] : memref<2x49xf32, #tpu.memory_space<smem>>
    %513 = vector.broadcast %512 : f32 to vector<1x512xf32>
    %514 = arith.mulf %510, %513 : vector<1x512xf32>
    %515 = arith.addf %509, %514 : vector<1x512xf32>
    %c1_212 = arith.constant 1 : index
    %c48_213 = arith.constant 48 : index
    %516 = memref.load %arg6[%c1_212, %c48_213] : memref<2x49xf32, #tpu.memory_space<smem>>
    %517 = vector.broadcast %516 : f32 to vector<1x512xf32>
    %518 = arith.mulf %511, %517 : vector<1x512xf32>
    %519 = arith.addf %515, %518 : vector<1x512xf32>
    %cst_214 = arith.constant 0.000000e+00 : f32
    %520 = vector.broadcast %cst_214 : f32 to vector<1x512xf32>
    %521 = arith.subf %520, %519 : vector<1x512xf32>
    %522 = math.exp %521 : vector<1x512xf32>
    %cst_215 = arith.constant 1.000000e+00 : f32
    %523 = vector.broadcast %cst_215 : f32 to vector<1x512xf32>
    %524 = arith.addf %523, %522 : vector<1x512xf32>
    %cst_216 = arith.constant 1.000000e+00 : f32
    %525 = vector.broadcast %cst_216 : f32 to vector<1x512xf32>
    %526 = arith.divf %525, %524 : vector<1x512xf32>
    %527 = vector.broadcast %526 : vector<1x512xf32> to vector<24x512xf32>
    %528 = arith.mulf %24, %527 : vector<24x512xf32>
    %c0_217 = arith.constant 0 : index
    %c0_218 = arith.constant 0 : index
    %c0_219 = arith.constant 0 : index
    %529 = vector.load %arg7[%c0_217, %c0_218, %c0_219] : memref<1x24x512xf32, #tpu.memory_space<vmem>>, vector<1x24x512xf32>
    %530 = vector.shape_cast %529 : vector<1x24x512xf32> to vector<24x512xf32>
    %531 = vector.shape_cast %528 : vector<24x512xf32> to vector<1x24x512xf32>
    tpu.vector_store %arg7[%c0_217, %c0_218, %c0_219], %531 {strides = array<i32>} : memref<1x24x512xf32, #tpu.memory_space<vmem>>, vector<1x24x512xf32>,
    return
  }
  func.func @transform_0(%arg0: i32) -> (i32, i32, i32) {
    %c0_i32 = arith.constant 0 : i32
    %c0_i32_0 = arith.constant 0 : i32
    %c0_i32_1 = arith.constant 0 : i32
    return %arg0, %c0_i32, %c0_i32_0 : i32, i32, i32
  }
  func.func @transform_1(%arg0: i32) -> (i32, i32) {
    %c0_i32 = arith.constant 0 : i32
    %c0_i32_0 = arith.constant 0 : i32
    %c0_i32_1 = arith.constant 0 : i32
    return %c0_i32, %c0_i32_0 : i32, i32
  }
  func.func @transform_2(%arg0: i32) -> (i32, i32) {
    %c0_i32 = arith.constant 0 : i32
    %c0_i32_0 = arith.constant 0 : i32
    %c0_i32_1 = arith.constant 0 : i32
    return %c0_i32, %c0_i32_0 : i32, i32
  }
  func.func @transform_3(%arg0: i32) -> (i32, i32) {
    %c0_i32 = arith.constant 0 : i32
    %c0_i32_0 = arith.constant 0 : i32
    %c0_i32_1 = arith.constant 0 : i32
    return %c0_i32, %c0_i32_0 : i32, i32
  }
  func.func @transform_4(%arg0: i32) -> (i32, i32, i32) {
    %c0_i32 = arith.constant 0 : i32
    %c0_i32_0 = arith.constant 0 : i32
    %c0_i32_1 = arith.constant 0 : i32
    return %arg0, %c0_i32, %c0_i32_0 : i32, i32, i32
  }
  func.func @transform_5(%arg0: i32) -> (i32, i32) {
    %c0_i32 = arith.constant 0 : i32
    %c0_i32_0 = arith.constant 0 : i32
    %c0_i32_1 = arith.constant 0 : i32
    return %c0_i32, %c0_i32_0 : i32, i32
  }
  func.func @transform_6(%arg0: i32) -> (i32, i32, i32) {
    %c0_i32 = arith.constant 0 : i32
    %c0_i32_0 = arith.constant 0 : i32
    %c0_i32_1 = arith.constant 0 : i32
    return %arg0, %c0_i32, %c0_i32_0 : i32, i32, i32
  }
}

</mosaic_0001>

<bundles_post_ra>
// kernel: cnntsam_forward.4
= control target key start
LH: loop header
LB: loop body
LE: loop exit
PB: predicated region body
PF: predicated region fallthrough
CT: control target
= control target key end

     0   :  { %s552_s18 = smov 0   ;;  %s603_s0 = inlined_call_operand.vmem [shape: bf16[2,24,512], index: 0, kind: input, shape index: {}]   ;;  %s604_s1 = inlined_call_operand.vmem [shape: f32[24,1], index: 1, kind: input, shape index: {}]   ;;  %s605_s2 = inlined_call_operand.vmem [shape: f32[24,1], index: 2, kind: input, shape index: {}]   ;;  %s606_s3 = inlined_call_operand.vmem [shape: f32[1,512], index: 3, kind: input, shape index: {}]   ;;  %s607_s4 = inlined_call_operand.vmem [shape: f32[2,24,1], index: 4, kind: output, shape index: {0}]   ;;  %s608_s5 = inlined_call_operand.vmem [shape: f32[2,24,1], index: 5, kind: output, shape index: {1}]  }
   0x1 LB: > { %s490_s19 = sadd.s32 4294967295, %s519_s18   ;;  %p494_p0 = scmp.ge.s32.totalorder %s519_s18, 1  ;;  %s519_s18 = sphi %s552_s18, %s16_s18  }
   0x2   : > { %p190_p1 = scmp.lt.s32.totalorder %s519_s18, 3 }
   0x4   : > { %p191_p2 = pnand %p494_p0, %p190_p1 }
   0x5   : > { %v258_v0 = vld [vmem:[%s604_s1 + $0x10] sm:$0xff] (!%p191_p2)  ;;  %v256_v1 = vld [vmem:[%s604_s1] sm:$0xff] (!%p191_p2)  ;;  %v521_v2 = vmov (!%p191_p2), 0   ;;  %v257_v4 = vld [vmem:[%s604_s1 + $0x8] sm:$0xff] (!%p191_p2)  ;;  %p223_p3 = scmp.lt.s32.totalorder (!%p191_p2), %s490_s19, 1  ;;  %v330_v7 = vlaneseq (!%p191_p2)  ;;  %vm377_vm0 = vcmask (!%p191_p2), 7168  }
   0x6   : > { %194 = sbr.rel (%p191_p2) target bundleno = 308 (0x134), region = 36  ;;  %512 = vset.pattern.permute.xlu1 (!%p191_p2), %v521_v2  ;;  %511 = vset.pattern.permute.xlu0 (!%p191_p2), %v521_v2  ;;  %v286_v3 = vld [vmem:[%s605_s2] sm:$0xff] (!%p191_p2)  ;;  %v288_v5 = vld [vmem:[%s605_s2 + $0x10] sm:$0xff] (!%p191_p2)  ;;  %v287_v6 = vld [vmem:[%s605_s2 + $0x8] sm:$0xff] (!%p191_p2) }
   0x7   : > { %271 = vperm.xlu1 (!%p191_p2), %512, %v258_v0   ;;  %261 = vperm.xlu0 (!%p191_p2), %511, %v256_v1   ;;  %v331_v10 = vshrl.u32 (!%p191_p2), %v330_v7, 7  ;;  %v328_v25 = vld [vmem:[%s606_s3] sm:$0xf] (!%p191_p2) }
   0x9   : > { %v332_v20 = vsub.s32 (!%p191_p2), 0, %v331_v10  ;;  %v336_v21 = vsub.s32 (!%p191_p2), 1, %v331_v10  ;;  %v340_v26 = vsub.s32 (!%p191_p2), 2, %v331_v10  ;;  %v344_v27 = vsub.s32 (!%p191_p2), 3, %v331_v10 }
   0xb   : > { %291 = vperm.xlu1 (!%p191_p2), %512, %v286_v3   ;;  %266 = vperm.xlu0 (!%p191_p2), %511, %v257_v4   ;;  %v333_v40 = vrot.slane (!%p191_p2), %v328_v25, %v332_v20  ;;  %v337_v41 = vrot.slane (!%p191_p2), %v328_v25, %v336_v21  ;;  %v341_v48 = vrot.slane (!%p191_p2), %v328_v25, %v340_v26 }
   0xc   : > { %v345_v49 = vrot.slane (!%p191_p2), %v328_v25, %v344_v27 }
   0xd   : > { %s610_s19 = smov (!%p223_p3, %s490_s19), 1 }
   0xe   : > { %s500_s7 = smul.u32 48, %s610_s19 }
   0xf   : > { %301 = vperm.xlu1 %512, %v288_v5   ;;  %296 = vperm.xlu0 %511, %v287_v6   ;;  %s501_s13 = smul.u32 24, %s610_s19 }
  0x10   : > { %s227_s10 = scalar_lea.vmem %s603_s0, %s500_s7 }
  0x11   : > { %v238_v8 = vld [vmem:[%s227_s10] sm:$0xff]  ;;  %v239_v9 = vld [vmem:[%s227_s10 + $0x8] sm:$0xff]  ;;  %v240_v19 = vld [vmem:[%s227_s10 + $0x10] sm:$0xff]  ;;  %s232_s16 = scalar_lea.vmem %s607_s4, %s501_s13  ;;  %s237_s21 = scalar_lea.vmem %s608_s5, %s501_s13 }
  0x12   : > { %v242_v11 = vld [vmem:[%s227_s10 + $0x20] sm:$0xff]  ;;  %v244_v12 = vunpack.c.l.bf16 %v238_v8  ;;  %v245_v13 = vunpack.c.h.bf16 %v238_v8  ;;  %v246_v14 = vunpack.c.l.bf16 %v239_v9  ;;  %v247_v15 = vunpack.c.h.bf16 %v239_v9  ;;  %v243_v17 = vld [vmem:[%s227_s10 + $0x28] sm:$0xff]  ;;  %v241_v24 = vld [vmem:[%s227_s10 + $0x18] sm:$0xff] }
  0x13   : > { %v252_v22 = vunpack.c.l.bf16 %v242_v11  ;;  %v253_v23 = vunpack.c.h.bf16 %v242_v11  ;;  %v254_v32 = vunpack.c.l.bf16 %v243_v17  ;;  %v255_v33 = vunpack.c.h.bf16 %v243_v17 }
  0x14   : > { %v248_v34 = vunpack.c.l.bf16 %v240_v19  ;;  %v249_v35 = vunpack.c.h.bf16 %v240_v19  ;;  %v250_v38 = vunpack.c.l.bf16 %v241_v24  ;;  %v251_v39 = vunpack.c.h.bf16 %v241_v24 }
  0x86   : > { %v272_v16 = vpop.permute.xlu1 %271  ;;  %v262_v18 = vpop.permute.xlu0 %261 }
  0x87   : > { %v274_v28 = vmul.f32 %v262_v18, %v244_v12  ;;  %v275_v29 = vmul.f32 %v262_v18, %v245_v13  ;;  %v276_v30 = vmul.f32 %v262_v18, %v246_v14  ;;  %v277_v31 = vmul.f32 %v262_v18, %v247_v15 }
  0x88   : > { %v282_v46 = vmul.f32 %v272_v16, %v252_v22  ;;  %v283_v47 = vmul.f32 %v272_v16, %v253_v23  ;;  %v284_v50 = vmul.f32 %v272_v16, %v254_v32  ;;  %v285_v51 = vmul.f32 %v272_v16, %v255_v33 }
  0x8a   : > { %v292_v36 = vpop.permute.xlu1 %291  ;;  %v267_v37 = vpop.permute.xlu0 %266 }
  0x8b   : > { %v304_v42 = vadd.f32 %v292_v36, %v274_v28  ;;  %v305_v43 = vadd.f32 %v292_v36, %v275_v29  ;;  %v306_v44 = vadd.f32 %v292_v36, %v276_v30  ;;  %v307_v45 = vadd.f32 %v292_v36, %v277_v31 }
  0x8c   : > { %v278_v53 = vmul.f32 %v267_v37, %v248_v34  ;;  %v279_v55 = vmul.f32 %v267_v37, %v249_v35  ;;  %v280_v56 = vmul.f32 %v267_v37, %v250_v38  ;;  %v281_v57 = vmul.f32 %v267_v37, %v251_v39 }
  0x8d   : > { %v316_v52 = vmax.f32 %v304_v42, 0.0  ;;  %v317_v54 = vmax.f32 %v305_v43, 0.0  ;;  %v318_v60 = vmax.f32 %v306_v44, 0.0  ;;  %v319_v61 = vmax.f32 %v307_v45, 0.0 }
  0x8e   : > { %v302_v58 = vpop.permute.xlu1 %301  ;;  %v297_v59 = vpop.permute.xlu0 %296 }
  0x8f   : > { %v312_v62 = vadd.f32 %v302_v58, %v282_v46  ;;  %v313_v63 = vadd.f32 %v302_v58, %v283_v47  ;;  %v308_v0 = vadd.f32 %v297_v59, %v278_v53  ;;  %v309_v1 = vadd.f32 %v297_v59, %v279_v55 }
  0x90   : > { %v310_v2 = vadd.f32 %v297_v59, %v280_v56  ;;  %v311_v3 = vadd.f32 %v297_v59, %v281_v57  ;;  %v314_v4 = vadd.f32 %v302_v58, %v284_v50  ;;  %v350_v7 = vmul.f32 %v333_v40, %v316_v52 }
  0x91   : > { %v324_v5 = vmax.f32 %v312_v62, 0.0  ;;  %v325_v6 = vmax.f32 %v313_v63, 0.0  ;;  %v320_v8 = vmax.f32 %v308_v0, 0.0  ;;  %v321_v9 = vmax.f32 %v309_v1, 0.0 }
  0x92   : > { %v322_v10 = vmax.f32 %v310_v2, 0.0  ;;  %v351_v11 = vmul.f32 %v337_v41, %v317_v54  ;;  %v315_v12 = vadd.f32 %v302_v58, %v285_v51  ;;  %v352_v13 = vmul.f32 %v341_v48, %v318_v60 }
  0x93   : > { %v353_v14 = vmul.f32 %v345_v49, %v319_v61  ;;  %v323_v15 = vmax.f32 %v311_v3, 0.0  ;;  %v354_v17 = vmul.f32 %v333_v40, %v320_v8  ;;  %v355_v18 = vmul.f32 %v337_v41, %v321_v9 }
  0x94   : > { %v381_v16 = vadd.f32 %v351_v11, %v350_v7  ;;  %v326_v19 = vmax.f32 %v314_v4, 0.0  ;;  %v362_v20 = vmax.f32 %v350_v7, %v352_v13  ;;  %v358_v22 = vmul.f32 %v333_v40, %v324_v5 }
  0x95   : > { %v363_v21 = vmax.f32 %v351_v11, %v353_v14  ;;  %v356_v23 = vmul.f32 %v341_v48, %v322_v10  ;;  %v357_v24 = vmul.f32 %v345_v49, %v323_v15  ;;  %v386_v25 = vadd.f32 %v355_v18, %v354_v17 }
  0x96   : > { %v359_v26 = vmul.f32 %v337_v41, %v325_v6  ;;  %v382_v28 = vadd.f32 %v381_v16, %v352_v13  ;;  %v327_v29 = vmax.f32 %v315_v12, 0.0  ;;  %v360_v32 = vmul.f32 %v341_v48, %v326_v19 }
  0x97   : > { %v364_v27 = vmax.f32 %v362_v20, %v363_v21  ;;  %v387_v30 = vadd.f32 %v386_v25, %v356_v23  ;;  %v367_v34 = vmax.f32 %v354_v17, %v356_v23  ;;  %v368_v35 = vmax.f32 %v355_v18, %v357_v24 }
  0x98   : > { %v391_v31 = vadd.f32 %v359_v26, %v358_v22  ;;  %v383_v36 = vadd.f32 %v382_v28, %v353_v14  ;;  %v361_v37 = vmul.f32 %v345_v49, %v327_v29  ;;  %v372_v42 = vmax.f32 %v358_v22, %v360_v32 }
  0x99   : > { %365 = vmax.xlane.f32.xlu0 %v364_v27  ;;  %v388_v33 = vadd.f32 %v387_v30, %v357_v24  ;;  %v369_v39 = vmax.f32 %v367_v34, %v368_v35 }
  0x9a   : > { %v392_v38 = vadd.f32 %v391_v31, %v360_v32  ;;  %v373_v41 = vmax.f32 %v359_v26, %v361_v37 }
  0x9b   : > { %389 = vadd.xlane.f32.xlu1 %v388_v33 }
  0x9c   : > { %v393_v40 = vadd.f32 %v392_v38, %v361_v37  ;;  %v374_v43 = vmax.f32 %v372_v42, %v373_v41 }
  0x9d   : > { %384 = vadd.xlane.f32.xlu0 %v383_v36 }
  0x9f   : > { %370 = vmax.xlane.f32.xlu1 %v369_v39 }
  0xa1   : > { %394 = vadd.xlane.f32.xlu0 %v393_v40 }
  0xa5   : > { %375 = vmax.xlane.f32.xlu0 %v374_v43 }
 0x126   : > { %v366_v44 = vpop.xlane.xlu0 %365 }
 0x127   : > { %378 = vst.msk [vmem:[%s232_s16] sm:$0xff] %vm377_vm0, %v366_v44 }
 0x128   : > { %v390_v45 = vpop.xlane.xlu1 %389 }
 0x129   : > { %v397_v47 = vmul.f32 0.00390625, %v390_v45 }
 0x12a   : > { %v385_v46 = vpop.xlane.xlu0 %384 }
 0x12b   : > { %v396_v48 = vmul.f32 0.00390625, %v385_v46  ;;  %400 = vst.msk [vmem:[%s237_s21 + $0x8] sm:$0xff] %vm377_vm0, %v397_v47 }
 0x12c   : > { %v371_v49 = vpop.xlane.xlu1 %370 }
 0x12d   : > { %399 = vst.msk [vmem:[%s237_s21] sm:$0xff] %vm377_vm0, %v396_v48  ;;  %379 = vst.msk [vmem:[%s232_s16 + $0x8] sm:$0xff] %vm377_vm0, %v371_v49 }
 0x12e   : > { %v395_v50 = vpop.xlane.xlu0 %394 }
 0x12f   : > { %v398_v51 = vmul.f32 0.00390625, %v395_v50 }
 0x131   : > { %401 = vst.msk [vmem:[%s237_s21 + $0x10] sm:$0xff] %vm377_vm0, %v398_v51 }
 0x132   : > { %v376_v52 = vpop.xlane.xlu0 %375 }
 0x133   : > { %380 = vst.msk [vmem:[%s232_s16 + $0x10] sm:$0xff] %vm377_vm0, %v376_v52 }
 0x134 PF: > { %s16_s18 = sadd.s32 1, %s519_s18  }
 0x135   : > { %p13_p4 = scmp.ge.s32.totalorder %s16_s18, 4  }
 0x137   :  { %15 = sbr.rel (!%p13_p4) target bundleno = 1 (0x1), region = 78 }

// kernel: cnntsam_forward.3
= control target key start
LH: loop header
LB: loop body
LE: loop exit
PB: predicated region body
PF: predicated region fallthrough
CT: control target
= control target key end

     0   :  { %s1106_s21 = smov 0   ;;  %s1227_s0 = inlined_call_operand.vmem [shape: bf16[2,8,558], index: 0, kind: input, shape index: {}]   ;;  %s1228_s1 = inlined_call_operand.vmem [shape: f32[24,72], index: 1, kind: input, shape index: {}]   ;;  %s1229_s2 = inlined_call_operand.vmem [shape: f32[24,1], index: 2, kind: input, shape index: {}]   ;;  %s1230_s3 = inlined_call_operand.vmem [shape: f32[1,512], index: 3, kind: input, shape index: {}]   ;;  %s1231_s4 = inlined_call_operand.vmem [shape: bf16[2,24,512], index: 4, kind: output, shape index: {0}]   ;;  %s1232_s5 = inlined_call_operand.vmem [shape: f32[2,24,1], index: 5, kind: output, shape index: {1}]   ;;  %s1233_s6 = inlined_call_operand.vmem [shape: f32[2,24,1], index: 6, kind: output, shape index: {2}]  }
   0x1 LB: > { %s889_s22 = sadd.s32 4294967295, %s1059_s21   ;;  %p893_p0 = scmp.ge.s32.totalorder %s1059_s21, 1  ;;  %s1059_s21 = sphi %s1106_s21, %s17_s21  }
   0x2   : > { %p217_p1 = scmp.lt.s32.totalorder %s1059_s21, 3 }
   0x4   : > { %p218_p2 = pnand %p893_p0, %p217_p1 }
   0x5   : > { %p257_p3 = scmp.lt.s32.totalorder (!%p218_p2), %s889_s22, 1  ;;  %s1061_s27 = smov (!%p218_p2), 127   ;;  %v1068_v10 = vmov (!%p218_p2), 0.0   ;;  %v446_v11 = vld [vmem:[%s1229_s2 + $0x8] sm:$0xff] (!%p218_p2)  ;;  %v1070_v12 = vmov (!%p218_p2), 0   ;;  %v445_v13 = vld [vmem:[%s1229_s2] sm:$0xff] (!%p218_p2) }
   0x6   : > { %221 = sbr.rel (%p218_p2) target bundleno = 564 (0x234), region = 36  ;;  %s1062_s28 = smov (!%p218_p2), 126   ;;  %537 = vmatprep.mubr.f32.mxu0 (!%p218_p2), %v1068_v10  ;;  %620 = vmatprep.mubr.f32.mxu1 (!%p218_p2), %v1068_v10  ;;  %v447_v14 = vld [vmem:[%s1229_s2 + $0x10] sm:$0xff] (!%p218_p2)  ;;  %vm300_vm0 = vcmask (!%p218_p2), 1039360   ;;  %vm319_vm1 = vcmask (!%p218_p2), 1031168   ;;  %vm338_vm2 = vcmask (!%p218_p2), 867328  }
   0x7   : > { %s1063_s29 = smov (!%p218_p2), 106   ;;  %s1064_s30 = smov (!%p218_p2), 105   ;;  %1051 = vset.pattern.permute.xlu0 (!%p218_p2), %v1070_v12  ;;  %1052 = vset.pattern.permute.xlu1 (!%p218_p2), %v1070_v12  ;;  %vm357_vm3 = vcmask (!%p218_p2), 859136   ;;  %vm376_vm4 = vcmask (!%p218_p2), 850944   ;;  %vm395_vm5 = vcmask (!%p218_p2), 687104   ;;  %vm414_vm6 = vcmask (!%p218_p2), 678912  }
   0x8   : > { %s1065_s7 = smov (!%p218_p2), 104   ;;  %s1066_s8 = smov (!%p218_p2), 84   ;;  %vm433_vm7 = vcmask (!%p218_p2), 670720   ;;  %vm463_vm8 = vcmask (!%p218_p2), 588800   ;;  %vm688_vm9 = vcmask (!%p218_p2), 7168  }
   0x9   : > { %s1067_s9 = smov (!%p218_p2), 83   ;;  %s1069_s10 = smov (!%p218_p2), 82  }
   0xd   : > { %s1235_s22 = smov (!%p257_p3, %s889_s22), 1 }
   0xe   : > { %s950_s23 = smul.u32 20, %s1235_s22 }
  0x10   : > { %s261_s26 = scalar_lea.vmem %s1227_s0, %s950_s23 }
  0x11   : > { %v279_v0 = vld [vmem:[%s261_s26 + $0x10] sm:$0xf]  ;;  %v1120_v1 = vld [vmem:[%s261_s26] sm:$0xff]  ;;  %v1122_v2 = vld [vmem:[%s261_s26 + $0x8] sm:$0xff] }
  0x12   : > { %v284_v3 = vunpack.c.l.bf16 %v279_v0  ;;  %v280_v4 = vunpack.c.l.bf16 %v1120_v1  ;;  %v281_v5 = vunpack.c.h.bf16 %v1120_v1  ;;  %v282_v6 = vunpack.c.l.bf16 %v1122_v2 }
  0x13   : > { %v283_v7 = vunpack.c.h.bf16 %v1122_v2 }
  0x14   : > { %298 = vrot.lane.b32.xlu1 %v284_v3, %s1061_s27  ;;  %v971_v8 = vpack.i.bf16 %v282_v6, %v281_v5 }
  0x15   : > { %v976_v9 = vpack.i.bf16 %v283_v7, %v280_v4 }
  0x16   : > { %972 = vrot.lane.b32.xlu0 %v971_v8, %s1061_s27 }
  0x18   : > { %982 = vrot.lane.b32.xlu1 %v971_v8, %s1062_s28 }
  0x1a   : > { %977 = vrot.lane.b32.xlu0 %v976_v9, %s1061_s27  ;;  %s951_s27 = smul.u32 48, %s1235_s22 }
  0x1c   : > { %992 = vrot.lane.b32.xlu1 %v976_v9, %s1062_s28 }
  0x1e   : > { %987 = vrot.lane.b32.xlu0 %v971_v8, %s1063_s29 }
  0x20   : > { %317 = vrot.lane.b32.xlu1 %v284_v3, %s1062_s28 }
  0x22   : > { %997 = vrot.lane.b32.xlu0 %v976_v9, %s1063_s29 }
  0x24   : > { %1002 = vrot.lane.b32.xlu1 %v971_v8, %s1064_s30 }
  0x26   : > { %336 = vrot.lane.b32.xlu0 %v284_v3, %s1063_s29 }
  0x28   : > { %1012 = vrot.lane.b32.xlu1 %v976_v9, %s1064_s30 }
  0x2a   : > { %1007 = vrot.lane.b32.xlu0 %v971_v8, %s1065_s7 }
  0x2c   : > { %355 = vrot.lane.b32.xlu1 %v284_v3, %s1064_s30  ;;  %s1209_s30 = scalar_lea.vmem %s1231_s4, %s951_s27 }
  0x2e   : > { %1017 = vrot.lane.b32.xlu0 %v976_v9, %s1065_s7 }
  0x30   : > { %1022 = vrot.lane.b32.xlu1 %v971_v8, %s1066_s8 }
  0x32   : > { %374 = vrot.lane.b32.xlu0 %v284_v3, %s1065_s7  ;;  %s952_s7 = smul.u32 24, %s1235_s22 }
  0x34   : > { %1032 = vrot.lane.b32.xlu1 %v976_v9, %s1066_s8  ;;  %s276_s13 = scalar_lea.vmem %s1233_s6, %s952_s7 }
  0x36   : > { %1027 = vrot.lane.b32.xlu0 %v971_v8, %s1067_s9 }
  0x38   : > { %393 = vrot.lane.b32.xlu1 %v284_v3, %s1066_s8 }
  0x3a   : > { %1037 = vrot.lane.b32.xlu0 %v976_v9, %s1067_s9 }
  0x3c   : > { %1042 = vrot.lane.b32.xlu1 %v971_v8, %s1069_s10 }
  0x3e   : > { %412 = vrot.lane.b32.xlu0 %v284_v3, %s1067_s9 }
  0x40   : > { %431 = vrot.lane.b32.xlu1 %v284_v3, %s1069_s10 }
  0x42   : > { %1047 = vrot.lane.b32.xlu0 %v976_v9, %s1069_s10  ;;  %s271_s10 = scalar_lea.vmem %s1232_s5, %s952_s7 }
  0x44   : > { %455 = vperm.xlu1 %1052, %v446_v11  }
  0x46   : > { %450 = vperm.xlu0 %1051, %v445_v13  }
  0x48   : > { %460 = vperm.xlu1 %1052, %v447_v14  }
  0x86   : > { %v299_v15 = vpop.permute.xlu1 %298 }
  0x88   : > { %v973_v16 = vpop.permute.xlu0 %972 }
  0x89   : > { %v975_v17 = vunpack.i.h.bf16 %v973_v16  ;;  %v974_v18 = vunpack.i.l.bf16 %v973_v16 }
  0x8a   : > { %v983_v19 = vpop.permute.xlu1 %982 }
  0x8b   : > { %v302_v20 = vsel %vm300_vm0, %v974_v18, %v975_v17  ;;  %v985_v23 = vunpack.i.h.bf16 %v983_v19  ;;  %v984_v24 = vunpack.i.l.bf16 %v983_v19 }
  0x8c   : > { %v978_v21 = vpop.permute.xlu0 %977  ;;  %v918_v22 = vpack.c.bf16 %v302_v20, %v281_v5 }
  0x8d   : > { %v980_v25 = vunpack.i.h.bf16 %v978_v21  ;;  %v979_v26 = vunpack.i.l.bf16 %v978_v21  ;;  %v321_v37 = vsel %vm319_vm1, %v984_v24, %v985_v23 }
  0x8e   : > { %919 = vmatprep.subr.bf16.mxu0 %v918_v22  ;;  %v993_v27 = vpop.permute.xlu1 %992 }
  0x8f   : > { %v301_v28 = vsel %vm300_vm0, %v979_v26, %v974_v18  ;;  %v304_v29 = vsel %vm300_vm0, %v980_v25, %v299_v15  ;;  %v303_v33 = vsel %vm300_vm0, %v975_v17, %v980_v25  ;;  %v994_v39 = vunpack.i.l.bf16 %v993_v27 }
  0x90   : > { %v988_v30 = vpop.permute.xlu0 %987  ;;  %v920_v31 = vpack.c.bf16 %v301_v28, %v280_v4  ;;  %v934_v32 = vpack.c.bf16 %v304_v29, %v283_v7  ;;  %v936_v36 = vpack.c.bf16 %v303_v33, %v282_v6  ;;  %v995_v45 = vunpack.i.h.bf16 %v993_v27 }
  0x91   : > { %v990_v34 = vunpack.i.h.bf16 %v988_v30  ;;  %v989_v35 = vunpack.i.l.bf16 %v988_v30  ;;  %v320_v47 = vsel %vm319_vm1, %v994_v39, %v984_v24 }
  0x92   : > { %921 = vmatpush1.bf16.msra.mxu0 %v920_v31  ;;  %935 = vmatprep.subr.bf16.mxu1 %v934_v32  ;;  %v318_v38 = vpop.permute.xlu1 %317  ;;  %v322_v58 = vsel %vm319_vm1, %v985_v23, %v995_v45 }
  0x93   : > { %937 = vmatpush1.bf16.msra.mxu1 %v936_v36  ;;  %v340_v40 = vsel %vm338_vm2, %v989_v35, %v990_v34  ;;  %v323_v52 = vsel %vm319_vm1, %v995_v45, %v318_v38 }
  0x94   : > { %v998_v41 = vpop.permute.xlu0 %997  ;;  %v922_v42 = vpack.c.bf16 %v340_v40, %v321_v37 }
  0x95   : > { %v1000_v43 = vunpack.i.h.bf16 %v998_v41  ;;  %v999_v44 = vunpack.i.l.bf16 %v998_v41 }
  0x96   : > { %923 = vmatprep.subr.bf16.mxu0 %v922_v42  ;;  %v1003_v46 = vpop.permute.xlu1 %1002 }
  0x97   : > { %v339_v48 = vsel %vm338_vm2, %v999_v44, %v989_v35  ;;  %v341_v51 = vsel %vm338_vm2, %v990_v34, %v1000_v43  ;;  %v1005_v53 = vunpack.i.h.bf16 %v1003_v46  ;;  %v1004_v54 = vunpack.i.l.bf16 %v1003_v46 }
  0x98   : > { %v337_v49 = vpop.permute.xlu0 %336  ;;  %v924_v50 = vpack.c.bf16 %v339_v48, %v320_v47  ;;  %v940_v59 = vpack.c.bf16 %v341_v51, %v322_v58  ;;  %v444_v58 = vld [vmem:[%s1228_s1 + $0x10] sm:$0xff] }
  0x99   : > { %v342_v55 = vsel %vm338_vm2, %v1000_v43, %v337_v49  ;;  %v359_v63 = vsel %vm357_vm3, %v1004_v54, %v1005_v53 }
  0x9a   : > { %v938_v56 = vpack.c.bf16 %v342_v55, %v323_v52  ;;  %925 = vmatpush1.bf16.msra.mxu0 %v924_v50  ;;  %v1013_v57 = vpop.permute.xlu1 %1012 }
  0x9b   : > { %v1014_v1 = vunpack.i.l.bf16 %v1013_v57  ;;  %v1015_v7 = vunpack.i.h.bf16 %v1013_v57  ;;  %v443_v57 = vld [vmem:[%s1228_s1 + $0x8] sm:$0xff] }
  0x9c   : > { %v1008_v60 = vpop.permute.xlu0 %1007  ;;  %939 = vmatprep.subr.bf16.mxu1 %v938_v56 }
  0x9d   : > { %v1010_v61 = vunpack.i.h.bf16 %v1008_v60  ;;  %v1009_v62 = vunpack.i.l.bf16 %v1008_v60  ;;  %941 = vmatpush1.bf16.msra.mxu1 %v940_v59  ;;  %v358_v9 = vsel %vm357_vm3, %v1014_v1, %v1004_v54  ;;  %v360_v21 = vsel %vm357_vm3, %v1005_v53, %v1015_v7  ;;  %v442_v53 = vld [vmem:[%s1228_s1] sm:$0xff] }
  0x9e   : > { %v356_v0 = vpop.permute.xlu1 %355  ;;  %v641_v59 = vlaneseq }
  0x9f   : > { %v378_v2 = vsel %vm376_vm4, %v1009_v62, %v1010_v61  ;;  %v361_v15 = vsel %vm357_vm3, %v1015_v7, %v356_v0 }
  0xa0   : > { %v1018_v3 = vpop.permute.xlu0 %1017  ;;  %v926_v4 = vpack.c.bf16 %v378_v2, %v359_v63  ;;  %v642_v60 = vshrl.u32 %v641_v59, 7 }
  0xa1   : > { %v1020_v5 = vunpack.i.h.bf16 %v1018_v3  ;;  %v1019_v6 = vunpack.i.l.bf16 %v1018_v3 }
  0xa2   : > { %927 = vmatprep.subr.bf16.mxu0 %v926_v4  ;;  %v1023_v8 = vpop.permute.xlu1 %1022  ;;  %v647_v63 = vsub.s32 1, %v642_v60  ;;  %v651_v0 = vsub.s32 2, %v642_v60  ;;  %v655_v3 = vsub.s32 3, %v642_v60 }
  0xa3   : > { %v377_v11 = vsel %vm376_vm4, %v1019_v6, %v1009_v62  ;;  %v379_v14 = vsel %vm376_vm4, %v1010_v61, %v1020_v5  ;;  %v1025_v16 = vunpack.i.h.bf16 %v1023_v8  ;;  %v1024_v17 = vunpack.i.l.bf16 %v1023_v8  ;;  %v639_v62 = vld [vmem:[%s1230_s3] sm:$0xf] }
  0xa4   : > { %v375_v12 = vpop.permute.xlu0 %374  ;;  %v928_v13 = vpack.c.bf16 %v377_v11, %v358_v9  ;;  %v944_v22 = vpack.c.bf16 %v379_v14, %v360_v21  ;;  %v643_v61 = vsub.s32 0, %v642_v60 }
  0xa5   : > { %v380_v18 = vsel %vm376_vm4, %v1020_v5, %v375_v12  ;;  %v397_v26 = vsel %vm395_vm5, %v1024_v17, %v1025_v16  ;;  %v648_v5 = vrot.slane %v639_v62, %v647_v63 }
  0xa6   : > { %v942_v19 = vpack.c.bf16 %v380_v18, %v361_v15  ;;  %929 = vmatpush1.bf16.msra.mxu0 %v928_v13  ;;  %v1033_v20 = vpop.permute.xlu1 %1032  ;;  %v644_v2 = vrot.slane %v639_v62, %v643_v61 }
  0xa7   : > { %v1034_v28 = vunpack.i.l.bf16 %v1033_v20  ;;  %v1035_v34 = vunpack.i.h.bf16 %v1033_v20 }
  0xa8   : > { %v1028_v23 = vpop.permute.xlu0 %1027  ;;  %943 = vmatprep.subr.bf16.mxu1 %v942_v19 }
  0xa9   : > { %v1030_v24 = vunpack.i.h.bf16 %v1028_v23  ;;  %v1029_v25 = vunpack.i.l.bf16 %v1028_v23  ;;  %945 = vmatpush1.bf16.msra.mxu1 %v944_v22  ;;  %v396_v38 = vsel %vm395_vm5, %v1034_v28, %v1024_v17  ;;  %v398_v47 = vsel %vm395_vm5, %v1025_v16, %v1035_v34 }
  0xaa   : > { %v394_v27 = vpop.permute.xlu1 %393  ;;  %v656_v16 = vrot.slane %v639_v62, %v655_v3 }
  0xab   : > { %v416_v29 = vsel %vm414_vm6, %v1029_v25, %v1030_v24  ;;  %v399_v43 = vsel %vm395_vm5, %v1035_v34, %v394_v27 }
  0xac   : > { %v1038_v30 = vpop.permute.xlu0 %1037  ;;  %v930_v31 = vpack.c.bf16 %v416_v29, %v397_v26 }
  0xad   : > { %v1040_v32 = vunpack.i.h.bf16 %v1038_v30  ;;  %v1039_v33 = vunpack.i.l.bf16 %v1038_v30 }
  0xae   : > { %931 = vmatprep.subr.bf16.mxu0 %v930_v31  ;;  %v1043_v35 = vpop.permute.xlu1 %1042 }
  0xaf   : > { %v1045_v36 = vunpack.i.h.bf16 %v1043_v35  ;;  %v1044_v37 = vunpack.i.l.bf16 %v1043_v35  ;;  %v415_v39 = vsel %vm414_vm6, %v1039_v33, %v1029_v25  ;;  %v417_v42 = vsel %vm414_vm6, %v1030_v24, %v1040_v32 }
  0xb0   : > { %v413_v40 = vpop.permute.xlu0 %412  ;;  %v932_v41 = vpack.c.bf16 %v415_v39, %v396_v38  ;;  %v948_v48 = vpack.c.bf16 %v417_v42, %v398_v47 }
  0xb1   : > { %v418_v44 = vsel %vm414_vm6, %v1040_v32, %v413_v40  ;;  %v435_v45 = vsel %vm433_vm7, %v1044_v37, %v1045_v36 }
  0xb2   : > { %v946_v46 = vpack.c.bf16 %v418_v44, %v399_v43  ;;  %933 = vmatpush1.bf16.msra.mxu0 %v932_v41  ;;  %v432_v50 = vpop.permute.xlu1 %431 }
  0xb3   : > { %489 = vmatprep.subr.mxu0 %v435_v45 }
  0xb4   : > { %v1048_v49 = vpop.permute.xlu0 %1047  ;;  %947 = vmatprep.subr.bf16.mxu1 %v946_v46 }
  0xb5   : > { %v1050_v51 = vunpack.i.h.bf16 %v1048_v49  ;;  %v1049_v52 = vunpack.i.l.bf16 %v1048_v49  ;;  %949 = vmatpush1.bf16.msra.mxu1 %v948_v48 }
  0xb7   : > { %v434_v54 = vsel %vm433_vm7, %v1049_v52, %v1044_v37  ;;  %v437_v55 = vsel %vm433_vm7, %v1050_v51, %v432_v50  ;;  %v436_v56 = vsel %vm433_vm7, %v1045_v36, %v1050_v51 }
  0xb8   : > { %490 = vmatpush1.msra.mxu0 %v434_v54  ;;  %572 = vmatprep.subr.mxu1 %v437_v55 }
  0xb9   : > { %898 = vmatmul.mubr.msk.f32.vlgmr.msra.gmra.mrb[0].mxu0 %vm463_vm8, %v442_v53  ;;  %573 = vmatpush1.msra.mxu1 %v436_v56 }
  0xba   : > { %901 = vmatmul.mubr.msk.f32.vlgmr.msra.gmra.mrb[0].mxu1 %vm463_vm8, %v442_v53  ;;  %543 = vmatprep.mubr.f32.mxu0 %v1068_v10 }
  0xbb   : > { %626 = vmatprep.mubr.f32.mxu1 %v1068_v10 }
  0xbd   : > { %899 = vmatmul.mubr.msk.f32.gmra.mrb[2].mxu0 %vm463_vm8, %v443_v57 }
  0xbe   : > { %902 = vmatmul.mubr.msk.f32.gmra.mrb[2].mxu1 %vm463_vm8, %v443_v57  ;;  %549 = vmatprep.mubr.f32.mxu0 %v1068_v10 }
  0xbf   : > { %632 = vmatprep.mubr.f32.mxu1 %v1068_v10  ;;  %v652_v10 = vrot.slane %v639_v62, %v651_v0 }
  0xc1   : > { %900 = vmatmul.mubr.msk.f32.gmra.mrb[4].mxu0 %vm463_vm8, %v444_v58 }
  0xc2   : > { %903 = vmatmul.mubr.msk.f32.gmra.mrb[4].mxu1 %vm463_vm8, %v444_v58 }
  0xc3   : > { %v456_v9 = vpop.permute.xlu1 %455 }
  0xc5   : > { %v451_v1 = vpop.permute.xlu0 %450 }
  0xc7   : > { %v461_v35 = vpop.permute.xlu1 %460 }
 0x18c   : > { %v539_v4 = vpop.f32.mrb[0].mxu0 }
 0x18d   : > { %v540_v6 = vadd.f32 %v539_v4, %v451_v1  ;;  %v541_v7 = vpop.f32.mrb[1].mxu0  ;;  %v622_v8 = vpop.f32.mrb[0].mxu1 }
 0x18e   : > { %v542_v11 = vadd.f32 %v541_v7, %v451_v1  ;;  %v623_v12 = vadd.f32 %v622_v8, %v451_v1  ;;  %v624_v13 = vpop.f32.mrb[1].mxu1 }
 0x18f   : > { %v661_v14 = vmul.f32 %v644_v2, %v540_v6  ;;  %v625_v15 = vadd.f32 %v624_v13, %v451_v1 }
 0x190   : > { %v662_v17 = vmul.f32 %v648_v5, %v542_v11  ;;  %v912_v18 = vpack.c.bf16 %v542_v11, %v540_v6  ;;  %v663_v19 = vmul.f32 %v652_v10, %v623_v12  ;;  %v545_v20 = vpop.f32.mrb[2].mxu0 }
 0x191   : > { %v692_v21 = vmul.f32 %v661_v14, %v540_v6  ;;  %v913_v22 = vpack.c.bf16 %v625_v15, %v623_v12  ;;  %v546_v23 = vadd.f32 %v545_v20, %v456_v9  ;;  %v547_v24 = vpop.f32.mrb[3].mxu0  ;;  %v628_v25 = vpop.f32.mrb[2].mxu1  ;;  %v664_v32 = vmul.f32 %v656_v16, %v625_v15 }
 0x192   : > { %v693_v26 = vmul.f32 %v662_v17, %v542_v11  ;;  %762 = vst [vmem:[%s1209_s30] sm:$0xff] %v912_v18  ;;  %v548_v27 = vadd.f32 %v547_v24, %v456_v9  ;;  %v629_v28 = vadd.f32 %v628_v25, %v456_v9  ;;  %v630_v29 = vpop.f32.mrb[3].mxu1  ;;  %v673_v33 = vadd.f32 %v662_v17, %v661_v14 }
 0x193   : > { %763 = vst [vmem:[%s1209_s30 + $0x8] sm:$0xff] %v913_v22  ;;  %v665_v30 = vmul.f32 %v644_v2, %v546_v23  ;;  %v631_v31 = vadd.f32 %v630_v29, %v456_v9  ;;  %v694_v34 = vmul.f32 %v663_v19, %v623_v12  ;;  %v695_v61 = vmul.f32 %v664_v32, %v625_v15 }
 0x194   : > { %v666_v36 = vmul.f32 %v648_v5, %v548_v27  ;;  %v914_v37 = vpack.c.bf16 %v548_v27, %v546_v23  ;;  %v551_v38 = vpop.f32.mrb[4].mxu0  ;;  %v704_v39 = vadd.f32 %v693_v26, %v692_v21  ;;  %v667_v40 = vmul.f32 %v652_v10, %v629_v28 }
 0x195   : > { %v915_v41 = vpack.c.bf16 %v631_v31, %v629_v28  ;;  %v552_v42 = vadd.f32 %v551_v38, %v461_v35  ;;  %v553_v43 = vpop.f32.mrb[5].mxu0  ;;  %v634_v44 = vpop.f32.mrb[4].mxu1  ;;  %v674_v45 = vadd.f32 %v673_v33, %v663_v19  ;;  %v696_v46 = vmul.f32 %v665_v30, %v546_v23 }
 0x196   : > { %v697_v47 = vmul.f32 %v666_v36, %v548_v27  ;;  %764 = vst [vmem:[%s1209_s30 + $0x10] sm:$0xff] %v914_v37  ;;  %v554_v48 = vadd.f32 %v553_v43, %v461_v35  ;;  %v635_v49 = vadd.f32 %v634_v44, %v461_v35  ;;  %v636_v50 = vpop.f32.mrb[5].mxu1  ;;  %v668_v54 = vmul.f32 %v656_v16, %v631_v31 }
 0x197   : > { %765 = vst [vmem:[%s1209_s30 + $0x18] sm:$0xff] %v915_v41  ;;  %v669_v51 = vmul.f32 %v644_v2, %v552_v42  ;;  %v637_v52 = vadd.f32 %v636_v50, %v461_v35  ;;  %v675_v53 = vadd.f32 %v674_v45, %v664_v32  ;;  %v678_v58 = vadd.f32 %v666_v36, %v665_v30 }
 0x198   : > { %v670_v55 = vmul.f32 %v648_v5, %v554_v48  ;;  %v916_v56 = vpack.c.bf16 %v554_v48, %v552_v42  ;;  %v671_v57 = vmul.f32 %v652_v10, %v635_v49  ;;  %v705_v62 = vadd.f32 %v704_v39, %v694_v34 }
 0x199   : > { %v700_v59 = vmul.f32 %v669_v51, %v552_v42  ;;  %v917_v60 = vpack.c.bf16 %v637_v52, %v635_v49  ;;  %676 = vadd.xlane.f32.xlu0 %v675_v53  ;;  %v698_v63 = vmul.f32 %v667_v40, %v629_v28  ;;  %v679_v1 = vadd.f32 %v678_v58, %v667_v40 }
 0x19a   : > { %v701_v0 = vmul.f32 %v670_v55, %v554_v48  ;;  %766 = vst [vmem:[%s1209_s30 + $0x20] sm:$0xff] %v916_v56  ;;  %v709_v3 = vadd.f32 %v697_v47, %v696_v46  ;;  %v706_v2 = vadd.f32 %v705_v62, %v695_v61  ;;  %v699_v4 = vmul.f32 %v668_v54, %v631_v31 }
 0x19b   : > { %767 = vst [vmem:[%s1209_s30 + $0x28] sm:$0xff] %v917_v60  ;;  %v672_v6 = vmul.f32 %v656_v16, %v637_v52  ;;  %v683_v7 = vadd.f32 %v670_v55, %v669_v51  ;;  %v702_v5 = vmul.f32 %v671_v57, %v635_v49  ;;  %v680_v8 = vadd.f32 %v679_v1, %v668_v54 }
 0x19c   : > { %v710_v10 = vadd.f32 %v709_v3, %v698_v63  ;;  %v714_v9 = vadd.f32 %v701_v0, %v700_v59 }
 0x19d   : > { %707 = vadd.xlane.f32.xlu0 %v706_v2  ;;  %v684_v11 = vadd.f32 %v683_v7, %v671_v57  ;;  %681 = vadd.xlane.f32.xlu1 %v680_v8  ;;  %v703_v13 = vmul.f32 %v672_v6, %v637_v52 }
 0x19e   : > { %v711_v12 = vadd.f32 %v710_v10, %v699_v4  ;;  %v715_v14 = vadd.f32 %v714_v9, %v702_v5 }
 0x19f   : > { %v685_v15 = vadd.f32 %v684_v11, %v672_v6 }
 0x1a0   : > { %v716_v17 = vadd.f32 %v715_v14, %v703_v13 }
 0x1a1   : > { %686 = vadd.xlane.f32.xlu0 %v685_v15  ;;  %712 = vadd.xlane.f32.xlu1 %v711_v12 }
 0x1a5   : > { %717 = vadd.xlane.f32.xlu0 %v716_v17 }
 0x226   : > { %v677_v16 = vpop.xlane.xlu0 %676 }
 0x227   : > { %689 = vst.msk [vmem:[%s271_s10] sm:$0xff] %vm688_vm9, %v677_v16 }
 0x22a   : > { %v708_v18 = vpop.xlane.xlu0 %707  ;;  %v682_v19 = vpop.xlane.xlu1 %681 }
 0x22b   : > { %719 = vst.msk [vmem:[%s276_s13] sm:$0xff] %vm688_vm9, %v708_v18  ;;  %690 = vst.msk [vmem:[%s271_s10 + $0x8] sm:$0xff] %vm688_vm9, %v682_v19 }
 0x22e   : > { %v687_v20 = vpop.xlane.xlu0 %686  ;;  %v713_v21 = vpop.xlane.xlu1 %712 }
 0x22f   : > { %691 = vst.msk [vmem:[%s271_s10 + $0x10] sm:$0xff] %vm688_vm9, %v687_v20  ;;  %720 = vst.msk [vmem:[%s276_s13 + $0x8] sm:$0xff] %vm688_vm9, %v713_v21 }
 0x232   : > { %v718_v22 = vpop.xlane.xlu0 %717 }
 0x233   : > { %721 = vst.msk [vmem:[%s276_s13 + $0x10] sm:$0xff] %vm688_vm9, %v718_v22 }
 0x234 PF: > { %s17_s21 = sadd.s32 1, %s1059_s21  }
 0x235   : > { %p14_p4 = scmp.ge.s32.totalorder %s17_s21, 4  }
 0x237   :  { %16 = sbr.rel (!%p14_p4) target bundleno = 1 (0x1), region = 90 }

// kernel: cnntsam_forward.5
= control target key start
LH: loop header
LB: loop body
LE: loop exit
PB: predicated region body
PF: predicated region fallthrough
CT: control target
= control target key end

     0   :  { %11 = vsyncpa [#allocation3], 0  ;;  %s3093_s21 = smov 0   ;;  %s6432_s0 = inlined_call_operand.vmem [shape: bf16[2,24,512], index: 0, kind: input, shape index: {}]   ;;  %s6433_s1 = inlined_call_operand.vmem [shape: f32[24,1], index: 1, kind: input, shape index: {}]   ;;  %s6434_s2 = inlined_call_operand.vmem [shape: f32[24,1], index: 2, kind: input, shape index: {}]   ;;  %s6435_s3 = inlined_call_operand.vmem [shape: f32[1,512], index: 3, kind: input, shape index: {}]   ;;  %s6436_s4 = inlined_call_operand.vmem [shape: f32[2,24,1], index: 4, kind: input, shape index: {}]   ;;  %s6437_s5 = inlined_call_operand.vmem [shape: f32[2,49], index: 5, kind: input, shape index: {}]   ;;  %s6438_s6 = inlined_call_operand.vmem [shape: f32[2,24,512], index: 6, kind: output, shape index: {}]  }
   0x1 LB: > { %s3099_s22 = sadd.s32 4294967295, %s3009_s21   ;;  %p2779_p0 = scmp.ge.s32.totalorder %s3009_s21, 1  ;;  %s3009_s21 = sphi %s3093_s21, %s17_s21  }
   0x2   : > { %p184_p1 = scmp.lt.s32.totalorder %s3009_s21, 3  ;;  %s206_s25 = sshll.u32 %s6437_s5, 4  ;;  %s207_s25 = int_to_ptr.vmem [resolvable:$true] %s206_s25 }
   0x3   : > { %p2897_p3 = scmp.eq.s32.totalorder %s3099_s22, 0  ;;  %s2984_s27 = scalar_lea.vmem %s207_s25, 32 }
   0x4   : > { %p3106_p2 = pnand %p2779_p0, %p184_p1  ;;  %p2985_p6 = scmp.ne.s32.totalorder %s207_s25, %s2984_s27 }
   0x5   : > { %p2992_p10 = scmp.lt.s32.totalorder %s207_s25, %s207_s25  ;;  %p2993_p11 = scmp.lt.s32.totalorder %s2984_s27, %s2984_s27 }
   0x6   : > { %p2893_p4 = pneg %p3106_p2 }
   0x7   : > { %p2994_p12 = por %p2993_p11, %p2992_p10 }
   0x8   : > { %p2894_p5 = pnand %p2897_p3, %p2893_p4 }
   0xa   : > { %p2986_p7 = pneg %p2894_p5 }
   0xc   : > { %p2987_p8 = pnand %p2986_p7, %p2985_p6 }
   0xe   : > { %p2988_p9 = pneg %p2987_p8 }
  0x10   : > { %p2995_p13 = pnand %p2994_p12, %p2988_p9 }
  0x12   : > { %2998 = shalt.err (!%p2995_p13)
}
  0x13   : > { %s3011_s28 = smov [#allocation2]   ;;  %235 = sbr.rel (%p3106_p2) target bundleno = 1086 (0x43e), region = 44 }
  0x14   : > { %2896 = dma.vmem_to_smem (!%p2894_p5), %s207_s25, 32, %s3011_s28, [#allocation3]  }
  0x1a   : > { %3004 = dma.done.wait (%p2897_p3), [#allocation3], 32  }
  0x1b   : > { %3006 = vsyncadd (%p2897_p3), [#allocation3], 4294967264 }
  0x1c   : > { %241 = sfence }
  0x1d   : > { %v304_v0 = vld [vmem:[%s6433_s1] sm:$0xff]  ;;  %v306_v1 = vld [vmem:[%s6433_s1 + $0x10] sm:$0xff]  ;;  %p271_p0 = scmp.lt.s32.totalorder %s3099_s22, 1  ;;  %v3012_v2 = vmov 0   ;;  %v305_v3 = vld [vmem:[%s6433_s1 + $0x8] sm:$0xff]  ;;  %v6439_v31 = vlaneseq  ;;  %s3013_s29 = smov 69  }
  0x1e   : > { %2954 = vset.pattern.permute.xlu0 %v3012_v2  ;;  %2955 = vset.pattern.permute.xlu1 %v3012_v2  ;;  %v334_v4 = vld [vmem:[%s6434_s2] sm:$0xff]  ;;  %v335_v5 = vld [vmem:[%s6434_s2 + $0x8] sm:$0xff]  ;;  %v336_v6 = vld [vmem:[%s6434_s2 + $0x10] sm:$0xff]  ;;  %s3014_s30 = smov 68   ;;  %s3015_s7 = smov 67  }
  0x1f   : > { %309 = vperm.xlu0 %2954, %v304_v0   ;;  %319 = vperm.xlu1 %2955, %v306_v1   ;;  %s7104_s22 = smov (!%p271_p0, %s3099_s22), 1  ;;  %v379_v44 = vshrl.u32 %v6439_v31, 7  ;;  %v376_v2 = vld [vmem:[%s6435_s3] sm:$0xf]  ;;  %s3016_s8 = smov 66  }
  0x20   : > { %s2887_s13 = smul.u32 24, %s7104_s22  ;;  %s3017_s9 = smov 65  }
  0x21   : > { %s2886_s23 = smul.u32 48, %s7104_s22  ;;  %v3152_v58 = vsub.s32 0, %v379_v44  ;;  %v384_v59 = vsub.s32 1, %v379_v44  ;;  %v388_v60 = vsub.s32 2, %v379_v44  ;;  %v392_v61 = vsub.s32 3, %v379_v44  ;;  %s3018_s10 = smov 64  }
  0x22   : > { %s280_s20 = scalar_lea.vmem %s6436_s4, %s2887_s13  ;;  %s3019_s11 = smov 63  }
  0x23   : > { %314 = vperm.xlu0 %2954, %v305_v3   ;;  %339 = vperm.xlu1 %2955, %v334_v4   ;;  %v411_v7 = vld [vmem:[%s280_s20 + $0x8] sm:$0xff]  ;;  %v410_v8 = vld [vmem:[%s280_s20] sm:$0xff]  ;;  %v412_v9 = vld [vmem:[%s280_s20 + $0x10] sm:$0xff]  ;;  %s275_s26 = scalar_lea.vmem %s6432_s0, %s2886_s23  ;;  %6662 = vst [vmem:[#allocation5_spill] sm:$0xff] %v3152_v58  ;;  %s3020_s12 = smov 47  }
  0x24   : > { %v414_v10 = vsub.f32 0.0, %v411_v7  ;;  %v413_v11 = vsub.f32 0.0, %v410_v8  ;;  %v415_v12 = vsub.f32 0.0, %v412_v9  ;;  %v288_v27 = vld [vmem:[%s275_s26 + $0x10] sm:$0xff]  ;;  %v289_v28 = vld [vmem:[%s275_s26 + $0x18] sm:$0xff]  ;;  %v286_v29 = vld [vmem:[%s275_s26] sm:$0xff] }
  0x25   : > { %v287_v30 = vld [vmem:[%s275_s26 + $0x8] sm:$0xff]  ;;  %v290_v33 = vld [vmem:[%s275_s26 + $0x20] sm:$0xff]  ;;  %v296_v35 = vunpack.c.l.bf16 %v288_v27  ;;  %v297_v36 = vunpack.c.h.bf16 %v288_v27  ;;  %v298_v37 = vunpack.c.l.bf16 %v289_v28  ;;  %v299_v38 = vunpack.c.h.bf16 %v289_v28  ;;  %s3021_s13 = smov 46   ;;  %s3022_s14 = smov 45  }
  0x26   : > { %v418_v13 = vmul.f32 1.442695, %v414_v10  ;;  %v416_v14 = vmul.f32 1.442695, %v413_v11  ;;  %v420_v15 = vmul.f32 1.442695, %v415_v12  ;;  %v292_v39 = vunpack.c.l.bf16 %v286_v29 }
  0x27   : > { %344 = vperm.xlu0 %2954, %v335_v5   ;;  %349 = vperm.xlu1 %2955, %v336_v6   ;;  %v291_v34 = vld [vmem:[%s275_s26 + $0x28] sm:$0xff]  ;;  %v293_v40 = vunpack.c.h.bf16 %v286_v29  ;;  %v294_v41 = vunpack.c.l.bf16 %v287_v30  ;;  %v295_v42 = vunpack.c.h.bf16 %v287_v30  ;;  %v300_v45 = vunpack.c.l.bf16 %v290_v33  ;;  %s3023_s15 = smov 44   ;;  %s3024_s16 = smov 43  }
  0x28   : > { %2956 = vpow2.f32 %v418_v13  ;;  %v301_v46 = vunpack.c.h.bf16 %v290_v33  ;;  %v302_v47 = vunpack.c.l.bf16 %v291_v34  ;;  %v303_v48 = vunpack.c.h.bf16 %v291_v34  ;;  %s3025_s17 = smov 42   ;;  %s3026_s18 = smov 41  }
  0x29   : > { %2958 = vpow2.f32 %v416_v14  ;;  %v381_v12 = vrot.slane %v376_v2, %v3152_v58  ;;  %v385_v13 = vrot.slane %v376_v2, %v384_v59  ;;  %v389_v14 = vrot.slane %v376_v2, %v388_v60  ;;  %s3027_s19 = smov 25   ;;  %s3028_s20 = smov 24  }
  0x2a   : > { %2960 = vpow2.f32 %v420_v15  ;;  %v393_v15 = vrot.slane %v376_v2, %v392_v61  ;;  %s3029_s23 = smov 23   ;;  %s3030_s24 = smov 22  }
  0x2b   : > { %s3031_s25 = smov 21   ;;  %s3032_s26 = smov 20  }
  0x2c   : > { %s3033_s27 = smov 19   ;;  %s3034_s28 = smov 3  }
  0x32   : > { %v2957_v16 = vpop.eup %2956 }
  0x33   : > { %v2959_v17 = vpop.eup %2958  ;;  %v423_v18 = vadd.f32 1.0, %v2957_v16 }
  0x34   : > { %v2961_v19 = vpop.eup %2960  ;;  %v422_v20 = vadd.f32 1.0, %v2959_v17 }
  0x35   : > { %2962 = vrcp.f32 %v423_v18  ;;  %v424_v21 = vadd.f32 1.0, %v2961_v19 }
  0x36   : > { %2964 = vrcp.f32 %v422_v20 }
  0x37   : > { %2966 = vrcp.f32 %v424_v21 }
  0x3f   : > { %v2963_v22 = vpop.eup %2962 }
  0x40   : > { %v2965_v23 = vpop.eup %2964  ;;  %438 = vperm.xlu1 %2955, %v2963_v22  }
  0x41   : > { %433 = vperm.xlu0 %2954, %v2965_v23   ;;  %v2967_v24 = vpop.eup %2966 }
  0x45   : > { %443 = vperm.xlu0 %2954, %v2967_v24  }
  0x9e   : > { %v310_v25 = vpop.permute.xlu0 %309  ;;  %v320_v26 = vpop.permute.xlu1 %319 }
  0x9f   : > { %v322_v53 = vmul.f32 %v310_v25, %v292_v39  ;;  %v323_v54 = vmul.f32 %v310_v25, %v293_v40  ;;  %v324_v55 = vmul.f32 %v310_v25, %v294_v41  ;;  %v325_v56 = vmul.f32 %v310_v25, %v295_v42 }
  0xa0   : > { %v330_v62 = vmul.f32 %v320_v26, %v300_v45  ;;  %v331_v63 = vmul.f32 %v320_v26, %v301_v46  ;;  %v332_v0 = vmul.f32 %v320_v26, %v302_v47  ;;  %v333_v1 = vmul.f32 %v320_v26, %v303_v48 }
  0xa2   : > { %v315_v32 = vpop.permute.xlu0 %314  ;;  %v340_v43 = vpop.permute.xlu1 %339 }
  0xa3   : > { %v326_v49 = vmul.f32 %v315_v32, %v296_v35  ;;  %v327_v50 = vmul.f32 %v315_v32, %v297_v36  ;;  %v328_v51 = vmul.f32 %v315_v32, %v298_v37  ;;  %v329_v52 = vmul.f32 %v315_v32, %v299_v38 }
  0xa4   : > { %v352_v8 = vadd.f32 %v340_v43, %v322_v53  ;;  %v353_v9 = vadd.f32 %v340_v43, %v323_v54  ;;  %v354_v10 = vadd.f32 %v340_v43, %v324_v55  ;;  %v355_v11 = vadd.f32 %v340_v43, %v325_v56 }
  0xa6   : > { %v345_v57 = vpop.permute.xlu0 %344  ;;  %v350_v7 = vpop.permute.xlu1 %349  ;;  %v364_v24 = vmax.f32 %v352_v8, 0.0  ;;  %v365_v25 = vmax.f32 %v353_v9, 0.0  ;;  %v366_v26 = vmax.f32 %v354_v10, 0.0  ;;  %v367_v27 = vmax.f32 %v355_v11, 0.0 }
  0xa7   : > { %v356_v3 = vadd.f32 %v345_v57, %v326_v49  ;;  %v357_v4 = vadd.f32 %v345_v57, %v327_v50  ;;  %v358_v5 = vadd.f32 %v345_v57, %v328_v51  ;;  %v359_v6 = vadd.f32 %v345_v57, %v329_v52 }
  0xa8   : > { %v360_v16 = vadd.f32 %v350_v7, %v330_v62  ;;  %v361_v17 = vadd.f32 %v350_v7, %v331_v63  ;;  %v362_v18 = vadd.f32 %v350_v7, %v332_v0  ;;  %v363_v19 = vadd.f32 %v350_v7, %v333_v1 }
  0xa9   : > { %v368_v20 = vmax.f32 %v356_v3, 0.0  ;;  %v369_v21 = vmax.f32 %v357_v4, 0.0  ;;  %v370_v22 = vmax.f32 %v358_v5, 0.0  ;;  %v371_v23 = vmax.f32 %v359_v6, 0.0 }
  0xaa   : > { %v372_v28 = vmax.f32 %v360_v16, 0.0  ;;  %v373_v29 = vmax.f32 %v361_v17, 0.0  ;;  %v374_v30 = vmax.f32 %v362_v18, 0.0  ;;  %v375_v32 = vmax.f32 %v363_v19, 0.0 }
  0xab   : > { %v402_v33 = vmul.f32 %v381_v12, %v368_v20  ;;  %v403_v34 = vmul.f32 %v385_v13, %v369_v21  ;;  %v404_v35 = vmul.f32 %v389_v14, %v370_v22  ;;  %v405_v36 = vmul.f32 %v393_v15, %v371_v23 }
  0xac   : > { %v398_v38 = vmul.f32 %v381_v12, %v364_v24  ;;  %v399_v39 = vmul.f32 %v385_v13, %v365_v25  ;;  %v400_v40 = vmul.f32 %v389_v14, %v366_v26  ;;  %v401_v41 = vmul.f32 %v393_v15, %v367_v27 }
  0xad   : > { %v406_v51 = vmul.f32 %v381_v12, %v372_v28  ;;  %v407_v52 = vmul.f32 %v385_v13, %v373_v29  ;;  %v408_v53 = vmul.f32 %v389_v14, %v374_v30  ;;  %v409_v54 = vmul.f32 %v393_v15, %v375_v32 }
  0xbf   : > { %v439_v37 = vpop.permute.xlu1 %438 }
  0xc0   : > { %v3158_v42 = vmul.f32 %v439_v37, %v402_v33  ;;  %v3160_v43 = vmul.f32 %v439_v37, %v403_v34  ;;  %v3162_v44 = vmul.f32 %v439_v37, %v404_v35  ;;  %v3164_v45 = vmul.f32 %v439_v37, %v405_v36  ;;  %v434_v46 = vpop.permute.xlu0 %433 }
  0xc1   : > { %v3166_v47 = vmul.f32 %v434_v46, %v398_v38  ;;  %v3168_v48 = vmul.f32 %v434_v46, %v399_v39  ;;  %v3170_v49 = vmul.f32 %v434_v46, %v400_v40  ;;  %v3172_v50 = vmul.f32 %v434_v46, %v401_v41 }
  0xc2   : > { %6663 = vst [vmem:[#allocation6_spill] sm:$0xff] %v3158_v42  ;;  %6664 = vst [vmem:[#allocation7_spill] sm:$0xff] %v3160_v43 }
  0xc3   : > { %6665 = vst [vmem:[#allocation8_spill] sm:$0xff] %v3162_v44  ;;  %6666 = vst [vmem:[#allocation9_spill] sm:$0xff] %v3164_v45  ;;  %v458_v55 = vmax.f32 %v3166_v47, %v3158_v42  ;;  %v466_v56 = vmax.f32 %v3168_v48, %v3160_v43  ;;  %v474_v57 = vmax.f32 %v3170_v49, %v3162_v44 }
  0xc4   : > { %6667 = vst [vmem:[#allocation10_spill] sm:$0xff] %v3166_v47  ;;  %6668 = vst [vmem:[#allocation11_spill] sm:$0xff] %v3168_v48  ;;  %v482_v59 = vmax.f32 %v3172_v50, %v3164_v45  ;;  %v444_v60 = vpop.permute.xlu0 %443  ;;  %v490_v29 = vadd.f32 %v3158_v42, %v3166_v47  ;;  %v498_v30 = vadd.f32 %v3160_v43, %v3168_v48 }
  0xc5   : > { %6669 = vst [vmem:[#allocation12_spill] sm:$0xff] %v3170_v49  ;;  %6670 = vst [vmem:[#allocation13_spill] sm:$0xff] %v3172_v50  ;;  %v3182_v61 = vmul.f32 %v444_v60, %v406_v51  ;;  %v3184_v62 = vmul.f32 %v444_v60, %v407_v52  ;;  %v3186_v63 = vmul.f32 %v444_v60, %v408_v53 }
  0xc6   : > { %v3188_v0 = vmul.f32 %v444_v60, %v409_v54  ;;  %v506_v34 = vadd.f32 %v3162_v44, %v3170_v49  ;;  %v514_v35 = vadd.f32 %v3164_v45, %v3172_v50 }
  0xc7   : > { %6671 = vst [vmem:[#allocation14_spill] sm:$0xff] %v3182_v61  ;;  %6672 = vst [vmem:[#allocation15_spill] sm:$0xff] %v3184_v62  ;;  %v459_v1 = vmax.f32 %v458_v55, %v3182_v61  ;;  %v467_v2 = vmax.f32 %v466_v56, %v3184_v62  ;;  %v475_v3 = vmax.f32 %v474_v57, %v3186_v63 }
  0xc8   : > { %6673 = vst [vmem:[#allocation16_spill] sm:$0xff] %v3186_v63  ;;  %6674 = vst [vmem:[#allocation17_spill] sm:$0xff] %v3188_v0  ;;  %v483_v4 = vmax.f32 %v482_v59, %v3188_v0  ;;  %v491_v32 = vadd.f32 %v490_v29, %v3182_v61  ;;  %v499_v33 = vadd.f32 %v498_v30, %v3184_v62 }
  0xc9   : > { %v460_v5 = vrot.slane %v459_v1, 4  ;;  %v468_v6 = vrot.slane %v467_v2, 4  ;;  %v476_v7 = vrot.slane %v475_v3, 4  ;;  %v507_v38 = vadd.f32 %v506_v34, %v3186_v63 }
  0xca   : > { %v484_v8 = vrot.slane %v483_v4, 4  ;;  %v492_v36 = vrot.slane %v491_v32, 4  ;;  %v500_v37 = vrot.slane %v499_v33, 4  ;;  %v515_v39 = vadd.f32 %v514_v35, %v3188_v0 }
  0xcb   : > { %v461_v9 = vmax.f32 %v459_v1, %v460_v5  ;;  %v469_v10 = vmax.f32 %v467_v2, %v468_v6  ;;  %v477_v11 = vmax.f32 %v475_v3, %v476_v7  ;;  %v508_v46 = vrot.slane %v507_v38, 4 }
  0xcc   : > { %v485_v12 = vmax.f32 %v483_v4, %v484_v8  ;;  %v493_v40 = vadd.f32 %v492_v36, %v491_v32  ;;  %v501_v41 = vadd.f32 %v500_v37, %v499_v33  ;;  %v516_v51 = vrot.slane %v515_v39, 4 }
  0xcd   : > { %v462_v13 = vrot.slane %v461_v9, 2  ;;  %v470_v14 = vrot.slane %v469_v10, 2  ;;  %v478_v15 = vrot.slane %v477_v11, 2  ;;  %v509_v54 = vadd.f32 %v508_v46, %v507_v38 }
  0xce   : > { %v486_v16 = vrot.slane %v485_v12, 2  ;;  %v494_v52 = vrot.slane %v493_v40, 2  ;;  %v502_v53 = vrot.slane %v501_v41, 2  ;;  %v517_v55 = vadd.f32 %v516_v51, %v515_v39 }
  0xcf   : > { %v463_v17 = vmax.f32 %v461_v9, %v462_v13  ;;  %v471_v18 = vmax.f32 %v469_v10, %v470_v14  ;;  %v479_v19 = vmax.f32 %v477_v11, %v478_v15  ;;  %v510_v59 = vrot.slane %v509_v54, 2 }
  0xd0   : > { %v487_v20 = vmax.f32 %v485_v12, %v486_v16  ;;  %v495_v56 = vadd.f32 %v494_v52, %v493_v40  ;;  %v503_v57 = vadd.f32 %v502_v53, %v501_v41  ;;  %v518_v60 = vrot.slane %v517_v55, 2 }
  0xd1   : > { %v464_v21 = vrot.slane %v463_v17, 1  ;;  %v472_v22 = vrot.slane %v471_v18, 1  ;;  %v480_v25 = vrot.slane %v479_v19, 1  ;;  %v511_v3 = vadd.f32 %v510_v59, %v509_v54 }
  0xd2   : > { %v488_v26 = vrot.slane %v487_v20, 1  ;;  %v496_v1 = vrot.slane %v495_v56, 1  ;;  %v504_v2 = vrot.slane %v503_v57, 1  ;;  %v519_v4 = vadd.f32 %v518_v60, %v517_v55 }
  0xd3   : > { %v3194_v23 = vmax.f32 %v463_v17, %v464_v21  ;;  %v3196_v24 = vmax.f32 %v471_v18, %v472_v22  ;;  %v3202_v27 = vmax.f32 %v479_v19, %v480_v25  ;;  %v512_v7 = vrot.slane %v511_v3, 1 }
  0xd4   : > { %v3204_v28 = vmax.f32 %v487_v20, %v488_v26  ;;  %v497_v5 = vadd.f32 %v496_v1, %v495_v56  ;;  %v505_v6 = vadd.f32 %v504_v2, %v503_v57  ;;  %v520_v8 = vrot.slane %v519_v4, 1 }
  0xd5   : > { %529 = vrot.lane.b32.xlu0 %v3196_v24, %s3013_s29  ;;  %527 = vrot.lane.b32.xlu1 %v3194_v23, %s3013_s29  ;;  %v513_v9 = vadd.f32 %v512_v7, %v511_v3 }
  0xd6   : > { %v521_v10 = vadd.f32 %v520_v8, %v519_v4  ;;  %v3302_v11 = vmul.f32 0.041666668, %v497_v5  ;;  %v3304_v12 = vmul.f32 0.041666668, %v505_v6 }
  0xd7   : > { %v3310_v13 = vmul.f32 0.041666668, %v513_v9 }
  0xd8   : > { %v3312_v14 = vmul.f32 0.041666668, %v521_v10 }
  0xd9   : > { %533 = vrot.lane.b32.xlu0 %v3204_v28, %s3013_s29  ;;  %531 = vrot.lane.b32.xlu1 %v3202_v27, %s3013_s29 }
  0xdd   : > { %576 = vrot.lane.b32.xlu0 %v3196_v24, %s3014_s30  ;;  %574 = vrot.lane.b32.xlu1 %v3194_v23, %s3014_s30 }
  0xe1   : > { %580 = vrot.lane.b32.xlu0 %v3204_v28, %s3014_s30  ;;  %578 = vrot.lane.b32.xlu1 %v3202_v27, %s3014_s30 }
  0xe5   : > { %621 = vrot.lane.b32.xlu0 %v3196_v24, %s3015_s7  ;;  %619 = vrot.lane.b32.xlu1 %v3194_v23, %s3015_s7 }
  0xe9   : > { %625 = vrot.lane.b32.xlu0 %v3204_v28, %s3015_s7  ;;  %623 = vrot.lane.b32.xlu1 %v3202_v27, %s3015_s7 }
  0xed   : > { %666 = vrot.lane.b32.xlu0 %v3196_v24, %s3016_s8  ;;  %664 = vrot.lane.b32.xlu1 %v3194_v23, %s3016_s8 }
  0xf1   : > { %670 = vrot.lane.b32.xlu0 %v3204_v28, %s3016_s8  ;;  %668 = vrot.lane.b32.xlu1 %v3202_v27, %s3016_s8 }
  0xf5   : > { %711 = vrot.lane.b32.xlu0 %v3196_v24, %s3017_s9  ;;  %709 = vrot.lane.b32.xlu1 %v3194_v23, %s3017_s9 }
  0xf9   : > { %715 = vrot.lane.b32.xlu0 %v3204_v28, %s3017_s9  ;;  %713 = vrot.lane.b32.xlu1 %v3202_v27, %s3017_s9 }
  0xfd   : > { %756 = vrot.lane.b32.xlu0 %v3196_v24, %s3018_s10  ;;  %754 = vrot.lane.b32.xlu1 %v3194_v23, %s3018_s10 }
 0x101   : > { %760 = vrot.lane.b32.xlu0 %v3204_v28, %s3018_s10  ;;  %758 = vrot.lane.b32.xlu1 %v3202_v27, %s3018_s10 }
 0x105   : > { %801 = vrot.lane.b32.xlu0 %v3196_v24, %s3019_s11  ;;  %799 = vrot.lane.b32.xlu1 %v3194_v23, %s3019_s11 }
 0x109   : > { %805 = vrot.lane.b32.xlu0 %v3204_v28, %s3019_s11  ;;  %803 = vrot.lane.b32.xlu1 %v3202_v27, %s3019_s11 }
 0x10d   : > { %846 = vrot.lane.b32.xlu0 %v3196_v24, %s3020_s12  ;;  %844 = vrot.lane.b32.xlu1 %v3194_v23, %s3020_s12 }
 0x111   : > { %850 = vrot.lane.b32.xlu0 %v3204_v28, %s3020_s12  ;;  %848 = vrot.lane.b32.xlu1 %v3202_v27, %s3020_s12 }
 0x115   : > { %891 = vrot.lane.b32.xlu0 %v3196_v24, %s3021_s13  ;;  %889 = vrot.lane.b32.xlu1 %v3194_v23, %s3021_s13 }
 0x119   : > { %895 = vrot.lane.b32.xlu0 %v3204_v28, %s3021_s13  ;;  %893 = vrot.lane.b32.xlu1 %v3202_v27, %s3021_s13 }
 0x11d   : > { %936 = vrot.lane.b32.xlu0 %v3196_v24, %s3022_s14  ;;  %934 = vrot.lane.b32.xlu1 %v3194_v23, %s3022_s14 }
 0x121   : > { %940 = vrot.lane.b32.xlu0 %v3204_v28, %s3022_s14  ;;  %938 = vrot.lane.b32.xlu1 %v3202_v27, %s3022_s14 }
 0x125   : > { %981 = vrot.lane.b32.xlu0 %v3196_v24, %s3023_s15  ;;  %979 = vrot.lane.b32.xlu1 %v3194_v23, %s3023_s15 }
 0x129   : > { %985 = vrot.lane.b32.xlu0 %v3204_v28, %s3023_s15  ;;  %983 = vrot.lane.b32.xlu1 %v3202_v27, %s3023_s15 }
 0x12d   : > { %544 = vrot.lane.b32.xlu0 %v3304_v12, %s3013_s29  ;;  %542 = vrot.lane.b32.xlu1 %v3302_v11, %s3013_s29 }
 0x131   : > { %548 = vrot.lane.b32.xlu0 %v3312_v14, %s3013_s29  ;;  %546 = vrot.lane.b32.xlu1 %v3310_v13, %s3013_s29  ;;  %s3035_s29 = smov 2  }
 0x135   : > { %589 = vrot.lane.b32.xlu0 %v3304_v12, %s3014_s30  ;;  %587 = vrot.lane.b32.xlu1 %v3302_v11, %s3014_s30 }
 0x139   : > { %593 = vrot.lane.b32.xlu0 %v3312_v14, %s3014_s30  ;;  %591 = vrot.lane.b32.xlu1 %v3310_v13, %s3014_s30  ;;  %s3036_s30 = smov 1  }
 0x13d   : > { %634 = vrot.lane.b32.xlu0 %v3304_v12, %s3015_s7  ;;  %632 = vrot.lane.b32.xlu1 %v3302_v11, %s3015_s7 }
 0x141   : > { %638 = vrot.lane.b32.xlu0 %v3312_v14, %s3015_s7  ;;  %636 = vrot.lane.b32.xlu1 %v3310_v13, %s3015_s7  ;;  %s3037_s7 = smov 127  }
 0x145   : > { %679 = vrot.lane.b32.xlu0 %v3304_v12, %s3016_s8  ;;  %677 = vrot.lane.b32.xlu1 %v3302_v11, %s3016_s8 }
 0x147   : > { %v3338_v15 = vpop.permute.xlu0 %529  ;;  %v3340_v16 = vpop.permute.xlu1 %527 }
 0x149   : > { %683 = vrot.lane.b32.xlu0 %v3312_v14, %s3016_s8  ;;  %681 = vrot.lane.b32.xlu1 %v3310_v13, %s3016_s8  ;;  %s3038_s8 = smov 126  }
 0x14b   : > { %v3346_v17 = vpop.permute.xlu0 %533  ;;  %v3348_v18 = vpop.permute.xlu1 %531 }
 0x14d   : > { %724 = vrot.lane.b32.xlu0 %v3304_v12, %s3017_s9  ;;  %722 = vrot.lane.b32.xlu1 %v3302_v11, %s3017_s9 }
 0x14f   : > { %v3354_v19 = vpop.permute.xlu0 %576  ;;  %v3356_v20 = vpop.permute.xlu1 %574 }
 0x151   : > { %728 = vrot.lane.b32.xlu0 %v3312_v14, %s3017_s9  ;;  %726 = vrot.lane.b32.xlu1 %v3310_v13, %s3017_s9  ;;  %s3039_s9 = smov 125  }
 0x153   : > { %v3362_v21 = vpop.permute.xlu0 %580  ;;  %v3364_v22 = vpop.permute.xlu1 %578 }
 0x155   : > { %769 = vrot.lane.b32.xlu0 %v3304_v12, %s3018_s10  ;;  %767 = vrot.lane.b32.xlu1 %v3302_v11, %s3018_s10 }
 0x157   : > { %v3370_v25 = vpop.permute.xlu0 %621  ;;  %v3372_v26 = vpop.permute.xlu1 %619 }
 0x159   : > { %773 = vrot.lane.b32.xlu0 %v3312_v14, %s3018_s10  ;;  %771 = vrot.lane.b32.xlu1 %v3310_v13, %s3018_s10  ;;  %s554_s10 = sld [smem:[#allocation2]] }
 0x15b   : > { %v3378_v29 = vpop.permute.xlu0 %625  ;;  %v3380_v30 = vpop.permute.xlu1 %623 }
 0x15d   : > { %814 = vrot.lane.b32.xlu0 %v3304_v12, %s3019_s11  ;;  %812 = vrot.lane.b32.xlu1 %v3302_v11, %s3019_s11 }
 0x15f   : > { %v3386_v32 = vpop.permute.xlu0 %666  ;;  %v3388_v33 = vpop.permute.xlu1 %664 }
 0x161   : > { %818 = vrot.lane.b32.xlu0 %v3312_v14, %s3019_s11  ;;  %816 = vrot.lane.b32.xlu1 %v3310_v13, %s3019_s11  ;;  %s2788_s11 = sld [smem:[#allocation2 + $0x1]] }
 0x163   : > { %v3394_v34 = vpop.permute.xlu0 %670  ;;  %v3396_v35 = vpop.permute.xlu1 %668 }
 0x165   : > { %859 = vrot.lane.b32.xlu0 %v3304_v12, %s3020_s12  ;;  %857 = vrot.lane.b32.xlu1 %v3302_v11, %s3020_s12 }
 0x167   : > { %v3402_v36 = vpop.permute.xlu0 %711  ;;  %v3404_v37 = vpop.permute.xlu1 %709 }
 0x169   : > { %863 = vrot.lane.b32.xlu0 %v3312_v14, %s3020_s12  ;;  %861 = vrot.lane.b32.xlu1 %v3310_v13, %s3020_s12  ;;  %s2790_s12 = sld [smem:[#allocation2 + $0x2]] }
 0x16b   : > { %v3410_v38 = vpop.permute.xlu0 %715  ;;  %v3412_v39 = vpop.permute.xlu1 %713 }
 0x16d   : > { %904 = vrot.lane.b32.xlu0 %v3304_v12, %s3021_s13  ;;  %902 = vrot.lane.b32.xlu1 %v3302_v11, %s3021_s13 }
 0x16f   : > { %v3418_v40 = vpop.permute.xlu0 %756  ;;  %v3420_v41 = vpop.permute.xlu1 %754 }
 0x171   : > { %908 = vrot.lane.b32.xlu0 %v3312_v14, %s3021_s13  ;;  %906 = vrot.lane.b32.xlu1 %v3310_v13, %s3021_s13  ;;  %s2792_s13 = sld [smem:[#allocation2 + $0x3]] }
 0x173   : > { %v3426_v46 = vpop.permute.xlu0 %760  ;;  %v3428_v51 = vpop.permute.xlu1 %758 }
 0x174   : > { %6675 = vst [vmem:[#allocation18_spill] sm:$0xff] %v3426_v46  ;;  %6676 = vst [vmem:[#allocation19_spill] sm:$0xff] %v3428_v51 }
 0x175   : > { %949 = vrot.lane.b32.xlu0 %v3304_v12, %s3022_s14  ;;  %947 = vrot.lane.b32.xlu1 %v3302_v11, %s3022_s14 }
 0x177   : > { %v3434_v52 = vpop.permute.xlu0 %801  ;;  %v3436_v53 = vpop.permute.xlu1 %799 }
 0x178   : > { %6677 = vst [vmem:[#allocation20_spill] sm:$0xff] %v3434_v52  ;;  %6678 = vst [vmem:[#allocation21_spill] sm:$0xff] %v3436_v53 }
 0x179   : > { %953 = vrot.lane.b32.xlu0 %v3312_v14, %s3022_s14  ;;  %951 = vrot.lane.b32.xlu1 %v3310_v13, %s3022_s14  ;;  %s2794_s14 = sld [smem:[#allocation2 + $0x4]] }
 0x17b   : > { %v3442_v54 = vpop.permute.xlu0 %805  ;;  %v3444_v55 = vpop.permute.xlu1 %803 }
 0x17c   : > { %6679 = vst [vmem:[#allocation22_spill] sm:$0xff] %v3442_v54  ;;  %6680 = vst [vmem:[#allocation23_spill] sm:$0xff] %v3444_v55 }
 0x17d   : > { %994 = vrot.lane.b32.xlu0 %v3304_v12, %s3023_s15  ;;  %992 = vrot.lane.b32.xlu1 %v3302_v11, %s3023_s15 }
 0x17f   : > { %v3450_v56 = vpop.permute.xlu0 %846  ;;  %v3452_v57 = vpop.permute.xlu1 %844 }
 0x180   : > { %6681 = vst [vmem:[#allocation24_spill] sm:$0xff] %v3450_v56  ;;  %6682 = vst [vmem:[#allocation25_spill] sm:$0xff] %v3452_v57  ;;  %v3875_v57 = vstv %s2792_s13  ;;  %v3877_v56 = vstv %s2794_s14  ;;  %s4326_s13 = sld [smem:[#allocation2 + $0x8b]]  ;;  %s3042_s14 = smov 107  }
 0x181   : > { %998 = vrot.lane.b32.xlu0 %v3312_v14, %s3023_s15  ;;  %996 = vrot.lane.b32.xlu1 %v3310_v13, %s3023_s15  ;;  %s2796_s15 = sld [smem:[#allocation2 + $0x5]] }
 0x183   : > { %v3458_v59 = vpop.permute.xlu0 %850  ;;  %v3460_v60 = vpop.permute.xlu1 %848 }
 0x184   : > { %6683 = vst [vmem:[#allocation26_spill] sm:$0xff] %v3458_v59  ;;  %6684 = vst [vmem:[#allocation27_spill] sm:$0xff] %v3460_v60 }
 0x185   : > { %1026 = vrot.lane.b32.xlu0 %v3196_v24, %s3024_s16  ;;  %1024 = vrot.lane.b32.xlu1 %v3194_v23, %s3024_s16 }
 0x187   : > { %v3464_v1 = vpop.permute.xlu0 %891  ;;  %v3466_v2 = vpop.permute.xlu1 %889  ;;  %v3879_v55 = vstv %s2796_s15  ;;  %s4412_s15 = sld [smem:[#allocation2 + $0xc]] }
 0x188   : > { %6685 = vst [vmem:[#allocation28_spill] sm:$0xff] %v3464_v1  ;;  %6686 = vst [vmem:[#allocation29_spill] sm:$0xff] %v3466_v2 }
 0x189   : > { %1030 = vrot.lane.b32.xlu0 %v3204_v28, %s3024_s16  ;;  %1028 = vrot.lane.b32.xlu1 %v3202_v27, %s3024_s16  ;;  %6797 = vst [vmem:[#allocation139_spill] sm:$0xff] %v3879_v55 }
 0x18b   : > { %v3470_v3 = vpop.permute.xlu0 %895  ;;  %v3472_v4 = vpop.permute.xlu1 %893 }
 0x18c   : > { %6687 = vst [vmem:[#allocation30_spill] sm:$0xff] %v3470_v3  ;;  %6688 = vst [vmem:[#allocation31_spill] sm:$0xff] %v3472_v4 }
 0x18d   : > { %1039 = vrot.lane.b32.xlu0 %v3304_v12, %s3024_s16  ;;  %1037 = vrot.lane.b32.xlu1 %v3302_v11, %s3024_s16 }
 0x18f   : > { %v3476_v5 = vpop.permute.xlu0 %936  ;;  %v3478_v6 = vpop.permute.xlu1 %934 }
 0x190   : > { %6689 = vst [vmem:[#allocation32_spill] sm:$0xff] %v3476_v5  ;;  %6690 = vst [vmem:[#allocation33_spill] sm:$0xff] %v3478_v6 }
 0x191   : > { %1043 = vrot.lane.b32.xlu0 %v3312_v14, %s3024_s16  ;;  %1041 = vrot.lane.b32.xlu1 %v3310_v13, %s3024_s16  ;;  %s3830_s16 = sld [smem:[#allocation2 + $0x6]] }
 0x193   : > { %v3482_v7 = vpop.permute.xlu0 %940  ;;  %v3484_v8 = vpop.permute.xlu1 %938 }
 0x194   : > { %6691 = vst [vmem:[#allocation34_spill] sm:$0xff] %v3482_v7  ;;  %6692 = vst [vmem:[#allocation35_spill] sm:$0xff] %v3484_v8 }
 0x195   : > { %1071 = vrot.lane.b32.xlu0 %v3196_v24, %s3025_s17  ;;  %1069 = vrot.lane.b32.xlu1 %v3194_v23, %s3025_s17 }
 0x197   : > { %v3488_v9 = vpop.permute.xlu0 %981  ;;  %v3490_v10 = vpop.permute.xlu1 %979 }
 0x198   : > { %6693 = vst [vmem:[#allocation36_spill] sm:$0xff] %v3488_v9  ;;  %6694 = vst [vmem:[#allocation37_spill] sm:$0xff] %v3490_v10 }
 0x199   : > { %1075 = vrot.lane.b32.xlu0 %v3204_v28, %s3025_s17  ;;  %1073 = vrot.lane.b32.xlu1 %v3202_v27, %s3025_s17 }
 0x19b   : > { %v3494_v31 = vpop.permute.xlu0 %985  ;;  %v3496_v63 = vpop.permute.xlu1 %983 }
 0x19c   : > { %6695 = vst [vmem:[#allocation38_spill] sm:$0xff] %v3494_v31  ;;  %6696 = vst [vmem:[#allocation39_spill] sm:$0xff] %v3496_v63 }
 0x19d   : > { %1084 = vrot.lane.b32.xlu0 %v3304_v12, %s3025_s17  ;;  %1082 = vrot.lane.b32.xlu1 %v3302_v11, %s3025_s17 }
 0x19f   : > { %v3500_v44 = vpop.permute.xlu0 %544  ;;  %v3502_v49 = vpop.permute.xlu1 %542 }
 0x1a1   : > { %1088 = vrot.lane.b32.xlu0 %v3312_v14, %s3025_s17  ;;  %1086 = vrot.lane.b32.xlu1 %v3310_v13, %s3025_s17  ;;  %s3832_s17 = sld [smem:[#allocation2 + $0x7]] }
 0x1a3   : > { %v3506_v62 = vpop.permute.xlu0 %548  ;;  %v3508_v43 = vpop.permute.xlu1 %546 }
 0x1a5   : > { %1116 = vrot.lane.b32.xlu0 %v3196_v24, %s3026_s18  ;;  %1114 = vrot.lane.b32.xlu1 %v3194_v23, %s3026_s18 }
 0x1a7   : > { %v3512_v48 = vpop.permute.xlu0 %589  ;;  %v3514_v0 = vpop.permute.xlu1 %587 }
 0x1a9   : > { %1120 = vrot.lane.b32.xlu0 %v3204_v28, %s3026_s18  ;;  %1118 = vrot.lane.b32.xlu1 %v3202_v27, %s3026_s18 }
 0x1ab   : > { %v3518_v45 = vpop.permute.xlu0 %593  ;;  %v3520_v50 = vpop.permute.xlu1 %591 }
 0x1ad   : > { %1129 = vrot.lane.b32.xlu0 %v3304_v12, %s3026_s18  ;;  %1127 = vrot.lane.b32.xlu1 %v3302_v11, %s3026_s18 }
 0x1af   : > { %v3524_v61 = vpop.permute.xlu0 %634  ;;  %v3526_v42 = vpop.permute.xlu1 %632 }
 0x1b1   : > { %1133 = vrot.lane.b32.xlu0 %v3312_v14, %s3026_s18  ;;  %1131 = vrot.lane.b32.xlu1 %v3310_v13, %s3026_s18  ;;  %s3836_s18 = sld [smem:[#allocation2 + $0x8]] }
 0x1b3   : > { %v3530_v47 = vpop.permute.xlu0 %638  ;;  %v3532_v58 = vpop.permute.xlu1 %636 }
 0x1b5   : > { %1161 = vrot.lane.b32.xlu0 %v3196_v24, %s3027_s19  ;;  %1159 = vrot.lane.b32.xlu1 %v3194_v23, %s3027_s19 }
 0x1b7   : > { %v3536_v63 = vpop.permute.xlu0 %679  ;;  %v3538_v31 = vpop.permute.xlu1 %677  ;;  %v3893_v54 = vstv %s3836_s18  ;;  %s4530_s18 = sld [smem:[#allocation2 + $0xd]] }
 0x1b8   : > { %6800 = vst [vmem:[#allocation142_spill] sm:$0xff] %v3893_v54 }
 0x1b9   : > { %1165 = vrot.lane.b32.xlu0 %v3204_v28, %s3027_s19  ;;  %1163 = vrot.lane.b32.xlu1 %v3202_v27, %s3027_s19 }
 0x1bb   : > { %v3542_v10 = vpop.permute.xlu0 %683  ;;  %v3544_v9 = vpop.permute.xlu1 %681 }
 0x1bc   : > { %6697 = vst [vmem:[#allocation40_spill] sm:$0xff] %v3544_v9 }
 0x1bd   : > { %1174 = vrot.lane.b32.xlu0 %v3304_v12, %s3027_s19  ;;  %1172 = vrot.lane.b32.xlu1 %v3302_v11, %s3027_s19 }
 0x1bf   : > { %v3548_v8 = vpop.permute.xlu0 %724  ;;  %v3550_v7 = vpop.permute.xlu1 %722 }
 0x1c0   : > { %6698 = vst [vmem:[#allocation41_spill] sm:$0xff] %v3548_v8  ;;  %6699 = vst [vmem:[#allocation42_spill] sm:$0xff] %v3550_v7 }
 0x1c1   : > { %1178 = vrot.lane.b32.xlu0 %v3312_v14, %s3027_s19  ;;  %1176 = vrot.lane.b32.xlu1 %v3310_v13, %s3027_s19  ;;  %s3838_s19 = sld [smem:[#allocation2 + $0x9]] }
 0x1c3   : > { %v3554_v6 = vpop.permute.xlu0 %728  ;;  %v3556_v5 = vpop.permute.xlu1 %726 }
 0x1c4   : > { %6700 = vst [vmem:[#allocation43_spill] sm:$0xff] %v3554_v6  ;;  %6701 = vst [vmem:[#allocation44_spill] sm:$0xff] %v3556_v5 }
 0x1c5   : > { %1206 = vrot.lane.b32.xlu0 %v3196_v24, %s3028_s20  ;;  %1204 = vrot.lane.b32.xlu1 %v3194_v23, %s3028_s20 }
 0x1c7   : > { %v3560_v4 = vpop.permute.xlu0 %769  ;;  %v3562_v3 = vpop.permute.xlu1 %767  ;;  %v3906_v6 = vstv %s3838_s19  ;;  %s4549_s19 = sld [smem:[#allocation2 + $0x8d]] }
 0x1c8   : > { %6702 = vst [vmem:[#allocation45_spill] sm:$0xff] %v3560_v4  ;;  %6703 = vst [vmem:[#allocation46_spill] sm:$0xff] %v3562_v3 }
 0x1c9   : > { %1210 = vrot.lane.b32.xlu0 %v3204_v28, %s3028_s20  ;;  %1208 = vrot.lane.b32.xlu1 %v3202_v27, %s3028_s20  ;;  %6801 = vst [vmem:[#allocation143_spill] sm:$0xff] %v3906_v6 }
 0x1cb   : > { %v3566_v2 = vpop.permute.xlu0 %773  ;;  %v3568_v1 = vpop.permute.xlu1 %771 }
 0x1cc   : > { %6704 = vst [vmem:[#allocation47_spill] sm:$0xff] %v3566_v2  ;;  %6705 = vst [vmem:[#allocation48_spill] sm:$0xff] %v3568_v1 }
 0x1cd   : > { %1219 = vrot.lane.b32.xlu0 %v3304_v12, %s3028_s20  ;;  %1217 = vrot.lane.b32.xlu1 %v3302_v11, %s3028_s20 }
 0x1cf   : > { %v3572_v60 = vpop.permute.xlu0 %814  ;;  %v3574_v59 = vpop.permute.xlu1 %812 }
 0x1d0   : > { %6706 = vst [vmem:[#allocation49_spill] sm:$0xff] %v3572_v60  ;;  %6707 = vst [vmem:[#allocation50_spill] sm:$0xff] %v3574_v59 }
 0x1d1   : > { %1223 = vrot.lane.b32.xlu0 %v3312_v14, %s3028_s20  ;;  %1221 = vrot.lane.b32.xlu1 %v3310_v13, %s3028_s20  ;;  %s3842_s20 = sld [smem:[#allocation2 + $0xa]] }
 0x1d3   : > { %v3578_v3 = vpop.permute.xlu0 %818  ;;  %v3580_v4 = vpop.permute.xlu1 %816 }
 0x1d4   : > { %6708 = vst [vmem:[#allocation51_spill] sm:$0xff] %v3578_v3  ;;  %6709 = vst [vmem:[#allocation52_spill] sm:$0xff] %v3580_v4 }
 0x1d5   : > { %1251 = vrot.lane.b32.xlu0 %v3196_v24, %s3029_s23  ;;  %1249 = vrot.lane.b32.xlu1 %v3194_v23, %s3029_s23 }
 0x1d7   : > { %v3584_v1 = vpop.permute.xlu0 %859  ;;  %v3586_v2 = vpop.permute.xlu1 %857 }
 0x1d8   : > { %6710 = vst [vmem:[#allocation53_spill] sm:$0xff] %v3584_v1  ;;  %6711 = vst [vmem:[#allocation54_spill] sm:$0xff] %v3586_v2 }
 0x1d9   : > { %1255 = vrot.lane.b32.xlu0 %v3204_v28, %s3029_s23  ;;  %1253 = vrot.lane.b32.xlu1 %v3202_v27, %s3029_s23 }
 0x1db   : > { %v3590_v59 = vpop.permute.xlu0 %863  ;;  %v3592_v60 = vpop.permute.xlu1 %861 }
 0x1dc   : > { %6712 = vst [vmem:[#allocation55_spill] sm:$0xff] %v3590_v59  ;;  %6713 = vst [vmem:[#allocation56_spill] sm:$0xff] %v3592_v60 }
 0x1dd   : > { %1264 = vrot.lane.b32.xlu0 %v3304_v12, %s3029_s23  ;;  %1262 = vrot.lane.b32.xlu1 %v3302_v11, %s3029_s23 }
 0x1df   : > { %v3596_v4 = vpop.permute.xlu0 %904  ;;  %v3598_v3 = vpop.permute.xlu1 %902 }
 0x1e0   : > { %6714 = vst [vmem:[#allocation57_spill] sm:$0xff] %v3596_v4  ;;  %6715 = vst [vmem:[#allocation58_spill] sm:$0xff] %v3598_v3 }
 0x1e1   : > { %1268 = vrot.lane.b32.xlu0 %v3312_v14, %s3029_s23  ;;  %1266 = vrot.lane.b32.xlu1 %v3310_v13, %s3029_s23  ;;  %s3844_s23 = sld [smem:[#allocation2 + $0x80]] }
 0x1e3   : > { %v3602_v2 = vpop.permute.xlu0 %908  ;;  %v3604_v1 = vpop.permute.xlu1 %906 }
 0x1e4   : > { %6716 = vst [vmem:[#allocation59_spill] sm:$0xff] %v3602_v2  ;;  %6717 = vst [vmem:[#allocation60_spill] sm:$0xff] %v3604_v1 }
 0x1e5   : > { %1296 = vrot.lane.b32.xlu0 %v3196_v24, %s3030_s24  ;;  %1294 = vrot.lane.b32.xlu1 %v3194_v23, %s3030_s24 }
 0x1e7   : > { %v3608_v60 = vpop.permute.xlu0 %949  ;;  %v3610_v59 = vpop.permute.xlu1 %947  ;;  %v565_v53 = vstv %s3844_s23  ;;  %s4559_s23 = sld [smem:[#allocation2 + $0x8e]] }
 0x1e8   : > { %6718 = vst [vmem:[#allocation61_spill] sm:$0xff] %v3608_v60  ;;  %6719 = vst [vmem:[#allocation62_spill] sm:$0xff] %v3610_v59 }
 0x1e9   : > { %1300 = vrot.lane.b32.xlu0 %v3204_v28, %s3030_s24  ;;  %1298 = vrot.lane.b32.xlu1 %v3202_v27, %s3030_s24 }
 0x1eb   : > { %v3614_v3 = vpop.permute.xlu0 %953  ;;  %v3616_v4 = vpop.permute.xlu1 %951 }
 0x1ec   : > { %6720 = vst [vmem:[#allocation63_spill] sm:$0xff] %v3614_v3  ;;  %6721 = vst [vmem:[#allocation64_spill] sm:$0xff] %v3616_v4 }
 0x1ed   : > { %1309 = vrot.lane.b32.xlu0 %v3304_v12, %s3030_s24  ;;  %1307 = vrot.lane.b32.xlu1 %v3302_v11, %s3030_s24 }
 0x1ef   : > { %v3620_v1 = vpop.permute.xlu0 %994  ;;  %v3622_v2 = vpop.permute.xlu1 %992 }
 0x1f0   : > { %6722 = vst [vmem:[#allocation65_spill] sm:$0xff] %v3620_v1  ;;  %6723 = vst [vmem:[#allocation66_spill] sm:$0xff] %v3622_v2 }
 0x1f1   : > { %1313 = vrot.lane.b32.xlu0 %v3312_v14, %s3030_s24  ;;  %1311 = vrot.lane.b32.xlu1 %v3310_v13, %s3030_s24  ;;  %s3851_s24 = sld [smem:[#allocation2 + $0x81]] }
 0x1f3   : > { %v3626_v59 = vpop.permute.xlu0 %998  ;;  %v3628_v60 = vpop.permute.xlu1 %996 }
 0x1f4   : > { %6724 = vst [vmem:[#allocation67_spill] sm:$0xff] %v3626_v59  ;;  %6725 = vst [vmem:[#allocation68_spill] sm:$0xff] %v3628_v60 }
 0x1f5   : > { %1341 = vrot.lane.b32.xlu0 %v3196_v24, %s3031_s25  ;;  %1339 = vrot.lane.b32.xlu1 %v3194_v23, %s3031_s25 }
 0x1f7   : > { %v3632_v4 = vpop.permute.xlu0 %1026  ;;  %v3634_v3 = vpop.permute.xlu1 %1024  ;;  %v3923_v52 = vstv %s3851_s24  ;;  %s4569_s24 = sld [smem:[#allocation2 + $0xf]] }
 0x1f8   : > { %6726 = vst [vmem:[#allocation69_spill] sm:$0xff] %v3632_v4  ;;  %6727 = vst [vmem:[#allocation70_spill] sm:$0xff] %v3634_v3 }
 0x1f9   : > { %1345 = vrot.lane.b32.xlu0 %v3204_v28, %s3031_s25  ;;  %1343 = vrot.lane.b32.xlu1 %v3202_v27, %s3031_s25 }
 0x1fb   : > { %v3638_v2 = vpop.permute.xlu0 %1030  ;;  %v3640_v1 = vpop.permute.xlu1 %1028 }
 0x1fc   : > { %6728 = vst [vmem:[#allocation71_spill] sm:$0xff] %v3638_v2  ;;  %6729 = vst [vmem:[#allocation72_spill] sm:$0xff] %v3640_v1 }
 0x1fd   : > { %1354 = vrot.lane.b32.xlu0 %v3304_v12, %s3031_s25  ;;  %1352 = vrot.lane.b32.xlu1 %v3302_v11, %s3031_s25 }
 0x1ff   : > { %v3644_v60 = vpop.permute.xlu0 %1039  ;;  %v3646_v59 = vpop.permute.xlu1 %1037 }
 0x200   : > { %6730 = vst [vmem:[#allocation73_spill] sm:$0xff] %v3644_v60  ;;  %6731 = vst [vmem:[#allocation74_spill] sm:$0xff] %v3646_v59 }
 0x201   : > { %1358 = vrot.lane.b32.xlu0 %v3312_v14, %s3031_s25  ;;  %1356 = vrot.lane.b32.xlu1 %v3310_v13, %s3031_s25  ;;  %s3853_s25 = sld [smem:[#allocation2 + $0x82]] }
 0x203   : > { %v3650_v3 = vpop.permute.xlu0 %1043  ;;  %v3652_v4 = vpop.permute.xlu1 %1041 }
 0x204   : > { %6732 = vst [vmem:[#allocation75_spill] sm:$0xff] %v3650_v3  ;;  %6733 = vst [vmem:[#allocation76_spill] sm:$0xff] %v3652_v4 }
 0x205   : > { %1386 = vrot.lane.b32.xlu0 %v3196_v24, %s3032_s26  ;;  %1384 = vrot.lane.b32.xlu1 %v3194_v23, %s3032_s26 }
 0x207   : > { %v3656_v1 = vpop.permute.xlu0 %1071  ;;  %v3658_v2 = vpop.permute.xlu1 %1069 }
 0x208   : > { %6734 = vst [vmem:[#allocation77_spill] sm:$0xff] %v3656_v1  ;;  %6735 = vst [vmem:[#allocation78_spill] sm:$0xff] %v3658_v2 }
 0x209   : > { %1390 = vrot.lane.b32.xlu0 %v3204_v28, %s3032_s26  ;;  %1388 = vrot.lane.b32.xlu1 %v3202_v27, %s3032_s26 }
 0x20b   : > { %v3662_v59 = vpop.permute.xlu0 %1075  ;;  %v3664_v60 = vpop.permute.xlu1 %1073 }
 0x20c   : > { %6736 = vst [vmem:[#allocation79_spill] sm:$0xff] %v3662_v59  ;;  %6737 = vst [vmem:[#allocation80_spill] sm:$0xff] %v3664_v60 }
 0x20d   : > { %1399 = vrot.lane.b32.xlu0 %v3304_v12, %s3032_s26  ;;  %1397 = vrot.lane.b32.xlu1 %v3302_v11, %s3032_s26 }
 0x20f   : > { %v3668_v4 = vpop.permute.xlu0 %1084  ;;  %v3670_v3 = vpop.permute.xlu1 %1082 }
 0x210   : > { %6738 = vst [vmem:[#allocation81_spill] sm:$0xff] %v3668_v4  ;;  %6739 = vst [vmem:[#allocation82_spill] sm:$0xff] %v3670_v3 }
 0x211   : > { %1403 = vrot.lane.b32.xlu0 %v3312_v14, %s3032_s26  ;;  %1401 = vrot.lane.b32.xlu1 %v3310_v13, %s3032_s26  ;;  %s3857_s26 = sld [smem:[#allocation2 + $0x83]] }
 0x213   : > { %v3674_v2 = vpop.permute.xlu0 %1088  ;;  %v3676_v1 = vpop.permute.xlu1 %1086 }
 0x214   : > { %6740 = vst [vmem:[#allocation83_spill] sm:$0xff] %v3674_v2  ;;  %6741 = vst [vmem:[#allocation84_spill] sm:$0xff] %v3676_v1 }
 0x215   : > { %1431 = vrot.lane.b32.xlu0 %v3196_v24, %s3033_s27  ;;  %1429 = vrot.lane.b32.xlu1 %v3194_v23, %s3033_s27 }
 0x217   : > { %v3680_v60 = vpop.permute.xlu0 %1116  ;;  %v3682_v59 = vpop.permute.xlu1 %1114 }
 0x218   : > { %6742 = vst [vmem:[#allocation85_spill] sm:$0xff] %v3680_v60  ;;  %6743 = vst [vmem:[#allocation86_spill] sm:$0xff] %v3682_v59 }
 0x219   : > { %1435 = vrot.lane.b32.xlu0 %v3204_v28, %s3033_s27  ;;  %1433 = vrot.lane.b32.xlu1 %v3202_v27, %s3033_s27 }
 0x21b   : > { %v3686_v3 = vpop.permute.xlu0 %1120  ;;  %v3688_v4 = vpop.permute.xlu1 %1118 }
 0x21c   : > { %6744 = vst [vmem:[#allocation87_spill] sm:$0xff] %v3686_v3  ;;  %6745 = vst [vmem:[#allocation88_spill] sm:$0xff] %v3688_v4 }
 0x21d   : > { %1444 = vrot.lane.b32.xlu0 %v3304_v12, %s3033_s27  ;;  %1442 = vrot.lane.b32.xlu1 %v3302_v11, %s3033_s27 }
 0x21f   : > { %v3692_v1 = vpop.permute.xlu0 %1129  ;;  %v3694_v2 = vpop.permute.xlu1 %1127 }
 0x220   : > { %6746 = vst [vmem:[#allocation89_spill] sm:$0xff] %v3692_v1  ;;  %6747 = vst [vmem:[#allocation90_spill] sm:$0xff] %v3694_v2 }
 0x221   : > { %1448 = vrot.lane.b32.xlu0 %v3312_v14, %s3033_s27  ;;  %1446 = vrot.lane.b32.xlu1 %v3310_v13, %s3033_s27  ;;  %s3859_s27 = sld [smem:[#allocation2 + $0x84]] }
 0x223   : > { %v3698_v59 = vpop.permute.xlu0 %1133  ;;  %v3700_v60 = vpop.permute.xlu1 %1131 }
 0x224   : > { %6748 = vst [vmem:[#allocation91_spill] sm:$0xff] %v3698_v59  ;;  %6749 = vst [vmem:[#allocation92_spill] sm:$0xff] %v3700_v60 }
 0x225   : > { %1476 = vrot.lane.b32.xlu0 %v3196_v24, %s3034_s28  ;;  %1474 = vrot.lane.b32.xlu1 %v3194_v23, %s3034_s28 }
 0x227   : > { %v3704_v4 = vpop.permute.xlu0 %1161  ;;  %v3706_v3 = vpop.permute.xlu1 %1159  ;;  %v3937_v6 = vstv %s3859_s27  ;;  %s4596_s27 = sld [smem:[#allocation2 + $0x90]] }
 0x228   : > { %6750 = vst [vmem:[#allocation93_spill] sm:$0xff] %v3704_v4  ;;  %6751 = vst [vmem:[#allocation94_spill] sm:$0xff] %v3706_v3 }
 0x229   : > { %1480 = vrot.lane.b32.xlu0 %v3204_v28, %s3034_s28  ;;  %1478 = vrot.lane.b32.xlu1 %v3202_v27, %s3034_s28  ;;  %6806 = vst [vmem:[#allocation148_spill] sm:$0xff] %v3937_v6 }
 0x22b   : > { %v3710_v2 = vpop.permute.xlu0 %1165  ;;  %v3712_v1 = vpop.permute.xlu1 %1163 }
 0x22c   : > { %6752 = vst [vmem:[#allocation95_spill] sm:$0xff] %v3710_v2  ;;  %6753 = vst [vmem:[#allocation96_spill] sm:$0xff] %v3712_v1 }
 0x22d   : > { %1489 = vrot.lane.b32.xlu0 %v3304_v12, %s3034_s28  ;;  %1487 = vrot.lane.b32.xlu1 %v3302_v11, %s3034_s28 }
 0x22f   : > { %v3716_v60 = vpop.permute.xlu0 %1174  ;;  %v3718_v59 = vpop.permute.xlu1 %1172 }
 0x230   : > { %6754 = vst [vmem:[#allocation97_spill] sm:$0xff] %v3716_v60  ;;  %6755 = vst [vmem:[#allocation98_spill] sm:$0xff] %v3718_v59 }
 0x231   : > { %1493 = vrot.lane.b32.xlu0 %v3312_v14, %s3034_s28  ;;  %1491 = vrot.lane.b32.xlu1 %v3310_v13, %s3034_s28  ;;  %s3863_s28 = sld [smem:[#allocation2 + $0x85]] }
 0x233   : > { %v3722_v3 = vpop.permute.xlu0 %1178  ;;  %v3724_v4 = vpop.permute.xlu1 %1176 }
 0x234   : > { %6756 = vst [vmem:[#allocation99_spill] sm:$0xff] %v3722_v3  ;;  %6757 = vst [vmem:[#allocation100_spill] sm:$0xff] %v3724_v4 }
 0x235   : > { %1521 = vrot.lane.b32.xlu0 %v3196_v24, %s3035_s29  ;;  %1519 = vrot.lane.b32.xlu1 %v3194_v23, %s3035_s29 }
 0x237   : > { %v3728_v1 = vpop.permute.xlu0 %1206  ;;  %v3730_v2 = vpop.permute.xlu1 %1204 }
 0x238   : > { %6758 = vst [vmem:[#allocation101_spill] sm:$0xff] %v3728_v1  ;;  %6759 = vst [vmem:[#allocation102_spill] sm:$0xff] %v3730_v2 }
 0x239   : > { %1525 = vrot.lane.b32.xlu0 %v3204_v28, %s3035_s29  ;;  %1523 = vrot.lane.b32.xlu1 %v3202_v27, %s3035_s29 }
 0x23b   : > { %v3734_v59 = vpop.permute.xlu0 %1210  ;;  %v3736_v60 = vpop.permute.xlu1 %1208 }
 0x23c   : > { %6760 = vst [vmem:[#allocation103_spill] sm:$0xff] %v3734_v59  ;;  %6761 = vst [vmem:[#allocation104_spill] sm:$0xff] %v3736_v60 }
 0x23d   : > { %1534 = vrot.lane.b32.xlu0 %v3304_v12, %s3035_s29  ;;  %1532 = vrot.lane.b32.xlu1 %v3302_v11, %s3035_s29 }
 0x23f   : > { %v3740_v4 = vpop.permute.xlu0 %1219  ;;  %v3742_v3 = vpop.permute.xlu1 %1217 }
 0x240   : > { %6762 = vst [vmem:[#allocation105_spill] sm:$0xff] %v3740_v4  ;;  %6763 = vst [vmem:[#allocation106_spill] sm:$0xff] %v3742_v3 }
 0x241   : > { %1538 = vrot.lane.b32.xlu0 %v3312_v14, %s3035_s29  ;;  %1536 = vrot.lane.b32.xlu1 %v3310_v13, %s3035_s29  ;;  %s3881_s29 = sld [smem:[#allocation2 + $0x86]] }
 0x243   : > { %v3746_v2 = vpop.permute.xlu0 %1223  ;;  %v3748_v1 = vpop.permute.xlu1 %1221 }
 0x244   : > { %6764 = vst [vmem:[#allocation107_spill] sm:$0xff] %v3746_v2  ;;  %6765 = vst [vmem:[#allocation108_spill] sm:$0xff] %v3748_v1 }
 0x245   : > { %1566 = vrot.lane.b32.xlu0 %v3196_v24, %s3036_s30  ;;  %1564 = vrot.lane.b32.xlu1 %v3194_v23, %s3036_s30 }
 0x247   : > { %v3752_v60 = vpop.permute.xlu0 %1251  ;;  %v3754_v59 = vpop.permute.xlu1 %1249 }
 0x248   : > { %6766 = vst [vmem:[#allocation109_spill] sm:$0xff] %v3752_v60  ;;  %6767 = vst [vmem:[#allocation110_spill] sm:$0xff] %v3754_v59 }
 0x249   : > { %1570 = vrot.lane.b32.xlu0 %v3204_v28, %s3036_s30  ;;  %1568 = vrot.lane.b32.xlu1 %v3202_v27, %s3036_s30 }
 0x24b   : > { %v3758_v3 = vpop.permute.xlu0 %1255  ;;  %v3760_v4 = vpop.permute.xlu1 %1253 }
 0x24c   : > { %6768 = vst [vmem:[#allocation111_spill] sm:$0xff] %v3758_v3  ;;  %6769 = vst [vmem:[#allocation112_spill] sm:$0xff] %v3760_v4 }
 0x24d   : > { %1579 = vrot.lane.b32.xlu0 %v3304_v12, %s3036_s30  ;;  %1577 = vrot.lane.b32.xlu1 %v3302_v11, %s3036_s30 }
 0x24f   : > { %v3764_v1 = vpop.permute.xlu0 %1264  ;;  %v3766_v2 = vpop.permute.xlu1 %1262 }
 0x250   : > { %6770 = vst [vmem:[#allocation113_spill] sm:$0xff] %v3764_v1  ;;  %6771 = vst [vmem:[#allocation114_spill] sm:$0xff] %v3766_v2 }
 0x251   : > { %1583 = vrot.lane.b32.xlu0 %v3312_v14, %s3036_s30  ;;  %1581 = vrot.lane.b32.xlu1 %v3310_v13, %s3036_s30  ;;  %s3925_s30 = sld [smem:[#allocation2 + $0x87]] }
 0x253   : > { %v3770_v59 = vpop.permute.xlu0 %1268  ;;  %v3772_v60 = vpop.permute.xlu1 %1266 }
 0x254   : > { %6772 = vst [vmem:[#allocation115_spill] sm:$0xff] %v3770_v59  ;;  %6773 = vst [vmem:[#allocation116_spill] sm:$0xff] %v3772_v60 }
 0x255   : > { %1631 = vrot.lane.b32.xlu0 %v3196_v24, %s3037_s7  ;;  %1629 = vrot.lane.b32.xlu1 %v3194_v23, %s3037_s7 }
 0x257   : > { %v3776_v4 = vpop.permute.xlu0 %1296  ;;  %v3778_v3 = vpop.permute.xlu1 %1294 }
 0x258   : > { %6774 = vst [vmem:[#allocation117_spill] sm:$0xff] %v3776_v4  ;;  %6775 = vst [vmem:[#allocation118_spill] sm:$0xff] %v3778_v3 }
 0x259   : > { %1635 = vrot.lane.b32.xlu0 %v3204_v28, %s3037_s7  ;;  %1633 = vrot.lane.b32.xlu1 %v3202_v27, %s3037_s7 }
 0x25b   : > { %v3782_v2 = vpop.permute.xlu0 %1300  ;;  %v3784_v1 = vpop.permute.xlu1 %1298 }
 0x25c   : > { %6776 = vst [vmem:[#allocation119_spill] sm:$0xff] %v3782_v2  ;;  %6777 = vst [vmem:[#allocation120_spill] sm:$0xff] %v3784_v1 }
 0x25d   : > { %1644 = vrot.lane.b32.xlu0 %v3304_v12, %s3037_s7  ;;  %1642 = vrot.lane.b32.xlu1 %v3302_v11, %s3037_s7 }
 0x25f   : > { %v3788_v60 = vpop.permute.xlu0 %1309  ;;  %v3790_v59 = vpop.permute.xlu1 %1307 }
 0x260   : > { %6778 = vst [vmem:[#allocation121_spill] sm:$0xff] %v3788_v60  ;;  %6779 = vst [vmem:[#allocation122_spill] sm:$0xff] %v3790_v59 }
 0x261   : > { %1648 = vrot.lane.b32.xlu0 %v3312_v14, %s3037_s7  ;;  %1646 = vrot.lane.b32.xlu1 %v3310_v13, %s3037_s7  ;;  %s3040_s7 = smov 109  }
 0x263   : > { %v3794_v3 = vpop.permute.xlu0 %1313  ;;  %v3796_v4 = vpop.permute.xlu1 %1311 }
 0x264   : > { %6780 = vst [vmem:[#allocation123_spill] sm:$0xff] %v3794_v3  ;;  %6781 = vst [vmem:[#allocation124_spill] sm:$0xff] %v3796_v4 }
 0x265   : > { %1676 = vrot.lane.b32.xlu0 %v3196_v24, %s3038_s8  ;;  %1674 = vrot.lane.b32.xlu1 %v3194_v23, %s3038_s8 }
 0x267   : > { %v3800_v1 = vpop.permute.xlu0 %1341  ;;  %v3802_v2 = vpop.permute.xlu1 %1339 }
 0x268   : > { %6782 = vst [vmem:[#allocation125_spill] sm:$0xff] %v3800_v1  ;;  %6783 = vst [vmem:[#allocation126_spill] sm:$0xff] %v3802_v2 }
 0x269   : > { %1680 = vrot.lane.b32.xlu0 %v3204_v28, %s3038_s8  ;;  %1678 = vrot.lane.b32.xlu1 %v3202_v27, %s3038_s8 }
 0x26b   : > { %v3806_v59 = vpop.permute.xlu0 %1345  ;;  %v3808_v60 = vpop.permute.xlu1 %1343 }
 0x26c   : > { %6784 = vst [vmem:[#allocation127_spill] sm:$0xff] %v3806_v59  ;;  %6785 = vst [vmem:[#allocation128_spill] sm:$0xff] %v3808_v60  ;;  %v3870_v60 = vstv %s2790_s12  ;;  %s4245_s12 = sld [smem:[#allocation2 + $0xb]] }
 0x26d   : > { %1689 = vrot.lane.b32.xlu0 %v3304_v12, %s3038_s8  ;;  %1687 = vrot.lane.b32.xlu1 %v3302_v11, %s3038_s8 }
 0x26f   : > { %v3812_v4 = vpop.permute.xlu0 %1354  ;;  %v3814_v3 = vpop.permute.xlu1 %1352 }
 0x270   : > { %6786 = vst [vmem:[#allocation129_spill] sm:$0xff] %v3812_v4  ;;  %6787 = vst [vmem:[#allocation130_spill] sm:$0xff] %v3814_v3 }
 0x271   : > { %1693 = vrot.lane.b32.xlu0 %v3312_v14, %s3038_s8  ;;  %1691 = vrot.lane.b32.xlu1 %v3310_v13, %s3038_s8  ;;  %s3990_s8 = sld [smem:[#allocation2 + $0x88]] }
 0x273   : > { %v3818_v2 = vpop.permute.xlu0 %1358  ;;  %v3820_v1 = vpop.permute.xlu1 %1356 }
 0x274   : > { %6788 = vst [vmem:[#allocation131_spill] sm:$0xff] %v3818_v2  ;;  %6789 = vst [vmem:[#allocation132_spill] sm:$0xff] %v3820_v1 }
 0x275   : > { %1721 = vrot.lane.b32.xlu0 %v3196_v24, %s3039_s9  ;;  %1719 = vrot.lane.b32.xlu1 %v3194_v23, %s3039_s9 }
 0x277   : > { %v3826_v3 = vpop.permute.xlu0 %1386  ;;  %v3828_v4 = vpop.permute.xlu1 %1384 }
 0x278   : > { %6790 = vst [vmem:[#allocation133_spill] sm:$0xff] %v3826_v3  ;;  %6791 = vst [vmem:[#allocation134_spill] sm:$0xff] %v3828_v4  ;;  %v6793_v4 = vlaneseq }
 0x279   : > { %1725 = vrot.lane.b32.xlu0 %v3204_v28, %s3039_s9  ;;  %1723 = vrot.lane.b32.xlu1 %v3202_v27, %s3039_s9 }
 0x27a   : > { %v3849_v1 = vand.u32 127, %v6793_v4 }
 0x27b   : > { %v3846_v3 = vpop.permute.xlu0 %1390  ;;  %v3855_v2 = vpop.permute.xlu1 %1388 }
 0x27c   : > { %6792 = vst [vmem:[#allocation135_spill] sm:$0xff] %v3846_v3  ;;  %6794 = vst [vmem:[#allocation136_spill] sm:$0xff] %v3855_v2  ;;  %vm537_vm0 = vcmp.lt.s32.totalorder %v3849_v1, 69  ;;  %v555_v2 = vstv %s554_s10  ;;  %v600_v3 = vstv %s2788_s11  ;;  %vm582_vm1 = vcmp.lt.s32.totalorder %v3849_v1, 68  ;;  %s4121_s10 = sld [smem:[#allocation2 + $0x8a]]  ;;  %s3041_s11 = smov 108  }
 0x27d   : > { %1734 = vrot.lane.b32.xlu0 %v3304_v12, %s3039_s9  ;;  %1732 = vrot.lane.b32.xlu1 %v3302_v11, %s3039_s9  ;;  %vm627_vm2 = vcmp.lt.s32.totalorder %v3849_v1, 67  ;;  %v540_v5 = vsel %vm537_vm0, %v3340_v16, %v3338_v15  ;;  %v538_v54 = vsel %vm537_vm0, %v3348_v18, %v3346_v17  ;;  %v539_v8 = vsel %vm537_vm0, %v3338_v15, %v3348_v18 }
 0x27e   : > { %vm672_vm3 = vcmp.lt.s32.totalorder %v3849_v1, 66  ;;  %v557_v15 = vmul.f32 %v555_v2, %v540_v5  ;;  %v585_v18 = vsel %vm582_vm1, %v3356_v20, %v3354_v19  ;;  %v558_v51 = vmul.f32 %v555_v2, %v539_v8 }
 0x27f   : > { %v3867_v4 = vpop.permute.xlu0 %1399  ;;  %v3872_v59 = vpop.permute.xlu1 %1397  ;;  %v559_v46 = vmul.f32 %v555_v2, %v538_v54  ;;  %v586_v6 = vsel %vm582_vm1, %v3362_v21, %v3356_v20  ;;  %v552_v5 = vsel %vm537_vm0, %v3502_v49, %v3500_v44  ;;  %v584_v54 = vsel %vm582_vm1, %v3354_v19, %v3364_v22 }
 0x280   : > { %6795 = vst [vmem:[#allocation137_spill] sm:$0xff] %v3867_v4  ;;  %6796 = vst [vmem:[#allocation138_spill] sm:$0xff] %v3872_v59  ;;  %v3887_v4 = vstv %s3830_s16  ;;  %v3890_v59 = vstv %s3832_s17  ;;  %vm717_vm4 = vcmp.lt.s32.totalorder %v3849_v1, 65  ;;  %v553_v20 = vsel %vm537_vm0, %v3506_v62, %v3502_v49  ;;  %s4476_s16 = sld [smem:[#allocation2 + $0x8c]]  ;;  %s3043_s17 = smov 106  }
 0x281   : > { %1738 = vrot.lane.b32.xlu0 %v3312_v14, %s3039_s9  ;;  %6798 = vst [vmem:[#allocation140_spill] sm:$0xff] %v3887_v4  ;;  %6799 = vst [vmem:[#allocation141_spill] sm:$0xff] %v3890_v59  ;;  %1736 = vrot.lane.b32.xlu1 %v3310_v13, %s3039_s9  ;;  %v541_v4 = vsel %vm537_vm0, %v3346_v17, %v3340_v16  ;;  %v3909_v59 = vstv %s3842_s20  ;;  %v630_v19 = vsel %vm627_vm2, %v3372_v26, %v3370_v25  ;;  %s4057_s9 = sld [smem:[#allocation2 + $0x89]]  ;;  %s4551_s20 = sld [smem:[#allocation2 + $0xe]] }
 0x282   : > { %6802 = vst [vmem:[#allocation144_spill] sm:$0xff] %v3909_v59  ;;  %v3934_v59 = vstv %s3857_s26  ;;  %v556_v17 = vmul.f32 %v555_v2, %v541_v4  ;;  %v551_v2 = vsel %vm537_vm0, %v3500_v44, %v3508_v43  ;;  %v601_v44 = vmul.f32 %v600_v3, %v586_v6  ;;  %s4584_s26 = sld [smem:[#allocation2 + $0x10]] }
 0x283   : > { %v3911_v7 = vpop.permute.xlu0 %1403  ;;  %v3927_v16 = vpop.permute.xlu1 %1401  ;;  %6805 = vst [vmem:[#allocation147_spill] sm:$0xff] %v3934_v59  ;;  %v631_v49 = vsel %vm627_vm2, %v3378_v29, %v3372_v26  ;;  %v568_v59 = vmul.f32 %v565_v53, %v551_v2  ;;  %v4007_v6 = vmul.f32 %v3870_v60, %v630_v19  ;;  %v628_v26 = vsel %vm627_vm2, %v3380_v30, %v3378_v29 }
 0x284   : > { %6803 = vst [vmem:[#allocation145_spill] sm:$0xff] %v3911_v7  ;;  %6804 = vst [vmem:[#allocation146_spill] sm:$0xff] %v3927_v16  ;;  %v3931_v7 = vstv %s3853_s25  ;;  %v3946_v16 = vstv %s3863_s28  ;;  %v597_v29 = vsel %vm582_vm1, %v3514_v0, %v3512_v48  ;;  %vm762_vm5 = vcmp.lt.s32.totalorder %v3849_v1, 64  ;;  %s4571_s25 = sld [smem:[#allocation2 + $0x8f]]  ;;  %s4598_s28 = sld [smem:[#allocation2 + $0x11]] }
 0x285   : > { %1766 = vrot.lane.b32.xlu0 %v3196_v24, %s3040_s7  ;;  %6807 = vst [vmem:[#allocation149_spill] sm:$0xff] %v3946_v16  ;;  %1764 = vrot.lane.b32.xlu1 %v3194_v23, %s3040_s7  ;;  %v583_v16 = vsel %vm582_vm1, %v3364_v22, %v3362_v21  ;;  %v602_v21 = vmul.f32 %v600_v3, %v585_v18  ;;  %vm807_vm6 = vcmp.lt.s32.totalorder %v3849_v1, 63  ;;  %vm852_vm7 = vcmp.lt.s32.totalorder %v3849_v1, 47 }
 0x286   : > { %v550_v22 = vsel %vm537_vm0, %v3508_v43, %v3506_v62  ;;  %v629_v18 = vsel %vm627_vm2, %v3370_v25, %v3380_v30  ;;  %v567_v43 = vmul.f32 %v565_v53, %v552_v5  ;;  %v603_v62 = vmul.f32 %v600_v3, %v584_v54 }
 0x287   : > { %v3958_v4 = vpop.permute.xlu0 %1431  ;;  %v3977_v8 = vpop.permute.xlu1 %1429  ;;  %v569_v9 = vmul.f32 %v565_v53, %v550_v22  ;;  %v4014_v25 = vstv %s3925_s30  ;;  %v4019_v54 = vmul.f32 %v3870_v60, %v631_v49  ;;  %v676_v30 = vsel %vm672_vm3, %v3394_v34, %v3388_v33  ;;  %s4628_s30 = sld [smem:[#allocation2 + $0x12]] }
 0x288   : > { %6808 = vst [vmem:[#allocation150_spill] sm:$0xff] %v3958_v4  ;;  %6809 = vst [vmem:[#allocation151_spill] sm:$0xff] %v3977_v8  ;;  %v3988_v4 = vstv %s3881_s29  ;;  %v604_v8 = vmul.f32 %v600_v3, %v583_v16  ;;  %v4022_v3 = vmul.f32 %v3870_v60, %v629_v18  ;;  %v675_v16 = vsel %vm672_vm3, %v3388_v33, %v3386_v32  ;;  %s4607_s29 = sld [smem:[#allocation2 + $0x91]] }
 0x289   : > { %6810 = vst [vmem:[#allocation152_spill] sm:$0xff] %v3988_v4  ;;  %1770 = vrot.lane.b32.xlu0 %v3204_v28, %s3040_s7  ;;  %1768 = vrot.lane.b32.xlu1 %v3202_v27, %s3040_s7  ;;  %v566_v4 = vmul.f32 %v565_v53, %v553_v20  ;;  %v571_v53 = vadd.f32 %v567_v43, %v557_v15  ;;  %vm897_vm8 = vcmp.lt.s32.totalorder %v3849_v1, 46  ;;  %vm942_vm9 = vcmp.lt.s32.totalorder %v3849_v1, 45 }
 0x28a   : > { %v598_v20 = vsel %vm582_vm1, %v3518_v45, %v3514_v0  ;;  %v596_v2 = vsel %vm582_vm1, %v3512_v48, %v3520_v50  ;;  %v674_v33 = vsel %vm672_vm3, %v3386_v32, %v3396_v35  ;;  %v572_v19 = vadd.f32 %v568_v59, %v558_v51 }
 0x28b   : > { %v4004_v55 = vpop.permute.xlu0 %1435  ;;  %v4016_v5 = vpop.permute.xlu1 %1433  ;;  %v570_v15 = vadd.f32 %v566_v4, %v556_v17  ;;  %v595_v0 = vsel %vm582_vm1, %v3520_v50, %v3518_v45  ;;  %v649_v48 = vmul.f32 %v3870_v60, %v628_v26  ;;  %v4063_v49 = vmul.f32 %v3875_v57, %v675_v16 }
 0x28c   : > { %v573_v18 = vadd.f32 %v569_v9, %v559_v46  ;;  %v612_v43 = vmul.f32 %v3923_v52, %v597_v29  ;;  %v673_v51 = vsel %vm672_vm3, %v3396_v35, %v3394_v34  ;;  %v611_v45 = vmul.f32 %v3923_v52, %v598_v20 }
 0x28d   : > { %1779 = vrot.lane.b32.xlu0 %v3304_v12, %s3040_s7  ;;  %1777 = vrot.lane.b32.xlu1 %v3302_v11, %s3040_s7  ;;  %v613_v50 = vmul.f32 %v3923_v52, %v596_v2  ;;  %v4075_v59 = vstv %s3990_s8  ;;  %v4080_v46 = vmul.f32 %v3875_v57, %v676_v30  ;;  %v4083_v60 = vmul.f32 %v3875_v57, %v674_v33  ;;  %s3044_s8 = smov 105  }
 0x28e   : > { %v606_v9 = vadd.f32 %v602_v21, %v571_v53  ;;  %v614_v17 = vmul.f32 %v3923_v52, %v595_v0  ;;  %v4092_v34 = vsel %vm717_vm4, %v3404_v37, %v3402_v36  ;;  %v605_v35 = vadd.f32 %v601_v44, %v570_v15 }
 0x28f   : > { %v4059_v22 = vpop.permute.xlu0 %1444  ;;  %v4066_v32 = vpop.permute.xlu1 %1442  ;;  %6811 = vst [vmem:[#allocation153_spill] sm:$0xff] %v4092_v34  ;;  %v607_v4 = vadd.f32 %v603_v62, %v572_v19  ;;  %v642_v26 = vsel %vm627_vm2, %v3526_v42, %v3524_v61  ;;  %v608_v52 = vadd.f32 %v604_v8, %v573_v18  ;;  %v643_v29 = vsel %vm627_vm2, %v3530_v47, %v3526_v42 }
 0x290   : > { %v616_v21 = vadd.f32 %v612_v43, %v606_v9  ;;  %v641_v44 = vsel %vm627_vm2, %v3524_v61, %v3532_v58  ;;  %v4115_v30 = vsel %vm717_vm4, %v3410_v38, %v3404_v37  ;;  %v615_v8 = vadd.f32 %v611_v45, %v605_v35 }
 0x291   : > { %1783 = vrot.lane.b32.xlu0 %v3312_v14, %s3040_s7  ;;  %1781 = vrot.lane.b32.xlu1 %v3310_v13, %s3040_s7  ;;  %6812 = vst [vmem:[#allocation154_spill] sm:$0xff] %v4115_v30  ;;  %v617_v53 = vadd.f32 %v613_v50, %v607_v4  ;;  %v640_v42 = vsel %vm627_vm2, %v3532_v58, %v3530_v47  ;;  %v4142_v33 = vstv %s4057_s9  ;;  %vm987_vm10 = vcmp.lt.s32.totalorder %v3849_v1, 44  ;;  %s4654_s7 = sld [smem:[#allocation2 + $0x92]]  ;;  %s4691_s9 = sld [smem:[#allocation2 + $0x13]] }
 0x292   : > { %v694_v61 = vmul.f32 %v3875_v57, %v673_v51  ;;  %v4128_v20 = vmul.f32 %v3877_v56, %v4092_v34  ;;  %v618_v37 = vadd.f32 %v614_v17, %v608_v52  ;;  %v657_v2 = vmul.f32 %v3931_v7, %v642_v26  ;;  %v6876_v34 = vld [vmem:[#allocation53_spill] sm:$0xff] }
 0x293   : > { %v4098_v16 = vpop.permute.xlu0 %1448  ;;  %v4109_v62 = vpop.permute.xlu1 %1446  ;;  %v4137_v58 = vsel %vm717_vm4, %v3412_v39, %v3410_v38  ;;  %v656_v47 = vmul.f32 %v3931_v7, %v643_v29  ;;  %v658_v57 = vmul.f32 %v3931_v7, %v641_v44  ;;  %v4148_v19 = vmul.f32 %v3877_v56, %v4115_v30 }
 0x294   : > { %6813 = vst [vmem:[#allocation155_spill] sm:$0xff] %v4137_v58  ;;  %v4154_v0 = vsel %vm717_vm4, %v3402_v36, %v3412_v39  ;;  %v651_v38 = vadd.f32 %v4007_v6, %v616_v21  ;;  %v659_v18 = vmul.f32 %v3931_v7, %v640_v42  ;;  %v4164_v51 = vsel %vm762_vm5, %v3420_v41, %v3418_v40  ;;  %v6818_v21 = vld [vmem:[#allocation147_spill] sm:$0xff] }
 0x295   : > { %1811 = vrot.lane.b32.xlu0 %v3196_v24, %s3041_s11  ;;  %1809 = vrot.lane.b32.xlu1 %v3194_v23, %s3041_s11  ;;  %6814 = vst [vmem:[#allocation156_spill] sm:$0xff] %v4154_v0  ;;  %6815 = vst [vmem:[#allocation157_spill] sm:$0xff] %v4164_v51  ;;  %v650_v45 = vadd.f32 %v4019_v54, %v615_v8  ;;  %v652_v50 = vadd.f32 %v4022_v3, %v617_v53  ;;  %v6816_v54 = vld [vmem:[#allocation40_spill] sm:$0xff]  ;;  %v6819_v8 = vld [vmem:[#allocation18_spill] sm:$0xff]  ;;  %vm1032_vm11 = vcmp.lt.s32.totalorder %v3849_v1, 43 }
 0x296   : > { %v687_v36 = vsel %vm672_vm3, %v3538_v31, %v3536_v63  ;;  %v653_v39 = vadd.f32 %v649_v48, %v618_v37  ;;  %v661_v7 = vadd.f32 %v657_v2, %v651_v38  ;;  %v688_v6 = vsel %vm672_vm3, %v3542_v10, %v3538_v31  ;;  %v6821_v37 = vld [vmem:[#allocation19_spill] sm:$0xff]  ;;  %v6824_v38 = vld [vmem:[#allocation20_spill] sm:$0xff] }
 0x297   : > { %v4144_v15 = vpop.permute.xlu0 %1476  ;;  %v4158_v43 = vpop.permute.xlu1 %1474  ;;  %v686_v3 = vsel %vm672_vm3, %v3536_v63, %v6816_v54  ;;  %v738_v9 = vmul.f32 %v3877_v56, %v4154_v0  ;;  %v660_v17 = vadd.f32 %v656_v47, %v650_v45  ;;  %v662_v48 = vadd.f32 %v658_v57, %v652_v50  ;;  %v6817_v63 = vld [vmem:[#allocation139_spill] sm:$0xff] }
 0x298   : > { %v685_v35 = vsel %vm672_vm3, %v6816_v54, %v3542_v10  ;;  %v739_v4 = vmul.f32 %v3877_v56, %v4137_v58  ;;  %v4197_v26 = vmul.f32 %v6817_v63, %v4164_v51  ;;  %v663_v52 = vadd.f32 %v659_v18, %v653_v39  ;;  %v6825_v18 = vld [vmem:[#allocation21_spill] sm:$0xff]  ;;  %v6863_v0 = vld [vmem:[#allocation51_spill] sm:$0xff] }
 0x299   : > { %1815 = vrot.lane.b32.xlu0 %v3204_v28, %s3041_s11  ;;  %1813 = vrot.lane.b32.xlu1 %v3202_v27, %s3041_s11  ;;  %v702_v29 = vmul.f32 %v6818_v21, %v687_v36  ;;  %v4206_v53 = vsel %vm762_vm5, %v6819_v8, %v3420_v41  ;;  %v701_v10 = vmul.f32 %v6818_v21, %v688_v6  ;;  %v4211_v56 = vstv %s4121_s10  ;;  %v6827_v39 = vld [vmem:[#allocation41_spill] sm:$0xff]  ;;  %s4722_s10 = sld [smem:[#allocation2 + $0x93]] }
 0x29a   : > { %6820 = vst [vmem:[#allocation40_spill] sm:$0xff] %v4206_v53  ;;  %v703_v42 = vmul.f32 %v6818_v21, %v686_v3  ;;  %v4219_v2 = vsel %vm762_vm5, %v6821_v37, %v6819_v8  ;;  %v4225_v41 = vsel %vm762_vm5, %v3418_v40, %v6821_v37  ;;  %v696_v47 = vadd.f32 %v4063_v49, %v661_v7  ;;  %v6828_v40 = vld [vmem:[#allocation42_spill] sm:$0xff]  ;;  %v6830_v3 = vld [vmem:[#allocation43_spill] sm:$0xff] }
 0x29b   : > { %v4191_v31 = vpop.permute.xlu0 %1480  ;;  %v4200_v44 = vpop.permute.xlu1 %1478  ;;  %6822 = vst [vmem:[#allocation139_spill] sm:$0xff] %v4219_v2  ;;  %6823 = vst [vmem:[#allocation147_spill] sm:$0xff] %v4225_v41  ;;  %v704_v57 = vmul.f32 %v6818_v21, %v685_v35  ;;  %v4235_v45 = vsel %vm807_vm6, %v6825_v18, %v6824_v38  ;;  %v695_v50 = vadd.f32 %v4080_v46, %v660_v17  ;;  %v6832_v46 = vld [vmem:[#allocation44_spill] sm:$0xff]  ;;  %vm1077_vm12 = vcmp.lt.s32.totalorder %v3849_v1, 42 }
 0x29c   : > { %6826 = vst [vmem:[#allocation18_spill] sm:$0xff] %v4235_v45  ;;  %v697_v36 = vadd.f32 %v4083_v60, %v662_v48  ;;  %v4243_v49 = vsel %vm717_vm4, %v6828_v40, %v6827_v39  ;;  %v698_v6 = vadd.f32 %v694_v61, %v663_v52  ;;  %v706_v54 = vadd.f32 %v702_v29, %v696_v47  ;;  %v6835_v47 = vld [vmem:[#allocation148_spill] sm:$0xff] }
 0x29d   : > { %1824 = vrot.lane.b32.xlu0 %v3304_v12, %s3041_s11  ;;  %1822 = vrot.lane.b32.xlu1 %v3302_v11, %s3041_s11  ;;  %6829 = vst [vmem:[#allocation19_spill] sm:$0xff] %v4243_v49  ;;  %v4253_v35 = vsel %vm717_vm4, %v6830_v3, %v6828_v40  ;;  %v4259_v60 = vsel %vm717_vm4, %v6827_v39, %v6832_v46  ;;  %vm1122_vm13 = vcmp.lt.s32.totalorder %v3849_v1, 41  ;;  %vm1167_vm14 = vcmp.lt.s32.totalorder %v3849_v1, 25 }
 0x29e   : > { %6831 = vst [vmem:[#allocation20_spill] sm:$0xff] %v4253_v35  ;;  %6833 = vst [vmem:[#allocation21_spill] sm:$0xff] %v4259_v60  ;;  %v781_v48 = vmul.f32 %v6817_v63, %v4206_v53  ;;  %v705_v21 = vadd.f32 %v701_v10, %v695_v50  ;;  %v707_v61 = vadd.f32 %v703_v42, %v697_v36  ;;  %v6836_v42 = vld [vmem:[#allocation140_spill] sm:$0xff]  ;;  %v6837_v36 = vld [vmem:[#allocation22_spill] sm:$0xff]  ;;  %vm1212_vm15 = vcmp.lt.s32.totalorder %v3849_v1, 24 }
 0x29f   : > { %v4247_v7 = vpop.permute.xlu0 %1489  ;;  %v4261_v17 = vpop.permute.xlu1 %1487  ;;  %v4269_v52 = vsel %vm717_vm4, %v6832_v46, %v6830_v3  ;;  %v783_v29 = vmul.f32 %v6817_v63, %v4225_v41  ;;  %v784_v8 = vmul.f32 %v6817_v63, %v4219_v2  ;;  %v708_v37 = vadd.f32 %v704_v57, %v698_v6  ;;  %v6839_v6 = vld [vmem:[#allocation23_spill] sm:$0xff]  ;;  %v6843_v41 = vld [vmem:[#allocation24_spill] sm:$0xff]  ;;  %v6844_v53 = vld [vmem:[#allocation25_spill] sm:$0xff] }
 0x2a0   : > { %6834 = vst [vmem:[#allocation41_spill] sm:$0xff] %v4269_v52  ;;  %v747_v10 = vmul.f32 %v6835_v47, %v4243_v49  ;;  %v4283_v50 = vmul.f32 %v6836_v42, %v4235_v45  ;;  %v4289_v39 = vsel %vm807_vm6, %v6837_v36, %v6825_v18  ;;  %v746_v63 = vmul.f32 %v6835_v47, %v4253_v35 }
 0x2a1   : > { %1828 = vrot.lane.b32.xlu0 %v3312_v14, %s3041_s11  ;;  %1826 = vrot.lane.b32.xlu1 %v3310_v13, %s3041_s11  ;;  %6838 = vst [vmem:[#allocation42_spill] sm:$0xff] %v4289_v39  ;;  %v748_v57 = vmul.f32 %v6835_v47, %v4259_v60  ;;  %v4301_v3 = vsel %vm807_vm6, %v6839_v6, %v6837_v36  ;;  %s4754_s11 = sld [smem:[#allocation2 + $0x14]]  ;;  %vm1257_vm0 = vcmp.lt.s32.totalorder %v3849_v1, 23  ;;  %vm1302_vm1 = vcmp.lt.s32.totalorder %v3849_v1, 22 }
 0x2a2   : > { %6840 = vst [vmem:[#allocation43_spill] sm:$0xff] %v4301_v3  ;;  %v4307_v18 = vsel %vm807_vm6, %v6824_v38, %v6839_v6  ;;  %v741_v46 = vadd.f32 %v4128_v20, %v706_v54  ;;  %v749_v45 = vmul.f32 %v6835_v47, %v4269_v52  ;;  %v855_v36 = vsel %vm852_vm7, %v6844_v53, %v6843_v41  ;;  %v6845_v38 = vld [vmem:[#allocation45_spill] sm:$0xff]  ;;  %v6846_v6 = vld [vmem:[#allocation46_spill] sm:$0xff]  ;;  %v6848_v47 = vld [vmem:[#allocation47_spill] sm:$0xff] }
 0x2a3   : > { %v4295_v40 = vpop.permute.xlu0 %1493  ;;  %6841 = vst [vmem:[#allocation44_spill] sm:$0xff] %v4307_v18  ;;  %v4313_v2 = vpop.permute.xlu1 %1491  ;;  %v740_v60 = vadd.f32 %v4148_v19, %v705_v21  ;;  %v742_v35 = vadd.f32 %v738_v9, %v707_v61  ;;  %v4324_v51 = vsel %vm762_vm5, %v6846_v6, %v6845_v38  ;;  %v743_v20 = vadd.f32 %v739_v4, %v708_v37  ;;  %v6850_v9 = vld [vmem:[#allocation48_spill] sm:$0xff] }
 0x2a4   : > { %6842 = vst [vmem:[#allocation148_spill] sm:$0xff] %v4313_v2  ;;  %6847 = vst [vmem:[#allocation140_spill] sm:$0xff] %v4324_v51  ;;  %v751_v54 = vadd.f32 %v747_v10, %v741_v46  ;;  %v4334_v19 = vsel %vm762_vm5, %v6848_v47, %v6846_v6  ;;  %v4340_v21 = vsel %vm762_vm5, %v6845_v38, %v6850_v9  ;;  %v4351_v37 = vstv %s4245_s12  ;;  %s4781_s12 = sld [smem:[#allocation2 + $0x94]] }
 0x2a5   : > { %1856 = vrot.lane.b32.xlu0 %v3196_v24, %s3042_s14  ;;  %6849 = vst [vmem:[#allocation22_spill] sm:$0xff] %v4334_v19  ;;  %6851 = vst [vmem:[#allocation23_spill] sm:$0xff] %v4340_v21  ;;  %1854 = vrot.lane.b32.xlu1 %v3194_v23, %s3042_s14  ;;  %v750_v61 = vadd.f32 %v746_v63, %v740_v60  ;;  %v752_v52 = vadd.f32 %v748_v57, %v742_v35  ;;  %v6854_v60 = vld [vmem:[#allocation149_spill] sm:$0xff]  ;;  %vm1347_vm2 = vcmp.lt.s32.totalorder %v3849_v1, 21 }
 0x2a6   : > { %v4348_v4 = vsel %vm762_vm5, %v6850_v9, %v6848_v47  ;;  %v826_v46 = vmul.f32 %v6836_v42, %v4289_v39  ;;  %v828_v38 = vmul.f32 %v6836_v42, %v4307_v18  ;;  %v753_v6 = vadd.f32 %v749_v45, %v743_v20  ;;  %v6856_v47 = vld [vmem:[#allocation141_spill] sm:$0xff]  ;;  %v6857_v45 = vld [vmem:[#allocation26_spill] sm:$0xff]  ;;  %v6858_v18 = vld [vmem:[#allocation27_spill] sm:$0xff] }
 0x2a7   : > { %6852 = vst [vmem:[#allocation24_spill] sm:$0xff] %v4348_v4  ;;  %v4353_v10 = vpop.permute.xlu0 %1521  ;;  %v792_v35 = vmul.f32 %v6854_v60, %v4324_v51  ;;  %v4361_v63 = vpop.permute.xlu1 %1519  ;;  %v829_v57 = vmul.f32 %v6836_v42, %v4301_v3  ;;  %v4366_v9 = vmul.f32 %v6856_v47, %v855_v36  ;;  %v791_v58 = vmul.f32 %v6854_v60, %v4334_v19  ;;  %v6859_v51 = vld [vmem:[#allocation49_spill] sm:$0xff] }
 0x2a8   : > { %6853 = vst [vmem:[#allocation25_spill] sm:$0xff] %v4353_v10  ;;  %6855 = vst [vmem:[#allocation45_spill] sm:$0xff] %v4361_v63  ;;  %v793_v39 = vmul.f32 %v6854_v60, %v4340_v21  ;;  %v856_v20 = vsel %vm852_vm7, %v6857_v45, %v6844_v53  ;;  %v853_v42 = vsel %vm852_vm7, %v6858_v18, %v6857_v45  ;;  %v6860_v45 = vld [vmem:[#allocation50_spill] sm:$0xff]  ;;  %v6918_v63 = vld [vmem:[#allocation72_spill] sm:$0xff]  ;;  %v4824_v2 = vstv %s4754_s11  ;;  %s5462_s11 = sld [smem:[#allocation2 + $0x9c]] }
 0x2a9   : > { %1860 = vrot.lane.b32.xlu0 %v3204_v28, %s3042_s14  ;;  %v786_v36 = vadd.f32 %v4197_v26, %v751_v54  ;;  %v794_v3 = vmul.f32 %v6854_v60, %v4348_v4  ;;  %1858 = vrot.lane.b32.xlu1 %v3202_v27, %s3042_s14  ;;  %v854_v21 = vsel %vm852_vm7, %v6843_v41, %v6858_v18  ;;  %v6865_v41 = vld [vmem:[#allocation52_spill] sm:$0xff]  ;;  %vm1392_vm3 = vcmp.lt.s32.totalorder %v3849_v1, 20 }
 0x2aa   : > { %v785_v53 = vadd.f32 %v781_v48, %v750_v61  ;;  %v787_v19 = vadd.f32 %v783_v29, %v752_v52  ;;  %v4396_v26 = vsel %vm807_vm6, %v6860_v45, %v6859_v51  ;;  %v788_v60 = vadd.f32 %v784_v8, %v753_v6 }
 0x2ab   : > { %6861 = vst [vmem:[#allocation46_spill] sm:$0xff] %v4396_v26  ;;  %v4398_v54 = vpop.permute.xlu0 %1525  ;;  %v796_v4 = vadd.f32 %v792_v35, %v786_v36  ;;  %v4404_v30 = vsel %vm807_vm6, %v6863_v0, %v6860_v45  ;;  %v4410_v48 = vsel %vm807_vm6, %v6859_v51, %v6865_v41  ;;  %v4414_v52 = vpop.permute.xlu1 %1523  ;;  %v4420_v8 = vsel %vm807_vm6, %v6865_v41, %v6863_v0  ;;  %v6869_v36 = vld [vmem:[#allocation152_spill] sm:$0xff] }
 0x2ac   : > { %6862 = vst [vmem:[#allocation47_spill] sm:$0xff] %v4398_v54  ;;  %6864 = vst [vmem:[#allocation48_spill] sm:$0xff] %v4404_v30  ;;  %v795_v29 = vadd.f32 %v791_v58, %v785_v53  ;;  %v797_v18 = vadd.f32 %v793_v39, %v787_v19  ;;  %v4423_v61 = vstv %s4326_s13  ;;  %v871_v51 = vmul.f32 %v6856_v47, %v856_v20  ;;  %v6870_v0 = vld [vmem:[#allocation28_spill] sm:$0xff]  ;;  %v6871_v19 = vld [vmem:[#allocation29_spill] sm:$0xff]  ;;  %s3045_s13 = smov 104  }
 0x2ad   : > { %6866 = vst [vmem:[#allocation149_spill] sm:$0xff] %v4410_v48  ;;  %6867 = vst [vmem:[#allocation141_spill] sm:$0xff] %v4414_v52  ;;  %1869 = vrot.lane.b32.xlu0 %v3304_v12, %s3042_s14  ;;  %v873_v6 = vmul.f32 %v6856_v47, %v854_v21  ;;  %v798_v35 = vadd.f32 %v794_v3, %v788_v60  ;;  %v837_v58 = vmul.f32 %v6869_v36, %v4396_v26  ;;  %v6873_v20 = vld [vmem:[#allocation30_spill] sm:$0xff]  ;;  %v6891_v52 = vld [vmem:[#allocation60_spill] sm:$0xff] }
 0x2ae   : > { %6868 = vst [vmem:[#allocation26_spill] sm:$0xff] %v4420_v8  ;;  %1867 = vrot.lane.b32.xlu1 %v3302_v11, %s3042_s14  ;;  %v874_v39 = vmul.f32 %v6856_v47, %v853_v42  ;;  %v900_v53 = vsel %vm897_vm8, %v6871_v19, %v6870_v0  ;;  %v836_v45 = vmul.f32 %v6869_v36, %v4404_v30  ;;  %v6874_v47 = vld [vmem:[#allocation31_spill] sm:$0xff]  ;;  %vm1437_vm4 = vcmp.lt.s32.totalorder %v3849_v1, 19 }
 0x2af   : > { %v838_v21 = vmul.f32 %v6869_v36, %v4410_v48  ;;  %v4442_v3 = vpop.permute.xlu0 %1534  ;;  %v901_v60 = vsel %vm897_vm8, %v6873_v20, %v6871_v19  ;;  %v898_v42 = vsel %vm897_vm8, %v6874_v47, %v6873_v20  ;;  %v831_v41 = vadd.f32 %v4283_v50, %v796_v4  ;;  %v4455_v26 = vpop.permute.xlu1 %1532 }
 0x2b0   : > { %6872 = vst [vmem:[#allocation27_spill] sm:$0xff] %v4442_v3  ;;  %v839_v30 = vmul.f32 %v6869_v36, %v4420_v8  ;;  %6875 = vst [vmem:[#allocation49_spill] sm:$0xff] %v4455_v26  ;;  %v899_v48 = vsel %vm897_vm8, %v6870_v0, %v6874_v47  ;;  %v830_v19 = vadd.f32 %v826_v46, %v795_v29  ;;  %v6877_v3 = vld [vmem:[#allocation54_spill] sm:$0xff]  ;;  %v6878_v36 = vld [vmem:[#allocation55_spill] sm:$0xff]  ;;  %v4490_v8 = vstv %s4412_s15  ;;  %s3046_s15 = smov 103  }
 0x2b1   : > { %v832_v49 = vadd.f32 %v828_v38, %v797_v18  ;;  %v867_v20 = vsel %vm852_vm7, %v6877_v3, %v6876_v34  ;;  %1873 = vrot.lane.b32.xlu0 %v3312_v14, %s3042_s14  ;;  %v833_v50 = vadd.f32 %v829_v57, %v798_v35  ;;  %v841_v4 = vadd.f32 %v837_v58, %v831_v41  ;;  %v6879_v47 = vld [vmem:[#allocation56_spill] sm:$0xff]  ;;  %v6880_v38 = vld [vmem:[#allocation142_spill] sm:$0xff] }
 0x2b2   : > { %v868_v0 = vsel %vm852_vm7, %v6878_v36, %v6877_v3  ;;  %v866_v46 = vsel %vm852_vm7, %v6876_v34, %v6879_v47  ;;  %1871 = vrot.lane.b32.xlu1 %v3310_v13, %s3042_s14  ;;  %v917_v29 = vmul.f32 %v6880_v38, %v900_v53  ;;  %v840_v18 = vadd.f32 %v836_v45, %v830_v19  ;;  %s4874_s14 = sld [smem:[#allocation2 + $0x15]] }
 0x2b3   : > { %v842_v57 = vadd.f32 %v838_v21, %v832_v49  ;;  %v865_v35 = vsel %vm852_vm7, %v6879_v47, %v6878_v36  ;;  %v4485_v58 = vpop.permute.xlu0 %1538  ;;  %v916_v3 = vmul.f32 %v6880_v38, %v901_v60  ;;  %v843_v41 = vadd.f32 %v839_v30, %v833_v50  ;;  %v4492_v26 = vpop.permute.xlu1 %1536  ;;  %v6883_v60 = vld [vmem:[#allocation32_spill] sm:$0xff]  ;;  %v6884_v30 = vld [vmem:[#allocation33_spill] sm:$0xff]  ;;  %v6886_v36 = vld [vmem:[#allocation35_spill] sm:$0xff] }
 0x2b4   : > { %6881 = vst [vmem:[#allocation50_spill] sm:$0xff] %v4485_v58  ;;  %v882_v34 = vmul.f32 %v4014_v25, %v867_v20  ;;  %6882 = vst [vmem:[#allocation51_spill] sm:$0xff] %v4492_v26  ;;  %v918_v53 = vmul.f32 %v6880_v38, %v899_v48  ;;  %v919_v49 = vmul.f32 %v6880_v38, %v898_v42  ;;  %v6885_v20 = vld [vmem:[#allocation34_spill] sm:$0xff]  ;;  %v6887_v38 = vld [vmem:[#allocation57_spill] sm:$0xff]  ;;  %vm1482_vm5 = vcmp.lt.s32.totalorder %v3849_v1, 3 }
 0x2b5   : > { %v881_v45 = vmul.f32 %v4014_v25, %v868_v0  ;;  %v883_v21 = vmul.f32 %v4014_v25, %v866_v46  ;;  %1901 = vrot.lane.b32.xlu0 %v3196_v24, %s3043_s17  ;;  %v945_v19 = vsel %vm942_vm9, %v6884_v30, %v6883_v60  ;;  %v946_v48 = vsel %vm942_vm9, %v6885_v20, %v6884_v30  ;;  %v6888_v26 = vld [vmem:[#allocation58_spill] sm:$0xff] }
 0x2b6   : > { %v876_v42 = vadd.f32 %v4366_v9, %v841_v4  ;;  %v884_v50 = vmul.f32 %v4014_v25, %v865_v35  ;;  %1899 = vrot.lane.b32.xlu1 %v3194_v23, %s3043_s17  ;;  %v944_v0 = vsel %vm942_vm9, %v6883_v60, %v6886_v36  ;;  %v875_v47 = vadd.f32 %v871_v51, %v840_v18  ;;  %v6890_v4 = vld [vmem:[#allocation59_spill] sm:$0xff] }
 0x2b7   : > { %v877_v46 = vadd.f32 %v873_v6, %v842_v57  ;;  %v912_v58 = vsel %vm897_vm8, %v6888_v26, %v6887_v38  ;;  %v4520_v30 = vpop.permute.xlu0 %1566  ;;  %v878_v9 = vadd.f32 %v874_v39, %v843_v41  ;;  %v913_v35 = vsel %vm897_vm8, %v6890_v4, %v6888_v26  ;;  %v4532_v6 = vpop.permute.xlu1 %1564  ;;  %v6893_v41 = vld [vmem:[#allocation143_spill] sm:$0xff] }
 0x2b8   : > { %6889 = vst [vmem:[#allocation52_spill] sm:$0xff] %v4520_v30  ;;  %v886_v25 = vadd.f32 %v882_v34, %v876_v42  ;;  %v911_v51 = vsel %vm897_vm8, %v6887_v38, %v6891_v52  ;;  %6892 = vst [vmem:[#allocation152_spill] sm:$0xff] %v4532_v6  ;;  %v943_v39 = vsel %vm942_vm9, %v6886_v36, %v6885_v20  ;;  %v4547_v38 = vstv %s4476_s16  ;;  %v6896_v36 = vld [vmem:[#allocation37_spill] sm:$0xff]  ;;  %s5072_s16 = sld [smem:[#allocation2 + $0x95]] }
 0x2b9   : > { %v885_v18 = vadd.f32 %v881_v45, %v875_v47  ;;  %v887_v57 = vadd.f32 %v883_v21, %v877_v46  ;;  %v910_v26 = vsel %vm897_vm8, %v6891_v52, %v6890_v4  ;;  %1905 = vrot.lane.b32.xlu0 %v3204_v28, %s3043_s17  ;;  %v962_v34 = vmul.f32 %v6893_v41, %v945_v19 }
 0x2ba   : > { %v888_v60 = vadd.f32 %v884_v50, %v878_v9  ;;  %v927_v42 = vmul.f32 %v4075_v59, %v912_v58  ;;  %1903 = vrot.lane.b32.xlu1 %v3202_v27, %s3043_s17  ;;  %v961_v45 = vmul.f32 %v6893_v41, %v946_v48  ;;  %v963_v52 = vmul.f32 %v6893_v41, %v944_v0  ;;  %v6895_v50 = vld [vmem:[#allocation36_spill] sm:$0xff]  ;;  %v6898_v9 = vld [vmem:[#allocation38_spill] sm:$0xff] }
 0x2bb   : > { %v926_v21 = vmul.f32 %v4075_v59, %v913_v35  ;;  %v928_v19 = vmul.f32 %v4075_v59, %v911_v51  ;;  %v4561_v58 = vpop.permute.xlu0 %1570  ;;  %v964_v20 = vmul.f32 %v6893_v41, %v943_v39  ;;  %v990_v47 = vsel %vm987_vm10, %v6896_v36, %v6895_v50  ;;  %v4573_v0 = vpop.permute.xlu1 %1568  ;;  %v6899_v39 = vld [vmem:[#allocation61_spill] sm:$0xff]  ;;  %v6900_v41 = vld [vmem:[#allocation62_spill] sm:$0xff] }
 0x2bc   : > { %6894 = vst [vmem:[#allocation28_spill] sm:$0xff] %v4561_v58  ;;  %v921_v46 = vadd.f32 %v917_v29, %v886_v25  ;;  %v929_v48 = vmul.f32 %v4075_v59, %v910_v26  ;;  %6897 = vst [vmem:[#allocation29_spill] sm:$0xff] %v4573_v0  ;;  %v991_v4 = vsel %vm987_vm10, %v6898_v9, %v6896_v36  ;;  %v6901_v26 = vld [vmem:[#allocation63_spill] sm:$0xff]  ;;  %v4617_v30 = vstv %s4530_s18  ;;  %s5170_s18 = sld [smem:[#allocation2 + $0x16]] }
 0x2bd   : > { %v920_v35 = vadd.f32 %v916_v3, %v885_v18  ;;  %v922_v51 = vadd.f32 %v918_v53, %v887_v57  ;;  %v957_v29 = vsel %vm942_vm9, %v6900_v41, %v6899_v39  ;;  %1914 = vrot.lane.b32.xlu0 %v3304_v12, %s3043_s17  ;;  %v923_v59 = vadd.f32 %v919_v49, %v888_v60  ;;  %v6902_v53 = vld [vmem:[#allocation64_spill] sm:$0xff]  ;;  %v6904_v60 = vld [vmem:[#allocation39_spill] sm:$0xff] }
 0x2be   : > { %v931_v25 = vadd.f32 %v927_v42, %v921_v46  ;;  %v958_v3 = vsel %vm942_vm9, %v6901_v26, %v6900_v41  ;;  %v956_v18 = vsel %vm942_vm9, %v6899_v39, %v6902_v53  ;;  %1912 = vrot.lane.b32.xlu1 %v3302_v11, %s3043_s17  ;;  %v6903_v49 = vld [vmem:[#allocation144_spill] sm:$0xff]  ;;  %v989_v42 = vsel %vm987_vm10, %v6895_v50, %v6904_v60 }
 0x2bf   : > { %v1007_v57 = vmul.f32 %v6903_v49, %v990_v47  ;;  %v930_v36 = vadd.f32 %v926_v21, %v920_v35  ;;  %v932_v46 = vadd.f32 %v928_v19, %v922_v51  ;;  %v4609_v39 = vpop.permute.xlu0 %1579  ;;  %v933_v41 = vadd.f32 %v929_v48, %v923_v59  ;;  %v4619_v58 = vpop.permute.xlu1 %1577 }
 0x2c0   : > { %6905 = vst [vmem:[#allocation30_spill] sm:$0xff] %v4609_v39  ;;  %v972_v0 = vmul.f32 %v4142_v33, %v957_v29  ;;  %v955_v47 = vsel %vm942_vm9, %v6902_v53, %v6901_v26  ;;  %6906 = vst [vmem:[#allocation31_spill] sm:$0xff] %v4619_v58  ;;  %v1006_v21 = vmul.f32 %v6903_v49, %v991_v4  ;;  %v4634_v4 = vstv %s4549_s19  ;;  %v6915_v39 = vld [vmem:[#allocation70_spill] sm:$0xff]  ;;  %s5206_s19 = sld [smem:[#allocation2 + $0x96]] }
 0x2c1   : > { %v988_v19 = vsel %vm987_vm10, %v6904_v60, %v6898_v9  ;;  %v971_v50 = vmul.f32 %v4142_v33, %v958_v3  ;;  %v973_v48 = vmul.f32 %v4142_v33, %v956_v18  ;;  %1918 = vrot.lane.b32.xlu0 %v3312_v14, %s3043_s17  ;;  %v1008_v35 = vmul.f32 %v6903_v49, %v989_v42  ;;  %v6909_v42 = vld [vmem:[#allocation65_spill] sm:$0xff] }
 0x2c2   : > { %v966_v51 = vadd.f32 %v962_v34, %v931_v25  ;;  %v4637_v29 = vstv %s4551_s20  ;;  %1916 = vrot.lane.b32.xlu1 %v3310_v13, %s3043_s17  ;;  %v965_v9 = vadd.f32 %v961_v45, %v930_v36  ;;  %v967_v59 = vadd.f32 %v963_v52, %v932_v46  ;;  %v6910_v36 = vld [vmem:[#allocation66_spill] sm:$0xff]  ;;  %s3047_s17 = smov 87   ;;  %s3048_s20 = smov 86  }
 0x2c3   : > { %v974_v26 = vmul.f32 %v4142_v33, %v955_v47  ;;  %v4644_v3 = vstv %s4559_s23  ;;  %v4646_v53 = vpop.permute.xlu0 %1583  ;;  %v968_v34 = vadd.f32 %v964_v20, %v933_v41  ;;  %v4649_v18 = vstv %s4569_s24  ;;  %v4656_v45 = vpop.permute.xlu1 %1581  ;;  %v6911_v47 = vld [vmem:[#allocation67_spill] sm:$0xff]  ;;  %s5274_s23 = sld [smem:[#allocation2 + $0x17]] }
 0x2c4   : > { %6907 = vst [vmem:[#allocation53_spill] sm:$0xff] %v4646_v53  ;;  %v976_v25 = vadd.f32 %v972_v0, %v966_v51  ;;  %v4652_v60 = vstv %s4571_s25  ;;  %6908 = vst [vmem:[#allocation54_spill] sm:$0xff] %v4656_v45  ;;  %v975_v33 = vadd.f32 %v971_v50, %v965_v9  ;;  %v977_v52 = vadd.f32 %v973_v48, %v967_v59  ;;  %v6912_v9 = vld [vmem:[#allocation68_spill] sm:$0xff]  ;;  %v6916_v53 = vld [vmem:[#allocation71_spill] sm:$0xff]  ;;  %s5276_s24 = sld [smem:[#allocation2 + $0x97]]  ;;  %s5374_s25 = sld [smem:[#allocation2 + $0x18]] }
 0x2c5   : > { %v1002_v46 = vsel %vm987_vm10, %v6910_v36, %v6909_v42  ;;  %v1003_v20 = vsel %vm987_vm10, %v6911_v47, %v6910_v36  ;;  %1946 = vrot.lane.b32.xlu0 %v3196_v24, %s3044_s8  ;;  %v1009_v0 = vmul.f32 %v6903_v49, %v988_v19  ;;  %v4670_v41 = vstv %s4584_s26  ;;  %s5387_s26 = sld [smem:[#allocation2 + $0x98]] }
 0x2c6   : > { %v4673_v50 = vstv %s4596_s27  ;;  %v4676_v48 = vstv %s4598_s28  ;;  %1944 = vrot.lane.b32.xlu1 %v3194_v23, %s3044_s8  ;;  %v978_v51 = vadd.f32 %v974_v26, %v968_v34  ;;  %v1000_v59 = vsel %vm987_vm10, %v6912_v9, %v6911_v47  ;;  %v6914_v34 = vld [vmem:[#allocation69_spill] sm:$0xff]  ;;  %s3049_s27 = smov 85   ;;  %s5437_s28 = sld [smem:[#allocation2 + $0x19]] }
 0x2c7   : > { %v1001_v49 = vsel %vm987_vm10, %v6909_v42, %v6912_v9  ;;  %v4689_v19 = vstv %s4607_s29  ;;  %v4693_v36 = vpop.permute.xlu0 %1631  ;;  %v1017_v45 = vmul.f32 %v4211_v56, %v1002_v46  ;;  %v1016_v26 = vmul.f32 %v4211_v56, %v1003_v20  ;;  %v4705_v9 = vpop.permute.xlu1 %1629  ;;  %s5439_s29 = sld [smem:[#allocation2 + $0x99]] }
 0x2c8   : > { %6913 = vst [vmem:[#allocation55_spill] sm:$0xff] %v4693_v36  ;;  %v1035_v47 = vsel %vm1032_vm11, %v6915_v39, %v6914_v34  ;;  %v1036_v42 = vsel %vm1032_vm11, %v6916_v53, %v6915_v39  ;;  %6917 = vst [vmem:[#allocation56_spill] sm:$0xff] %v4705_v9  ;;  %v1011_v58 = vadd.f32 %v1007_v57, %v976_v25  ;;  %v4708_v36 = vstv %s4628_s30  ;;  %v6919_v25 = vld [vmem:[#allocation73_spill] sm:$0xff]  ;;  %v6924_v9 = vld [vmem:[#allocation76_spill] sm:$0xff]  ;;  %s5444_s30 = sld [smem:[#allocation2 + $0x1a]] }
 0x2c9   : > { %v1010_v6 = vadd.f32 %v1006_v21, %v975_v33  ;;  %v1012_v54 = vadd.f32 %v1008_v35, %v977_v52  ;;  %1950 = vrot.lane.b32.xlu0 %v3204_v28, %s3044_s8  ;;  %v1018_v46 = vmul.f32 %v4211_v56, %v1001_v49  ;;  %v1019_v20 = vmul.f32 %v4211_v56, %v1000_v59  ;;  %v6920_v33 = vld [vmem:[#allocation74_spill] sm:$0xff]  ;;  %v6922_v49 = vld [vmem:[#allocation75_spill] sm:$0xff] }
 0x2ca   : > { %v1033_v39 = vsel %vm1032_vm11, %v6918_v63, %v6916_v53  ;;  %v1034_v57 = vsel %vm1032_vm11, %v6914_v34, %v6918_v63  ;;  %1948 = vrot.lane.b32.xlu1 %v3202_v27, %s3044_s8  ;;  %v1013_v21 = vadd.f32 %v1009_v0, %v978_v51  ;;  %v1052_v35 = vmul.f32 %v4351_v37, %v1035_v47 }
 0x2cb   : > { %v1051_v56 = vmul.f32 %v4351_v37, %v1036_v42  ;;  %v1047_v53 = vsel %vm1032_vm11, %v6920_v33, %v6919_v25  ;;  %v4733_v52 = vpop.permute.xlu0 %1635  ;;  %v1021_v63 = vadd.f32 %v1017_v45, %v1011_v58  ;;  %v1020_v59 = vadd.f32 %v1016_v26, %v1010_v6  ;;  %v4742_v34 = vpop.permute.xlu1 %1633 }
 0x2cc   : > { %6921 = vst [vmem:[#allocation142_spill] sm:$0xff] %v4733_v52  ;;  %v1048_v0 = vsel %vm1032_vm11, %v6922_v49, %v6920_v33  ;;  %v4740_v51 = vstv %s4654_s7  ;;  %6923 = vst [vmem:[#allocation32_spill] sm:$0xff] %v4742_v34  ;;  %v1053_v47 = vmul.f32 %v4351_v37, %v1034_v57  ;;  %v1054_v42 = vmul.f32 %v4351_v37, %v1033_v39  ;;  %v6925_v37 = vld [vmem:[#allocation77_spill] sm:$0xff]  ;;  %v6926_v39 = vld [vmem:[#allocation78_spill] sm:$0xff]  ;;  %s5446_s7 = sld [smem:[#allocation2 + $0x9a]] }
 0x2cd   : > { %v1045_v58 = vsel %vm1032_vm11, %v6924_v9, %v6922_v49  ;;  %v1046_v6 = vsel %vm1032_vm11, %v6919_v25, %v6924_v9  ;;  %1959 = vrot.lane.b32.xlu0 %v3304_v12, %s3044_s8  ;;  %v1022_v45 = vadd.f32 %v1018_v46, %v1012_v54  ;;  %v1023_v26 = vadd.f32 %v1019_v20, %v1013_v21  ;;  %v6928_v20 = vld [vmem:[#allocation79_spill] sm:$0xff] }
 0x2ce   : > { %v1062_v57 = vmul.f32 %v4423_v61, %v1047_v53  ;;  %v1080_v33 = vsel %vm1077_vm12, %v6926_v39, %v6925_v37  ;;  %1957 = vrot.lane.b32.xlu1 %v3302_v11, %s3044_s8  ;;  %v1056_v49 = vadd.f32 %v1052_v35, %v1021_v63  ;;  %v1055_v34 = vadd.f32 %v1051_v56, %v1020_v59  ;;  %v6929_v53 = vld [vmem:[#allocation80_spill] sm:$0xff] }
 0x2cf   : > { %v1061_v9 = vmul.f32 %v4423_v61, %v1048_v0  ;;  %v4767_v25 = vstv %s4691_s9  ;;  %v4769_v52 = vpop.permute.xlu0 %1644  ;;  %v1063_v54 = vmul.f32 %v4423_v61, %v1046_v6  ;;  %v1064_v46 = vmul.f32 %v4423_v61, %v1045_v58  ;;  %v4783_v56 = vpop.permute.xlu1 %1642  ;;  %v6931_v6 = vld [vmem:[#allocation81_spill] sm:$0xff]  ;;  %s5454_s9 = sld [smem:[#allocation2 + $0x9b]] }
 0x2d0   : > { %6927 = vst [vmem:[#allocation33_spill] sm:$0xff] %v4769_v52  ;;  %v1081_v21 = vsel %vm1077_vm12, %v6928_v20, %v6926_v39  ;;  %v1079_v35 = vsel %vm1077_vm12, %v6925_v37, %v6929_v53  ;;  %6930 = vst [vmem:[#allocation34_spill] sm:$0xff] %v4783_v56  ;;  %v1057_v63 = vadd.f32 %v1053_v47, %v1022_v45  ;;  %v6932_v37 = vld [vmem:[#allocation82_spill] sm:$0xff]  ;;  %v6933_v47 = vld [vmem:[#allocation83_spill] sm:$0xff]  ;;  %v4802_v45 = vstv %s4722_s10  ;;  %s5460_s10 = sld [smem:[#allocation2 + $0x1c]] }
 0x2d1   : > { %v1058_v59 = vadd.f32 %v1054_v42, %v1023_v26  ;;  %v1097_v0 = vmul.f32 %v4490_v8, %v1080_v33  ;;  %v1078_v61 = vsel %vm1077_vm12, %v6929_v53, %v6928_v20  ;;  %1963 = vrot.lane.b32.xlu0 %v3312_v14, %s3044_s8  ;;  %v1066_v58 = vadd.f32 %v1062_v57, %v1056_v49  ;;  %v6934_v49 = vld [vmem:[#allocation84_spill] sm:$0xff] }
 0x2d2   : > { %v1092_v39 = vsel %vm1077_vm12, %v6932_v37, %v6931_v6  ;;  %v1093_v42 = vsel %vm1077_vm12, %v6933_v47, %v6932_v37  ;;  %1961 = vrot.lane.b32.xlu1 %v3310_v13, %s3044_s8  ;;  %v1065_v26 = vadd.f32 %v1061_v9, %v1055_v34  ;;  %v1096_v33 = vmul.f32 %v4490_v8, %v1081_v21  ;;  %s5452_s8 = sld [smem:[#allocation2 + $0x1b]] }
 0x2d3   : > { %v1098_v57 = vmul.f32 %v4490_v8, %v1079_v35  ;;  %v1091_v20 = vsel %vm1077_vm12, %v6931_v6, %v6934_v49  ;;  %v4812_v53 = vpop.permute.xlu0 %1648  ;;  %v1067_v56 = vadd.f32 %v1063_v54, %v1057_v63  ;;  %v1068_v37 = vadd.f32 %v1064_v46, %v1058_v59  ;;  %v4819_v9 = vpop.permute.xlu1 %1646  ;;  %v6937_v54 = vld [vmem:[#allocation85_spill] sm:$0xff]  ;;  %v6938_v46 = vld [vmem:[#allocation86_spill] sm:$0xff]  ;;  %v6939_v59 = vld [vmem:[#allocation87_spill] sm:$0xff] }
 0x2d4   : > { %6935 = vst [vmem:[#allocation35_spill] sm:$0xff] %v4812_v53  ;;  %v1099_v52 = vmul.f32 %v4490_v8, %v1078_v61  ;;  %v1090_v34 = vsel %vm1077_vm12, %v6934_v49, %v6933_v47  ;;  %6936 = vst [vmem:[#allocation57_spill] sm:$0xff] %v4819_v9  ;;  %v1101_v21 = vadd.f32 %v1097_v0, %v1066_v58  ;;  %v6940_v61 = vld [vmem:[#allocation88_spill] sm:$0xff]  ;;  %v6943_v9 = vld [vmem:[#allocation90_spill] sm:$0xff]  ;;  %vm1527_vm6 = vcmp.lt.s32.totalorder %v3849_v1, 2 }
 0x2d5   : > { %v1107_v35 = vmul.f32 %v4547_v38, %v1092_v39  ;;  %v1106_v10 = vmul.f32 %v4547_v38, %v1093_v42  ;;  %1991 = vrot.lane.b32.xlu0 %v3196_v24, %s3045_s13  ;;  %v1108_v8 = vmul.f32 %v4547_v38, %v1091_v20  ;;  %v1125_v63 = vsel %vm1122_vm13, %v6938_v46, %v6937_v54  ;;  %v6944_v53 = vld [vmem:[#allocation91_spill] sm:$0xff] }
 0x2d6   : > { %v1126_v0 = vsel %vm1122_vm13, %v6939_v59, %v6938_v46  ;;  %v1124_v58 = vsel %vm1122_vm13, %v6937_v54, %v6940_v61  ;;  %1989 = vrot.lane.b32.xlu1 %v3194_v23, %s3045_s13  ;;  %v1100_v6 = vadd.f32 %v1096_v33, %v1065_v26  ;;  %v1102_v39 = vadd.f32 %v1098_v57, %v1067_v56  ;;  %v6942_v46 = vld [vmem:[#allocation89_spill] sm:$0xff] }
 0x2d7   : > { %v1109_v47 = vmul.f32 %v4547_v38, %v1090_v34  ;;  %v1123_v42 = vsel %vm1122_vm13, %v6940_v61, %v6939_v59  ;;  %v4849_v49 = vpop.permute.xlu0 %1676  ;;  %v1103_v20 = vadd.f32 %v1099_v52, %v1068_v37  ;;  %v1137_v54 = vsel %vm1122_vm13, %v6943_v9, %v6942_v46  ;;  %v4862_v38 = vpop.permute.xlu1 %1674  ;;  %v6946_v37 = vld [vmem:[#allocation92_spill] sm:$0xff] }
 0x2d8   : > { %6941 = vst [vmem:[#allocation58_spill] sm:$0xff] %v4849_v49  ;;  %v1138_v56 = vsel %vm1122_vm13, %v6944_v53, %v6943_v9  ;;  %v4860_v26 = vstv %s4781_s12  ;;  %6945 = vst [vmem:[#allocation59_spill] sm:$0xff] %v4862_v38  ;;  %v1142_v33 = vmul.f32 %v4617_v30, %v1125_v63  ;;  %v1141_v57 = vmul.f32 %v4617_v30, %v1126_v0  ;;  %s5466_s12 = sld [smem:[#allocation2 + $0x1d]] }
 0x2d9   : > { %v1143_v52 = vmul.f32 %v4617_v30, %v1124_v58  ;;  %v1136_v34 = vsel %vm1122_vm13, %v6942_v46, %v6946_v37  ;;  %1995 = vrot.lane.b32.xlu0 %v3204_v28, %s3045_s13  ;;  %v1111_v59 = vadd.f32 %v1107_v35, %v1101_v21  ;;  %v1110_v9 = vadd.f32 %v1106_v10, %v1100_v6  ;;  %v6949_v35 = vld [vmem:[#allocation94_spill] sm:$0xff]  ;;  %v6950_v6 = vld [vmem:[#allocation95_spill] sm:$0xff] }
 0x2da   : > { %v1112_v61 = vadd.f32 %v1108_v8, %v1102_v39  ;;  %v1144_v49 = vmul.f32 %v4617_v30, %v1123_v42  ;;  %1993 = vrot.lane.b32.xlu1 %v3202_v27, %s3045_s13  ;;  %v1113_v63 = vadd.f32 %v1109_v47, %v1103_v20  ;;  %v1152_v0 = vmul.f32 %v4634_v4, %v1137_v54  ;;  %v6948_v30 = vld [vmem:[#allocation93_spill] sm:$0xff]  ;;  %v6951_v47 = vld [vmem:[#allocation96_spill] sm:$0xff] }
 0x2db   : > { %v1151_v58 = vmul.f32 %v4634_v4, %v1138_v56  ;;  %v1135_v46 = vsel %vm1122_vm13, %v6946_v37, %v6944_v53  ;;  %v4884_v21 = vpop.permute.xlu0 %1680  ;;  %v1153_v10 = vmul.f32 %v4634_v4, %v1136_v34  ;;  %v1170_v8 = vsel %vm1167_vm14, %v6949_v35, %v6948_v30  ;;  %v4900_v53 = vpop.permute.xlu1 %1678 }
 0x2dc   : > { %6947 = vst [vmem:[#allocation60_spill] sm:$0xff] %v4884_v21  ;;  %v1171_v39 = vsel %vm1167_vm14, %v6950_v6, %v6949_v35  ;;  %v1169_v42 = vsel %vm1167_vm14, %v6948_v30, %v6951_v47  ;;  %6952 = vst [vmem:[#allocation143_spill] sm:$0xff] %v4900_v53  ;;  %v1146_v20 = vadd.f32 %v1142_v33, %v1111_v59  ;;  %v6953_v21 = vld [vmem:[#allocation97_spill] sm:$0xff]  ;;  %v6954_v30 = vld [vmem:[#allocation98_spill] sm:$0xff]  ;;  %vm1572_vm7 = vcmp.lt.s32.totalorder %v3849_v1, 1 }
 0x2dd   : > { %v1145_v54 = vadd.f32 %v1141_v57, %v1110_v9  ;;  %v1147_v56 = vadd.f32 %v1143_v52, %v1112_v61  ;;  %v1168_v37 = vsel %vm1167_vm14, %v6951_v47, %v6950_v6  ;;  %2004 = vrot.lane.b32.xlu0 %v3304_v12, %s3045_s13  ;;  %v1148_v34 = vadd.f32 %v1144_v49, %v1113_v63  ;;  %v6955_v33 = vld [vmem:[#allocation99_spill] sm:$0xff]  ;;  %v6958_v53 = vld [vmem:[#allocation102_spill] sm:$0xff] }
 0x2de   : > { %v1154_v35 = vmul.f32 %v4634_v4, %v1135_v46  ;;  %v1182_v38 = vsel %vm1167_vm14, %v6954_v30, %v6953_v21  ;;  %v1183_v57 = vsel %vm1167_vm14, %v6955_v33, %v6954_v30  ;;  %2002 = vrot.lane.b32.xlu1 %v3302_v11, %s3045_s13  ;;  %v1187_v52 = vmul.f32 %v4637_v29, %v1170_v8  ;;  %v6956_v4 = vld [vmem:[#allocation100_spill] sm:$0xff] }
 0x2df   : > { %v1186_v59 = vmul.f32 %v4637_v29, %v1171_v39  ;;  %v1188_v49 = vmul.f32 %v4637_v29, %v1169_v42  ;;  %v1181_v9 = vsel %vm1167_vm14, %v6953_v21, %v6956_v4  ;;  %v4926_v61 = vpop.permute.xlu0 %1689  ;;  %v1156_v63 = vadd.f32 %v1152_v0, %v1146_v20  ;;  %v4929_v30 = vpop.permute.xlu1 %1687  ;;  %v6957_v21 = vld [vmem:[#allocation101_spill] sm:$0xff] }
 0x2e0   : > { %v1155_v46 = vadd.f32 %v1151_v58, %v1145_v54  ;;  %v1157_v6 = vadd.f32 %v1153_v10, %v1147_v56  ;;  %v1189_v47 = vmul.f32 %v4637_v29, %v1168_v37  ;;  %v1197_v8 = vmul.f32 %v4644_v3, %v1182_v38  ;;  %v6959_v38 = vld [vmem:[#allocation103_spill] sm:$0xff] }
 0x2e1   : > { %v1196_v39 = vmul.f32 %v4644_v3, %v1183_v57  ;;  %v1180_v42 = vsel %vm1167_vm14, %v6956_v4, %v6955_v33  ;;  %v1215_v0 = vsel %vm1212_vm15, %v6958_v53, %v6957_v21  ;;  %2008 = vrot.lane.b32.xlu0 %v3312_v14, %s3045_s13  ;;  %v1158_v29 = vadd.f32 %v1154_v35, %v1148_v34  ;;  %v6960_v33 = vld [vmem:[#allocation104_spill] sm:$0xff] }
 0x2e2   : > { %v1198_v58 = vmul.f32 %v4644_v3, %v1181_v9  ;;  %v1216_v10 = vsel %vm1212_vm15, %v6959_v38, %v6958_v53  ;;  %v4950_v20 = vstv %s4874_s14  ;;  %2006 = vrot.lane.b32.xlu1 %v3310_v13, %s3045_s13  ;;  %v1191_v54 = vadd.f32 %v1187_v52, %v1156_v63  ;;  %v6961_v9 = vld [vmem:[#allocation105_spill] sm:$0xff]  ;;  %v6962_v52 = vld [vmem:[#allocation106_spill] sm:$0xff]  ;;  %s5468_s13 = sld [smem:[#allocation2 + $0x9d]]  ;;  %s5473_s14 = sld [smem:[#allocation2 + $0x1e]] }
 0x2e3   : > { %v1190_v56 = vadd.f32 %v1186_v59, %v1155_v46  ;;  %v1192_v37 = vadd.f32 %v1188_v49, %v1157_v6  ;;  %v1214_v34 = vsel %vm1212_vm15, %v6957_v21, %v6960_v33  ;;  %v4958_v35 = vpop.permute.xlu0 %1693  ;;  %v1199_v57 = vmul.f32 %v4644_v3, %v1180_v42  ;;  %v4970_v49 = vpop.permute.xlu1 %1691 }
 0x2e4   : > { %v1232_v53 = vmul.f32 %v4649_v18, %v1215_v0  ;;  %v1213_v4 = vsel %vm1212_vm15, %v6960_v33, %v6959_v38  ;;  %v1227_v59 = vsel %vm1212_vm15, %v6962_v52, %v6961_v9  ;;  %v1193_v63 = vadd.f32 %v1189_v47, %v1158_v29  ;;  %v6963_v0 = vld [vmem:[#allocation107_spill] sm:$0xff]  ;;  %v6964_v33 = vld [vmem:[#allocation108_spill] sm:$0xff] }
 0x2e5   : > { %v1201_v46 = vadd.f32 %v1197_v8, %v1191_v54  ;;  %v1200_v6 = vadd.f32 %v1196_v39, %v1190_v56  ;;  %v1231_v21 = vmul.f32 %v4649_v18, %v1216_v10  ;;  %2036 = vrot.lane.b32.xlu0 %v3196_v24, %s3046_s15  ;;  %v1202_v3 = vadd.f32 %v1198_v58, %v1192_v37  ;;  %v6965_v58 = vld [vmem:[#allocation109_spill] sm:$0xff]  ;;  %v6966_v10 = vld [vmem:[#allocation110_spill] sm:$0xff] }
 0x2e6   : > { %v1233_v42 = vmul.f32 %v4649_v18, %v1214_v34  ;;  %v1228_v38 = vsel %vm1212_vm15, %v6963_v0, %v6962_v52  ;;  %v1226_v47 = vsel %vm1212_vm15, %v6961_v9, %v6964_v33  ;;  %2034 = vrot.lane.b32.xlu1 %v3194_v23, %s3046_s15  ;;  %v1234_v8 = vmul.f32 %v4649_v18, %v1213_v4  ;;  %v6967_v9 = vld [vmem:[#allocation111_spill] sm:$0xff]  ;;  %v6968_v4 = vld [vmem:[#allocation112_spill] sm:$0xff] }
 0x2e7   : > { %v1242_v39 = vmul.f32 %v4652_v60, %v1227_v59  ;;  %v1225_v29 = vsel %vm1212_vm15, %v6964_v33, %v6963_v0  ;;  %v1260_v54 = vsel %vm1257_vm0, %v6966_v10, %v6965_v58  ;;  %v4996_v56 = vpop.permute.xlu0 %1721  ;;  %v1203_v37 = vadd.f32 %v1199_v57, %v1193_v63  ;;  %v5007_v59 = vpop.permute.xlu1 %1719 }
 0x2e8   : > { %v1236_v34 = vadd.f32 %v1232_v53, %v1201_v46  ;;  %v1261_v18 = vsel %vm1257_vm0, %v6967_v9, %v6966_v10  ;;  %v1259_v52 = vsel %vm1257_vm0, %v6965_v58, %v6968_v4  ;;  %6969 = vst [vmem:[#allocation36_spill] sm:$0xff] %v5007_v59  ;;  %v1235_v0 = vadd.f32 %v1231_v21, %v1200_v6  ;;  %v6970_v10 = vld [vmem:[#allocation113_spill] sm:$0xff]  ;;  %v6971_v59 = vld [vmem:[#allocation114_spill] sm:$0xff] }
 0x2e9   : > { %v1241_v33 = vmul.f32 %v4652_v60, %v1228_v38  ;;  %v1243_v57 = vmul.f32 %v4652_v60, %v1226_v47  ;;  %v1258_v53 = vsel %vm1257_vm0, %v6968_v4, %v6967_v9  ;;  %2040 = vrot.lane.b32.xlu0 %v3204_v28, %s3046_s15  ;;  %v1237_v63 = vadd.f32 %v1233_v42, %v1202_v3  ;;  %v6973_v3 = vld [vmem:[#allocation115_spill] sm:$0xff] }
 0x2ea   : > { %v1244_v46 = vmul.f32 %v4652_v60, %v1225_v29  ;;  %v1277_v58 = vmul.f32 %v4670_v41, %v1260_v54  ;;  %v1272_v6 = vsel %vm1257_vm0, %v6971_v59, %v6970_v10  ;;  %2038 = vrot.lane.b32.xlu1 %v3202_v27, %s3046_s15  ;;  %v1238_v21 = vadd.f32 %v1234_v8, %v1203_v37  ;;  %v6974_v29 = vld [vmem:[#allocation116_spill] sm:$0xff] }
 0x2eb   : > { %v1246_v38 = vadd.f32 %v1242_v39, %v1236_v34  ;;  %v1276_v47 = vmul.f32 %v4670_v41, %v1261_v18  ;;  %v1278_v9 = vmul.f32 %v4670_v41, %v1259_v52  ;;  %v5027_v4 = vpop.permute.xlu0 %1725  ;;  %v1279_v60 = vmul.f32 %v4670_v41, %v1258_v53  ;;  %v5042_v39 = vpop.permute.xlu1 %1723  ;;  %v6975_v18 = vld [vmem:[#allocation117_spill] sm:$0xff]  ;;  %v6976_v52 = vld [vmem:[#allocation118_spill] sm:$0xff] }
 0x2ec   : > { %6972 = vst [vmem:[#allocation37_spill] sm:$0xff] %v5027_v4  ;;  %v1273_v42 = vsel %vm1257_vm0, %v6973_v3, %v6971_v59  ;;  %v1270_v54 = vsel %vm1257_vm0, %v6974_v29, %v6973_v3  ;;  %v1271_v8 = vsel %vm1257_vm0, %v6970_v10, %v6974_v29  ;;  %v1245_v37 = vadd.f32 %v1241_v33, %v1235_v0  ;;  %v6977_v4 = vld [vmem:[#allocation119_spill] sm:$0xff]  ;;  %v6978_v29 = vld [vmem:[#allocation120_spill] sm:$0xff] }
 0x2ed   : > { %v1247_v34 = vadd.f32 %v1243_v57, %v1237_v63  ;;  %v1287_v41 = vmul.f32 %v4673_v50, %v1272_v6  ;;  %v1305_v59 = vsel %vm1302_vm1, %v6976_v52, %v6975_v18  ;;  %2049 = vrot.lane.b32.xlu0 %v3304_v12, %s3046_s15  ;;  %v1248_v53 = vadd.f32 %v1244_v46, %v1238_v21 }
 0x2ee   : > { %v1281_v3 = vadd.f32 %v1277_v58, %v1246_v38  ;;  %v1306_v10 = vsel %vm1302_vm1, %v6977_v4, %v6976_v52  ;;  %v1304_v0 = vsel %vm1302_vm1, %v6975_v18, %v6978_v29  ;;  %2047 = vrot.lane.b32.xlu1 %v3302_v11, %s3046_s15  ;;  %v1286_v33 = vmul.f32 %v4673_v50, %v1273_v42  ;;  %v6980_v52 = vld [vmem:[#allocation121_spill] sm:$0xff] }
 0x2ef   : > { %v1288_v57 = vmul.f32 %v4673_v50, %v1271_v8  ;;  %v1289_v63 = vmul.f32 %v4673_v50, %v1270_v54  ;;  %v1303_v46 = vsel %vm1302_vm1, %v6978_v29, %v6977_v4  ;;  %v5069_v58 = vpop.permute.xlu0 %1734  ;;  %v1280_v6 = vadd.f32 %v1276_v47, %v1245_v37  ;;  %v5074_v42 = vpop.permute.xlu1 %1732  ;;  %v6981_v4 = vld [vmem:[#allocation122_spill] sm:$0xff]  ;;  %v6983_v37 = vld [vmem:[#allocation124_spill] sm:$0xff] }
 0x2f0   : > { %v1282_v21 = vadd.f32 %v1278_v9, %v1247_v34  ;;  %v1283_v38 = vadd.f32 %v1279_v60, %v1248_v53  ;;  %v1322_v18 = vmul.f32 %v4676_v48, %v1305_v59  ;;  %6979 = vst [vmem:[#allocation38_spill] sm:$0xff] %v5074_v42  ;;  %v1291_v8 = vadd.f32 %v1287_v41, %v1281_v3  ;;  %v6982_v9 = vld [vmem:[#allocation123_spill] sm:$0xff]  ;;  %v6984_v3 = vld [vmem:[#allocation125_spill] sm:$0xff] }
 0x2f1   : > { %v1321_v50 = vmul.f32 %v4676_v48, %v1306_v10  ;;  %v1323_v54 = vmul.f32 %v4676_v48, %v1304_v0  ;;  %v1317_v29 = vsel %vm1302_vm1, %v6981_v4, %v6980_v52  ;;  %2053 = vrot.lane.b32.xlu0 %v3312_v14, %s3046_s15  ;;  %v1324_v47 = vmul.f32 %v4676_v48, %v1303_v46  ;;  %v6985_v10 = vld [vmem:[#allocation126_spill] sm:$0xff]  ;;  %v6986_v42 = vld [vmem:[#allocation127_spill] sm:$0xff] }
 0x2f2   : > { %v1318_v60 = vsel %vm1302_vm1, %v6982_v9, %v6981_v4  ;;  %v1315_v34 = vsel %vm1302_vm1, %v6983_v37, %v6982_v9  ;;  %v1316_v41 = vsel %vm1302_vm1, %v6980_v52, %v6983_v37  ;;  %2051 = vrot.lane.b32.xlu1 %v3310_v13, %s3046_s15  ;;  %v1290_v59 = vadd.f32 %v1286_v33, %v1280_v6  ;;  %v6987_v37 = vld [vmem:[#allocation128_spill] sm:$0xff]  ;;  %s5477_s15 = sld [smem:[#allocation2 + $0x9e]] }
 0x2f3   : > { %v1292_v48 = vadd.f32 %v1288_v57, %v1282_v21  ;;  %v1293_v53 = vadd.f32 %v1289_v63, %v1283_v38  ;;  %v1350_v0 = vsel %vm1347_vm2, %v6985_v10, %v6984_v3  ;;  %v5103_v46 = vpop.permute.xlu0 %1738  ;;  %v1326_v4 = vadd.f32 %v1322_v18, %v1291_v8  ;;  %v5115_v57 = vpop.permute.xlu1 %1736 }
 0x2f4   : > { %v1332_v9 = vmul.f32 %v4689_v19, %v1317_v29  ;;  %v1351_v52 = vsel %vm1347_vm2, %v6986_v42, %v6985_v10  ;;  %v1349_v33 = vsel %vm1347_vm2, %v6984_v3, %v6987_v37  ;;  %6988 = vst [vmem:[#allocation61_spill] sm:$0xff] %v5115_v57  ;;  %v1331_v63 = vmul.f32 %v4689_v19, %v1318_v60  ;;  %v6991_v10 = vld [vmem:[#allocation131_spill] sm:$0xff] }
 0x2f5   : > { %v1333_v6 = vmul.f32 %v4689_v19, %v1316_v41  ;;  %v1334_v21 = vmul.f32 %v4689_v19, %v1315_v34  ;;  %v1348_v38 = vsel %vm1347_vm2, %v6987_v37, %v6986_v42  ;;  %2081 = vrot.lane.b32.xlu0 %v3196_v24, %s3047_s17  ;;  %v1325_v18 = vadd.f32 %v1321_v50, %v1290_v59  ;;  %v6989_v34 = vld [vmem:[#allocation129_spill] sm:$0xff]  ;;  %v6990_v41 = vld [vmem:[#allocation130_spill] sm:$0xff] }
 0x2f6   : > { %v1327_v8 = vadd.f32 %v1323_v54, %v1292_v48  ;;  %v1328_v29 = vadd.f32 %v1324_v47, %v1293_v53  ;;  %v1367_v3 = vmul.f32 %v4708_v36, %v1350_v0  ;;  %2079 = vrot.lane.b32.xlu1 %v3194_v23, %s3047_s17  ;;  %v1366_v19 = vmul.f32 %v4708_v36, %v1351_v52  ;;  %v6992_v48 = vld [vmem:[#allocation132_spill] sm:$0xff] }
 0x2f7   : > { %v1368_v60 = vmul.f32 %v4708_v36, %v1349_v33  ;;  %v1362_v42 = vsel %vm1347_vm2, %v6990_v41, %v6989_v34  ;;  %v1363_v50 = vsel %vm1347_vm2, %v6991_v10, %v6990_v41  ;;  %v5139_v54 = vpop.permute.xlu0 %1766  ;;  %v1336_v47 = vadd.f32 %v1332_v9, %v1326_v4  ;;  %v5149_v52 = vpop.permute.xlu1 %1764  ;;  %v6993_v9 = vld [vmem:[#allocation133_spill] sm:$0xff] }
 0x2f8   : > { %v1369_v59 = vmul.f32 %v4708_v36, %v1348_v38  ;;  %v1361_v53 = vsel %vm1347_vm2, %v6989_v34, %v6992_v48  ;;  %v5147_v0 = vstv %s5072_s16  ;;  %v1335_v37 = vadd.f32 %v1331_v63, %v1325_v18  ;;  %v6994_v38 = vld [vmem:[#allocation134_spill] sm:$0xff]  ;;  %v6995_v63 = vld [vmem:[#allocation135_spill] sm:$0xff]  ;;  %s3050_s16 = smov 84  }
 0x2f9   : > { %v1337_v33 = vadd.f32 %v1333_v6, %v1327_v8  ;;  %v1338_v57 = vadd.f32 %v1334_v21, %v1328_v29  ;;  %v1360_v41 = vsel %vm1347_vm2, %v6992_v48, %v6991_v10  ;;  %2085 = vrot.lane.b32.xlu0 %v3204_v28, %s3047_s17  ;;  %v1377_v36 = vmul.f32 %v4740_v51, %v1362_v42  ;;  %v6996_v48 = vld [vmem:[#allocation136_spill] sm:$0xff] }
 0x2fa   : > { %v1376_v4 = vmul.f32 %v4740_v51, %v1363_v50  ;;  %v1395_v34 = vsel %vm1392_vm3, %v6994_v38, %v6993_v9  ;;  %v1396_v6 = vsel %vm1392_vm3, %v6995_v63, %v6994_v38  ;;  %2083 = vrot.lane.b32.xlu1 %v3202_v27, %s3047_s17  ;;  %v1371_v21 = vadd.f32 %v1367_v3, %v1336_v47  ;;  %v6997_v47 = vld [vmem:[#allocation137_spill] sm:$0xff] }
 0x2fb   : > { %v1370_v18 = vadd.f32 %v1366_v19, %v1335_v37  ;;  %v1372_v8 = vadd.f32 %v1368_v60, %v1337_v33  ;;  %v1378_v29 = vmul.f32 %v4740_v51, %v1361_v53  ;;  %v5172_v42 = vpop.permute.xlu0 %1770  ;;  %v1373_v10 = vadd.f32 %v1369_v59, %v1338_v57  ;;  %v5184_v19 = vpop.permute.xlu1 %1768  ;;  %v6999_v53 = vld [vmem:[#allocation145_spill] sm:$0xff] }
 0x2fc   : > { %v1379_v50 = vmul.f32 %v4740_v51, %v1360_v41  ;;  %v1393_v38 = vsel %vm1392_vm3, %v6996_v48, %v6995_v63  ;;  %v1394_v3 = vsel %vm1392_vm3, %v6993_v9, %v6996_v48  ;;  %v1412_v60 = vmul.f32 %v4767_v25, %v1395_v34  ;;  %v6998_v51 = vld [vmem:[#allocation138_spill] sm:$0xff] }
 0x2fd   : > { %v1411_v57 = vmul.f32 %v4767_v25, %v1396_v6  ;;  %v1407_v59 = vsel %vm1392_vm3, %v6998_v51, %v6997_v47  ;;  %v1408_v37 = vsel %vm1392_vm3, %v6999_v53, %v6998_v51  ;;  %2094 = vrot.lane.b32.xlu0 %v3304_v12, %s3047_s17  ;;  %v1381_v33 = vadd.f32 %v1377_v36, %v1371_v21  ;;  %v7000_v9 = vld [vmem:[#allocation146_spill] sm:$0xff]  ;;  %v7002_v21 = vld [vmem:[#allocation151_spill] sm:$0xff] }
 0x2fe   : > { %v1380_v41 = vadd.f32 %v1376_v4, %v1370_v18  ;;  %v1405_v34 = vsel %vm1392_vm3, %v7000_v9, %v6999_v53  ;;  %v1406_v63 = vsel %vm1392_vm3, %v6997_v47, %v7000_v9  ;;  %2092 = vrot.lane.b32.xlu1 %v3302_v11, %s3047_s17  ;;  %v1382_v6 = vadd.f32 %v1378_v29, %v1372_v8  ;;  %v7001_v4 = vld [vmem:[#allocation150_spill] sm:$0xff] }
 0x2ff   : > { %v1413_v48 = vmul.f32 %v4767_v25, %v1394_v3  ;;  %v1414_v36 = vmul.f32 %v4767_v25, %v1393_v38  ;;  %v1440_v18 = vsel %vm1437_vm4, %v7002_v21, %v7001_v4  ;;  %v5216_v51 = vpop.permute.xlu0 %1779  ;;  %v1383_v53 = vadd.f32 %v1379_v50, %v1373_v10  ;;  %v5225_v25 = vpop.permute.xlu1 %1777 }
 0x300   : > { %v1422_v47 = vmul.f32 %v4802_v45, %v1407_v59  ;;  %v1421_v9 = vmul.f32 %v4802_v45, %v1408_v37  ;;  %v1441_v8 = vsel %vm1437_vm4, %v4004_v55, %v7002_v21  ;;  %v1416_v29 = vadd.f32 %v1412_v60, %v1381_v33 }
 0x301   : > { %v1415_v38 = vadd.f32 %v1411_v57, %v1380_v41  ;;  %v1423_v3 = vmul.f32 %v4802_v45, %v1406_v63  ;;  %v1424_v10 = vmul.f32 %v4802_v45, %v1405_v34  ;;  %2098 = vrot.lane.b32.xlu0 %v3312_v14, %s3047_s17  ;;  %v1457_v50 = vmul.f32 %v4824_v2, %v1440_v18 }
 0x302   : > { %v1438_v59 = vsel %vm1437_vm4, %v4016_v5, %v4004_v55  ;;  %v1439_v60 = vsel %vm1437_vm4, %v7001_v4, %v4016_v5  ;;  %v1452_v45 = vsel %vm1437_vm4, %v4066_v32, %v4059_v22  ;;  %2096 = vrot.lane.b32.xlu1 %v3310_v13, %s3047_s17  ;;  %v1417_v57 = vadd.f32 %v1413_v48, %v1382_v6  ;;  %s5559_s17 = sld [smem:[#allocation2 + $0x1f]] }
 0x303   : > { %v1418_v37 = vadd.f32 %v1414_v36, %v1383_v53  ;;  %v1456_v33 = vmul.f32 %v4824_v2, %v1441_v8  ;;  %v5248_v41 = vstv %s5170_s18  ;;  %v5250_v55 = vpop.permute.xlu0 %1783  ;;  %v1426_v34 = vadd.f32 %v1422_v47, %v1416_v29  ;;  %v5260_v48 = vpop.permute.xlu1 %1781  ;;  %s5581_s18 = sld [smem:[#allocation2 + $0x9f]] }
 0x304   : > { %v1425_v63 = vadd.f32 %v1421_v9, %v1415_v38  ;;  %v1453_v5 = vsel %vm1437_vm4, %v4098_v16, %v4066_v32  ;;  %v1451_v6 = vsel %vm1437_vm4, %v4059_v22, %v4109_v62  ;;  %v1458_v36 = vmul.f32 %v4824_v2, %v1439_v60 }
 0x305   : > { %v1459_v4 = vmul.f32 %v4824_v2, %v1438_v59  ;;  %v1467_v21 = vmul.f32 %v4860_v26, %v1452_v45  ;;  %v1450_v18 = vsel %vm1437_vm4, %v4109_v62, %v4098_v16  ;;  %2126 = vrot.lane.b32.xlu0 %v3196_v24, %s3048_s20  ;;  %v1427_v32 = vadd.f32 %v1423_v3, %v1417_v57 }
 0x306   : > { %v1428_v53 = vadd.f32 %v1424_v10, %v1418_v37  ;;  %v1461_v22 = vadd.f32 %v1457_v50, %v1426_v34  ;;  %v5272_v47 = vstv %s5206_s19  ;;  %2124 = vrot.lane.b32.xlu1 %v3194_v23, %s3048_s20  ;;  %v1460_v2 = vadd.f32 %v1456_v33, %v1425_v63  ;;  %v7004_v34 = vld [vmem:[#allocation25_spill] sm:$0xff]  ;;  %s5656_s19 = sld [smem:[#allocation2 + $0x20]] }
 0x307   : > { %v1466_v9 = vmul.f32 %v4860_v26, %v1453_v5  ;;  %v1468_v16 = vmul.f32 %v4860_v26, %v1451_v6  ;;  %v1485_v62 = vsel %vm1482_vm5, %v4158_v43, %v4144_v15  ;;  %v5286_v8 = vpop.permute.xlu0 %1811  ;;  %v1469_v29 = vmul.f32 %v4860_v26, %v1450_v18  ;;  %v5302_v50 = vpop.permute.xlu1 %1809  ;;  %v7005_v63 = vld [vmem:[#allocation45_spill] sm:$0xff] }
 0x308   : > { %v1486_v38 = vsel %vm1482_vm5, %v4191_v31, %v4158_v43  ;;  %v1483_v3 = vsel %vm1482_vm5, %v4200_v44, %v4191_v31  ;;  %v1484_v10 = vsel %vm1482_vm5, %v4144_v15, %v4200_v44  ;;  %v1462_v26 = vadd.f32 %v1458_v36, %v1427_v32  ;;  %v7003_v44 = vld [vmem:[#allocation148_spill] sm:$0xff] }
 0x309   : > { %v1463_v59 = vadd.f32 %v1459_v4, %v1428_v53  ;;  %v1471_v60 = vadd.f32 %v1467_v21, %v1461_v22  ;;  %v1497_v43 = vsel %vm1482_vm5, %v4261_v17, %v4247_v7  ;;  %2130 = vrot.lane.b32.xlu0 %v3204_v28, %s3048_s20  ;;  %v1502_v31 = vmul.f32 %v4950_v20, %v1485_v62  ;;  %v7006_v53 = vld [vmem:[#allocation47_spill] sm:$0xff] }
 0x30a   : > { %v1498_v15 = vsel %vm1482_vm5, %v4295_v40, %v4261_v17  ;;  %v1495_v45 = vsel %vm1482_vm5, %v7003_v44, %v4295_v40  ;;  %v1496_v57 = vsel %vm1482_vm5, %v4247_v7, %v7003_v44  ;;  %2128 = vrot.lane.b32.xlu1 %v3202_v27, %s3048_s20  ;;  %v1501_v37 = vmul.f32 %v4950_v20, %v1486_v38 }
 0x30b   : > { %v1503_v33 = vmul.f32 %v4950_v20, %v1484_v10  ;;  %v1504_v17 = vmul.f32 %v4950_v20, %v1483_v3  ;;  %v1530_v40 = vsel %vm1527_vm6, %v7005_v63, %v7004_v34  ;;  %v5332_v5 = vpop.permute.xlu0 %1815  ;;  %v1470_v6 = vadd.f32 %v1466_v9, %v1460_v2  ;;  %v5335_v21 = vpop.permute.xlu1 %1813  ;;  %v7007_v3 = vld [vmem:[#allocation141_spill] sm:$0xff] }
 0x30c   : > { %v1472_v7 = vadd.f32 %v1468_v16, %v1462_v26  ;;  %v1473_v36 = vadd.f32 %v1469_v29, %v1463_v59  ;;  %v1512_v4 = vmul.f32 %v5147_v0, %v1497_v43  ;;  %v1511_v18 = vmul.f32 %v5147_v0, %v1498_v15  ;;  %v7009_v15 = vld [vmem:[#allocation50_spill] sm:$0xff] }
 0x30d   : > { %v1513_v32 = vmul.f32 %v5147_v0, %v1496_v57  ;;  %v1514_v20 = vmul.f32 %v5147_v0, %v1495_v45  ;;  %v1531_v22 = vsel %vm1527_vm6, %v7006_v53, %v7005_v63  ;;  %2139 = vrot.lane.b32.xlu0 %v3304_v12, %s3048_s20  ;;  %v1506_v2 = vadd.f32 %v1502_v31, %v1471_v60  ;;  %v7008_v31 = vld [vmem:[#allocation49_spill] sm:$0xff] }
 0x30e   : > { %v1547_v9 = vmul.f32 %v5248_v41, %v1530_v40  ;;  %v1590_v16 = vstv %s5274_s23  ;;  %v5349_v62 = vstv %s5276_s24  ;;  %2137 = vrot.lane.b32.xlu1 %v3302_v11, %s3048_s20  ;;  %v1505_v29 = vadd.f32 %v1501_v37, %v1470_v6  ;;  %v7011_v6 = vld [vmem:[#allocation51_spill] sm:$0xff]  ;;  %s3051_s23 = smov 83   ;;  %s5759_s24 = sld [smem:[#allocation2 + $0x21]] }
 0x30f   : > { %v1507_v38 = vadd.f32 %v1503_v33, %v1472_v7  ;;  %v1508_v0 = vadd.f32 %v1504_v17, %v1473_v36  ;;  %v1529_v10 = vsel %vm1527_vm6, %v7004_v34, %v7007_v3  ;;  %v5357_v26 = vpop.permute.xlu0 %1824  ;;  %v1516_v59 = vadd.f32 %v1512_v4, %v1506_v2  ;;  %v5368_v45 = vpop.permute.xlu1 %1822  ;;  %v7010_v17 = vld [vmem:[#allocation27_spill] sm:$0xff]  ;;  %v7012_v36 = vld [vmem:[#allocation152_spill] sm:$0xff] }
 0x310   : > { %v1546_v60 = vmul.f32 %v5248_v41, %v1531_v22  ;;  %v1528_v43 = vsel %vm1527_vm6, %v7007_v3, %v7006_v53  ;;  %v1543_v44 = vsel %vm1527_vm6, %v7009_v15, %v7008_v31  ;;  %v1515_v57 = vadd.f32 %v1511_v18, %v1505_v29  ;;  %v7013_v4 = vld [vmem:[#allocation28_spill] sm:$0xff]  ;;  %v7016_v3 = vld [vmem:[#allocation31_spill] sm:$0xff] }
 0x311   : > { %v1517_v37 = vadd.f32 %v1513_v32, %v1507_v38  ;;  %v1518_v33 = vadd.f32 %v1514_v20, %v1508_v0  ;;  %v1542_v34 = vsel %vm1527_vm6, %v7008_v31, %v7010_v17  ;;  %2143 = vrot.lane.b32.xlu0 %v3312_v14, %s3048_s20  ;;  %v1551_v63 = vadd.f32 %v1547_v9, %v1516_v59  ;;  %v7014_v22 = vld [vmem:[#allocation52_spill] sm:$0xff]  ;;  %v7015_v0 = vld [vmem:[#allocation29_spill] sm:$0xff] }
 0x312   : > { %v1548_v40 = vmul.f32 %v5248_v41, %v1529_v10  ;;  %v1541_v7 = vsel %vm1527_vm6, %v7010_v17, %v7011_v6  ;;  %v1576_v18 = vsel %vm1572_vm7, %v7013_v4, %v7012_v36  ;;  %2141 = vrot.lane.b32.xlu1 %v3310_v13, %s3048_s20  ;;  %v1549_v32 = vmul.f32 %v5248_v41, %v1528_v43  ;;  %v7017_v10 = vld [vmem:[#allocation53_spill] sm:$0xff]  ;;  %s5680_s20 = sld [smem:[#allocation2 + $0xa0]] }
 0x313   : > { %v1556_v20 = vmul.f32 %v5272_v47, %v1543_v44  ;;  %v1540_v53 = vsel %vm1527_vm6, %v7011_v6, %v7009_v15  ;;  %v1575_v2 = vsel %vm1572_vm7, %v7012_v36, %v7014_v22  ;;  %v5401_v9 = vpop.permute.xlu0 %1828  ;;  %v1550_v29 = vadd.f32 %v1546_v60, %v1515_v57  ;;  %v5412_v43 = vpop.permute.xlu1 %1826  ;;  %v7019_v44 = vld [vmem:[#allocation30_spill] sm:$0xff] }
 0x314   : > { %v1557_v38 = vmul.f32 %v5272_v47, %v1542_v34  ;;  %v1574_v41 = vsel %vm1572_vm7, %v7014_v22, %v7015_v0  ;;  %v1588_v59 = vsel %vm1572_vm7, %v7017_v10, %v7016_v3  ;;  %7018 = vst [vmem:[#allocation62_spill] sm:$0xff] %v5412_v43  ;;  %v1558_v31 = vmul.f32 %v5272_v47, %v1541_v7  ;;  %v7020_v7 = vld [vmem:[#allocation54_spill] sm:$0xff]  ;;  %v7043_v43 = vld [vmem:[#allocation60_spill] sm:$0xff] }
 0x315   : > { %v1591_v15 = vmul.f32 %v1590_v16, %v1576_v18  ;;  %v1573_v60 = vsel %vm1572_vm7, %v7015_v0, %v7013_v4  ;;  %v1587_v57 = vsel %vm1572_vm7, %v7016_v3, %v7019_v44  ;;  %2171 = vrot.lane.b32.xlu0 %v3196_v24, %s3049_s27  ;;  %v1552_v17 = vadd.f32 %v1548_v40, %v1517_v37 }
 0x316   : > { %v1559_v34 = vmul.f32 %v5272_v47, %v1540_v53  ;;  %v1592_v6 = vmul.f32 %v1590_v16, %v1575_v2  ;;  %v1586_v36 = vsel %vm1572_vm7, %v7019_v44, %v7020_v7  ;;  %2169 = vrot.lane.b32.xlu1 %v3194_v23, %s3049_s27  ;;  %v1560_v4 = vadd.f32 %v1556_v20, %v1550_v29 }
 0x317   : > { %v1593_v18 = vmul.f32 %v1590_v16, %v1574_v41  ;;  %v1601_v22 = vmul.f32 %v5349_v62, %v1588_v59  ;;  %v1585_v37 = vsel %vm1572_vm7, %v7020_v7, %v7017_v10  ;;  %v5441_v47 = vpop.permute.xlu0 %1856  ;;  %v1553_v40 = vadd.f32 %v1549_v32, %v1518_v33  ;;  %v5448_v29 = vpop.permute.xlu1 %1854 }
 0x318   : > { %7021 = vst [vmem:[#allocation63_spill] sm:$0xff] %v5441_v47  ;;  %v1561_v53 = vadd.f32 %v1557_v38, %v1551_v63  ;;  %v1594_v2 = vmul.f32 %v1590_v16, %v1573_v60  ;;  %v1602_v20 = vmul.f32 %v5349_v62, %v1587_v57  ;;  %7022 = vst [vmem:[#allocation64_spill] sm:$0xff] %v5448_v29  ;;  %v1610_v3 = vstv %s5374_s25  ;;  %s5784_s25 = sld [smem:[#allocation2 + $0xa1]] }
 0x319   : > { %v1562_v0 = vadd.f32 %v1558_v31, %v1552_v17  ;;  %v1595_v41 = vadd.f32 %v1591_v15, %v1560_v4  ;;  %v1603_v10 = vmul.f32 %v5349_v62, %v1586_v36  ;;  %2175 = vrot.lane.b32.xlu0 %v3204_v28, %s3049_s27  ;;  %v1563_v16 = vadd.f32 %v1559_v34, %v1553_v40 }
 0x31a   : > { %v1596_v33 = vadd.f32 %v1592_v6, %v1561_v53  ;;  %v1620_v63 = vstv %s5387_s26  ;;  %v1604_v32 = vmul.f32 %v5349_v62, %v1585_v37  ;;  %2173 = vrot.lane.b32.xlu1 %v3202_v27, %s3049_s27  ;;  %v1612_v60 = vmul.f32 %v1610_v3, %v3196_v24  ;;  %s3052_s26 = smov 82  }
 0x31b   : > { %v1597_v38 = vadd.f32 %v1593_v18, %v1562_v0  ;;  %v1605_v59 = vadd.f32 %v1601_v22, %v1595_v41  ;;  %v5470_v31 = vpop.permute.xlu0 %1860  ;;  %v1598_v15 = vadd.f32 %v1594_v2, %v1563_v16  ;;  %v5475_v62 = vpop.permute.xlu1 %1858  ;;  %v1622_v57 = vmul.f32 %v1620_v63, %v3304_v12 }
 0x31c   : > { %7023 = vst [vmem:[#allocation144_spill] sm:$0xff] %v5470_v31  ;;  %v1606_v44 = vadd.f32 %v1602_v20, %v1596_v33  ;;  %7024 = vst [vmem:[#allocation39_spill] sm:$0xff] %v5475_v62  ;;  %v1611_v17 = vmul.f32 %v1610_v3, %v3194_v23  ;;  %v1621_v34 = vmul.f32 %v1620_v63, %v3302_v11  ;;  %vm1637_vm8 = vcmp.lt.s32.totalorder %v3849_v1, 127 }
 0x31d   : > { %v1607_v6 = vadd.f32 %v1603_v10, %v1597_v38  ;;  %2184 = vrot.lane.b32.xlu0 %v3304_v12, %s3049_s27  ;;  %v1613_v7 = vmul.f32 %v1610_v3, %v3202_v27  ;;  %v1614_v36 = vmul.f32 %v1610_v3, %v3204_v28  ;;  %v1623_v4 = vmul.f32 %v1620_v63, %v3310_v13  ;;  %v7028_v38 = vld [vmem:[#allocation56_spill] sm:$0xff] }
 0x31e   : > { %v1608_v18 = vadd.f32 %v1604_v32, %v1598_v15  ;;  %2182 = vrot.lane.b32.xlu1 %v3302_v11, %s3049_s27  ;;  %v1615_v22 = vadd.f32 %v1611_v17, %v1605_v59  ;;  %v1624_v37 = vmul.f32 %v1620_v63, %v3312_v14  ;;  %v1655_v40 = vstv %s5437_s28  ;;  %v7027_v32 = vld [vmem:[#allocation55_spill] sm:$0xff]  ;;  %v7029_v17 = vld [vmem:[#allocation142_spill] sm:$0xff]  ;;  %s3053_s28 = smov 81  }
 0x31f   : > { %v5492_v53 = vpop.permute.xlu0 %1869  ;;  %v1616_v2 = vadd.f32 %v1612_v60, %v1606_v44  ;;  %v1665_v20 = vstv %s5439_s29  ;;  %vm1682_vm9 = vcmp.lt.s32.totalorder %v3849_v1, 126  ;;  %v5497_v0 = vstv %s5444_s30  ;;  %s5993_s29 = sld [smem:[#allocation2 + $0xa2]]  ;;  %s2856_s30 = sld [smem:[#allocation2 + $0x23]] }
 0x320   : > { %7025 = vst [vmem:[#allocation65_spill] sm:$0xff] %v5492_v53  ;;  %v5499_v41 = vpop.permute.xlu1 %1867  ;;  %v1617_v3 = vadd.f32 %v1613_v7, %v1607_v6  ;;  %v5502_v10 = vstv %s5446_s7  ;;  %v5505_v16 = vstv %s5452_s8  ;;  %v5508_v33 = vstv %s5454_s9  ;;  %v7032_v53 = vld [vmem:[#allocation32_spill] sm:$0xff]  ;;  %s3054_s7 = smov 62   ;;  %s2857_s8 = sld [smem:[#allocation2 + $0xa3]] }
 0x321   : > { %7026 = vst [vmem:[#allocation66_spill] sm:$0xff] %v5499_v41  ;;  %2188 = vrot.lane.b32.xlu0 %v3312_v14, %s3049_s27  ;;  %v1618_v63 = vadd.f32 %v1614_v36, %v1608_v18  ;;  %v1640_v59 = vsel %vm1637_vm8, %v7028_v38, %v7027_v32  ;;  %v5517_v15 = vstv %s5460_s10  ;;  %v5520_v60 = vstv %s5462_s11  ;;  %s2858_s9 = sld [smem:[#allocation2 + $0x24]]  ;;  %s3055_s10 = smov 61  }
 0x322   : > { %2186 = vrot.lane.b32.xlu1 %v3310_v13, %s3049_s27  ;;  %v1625_v44 = vadd.f32 %v1621_v34, %v1615_v22  ;;  %v1641_v6 = vsel %vm1637_vm8, %v7029_v17, %v7028_v38  ;;  %v5529_v7 = vstv %s5466_s12  ;;  %v5532_v36 = vstv %s5468_s13  ;;  %s5966_s27 = sld [smem:[#allocation2 + $0x22]]  ;;  %s2859_s11 = sld [smem:[#allocation2 + $0xa4]] }
 0x323   : > { %7030 = vst [vmem:[#allocation67_spill] sm:$0xff] %v5532_v36  ;;  %v5534_v18 = vpop.permute.xlu0 %1873  ;;  %v1626_v41 = vadd.f32 %v1622_v57, %v1616_v2  ;;  %v1639_v62 = vsel %vm1637_vm8, %v7027_v32, %v7032_v53  ;;  %vm1727_vm10 = vcmp.lt.s32.totalorder %v3849_v1, 125  ;;  %v5542_v34 = vstv %s5473_s14  ;;  %v7036_v2 = vld [vmem:[#allocation33_spill] sm:$0xff]  ;;  %s2860_s12 = sld [smem:[#allocation2 + $0x25]]  ;;  %s3056_s13 = smov 60  }
 0x324   : > { %7031 = vst [vmem:[#allocation68_spill] sm:$0xff] %v5534_v18  ;;  %7033 = vst [vmem:[#allocation69_spill] sm:$0xff] %v5542_v34  ;;  %v5545_v22 = vstv %s5477_s15  ;;  %v5547_v31 = vpop.permute.xlu1 %1871  ;;  %v1627_v38 = vadd.f32 %v1623_v4, %v1617_v3  ;;  %v1656_v29 = vmul.f32 %v1655_v40, %v1640_v59  ;;  %v1638_v57 = vsel %vm1637_vm8, %v7032_v53, %v7029_v17  ;;  %v7037_v18 = vld [vmem:[#allocation34_spill] sm:$0xff]  ;;  %v7038_v4 = vld [vmem:[#allocation35_spill] sm:$0xff]  ;;  %s2861_s14 = sld [smem:[#allocation2 + $0xa5]]  ;;  %s2862_s15 = sld [smem:[#allocation2 + $0x26]] }
 0x325   : > { %7034 = vst [vmem:[#allocation70_spill] sm:$0xff] %v5545_v22  ;;  %7035 = vst [vmem:[#allocation71_spill] sm:$0xff] %v5547_v31  ;;  %v1652_v32 = vsel %vm1637_vm8, %v7037_v18, %v7036_v2  ;;  %2216 = vrot.lane.b32.xlu0 %v3196_v24, %s3050_s16  ;;  %v1628_v22 = vadd.f32 %v1624_v37, %v1618_v63  ;;  %v1659_v31 = vmul.f32 %v1655_v40, %v1641_v6  ;;  %v7039_v59 = vld [vmem:[#allocation57_spill] sm:$0xff]  ;;  %v7040_v63 = vld [vmem:[#allocation58_spill] sm:$0xff] }
 0x326   : > { %v1653_v3 = vsel %vm1637_vm8, %v7038_v4, %v7037_v18  ;;  %v1651_v53 = vsel %vm1637_vm8, %v7036_v2, %v7039_v59  ;;  %2214 = vrot.lane.b32.xlu1 %v3194_v23, %s3050_s16  ;;  %v1660_v17 = vadd.f32 %v1656_v29, %v1625_v44  ;;  %v1657_v34 = vmul.f32 %v1655_v40, %v1639_v62  ;;  %v7041_v6 = vld [vmem:[#allocation59_spill] sm:$0xff] }
 0x327   : > { %v1650_v37 = vsel %vm1637_vm8, %v7039_v59, %v7038_v4  ;;  %v1685_v18 = vsel %vm1682_vm9, %v7041_v6, %v7040_v63  ;;  %v5579_v36 = vpop.permute.xlu0 %1901  ;;  %v1658_v2 = vmul.f32 %v1655_v40, %v1638_v57  ;;  %v1666_v47 = vmul.f32 %v1665_v20, %v1652_v32  ;;  %v7044_v62 = vld [vmem:[#allocation143_spill] sm:$0xff] }
 0x328   : > { %7042 = vst [vmem:[#allocation72_spill] sm:$0xff] %v5579_v36  ;;  %v1686_v29 = vsel %vm1682_vm9, %v7043_v43, %v7041_v6  ;;  %v1684_v44 = vsel %vm1682_vm9, %v7040_v63, %v7044_v62  ;;  %vm1772_vm11 = vcmp.lt.s32.totalorder %v3849_v1, 109  ;;  %v5592_v4 = vpop.permute.xlu1 %1899  ;;  %v1669_v59 = vmul.f32 %v1665_v20, %v1653_v3 }
 0x329   : > { %7045 = vst [vmem:[#allocation73_spill] sm:$0xff] %v5592_v4  ;;  %v1667_v36 = vmul.f32 %v1665_v20, %v1651_v53  ;;  %v1683_v40 = vsel %vm1682_vm9, %v7044_v62, %v7043_v43  ;;  %v1697_v57 = vsel %vm1682_vm9, %v4929_v30, %v4926_v61  ;;  %2220 = vrot.lane.b32.xlu0 %v3204_v28, %s3050_s16  ;;  %vm1817_vm12 = vcmp.lt.s32.totalorder %v3849_v1, 108 }
 0x32a   : > { %v1663_v32 = vadd.f32 %v1659_v31, %v1628_v22  ;;  %v1668_v63 = vmul.f32 %v1665_v20, %v1650_v37  ;;  %v1701_v6 = vmul.f32 %v5497_v0, %v1685_v18  ;;  %v1698_v3 = vsel %vm1682_vm9, %v4958_v35, %v4929_v30  ;;  %2218 = vrot.lane.b32.xlu1 %v3202_v27, %s3050_s16 }
 0x32b   : > { %v1661_v43 = vadd.f32 %v1657_v34, %v1626_v41  ;;  %v1704_v53 = vmul.f32 %v5497_v0, %v1686_v29  ;;  %v1702_v62 = vmul.f32 %v5497_v0, %v1684_v44  ;;  %v1696_v31 = vsel %vm1682_vm9, %v4926_v61, %v4970_v49  ;;  %v5617_v20 = vpop.permute.xlu0 %1905 }
 0x32c   : > { %7046 = vst [vmem:[#allocation74_spill] sm:$0xff] %v5617_v20  ;;  %v1662_v22 = vadd.f32 %v1658_v2, %v1627_v38  ;;  %v1670_v37 = vadd.f32 %v1666_v47, %v1660_v17  ;;  %v1703_v18 = vmul.f32 %v5497_v0, %v1683_v40  ;;  %v1711_v30 = vmul.f32 %v5502_v10, %v1697_v57  ;;  %v5621_v4 = vpop.permute.xlu1 %1903  ;;  %v7047_v17 = vld [vmem:[#allocation36_spill] sm:$0xff] }
 0x32d   : > { %v1673_v41 = vadd.f32 %v1669_v59, %v1663_v32  ;;  %v1671_v34 = vadd.f32 %v1667_v36, %v1661_v43  ;;  %v1714_v29 = vmul.f32 %v5502_v10, %v1698_v3  ;;  %v5625_v44 = vstv %s5559_s17  ;;  %2229 = vrot.lane.b32.xlu0 %v3304_v12, %s3050_s16  ;;  %s2863_s17 = sld [smem:[#allocation2 + $0xa6]] }
 0x32e   : > { %v1672_v61 = vadd.f32 %v1668_v63, %v1662_v22  ;;  %v1705_v20 = vadd.f32 %v1701_v6, %v1670_v37  ;;  %v1695_v47 = vsel %vm1682_vm9, %v4970_v49, %v4958_v35  ;;  %v1712_v0 = vmul.f32 %v5502_v10, %v1696_v31  ;;  %2227 = vrot.lane.b32.xlu1 %v3302_v11, %s3050_s16  ;;  %v7048_v35 = vld [vmem:[#allocation37_spill] sm:$0xff] }
 0x32f   : > { %v1708_v36 = vadd.f32 %v1704_v53, %v1673_v41  ;;  %v1706_v38 = vadd.f32 %v1702_v62, %v1671_v34  ;;  %v1730_v2 = vsel %vm1727_vm10, %v7047_v17, %v4996_v56  ;;  %v5640_v59 = vpop.permute.xlu0 %1914  ;;  %v5643_v40 = vstv %s5581_s18  ;;  %v7049_v62 = vld [vmem:[#allocation38_spill] sm:$0xff]  ;;  %v7050_v22 = vld [vmem:[#allocation61_spill] sm:$0xff]  ;;  %s2864_s18 = sld [smem:[#allocation2 + $0x27]] }
 0x330   : > { %v1707_v57 = vadd.f32 %v1703_v18, %v1672_v61  ;;  %v1715_v32 = vadd.f32 %v1711_v30, %v1705_v20  ;;  %v1731_v49 = vsel %vm1727_vm10, %v7048_v35, %v7047_v17  ;;  %v1729_v63 = vsel %vm1727_vm10, %v4996_v56, %v5042_v39  ;;  %v5654_v6 = vpop.permute.xlu1 %1912 }
 0x331   : > { %v1718_v3 = vadd.f32 %v1714_v29, %v1708_v36  ;;  %v1713_v43 = vmul.f32 %v5502_v10, %v1695_v47  ;;  %v1728_v53 = vsel %vm1727_vm10, %v5042_v39, %v7048_v35  ;;  %v1742_v31 = vsel %vm1727_vm10, %v7049_v62, %v5069_v58  ;;  %2233 = vrot.lane.b32.xlu0 %v3312_v14, %s3050_s16 }
 0x332   : > { %v1716_v56 = vadd.f32 %v1712_v0, %v1706_v38  ;;  %v1746_v20 = vmul.f32 %v5505_v16, %v1730_v2  ;;  %v1743_v10 = vsel %vm1727_vm10, %v5103_v46, %v7049_v62  ;;  %v1741_v39 = vsel %vm1727_vm10, %v5069_v58, %v7050_v22  ;;  %2231 = vrot.lane.b32.xlu1 %v3310_v13, %s3050_s16  ;;  %s3057_s16 = smov 59  }
 0x333   : > { %v1749_v37 = vmul.f32 %v5505_v16, %v1731_v49  ;;  %v1747_v18 = vmul.f32 %v5505_v16, %v1729_v63  ;;  %v1740_v30 = vsel %vm1727_vm10, %v7050_v22, %v5103_v46  ;;  %v1775_v41 = vsel %vm1772_vm11, %v5149_v52, %v5139_v54  ;;  %v5692_v58 = vpop.permute.xlu0 %1918 }
 0x334   : > { %v1748_v34 = vmul.f32 %v5505_v16, %v1728_v53  ;;  %v1756_v29 = vmul.f32 %v5508_v33, %v1742_v31  ;;  %v1776_v61 = vsel %vm1772_vm11, %v5172_v42, %v5149_v52  ;;  %v1774_v46 = vsel %vm1772_vm11, %v5139_v54, %v5184_v19  ;;  %v5705_v47 = vpop.permute.xlu1 %1916 }
 0x335   : > { %vm1862_vm13 = vcmp.lt.s32.totalorder %v3849_v1, 107  ;;  %v1717_v0 = vadd.f32 %v1713_v43, %v1707_v57  ;;  %v1759_v36 = vmul.f32 %v5508_v33, %v1743_v10  ;;  %v1757_v16 = vmul.f32 %v5508_v33, %v1741_v39  ;;  %2261 = vrot.lane.b32.xlu0 %v3196_v24, %s3051_s23 }
 0x336   : > { %v1773_v38 = vsel %vm1772_vm11, %v5184_v19, %v5172_v42  ;;  %v1750_v54 = vadd.f32 %v1746_v20, %v1715_v32  ;;  %v1758_v52 = vmul.f32 %v5508_v33, %v1740_v30  ;;  %v1791_v17 = vmul.f32 %v5517_v15, %v1775_v41  ;;  %2259 = vrot.lane.b32.xlu1 %v3194_v23, %s3051_s23 }
 0x337   : > { %v1787_v2 = vsel %vm1772_vm11, %v5225_v25, %v5216_v51  ;;  %v1753_v57 = vadd.f32 %v1749_v37, %v1718_v3  ;;  %v1751_v42 = vadd.f32 %v1747_v18, %v1716_v56  ;;  %v1794_v19 = vmul.f32 %v5517_v15, %v1776_v61  ;;  %v5725_v32 = vpop.permute.xlu0 %1946 }
 0x338   : > { %v1792_v35 = vmul.f32 %v5517_v15, %v1774_v46  ;;  %v1752_v33 = vadd.f32 %v1748_v34, %v1717_v0  ;;  %v1760_v49 = vadd.f32 %v1756_v29, %v1750_v54  ;;  %v1793_v63 = vmul.f32 %v5517_v15, %v1773_v38  ;;  %v5731_v53 = vpop.permute.xlu1 %1944  ;;  %v7052_v54 = vld [vmem:[#allocation63_spill] sm:$0xff] }
 0x339   : > { %v5729_v43 = vstv %s5656_s19  ;;  %v1763_v62 = vadd.f32 %v1759_v36, %v1753_v57  ;;  %v1761_v31 = vadd.f32 %v1757_v16, %v1751_v42  ;;  %v1801_v3 = vmul.f32 %v5520_v60, %v1787_v2  ;;  %2265 = vrot.lane.b32.xlu0 %v3204_v28, %s3051_s23  ;;  %v7054_v57 = vld [vmem:[#allocation67_spill] sm:$0xff]  ;;  %s2865_s19 = sld [smem:[#allocation2 + $0xa7]] }
 0x33a   : > { %v1788_v56 = vsel %vm1772_vm11, %v5250_v55, %v5225_v25  ;;  %v1762_v20 = vadd.f32 %v1758_v52, %v1752_v33  ;;  %v1795_v10 = vadd.f32 %v1791_v17, %v1760_v49  ;;  %v1786_v15 = vsel %vm1772_vm11, %v5216_v51, %v5260_v48  ;;  %2263 = vrot.lane.b32.xlu1 %v3202_v27, %s3051_s23  ;;  %v7053_v52 = vld [vmem:[#allocation64_spill] sm:$0xff] }
 0x33b   : > { %v5747_v22 = vstv %s5680_s20  ;;  %v1798_v39 = vadd.f32 %v1794_v19, %v1763_v62  ;;  %v1796_v37 = vadd.f32 %v1792_v35, %v1761_v31  ;;  %v1785_v25 = vsel %vm1772_vm11, %v5260_v48, %v5250_v55  ;;  %v5757_v30 = vpop.permute.xlu0 %1950  ;;  %v7055_v19 = vld [vmem:[#allocation144_spill] sm:$0xff]  ;;  %v7056_v62 = vld [vmem:[#allocation39_spill] sm:$0xff]  ;;  %s2870_s20 = sld [smem:[#allocation2 + $0x2a]] }
 0x33c   : > { %v1820_v18 = vsel %vm1817_vm12, %v5302_v50, %v5286_v8  ;;  %v1797_v51 = vadd.f32 %v1793_v63, %v1762_v20  ;;  %v1804_v41 = vmul.f32 %v5520_v60, %v1788_v56  ;;  %v1821_v34 = vsel %vm1817_vm12, %v5332_v5, %v5302_v50  ;;  %v5771_v48 = vpop.permute.xlu1 %1948  ;;  %v7057_v20 = vld [vmem:[#allocation69_spill] sm:$0xff] }
 0x33d   : > { %v1819_v55 = vsel %vm1817_vm12, %v5286_v8, %v5335_v21  ;;  %vm1907_vm14 = vcmp.lt.s32.totalorder %v3849_v1, 106  ;;  %v1805_v29 = vadd.f32 %v1801_v3, %v1795_v10  ;;  %v1802_v61 = vmul.f32 %v5520_v60, %v1786_v15  ;;  %2274 = vrot.lane.b32.xlu0 %v3304_v12, %s3051_s23 }
 0x33e   : > { %v1818_v46 = vsel %vm1817_vm12, %v5335_v21, %v5332_v5  ;;  %v1832_v50 = vsel %vm1817_vm12, %v5368_v45, %v5357_v26  ;;  %v1803_v8 = vmul.f32 %v5520_v60, %v1785_v25  ;;  %v1836_v0 = vmul.f32 %v5529_v7, %v1820_v18  ;;  %v7051_v5 = vld [vmem:[#allocation62_spill] sm:$0xff]  ;;  %2272 = vrot.lane.b32.xlu1 %v3302_v11, %s3051_s23 }
 0x33f   : > { %v1833_v36 = vsel %vm1817_vm12, %v5401_v9, %v5368_v45  ;;  %v1831_v21 = vsel %vm1817_vm12, %v5357_v26, %v7051_v5  ;;  %v1839_v16 = vmul.f32 %v5529_v7, %v1821_v34  ;;  %v1837_v38 = vmul.f32 %v5529_v7, %v1819_v55  ;;  %v5808_v17 = vpop.permute.xlu0 %1959 }
 0x340   : > { %v1830_v60 = vsel %vm1817_vm12, %v7051_v5, %v5401_v9  ;;  %v1865_v45 = vsel %vm1862_vm13, %v7053_v52, %v7052_v54  ;;  %v1808_v26 = vadd.f32 %v1804_v41, %v1798_v39  ;;  %v1838_v2 = vmul.f32 %v5529_v7, %v1818_v46  ;;  %v5817_v9 = vpop.permute.xlu1 %1957 }
 0x341   : > { %v1846_v42 = vmul.f32 %v7054_v57, %v1832_v50  ;;  %v1866_v35 = vsel %vm1862_vm13, %v7055_v19, %v7053_v52  ;;  %vm1952_vm15 = vcmp.lt.s32.totalorder %v3849_v1, 105  ;;  %v1806_v33 = vadd.f32 %v1802_v61, %v1796_v37  ;;  %2278 = vrot.lane.b32.xlu0 %v3312_v14, %s3051_s23  ;;  %v7058_v50 = vld [vmem:[#allocation65_spill] sm:$0xff] }
 0x342   : > { %v1849_v49 = vmul.f32 %v7054_v57, %v1833_v36  ;;  %v1847_v63 = vmul.f32 %v7054_v57, %v1831_v21  ;;  %v1864_v7 = vsel %vm1862_vm13, %v7052_v54, %v7056_v62  ;;  %v1807_v31 = vadd.f32 %v1803_v8, %v1797_v51  ;;  %2276 = vrot.lane.b32.xlu1 %v3310_v13, %s3051_s23  ;;  %v7059_v8 = vld [vmem:[#allocation66_spill] sm:$0xff]  ;;  %s2872_s23 = sld [smem:[#allocation2 + $0x2b]] }
 0x343   : > { %v1840_v3 = vadd.f32 %v1836_v0, %v1805_v29  ;;  %v1848_v56 = vmul.f32 %v7054_v57, %v1830_v60  ;;  %v1881_v10 = vmul.f32 %v7057_v20, %v1865_v45  ;;  %v1843_v15 = vadd.f32 %v1839_v16, %v1808_v26  ;;  %v5832_v25 = vpop.permute.xlu0 %1963  ;;  %v7060_v16 = vld [vmem:[#allocation68_spill] sm:$0xff]  ;;  %v7061_v60 = vld [vmem:[#allocation71_spill] sm:$0xff]  ;;  %v7063_v57 = vld [vmem:[#allocation73_spill] sm:$0xff] }
 0x344   : > { %v1841_v39 = vadd.f32 %v1837_v38, %v1806_v33  ;;  %v1884_v37 = vmul.f32 %v7057_v20, %v1866_v35  ;;  %v5835_v18 = vstv %s5759_s24  ;;  %v1842_v41 = vadd.f32 %v1838_v2, %v1807_v31  ;;  %v5842_v29 = vpop.permute.xlu1 %1961  ;;  %v7062_v2 = vld [vmem:[#allocation72_spill] sm:$0xff]  ;;  %v7064_v33 = vld [vmem:[#allocation70_spill] sm:$0xff]  ;;  %s2874_s24 = sld [smem:[#allocation2 + $0x2c]] }
 0x345   : > { %v1850_v34 = vadd.f32 %v1846_v42, %v1840_v3  ;;  %v1863_v51 = vsel %vm1862_vm13, %v7056_v62, %v7055_v19  ;;  %v1882_v55 = vmul.f32 %v7057_v20, %v1864_v7  ;;  %v1853_v61 = vadd.f32 %v1849_v49, %v1843_v15  ;;  %2306 = vrot.lane.b32.xlu0 %v3196_v24, %s3052_s26 }
 0x346   : > { %v1851_v46 = vadd.f32 %v1847_v63, %v1841_v39  ;;  %v1877_v0 = vsel %vm1862_vm13, %v7059_v8, %v7058_v50  ;;  %v5851_v36 = vstv %s5784_s25  ;;  %v1852_v5 = vadd.f32 %v1848_v56, %v1842_v41  ;;  %2304 = vrot.lane.b32.xlu1 %v3194_v23, %s3052_s26  ;;  %v7065_v63 = vld [vmem:[#allocation74_spill] sm:$0xff]  ;;  %s2866_s25 = sld [smem:[#allocation2 + $0x28]] }
 0x347   : > { %v1885_v21 = vadd.f32 %v1881_v10, %v1850_v34  ;;  %v1878_v38 = vsel %vm1862_vm13, %v7060_v16, %v7059_v8  ;;  %v1876_v54 = vsel %vm1862_vm13, %v7058_v50, %v7061_v60  ;;  %v1888_v52 = vadd.f32 %v1884_v37, %v1853_v61  ;;  %v5872_v19 = vpop.permute.xlu0 %1991 }
 0x348   : > { %v1883_v45 = vmul.f32 %v7057_v20, %v1863_v51  ;;  %v1875_v26 = vsel %vm1862_vm13, %v7061_v60, %v7060_v16  ;;  %v1910_v42 = vsel %vm1907_vm14, %v7063_v57, %v7062_v2  ;;  %v1886_v35 = vadd.f32 %v1882_v55, %v1851_v46  ;;  %v1990_v31 = vpop.permute.xlu1 %1989 }
 0x349   : > { %v1891_v49 = vmul.f32 %v7064_v33, %v1877_v0  ;;  %v1911_v62 = vsel %vm1907_vm14, %v7065_v63, %v7063_v57  ;;  %v1909_v7 = vsel %vm1907_vm14, %v7062_v2, %v5621_v4  ;;  %v1894_v3 = vmul.f32 %v7064_v33, %v1878_v38  ;;  %2310 = vrot.lane.b32.xlu0 %v3204_v28, %s3052_s26 }
 0x34a   : > { %v1892_v56 = vmul.f32 %v7064_v33, %v1876_v54  ;;  %v1908_v20 = vsel %vm1907_vm14, %v5621_v4, %v7065_v63  ;;  %v1922_v10 = vsel %vm1907_vm14, %v5654_v6, %v5640_v59  ;;  %vm1997_vm0 = vcmp.lt.s32.totalorder %v3849_v1, 104  ;;  %2308 = vrot.lane.b32.xlu1 %v3202_v27, %s3052_s26 }
 0x34b   : > { %v1893_v15 = vmul.f32 %v7064_v33, %v1875_v26  ;;  %v1926_v39 = vmul.f32 %v5625_v44, %v1910_v42  ;;  %v1923_v37 = vsel %vm1907_vm14, %v5692_v58, %v5654_v6  ;;  %v1921_v4 = vsel %vm1907_vm14, %v5640_v59, %v5705_v47  ;;  %v1996_v55 = vpop.permute.xlu0 %1995 }
 0x34c   : > { %v1929_v41 = vmul.f32 %v5625_v44, %v1911_v62  ;;  %v1927_v34 = vmul.f32 %v5625_v44, %v1909_v7  ;;  %v1920_v51 = vsel %vm1907_vm14, %v5705_v47, %v5692_v58  ;;  %v1955_v6 = vsel %vm1952_vm15, %v5731_v53, %v5725_v32  ;;  %v1994_v8 = vpop.permute.xlu1 %1993 }
 0x34d   : > { %v1887_v61 = vadd.f32 %v1883_v45, %v1852_v5  ;;  %v1895_v59 = vadd.f32 %v1891_v49, %v1885_v21  ;;  %v1928_v46 = vmul.f32 %v5625_v44, %v1908_v20  ;;  %v1936_v50 = vmul.f32 %v5643_v40, %v1922_v10  ;;  %2319 = vrot.lane.b32.xlu0 %v3304_v12, %s3052_s26 }
 0x34e   : > { %v1898_v0 = vadd.f32 %v1894_v3, %v1888_v52  ;;  %v1896_v16 = vadd.f32 %v1892_v56, %v1886_v35  ;;  %v1939_v38 = vmul.f32 %v5643_v40, %v1923_v37  ;;  %v1937_v60 = vmul.f32 %v5643_v40, %v1921_v4  ;;  %2317 = vrot.lane.b32.xlu1 %v3302_v11, %s3052_s26 }
 0x34f   : > { %v1897_v58 = vadd.f32 %v1893_v15, %v1887_v61  ;;  %v1930_v47 = vadd.f32 %v1926_v39, %v1895_v59  ;;  %v1938_v54 = vmul.f32 %v5643_v40, %v1920_v51  ;;  %v1971_v5 = vmul.f32 %v5729_v43, %v1955_v6  ;;  %v2005_v45 = vpop.permute.xlu0 %2004 }
 0x350   : > { %v1933_v44 = vadd.f32 %v1929_v41, %v1898_v0  ;;  %v1931_v21 = vadd.f32 %v1927_v34, %v1896_v16  ;;  %v1956_v52 = vsel %vm1952_vm15, %v5757_v30, %v5731_v53  ;;  %vm2042_vm1 = vcmp.lt.s32.totalorder %v3849_v1, 103  ;;  %v2003_v42 = vpop.permute.xlu1 %2002 }
 0x351   : > { %v1932_v26 = vadd.f32 %v1928_v46, %v1897_v58  ;;  %v1940_v2 = vadd.f32 %v1936_v50, %v1930_v47  ;;  %v1953_v40 = vsel %vm1952_vm15, %v5771_v48, %v5757_v30  ;;  %v1954_v57 = vsel %vm1952_vm15, %v5725_v32, %v5771_v48  ;;  %2323 = vrot.lane.b32.xlu0 %v3312_v14, %s3052_s26 }
 0x352   : > { %v1943_v35 = vadd.f32 %v1939_v38, %v1933_v44  ;;  %v1941_v33 = vadd.f32 %v1937_v60, %v1931_v21  ;;  %v1967_v53 = vsel %vm1952_vm15, %v5817_v9, %v5808_v17  ;;  %v1968_v49 = vsel %vm1952_vm15, %v5832_v25, %v5817_v9  ;;  %2321 = vrot.lane.b32.xlu1 %v3310_v13, %s3052_s26  ;;  %s2871_s26 = sld [smem:[#allocation2 + $0xaa]] }
 0x353   : > { %v1942_v30 = vadd.f32 %v1938_v54, %v1932_v26  ;;  %v1975_v63 = vadd.f32 %v1971_v5, %v1940_v2  ;;  %v1974_v32 = vmul.f32 %v5729_v43, %v1956_v52  ;;  %v1966_v48 = vsel %vm1952_vm15, %v5808_v17, %v5842_v29  ;;  %v2009_v56 = vpop.permute.xlu0 %2008 }
 0x354   : > { %v1972_v62 = vmul.f32 %v5729_v43, %v1954_v57  ;;  %v1973_v7 = vmul.f32 %v5729_v43, %v1953_v40  ;;  %v1965_v9 = vsel %vm1952_vm15, %v5842_v29, %v5832_v25  ;;  %v2001_v3 = vsel %vm1997_vm0, %v1996_v55, %v1990_v31  ;;  %v2007_v15 = vpop.permute.xlu1 %2006 }
 0x355   : > { %v1981_v17 = vmul.f32 %v5747_v22, %v1967_v53  ;;  %v1984_v20 = vmul.f32 %v5747_v22, %v1968_v49  ;;  %v2000_v10 = vsel %vm1997_vm0, %v1990_v31, %v5872_v19  ;;  %v1999_v43 = vsel %vm1997_vm0, %v5872_v19, %v1994_v8  ;;  %2351 = vrot.lane.b32.xlu0 %v3196_v24, %s3053_s28 }
 0x356   : > { %v1982_v25 = vmul.f32 %v5747_v22, %v1966_v48  ;;  %v1998_v29 = vsel %vm1997_vm0, %v1994_v8, %v1996_v55  ;;  %v2013_v39 = vsel %vm1997_vm0, %v2009_v56, %v2003_v42  ;;  %v2010_v37 = vsel %vm1997_vm0, %v2007_v15, %v2009_v56  ;;  %2349 = vrot.lane.b32.xlu1 %v3194_v23, %s3053_s28 }
 0x357   : > { %v1978_v31 = vadd.f32 %v1974_v32, %v1943_v35  ;;  %v1983_v4 = vmul.f32 %v5747_v22, %v1965_v9  ;;  %v2019_v19 = vmul.f32 %v5835_v18, %v2001_v3  ;;  %v2011_v41 = vsel %vm1997_vm0, %v2005_v45, %v2007_v15  ;;  %v2037_v61 = vpop.permute.xlu0 %2036 }
 0x358   : > { %v1976_v34 = vadd.f32 %v1972_v62, %v1941_v33  ;;  %v1977_v51 = vadd.f32 %v1973_v7, %v1942_v30  ;;  %v2016_v6 = vmul.f32 %v5835_v18, %v2000_v10  ;;  %v2017_v55 = vmul.f32 %v5835_v18, %v1999_v43  ;;  %v2035_v8 = vpop.permute.xlu1 %2034 }
 0x359   : > { %v1985_v59 = vadd.f32 %v1981_v17, %v1975_v63  ;;  %v1988_v22 = vadd.f32 %v1984_v20, %v1978_v31  ;;  %v2018_v46 = vmul.f32 %v5835_v18, %v1998_v29  ;;  %v2029_v50 = vmul.f32 %v5851_v36, %v2013_v39  ;;  %2355 = vrot.lane.b32.xlu0 %v3204_v28, %s3053_s28 }
 0x35a   : > { %v1986_v0 = vadd.f32 %v1982_v25, %v1976_v34  ;;  %v2012_v16 = vsel %vm1997_vm0, %v2003_v42, %v2005_v45  ;;  %v2027_v38 = vmul.f32 %v5851_v36, %v2011_v41  ;;  %v2045_v60 = vsel %vm2042_vm1, %v2035_v8, %v2037_v61  ;;  %2353 = vrot.lane.b32.xlu1 %v3202_v27, %s3053_s28 }
 0x35b   : > { %v1987_v58 = vadd.f32 %v1983_v4, %v1977_v51  ;;  %v2023_v47 = vadd.f32 %v2019_v19, %v1988_v22  ;;  %v2028_v54 = vmul.f32 %v5851_v36, %v2010_v37  ;;  %v2020_v18 = vadd.f32 %v2016_v6, %v1985_v59  ;;  %v2041_v21 = vpop.permute.xlu0 %2040 }
 0x35c   : > { %v2021_v5 = vadd.f32 %v2017_v55, %v1986_v0  ;;  %v2060_v44 = vstv %s5966_s27  ;;  %v2026_v45 = vmul.f32 %v5851_v36, %v2012_v16  ;;  %v2046_v2 = vsel %vm2042_vm1, %v2041_v21, %v2035_v8  ;;  %v2039_v40 = vpop.permute.xlu1 %2038  ;;  %s2873_s27 = sld [smem:[#allocation2 + $0xab]] }
 0x35d   : > { %v2022_v52 = vadd.f32 %v2018_v46, %v1987_v58  ;;  %v2033_v26 = vadd.f32 %v2029_v50, %v2023_v47  ;;  %v2064_v42 = vmul.f32 %v2060_v44, %v2046_v2  ;;  %v2043_v35 = vsel %vm2042_vm1, %v2039_v40, %v2041_v21  ;;  %2364 = vrot.lane.b32.xlu0 %v3304_v12, %s3053_s28 }
 0x35e   : > { %v2031_v57 = vadd.f32 %v2027_v38, %v2021_v5  ;;  %v2044_v33 = vsel %vm2042_vm1, %v2037_v61, %v2039_v40  ;;  %v2061_v49 = vmul.f32 %v2060_v44, %v2045_v60  ;;  %v2063_v30 = vmul.f32 %v2060_v44, %v2043_v35  ;;  %2362 = vrot.lane.b32.xlu1 %v3302_v11, %s3053_s28 }
 0x35f   : > { %v2032_v53 = vadd.f32 %v2028_v54, %v2022_v52  ;;  %v2062_v36 = vmul.f32 %v2060_v44, %v2044_v33  ;;  %v2068_v63 = vadd.f32 %v2064_v42, %v2033_v26  ;;  %v2050_v32 = vpop.permute.xlu0 %2049  ;;  %v2070_v48 = vstv %s5993_s29  ;;  %s2868_s29 = sld [smem:[#allocation2 + $0x29]] }
 0x360   : > { %v2030_v62 = vadd.f32 %v2026_v45, %v2020_v18  ;;  %v2048_v3 = vpop.permute.xlu1 %2047  ;;  %vm2087_vm2 = vcmp.lt.s32.totalorder %v3849_v1, 87  ;;  %v2105_v34 = vstv %s2856_s30  ;;  %v2115_v18 = vstv %s2857_s8  ;;  %s6192_s30 = sld [smem:[#allocation2 + $0xa9]]  ;;  %s2876_s8 = sld [smem:[#allocation2 + $0x2d]] }
 0x361   : > { %v2066_v7 = vadd.f32 %v2062_v36, %v2031_v57  ;;  %v2067_v9 = vadd.f32 %v2063_v30, %v2032_v53  ;;  %v2057_v56 = vsel %vm2042_vm1, %v2048_v3, %v2050_v32  ;;  %2368 = vrot.lane.b32.xlu0 %v3312_v14, %s3053_s28  ;;  %vm2132_vm3 = vcmp.lt.s32.totalorder %v3849_v1, 86 }
 0x362   : > { %v2065_v17 = vadd.f32 %v2061_v49, %v2030_v62  ;;  %v2071_v20 = vmul.f32 %v2070_v48, %v2057_v56  ;;  %2366 = vrot.lane.b32.xlu1 %v3310_v13, %s3053_s28  ;;  %vm2177_vm4 = vcmp.lt.s32.totalorder %v3849_v1, 85  ;;  %vm2222_vm5 = vcmp.lt.s32.totalorder %v3849_v1, 84  ;;  %s2867_s28 = sld [smem:[#allocation2 + $0xa8]] }
 0x363   : > { %v2054_v10 = vpop.permute.xlu0 %2053  ;;  %vm2267_vm6 = vcmp.lt.s32.totalorder %v3849_v1, 83  ;;  %vm2312_vm7 = vcmp.lt.s32.totalorder %v3849_v1, 82  ;;  %vm2357_vm8 = vcmp.lt.s32.totalorder %v3849_v1, 81  ;;  %vm2462_vm9 = vcmp.lt.s32.totalorder %v3849_v1, 62 }
 0x364   : > { %v2075_v43 = vadd.f32 %v2071_v20, %v2065_v17  ;;  %v2058_v15 = vsel %vm2042_vm1, %v2054_v10, %v2048_v3  ;;  %v2052_v25 = vpop.permute.xlu1 %2051  ;;  %vm2507_vm10 = vcmp.lt.s32.totalorder %v3849_v1, 61  ;;  %vm2552_vm11 = vcmp.lt.s32.totalorder %v3849_v1, 60 }
 0x365   : > { %v2074_v29 = vmul.f32 %v2070_v48, %v2058_v15  ;;  %v2055_v39 = vsel %vm2042_vm1, %v2052_v25, %v2054_v10  ;;  %v2056_v37 = vsel %vm2042_vm1, %v2050_v32, %v2052_v25  ;;  %2456 = vrot.lane.b32.xlu0 %v3196_v24, %s3054_s7  ;;  %vm2597_vm12 = vcmp.lt.s32.totalorder %v3849_v1, 59 }
 0x366   : > { %v2072_v31 = vmul.f32 %v2070_v48, %v2056_v37  ;;  %v2073_v4 = vmul.f32 %v2070_v48, %v2055_v39  ;;  %2454 = vrot.lane.b32.xlu1 %v3194_v23, %s3054_s7 }
 0x367   : > { %v2078_v19 = vadd.f32 %v2074_v29, %v2068_v63  ;;  %v2082_v41 = vpop.permute.xlu0 %2081  ;;  %v2150_v63 = vstv %s2858_s9  ;;  %s2877_s9 = sld [smem:[#allocation2 + $0xad]] }
 0x368   : > { %v2076_v51 = vadd.f32 %v2072_v31, %v2066_v7  ;;  %v2077_v6 = vadd.f32 %v2073_v4, %v2067_v9  ;;  %v2080_v55 = vpop.permute.xlu1 %2079  ;;  %v2160_v31 = vstv %s2859_s11  ;;  %s2879_s11 = sld [smem:[#allocation2 + $0xae]] }
 0x369   : > { %v2090_v61 = vsel %vm2087_vm2, %v2080_v55, %v2082_v41  ;;  %2460 = vrot.lane.b32.xlu0 %v3204_v28, %s3054_s7 }
 0x36a   : > { %v2106_v59 = vmul.f32 %v2105_v34, %v2090_v61  ;;  %2458 = vrot.lane.b32.xlu1 %v3202_v27, %s3054_s7 }
 0x36b   : > { %v2086_v22 = vpop.permute.xlu0 %2085 }
 0x36c   : > { %v2110_v46 = vadd.f32 %v2106_v59, %v2075_v43  ;;  %v2091_v50 = vsel %vm2087_vm2, %v2086_v22, %v2080_v55  ;;  %v2084_v8 = vpop.permute.xlu1 %2083 }
 0x36d   : > { %v2109_v0 = vmul.f32 %v2105_v34, %v2091_v50  ;;  %v2088_v16 = vsel %vm2087_vm2, %v2084_v8, %v2086_v22  ;;  %v2089_v38 = vsel %vm2087_vm2, %v2082_v41, %v2084_v8  ;;  %2469 = vrot.lane.b32.xlu0 %v3304_v12, %s3054_s7 }
 0x36e   : > { %v2107_v60 = vmul.f32 %v2105_v34, %v2089_v38  ;;  %v2108_v58 = vmul.f32 %v2105_v34, %v2088_v16  ;;  %2467 = vrot.lane.b32.xlu1 %v3302_v11, %s3054_s7 }
 0x36f   : > { %v2113_v47 = vadd.f32 %v2109_v0, %v2078_v19  ;;  %v2095_v54 = vpop.permute.xlu0 %2094 }
 0x370   : > { %v2111_v5 = vadd.f32 %v2107_v60, %v2076_v51  ;;  %v2112_v44 = vadd.f32 %v2108_v58, %v2077_v6  ;;  %v2093_v21 = vpop.permute.xlu1 %2092  ;;  %v2195_v60 = vstv %s2860_s12  ;;  %s6316_s12 = sld [smem:[#allocation2 + $0x2f]] }
 0x371   : > { %v2102_v52 = vsel %vm2087_vm2, %v2093_v21, %v2095_v54  ;;  %2473 = vrot.lane.b32.xlu0 %v3312_v14, %s3054_s7 }
 0x372   : > { %v2116_v45 = vmul.f32 %v2115_v18, %v2102_v52  ;;  %2471 = vrot.lane.b32.xlu1 %v3310_v13, %s3054_s7  ;;  %s6209_s7 = sld [smem:[#allocation2 + $0xac]] }
 0x373   : > { %v2099_v26 = vpop.permute.xlu0 %2098 }
 0x374   : > { %v2120_v2 = vadd.f32 %v2116_v45, %v2110_v46  ;;  %v2103_v40 = vsel %vm2087_vm2, %v2099_v26, %v2093_v21  ;;  %v2097_v57 = vpop.permute.xlu1 %2096 }
 0x375   : > { %v2119_v42 = vmul.f32 %v2115_v18, %v2103_v40  ;;  %v2100_v35 = vsel %vm2087_vm2, %v2097_v57, %v2099_v26  ;;  %v2101_v33 = vsel %vm2087_vm2, %v2095_v54, %v2097_v57  ;;  %2501 = vrot.lane.b32.xlu0 %v3196_v24, %s3055_s10 }
 0x376   : > { %v2117_v53 = vmul.f32 %v2115_v18, %v2101_v33  ;;  %v2118_v49 = vmul.f32 %v2115_v18, %v2100_v35  ;;  %2499 = vrot.lane.b32.xlu1 %v3194_v23, %s3055_s10 }
 0x377   : > { %v2123_v36 = vadd.f32 %v2119_v42, %v2113_v47  ;;  %v2127_v30 = vpop.permute.xlu0 %2126 }
 0x378   : > { %v2121_v32 = vadd.f32 %v2117_v53, %v2111_v5  ;;  %v2122_v48 = vadd.f32 %v2118_v49, %v2112_v44  ;;  %v2125_v62 = vpop.permute.xlu1 %2124  ;;  %v2205_v53 = vstv %s2861_s14  ;;  %s6327_s14 = sld [smem:[#allocation2 + $0x30]] }
 0x379   : > { %v2135_v7 = vsel %vm2132_vm3, %v2125_v62, %v2127_v30  ;;  %2505 = vrot.lane.b32.xlu0 %v3204_v28, %s3055_s10 }
 0x37a   : > { %v2151_v9 = vmul.f32 %v2150_v63, %v2135_v7  ;;  %2503 = vrot.lane.b32.xlu1 %v3202_v27, %s3055_s10 }
 0x37b   : > { %v2131_v3 = vpop.permute.xlu0 %2130 }
 0x37c   : > { %v2155_v56 = vadd.f32 %v2151_v9, %v2120_v2  ;;  %v2136_v17 = vsel %vm2132_vm3, %v2131_v3, %v2125_v62  ;;  %v2129_v20 = vpop.permute.xlu1 %2128 }
 0x37d   : > { %v2154_v10 = vmul.f32 %v2150_v63, %v2136_v17  ;;  %v2133_v43 = vsel %vm2132_vm3, %v2129_v20, %v2131_v3  ;;  %v2134_v15 = vsel %vm2132_vm3, %v2127_v30, %v2129_v20  ;;  %2514 = vrot.lane.b32.xlu0 %v3304_v12, %s3055_s10 }
 0x37e   : > { %v2152_v25 = vmul.f32 %v2150_v63, %v2134_v15  ;;  %v2153_v29 = vmul.f32 %v2150_v63, %v2133_v43  ;;  %2512 = vrot.lane.b32.xlu1 %v3302_v11, %s3055_s10 }
 0x37f   : > { %v2158_v39 = vadd.f32 %v2154_v10, %v2123_v36  ;;  %v2140_v37 = vpop.permute.xlu0 %2139 }
 0x380   : > { %v2156_v4 = vadd.f32 %v2152_v25, %v2121_v32  ;;  %v2157_v19 = vadd.f32 %v2153_v29, %v2122_v48  ;;  %v2138_v41 = vpop.permute.xlu1 %2137  ;;  %v2240_v25 = vstv %s2862_s15  ;;  %s6329_s15 = sld [smem:[#allocation2 + $0xb0]] }
 0x381   : > { %v2147_v34 = vsel %vm2132_vm3, %v2138_v41, %v2140_v37  ;;  %2518 = vrot.lane.b32.xlu0 %v3312_v14, %s3055_s10 }
 0x382   : > { %v2161_v51 = vmul.f32 %v2160_v31, %v2147_v34  ;;  %2516 = vrot.lane.b32.xlu1 %v3310_v13, %s3055_s10  ;;  %s2878_s10 = sld [smem:[#allocation2 + $0x2e]] }
 0x383   : > { %v2144_v6 = vpop.permute.xlu0 %2143 }
 0x384   : > { %v2165_v55 = vadd.f32 %v2161_v51, %v2155_v56  ;;  %v2148_v61 = vsel %vm2132_vm3, %v2144_v6, %v2138_v41  ;;  %v2142_v59 = vpop.permute.xlu1 %2141 }
 0x385   : > { %v2164_v22 = vmul.f32 %v2160_v31, %v2148_v61  ;;  %v2145_v46 = vsel %vm2132_vm3, %v2142_v59, %v2144_v6  ;;  %v2146_v50 = vsel %vm2132_vm3, %v2140_v37, %v2142_v59  ;;  %2546 = vrot.lane.b32.xlu0 %v3196_v24, %s3056_s13  ;;  %v2250_v59 = vstv %s2863_s17 }
 0x386   : > { %v2162_v8 = vmul.f32 %v2160_v31, %v2146_v50  ;;  %v2163_v0 = vmul.f32 %v2160_v31, %v2145_v46  ;;  %2544 = vrot.lane.b32.xlu1 %v3194_v23, %s3056_s13 }
 0x387   : > { %v2168_v16 = vadd.f32 %v2164_v22, %v2158_v39  ;;  %v2172_v38 = vpop.permute.xlu0 %2171 }
 0x388   : > { %v2166_v58 = vadd.f32 %v2162_v8, %v2156_v4  ;;  %v2167_v47 = vadd.f32 %v2163_v0, %v2157_v19  ;;  %v2170_v54 = vpop.permute.xlu1 %2169 }
 0x389   : > { %v2180_v18 = vsel %vm2177_vm4, %v2170_v54, %v2172_v38  ;;  %2550 = vrot.lane.b32.xlu0 %v3204_v28, %s3056_s13 }
 0x38a   : > { %v2196_v5 = vmul.f32 %v2195_v60, %v2180_v18  ;;  %2548 = vrot.lane.b32.xlu1 %v3202_v27, %s3056_s13 }
 0x38b   : > { %v2176_v44 = vpop.permute.xlu0 %2175 }
 0x38c   : > { %v2200_v21 = vadd.f32 %v2196_v5, %v2165_v55  ;;  %v2181_v52 = vsel %vm2177_vm4, %v2176_v44, %v2170_v54  ;;  %v2174_v45 = vpop.permute.xlu1 %2173 }
 0x38d   : > { %v2199_v26 = vmul.f32 %v2195_v60, %v2181_v52  ;;  %v2178_v2 = vsel %vm2177_vm4, %v2174_v45, %v2176_v44  ;;  %v2179_v40 = vsel %vm2177_vm4, %v2172_v38, %v2174_v45  ;;  %2559 = vrot.lane.b32.xlu0 %v3304_v12, %s3056_s13 }
 0x38e   : > { %v2197_v57 = vmul.f32 %v2195_v60, %v2179_v40  ;;  %v2198_v42 = vmul.f32 %v2195_v60, %v2178_v2  ;;  %2557 = vrot.lane.b32.xlu1 %v3302_v11, %s3056_s13 }
 0x38f   : > { %v2203_v35 = vadd.f32 %v2199_v26, %v2168_v16  ;;  %v2185_v33 = vpop.permute.xlu0 %2184 }
 0x390   : > { %v2201_v49 = vadd.f32 %v2197_v57, %v2166_v58  ;;  %v2202_v36 = vadd.f32 %v2198_v42, %v2167_v47  ;;  %v2183_v30 = vpop.permute.xlu1 %2182 }
 0x391   : > { %v2192_v63 = vsel %vm2177_vm4, %v2183_v30, %v2185_v33  ;;  %2563 = vrot.lane.b32.xlu0 %v3312_v14, %s3056_s13 }
 0x392   : > { %v2206_v32 = vmul.f32 %v2205_v53, %v2192_v63  ;;  %2561 = vrot.lane.b32.xlu1 %v3310_v13, %s3056_s13  ;;  %s6320_s13 = sld [smem:[#allocation2 + $0xaf]] }
 0x393   : > { %v2189_v48 = vpop.permute.xlu0 %2188 }
 0x394   : > { %v2210_v62 = vadd.f32 %v2206_v32, %v2200_v21  ;;  %v2193_v7 = vsel %vm2177_vm4, %v2189_v48, %v2183_v30  ;;  %v2187_v9 = vpop.permute.xlu1 %2186 }
 0x395   : > { %v2209_v3 = vmul.f32 %v2205_v53, %v2193_v7  ;;  %v2190_v56 = vsel %vm2177_vm4, %v2187_v9, %v2189_v48  ;;  %v2191_v17 = vsel %vm2177_vm4, %v2185_v33, %v2187_v9  ;;  %2591 = vrot.lane.b32.xlu0 %v3196_v24, %s3057_s16 }
 0x396   : > { %v2207_v20 = vmul.f32 %v2205_v53, %v2191_v17  ;;  %v2208_v10 = vmul.f32 %v2205_v53, %v2190_v56  ;;  %2589 = vrot.lane.b32.xlu1 %v3194_v23, %s3057_s16 }
 0x397   : > { %v2213_v43 = vadd.f32 %v2209_v3, %v2203_v35  ;;  %v2217_v15 = vpop.permute.xlu0 %2216  ;;  %v2295_v3 = vstv %s2865_s19 }
 0x398   : > { %v2211_v29 = vadd.f32 %v2207_v20, %v2201_v49  ;;  %v2212_v39 = vadd.f32 %v2208_v10, %v2202_v36  ;;  %v2215_v37 = vpop.permute.xlu1 %2214 }
 0x399   : > { %v2225_v31 = vsel %vm2222_vm5, %v2215_v37, %v2217_v15  ;;  %2595 = vrot.lane.b32.xlu0 %v3204_v28, %s3057_s16 }
 0x39a   : > { %v2241_v24 = vmul.f32 %v2240_v25, %v2225_v31  ;;  %2593 = vrot.lane.b32.xlu1 %v3202_v27, %s3057_s16 }
 0x39b   : > { %v2221_v23 = vpop.permute.xlu0 %2220 }
 0x39c   : > { %v2245_v4 = vadd.f32 %v2241_v24, %v2210_v62  ;;  %v2226_v19 = vsel %vm2222_vm5, %v2221_v23, %v2215_v37  ;;  %v2219_v41 = vpop.permute.xlu1 %2218 }
 0x39d   : > { %v2244_v34 = vmul.f32 %v2240_v25, %v2226_v19  ;;  %v2223_v51 = vsel %vm2222_vm5, %v2219_v41, %v2221_v23  ;;  %v2224_v6 = vsel %vm2222_vm5, %v2217_v15, %v2219_v41  ;;  %2604 = vrot.lane.b32.xlu0 %v3304_v12, %s3057_s16  ;;  %v6186_v19 = vstv %s2872_s23 }
 0x39e   : > { %v2242_v28 = vmul.f32 %v2240_v25, %v2224_v6  ;;  %v2243_v55 = vmul.f32 %v2240_v25, %v2223_v51  ;;  %2602 = vrot.lane.b32.xlu1 %v3302_v11, %s3057_s16  ;;  %v6188_v41 = vstv %s2874_s24  ;;  %v2330_v51 = vstv %s2866_s25 }
 0x39f   : > { %v2248_v27 = vadd.f32 %v2244_v34, %v2213_v43  ;;  %v2230_v61 = vpop.permute.xlu0 %2229 }
 0x3a0   : > { %v2246_v22 = vadd.f32 %v2242_v28, %v2211_v29  ;;  %v2247_v46 = vadd.f32 %v2243_v55, %v2212_v39  ;;  %v2228_v50 = vpop.permute.xlu1 %2227  ;;  %v6194_v55 = vstv %s2871_s26 }
 0x3a1   : > { %v2237_v8 = vsel %vm2222_vm5, %v2228_v50, %v2230_v61  ;;  %2608 = vrot.lane.b32.xlu0 %v3312_v14, %s3057_s16 }
 0x3a2   : > { %v2251_v0 = vmul.f32 %v2250_v59, %v2237_v8  ;;  %2606 = vrot.lane.b32.xlu1 %v3310_v13, %s3057_s16  ;;  %v2285_v13 = vstv %s2864_s18  ;;  %s2888_s16 = smul.u32 96, %s7104_s22 }
 0x3a3   : > { %v2234_v12 = vpop.permute.xlu0 %2233 }
 0x3a4   : > { %v2255_v16 = vadd.f32 %v2251_v0, %v2245_v4  ;;  %v2238_v11 = vsel %vm2222_vm5, %v2234_v12, %v2228_v50  ;;  %v2232_v38 = vpop.permute.xlu1 %2231  ;;  %v6184_v4 = vstv %s2870_s20  ;;  %v2340_v50 = vstv %s2867_s28  ;;  %s285_s19 = scalar_lea.vmem %s6438_s6, %s2888_s16 }
 0x3a5   : > { %v2254_v60 = vmul.f32 %v2250_v59, %v2238_v11  ;;  %v2235_v58 = vsel %vm2222_vm5, %v2232_v38, %v2234_v12  ;;  %v2236_v47 = vsel %vm2222_vm5, %v2230_v61, %v2232_v38  ;;  %v2375_v11 = vstv %s2868_s29 }
 0x3a6   : > { %v2252_v54 = vmul.f32 %v2250_v59, %v2236_v47  ;;  %v2253_v18 = vmul.f32 %v2250_v59, %v2235_v58 }
 0x3a7   : > { %v2258_v14 = vadd.f32 %v2254_v60, %v2248_v27  ;;  %v2262_v5 = vpop.permute.xlu0 %2261 }
 0x3a8   : > { %v2256_v44 = vadd.f32 %v2252_v54, %v2246_v22  ;;  %v2257_v21 = vadd.f32 %v2253_v18, %v2247_v46  ;;  %v2260_v52 = vpop.permute.xlu1 %2259  ;;  %v6199_v22 = vstv %s2873_s27 }
 0x3a9   : > { %v2270_v45 = vsel %vm2267_vm6, %v2260_v52, %v2262_v5 }
 0x3aa   : > { %v2286_v26 = vmul.f32 %v2285_v13, %v2270_v45 }
 0x3ab   : > { %v2266_v2 = vpop.permute.xlu0 %2265 }
 0x3ac   : > { %v2290_v40 = vadd.f32 %v2286_v26, %v2255_v16  ;;  %v2271_v57 = vsel %vm2267_vm6, %v2266_v2, %v2260_v52  ;;  %v2264_v42 = vpop.permute.xlu1 %2263 }
 0x3ad   : > { %v2289_v35 = vmul.f32 %v2285_v13, %v2271_v57  ;;  %v2268_v33 = vsel %vm2267_vm6, %v2264_v42, %v2266_v2  ;;  %v2269_v53 = vsel %vm2267_vm6, %v2262_v5, %v2264_v42 }
 0x3ae   : > { %v2287_v49 = vmul.f32 %v2285_v13, %v2269_v53  ;;  %v2288_v36 = vmul.f32 %v2285_v13, %v2268_v33 }
 0x3af   : > { %v2293_v30 = vadd.f32 %v2289_v35, %v2258_v14  ;;  %v2275_v63 = vpop.permute.xlu0 %2274 }
 0x3b0   : > { %v2291_v32 = vadd.f32 %v2287_v49, %v2256_v44  ;;  %v6173_v48 = vadd.f32 %v2288_v36, %v2257_v21  ;;  %v2273_v62 = vpop.permute.xlu1 %2272  ;;  %v2385_v36 = vstv %s6192_s30 }
 0x3b1   : > { %v2282_v31 = vsel %vm2267_vm6, %v2273_v62, %v2275_v63 }
 0x3b2   : > { %v2296_v34 = vmul.f32 %v2295_v3, %v2282_v31  ;;  %v6235_v31 = vstv %s6209_s7 }
 0x3b3   : > { %v2279_v7 = vpop.permute.xlu0 %2278 }
 0x3b4   : > { %v2277_v9 = vpop.permute.xlu1 %2276  ;;  %v2283_v23 = vsel %vm2267_vm6, %v2279_v7, %v2273_v62  ;;  %v2300_v38 = vadd.f32 %v2296_v34, %v2290_v40 }
 0x3b5   : > { %v2281_v56 = vsel %vm2267_vm6, %v2275_v63, %v2277_v9  ;;  %v2299_v27 = vmul.f32 %v2295_v3, %v2283_v23  ;;  %v2280_v61 = vsel %vm2267_vm6, %v2277_v9, %v2279_v7 }
 0x3b6   : > { %v2297_v17 = vmul.f32 %v2295_v3, %v2281_v56  ;;  %v2298_v60 = vmul.f32 %v2295_v3, %v2280_v61 }
 0x3b7   : > { %v2307_v20 = vpop.permute.xlu0 %2306  ;;  %v2303_v18 = vadd.f32 %v2299_v27, %v2293_v30 }
 0x3b8   : > { %v6177_v10 = vadd.f32 %v2297_v17, %v2291_v32  ;;  %v2305_v43 = vpop.permute.xlu1 %2304  ;;  %v2302_v35 = vadd.f32 %v2298_v60, %v6173_v48 }
 0x3b9   : > { %v2315_v6 = vsel %vm2312_vm7, %v2305_v43, %v2307_v20 }
 0x3ba   : > { %v2331_v0 = vmul.f32 %v2330_v51, %v2315_v6 }
 0x3bb   : > { %v2311_v15 = vpop.permute.xlu0 %2310 }
 0x3bc   : > { %v2309_v25 = vpop.permute.xlu1 %2308  ;;  %v2316_v46 = vsel %vm2312_vm7, %v2311_v15, %v2305_v43  ;;  %v2335_v2 = vadd.f32 %v2331_v0, %v2300_v38  ;;  %v7069_v38 = vld [vmem:[#allocation156_spill] sm:$0xff] }
 0x3bd   : > { %v2313_v12 = vsel %vm2312_vm7, %v2309_v25, %v2311_v15  ;;  %v2314_v16 = vsel %vm2312_vm7, %v2307_v20, %v2309_v25  ;;  %v2334_v14 = vmul.f32 %v2330_v51, %v2316_v46  ;;  %v7066_v25 = vld [vmem:[#allocation153_spill] sm:$0xff]  ;;  %v2397_v60 = vmul.f32 %v6184_v4, %v7069_v38 }
 0x3be   : > { %v2332_v21 = vmul.f32 %v2330_v51, %v2314_v16  ;;  %v2333_v52 = vmul.f32 %v2330_v51, %v2313_v12  ;;  %v7068_v16 = vld [vmem:[#allocation154_spill] sm:$0xff] }
 0x3bf   : > { %v2320_v29 = vpop.permute.xlu0 %2319  ;;  %v2338_v30 = vadd.f32 %v2334_v14, %v2303_v18  ;;  %v7071_v14 = vld [vmem:[#allocation157_spill] sm:$0xff] }
 0x3c0   : > { %v2318_v39 = vpop.permute.xlu1 %2317  ;;  %v2336_v9 = vadd.f32 %v2332_v21, %v6177_v10  ;;  %v2337_v3 = vadd.f32 %v2333_v52, %v2302_v35  ;;  %v7075_v35 = vld [vmem:[#allocation140_spill] sm:$0xff] }
 0x3c1   : > { %v2327_v8 = vsel %vm2312_vm7, %v2318_v39, %v2320_v29 }
 0x3c2   : > { %v2341_v5 = vmul.f32 %v2340_v50, %v2327_v8 }
 0x3c3   : > { %v2324_v37 = vpop.permute.xlu0 %2323 }
 0x3c4   : > { %v2322_v24 = vpop.permute.xlu1 %2321  ;;  %v2328_v58 = vsel %vm2312_vm7, %v2324_v37, %v2318_v39  ;;  %v2345_v63 = vadd.f32 %v2341_v5, %v2335_v2  ;;  %v7067_v39 = vld [vmem:[#allocation19_spill] sm:$0xff]  ;;  %v2416_v5 = vmul.f32 %v6186_v19, %v7071_v14  ;;  %v7073_v2 = vld [vmem:[#allocation21_spill] sm:$0xff] }
 0x3c5   : > { %v2326_v13 = vsel %vm2312_vm7, %v2320_v29, %v2322_v24  ;;  %v2325_v45 = vsel %vm2312_vm7, %v2322_v24, %v2324_v37  ;;  %v2344_v40 = vmul.f32 %v2340_v50, %v2328_v58  ;;  %v2396_v29 = vmul.f32 %v6184_v4, %v7066_v25  ;;  %v7070_v58 = vld [vmem:[#allocation155_spill] sm:$0xff]  ;;  %v7080_v25 = vld [vmem:[#allocation22_spill] sm:$0xff] }
 0x3c6   : > { %v2342_v33 = vmul.f32 %v2340_v50, %v2326_v13  ;;  %v2343_v32 = vmul.f32 %v2340_v50, %v2325_v45  ;;  %v2406_v37 = vmul.f32 %v6194_v55, %v7067_v39  ;;  %v7072_v45 = vld [vmem:[#allocation20_spill] sm:$0xff]  ;;  %v7081_v39 = vld [vmem:[#allocation23_spill] sm:$0xff] }
 0x3c7   : > { %v2352_v28 = vpop.permute.xlu0 %2351  ;;  %v2348_v48 = vadd.f32 %v2344_v40, %v2338_v30  ;;  %v2407_v40 = vmul.f32 %v6194_v55, %v7073_v2  ;;  %v7076_v30 = vld [vmem:[#allocation40_spill] sm:$0xff] }
 0x3c8   : > { %v2350_v59 = vpop.permute.xlu1 %2349  ;;  %v2346_v24 = vadd.f32 %v2342_v33, %v2336_v9  ;;  %v2347_v10 = vadd.f32 %v2343_v32, %v2337_v3  ;;  %v2426_v33 = vmul.f32 %v6199_v22, %v7075_v35  ;;  %v7077_v32 = vld [vmem:[#allocation147_spill] sm:$0xff] }
 0x3c9   : > { %v2360_v47 = vsel %vm2357_vm8, %v2350_v59, %v2352_v28 }
 0x3ca   : > { %v2376_v57 = vmul.f32 %v2375_v11, %v2360_v47  ;;  %v2398_v47 = vmul.f32 %v6184_v4, %v7070_v58 }
 0x3cb   : > { %v2356_v54 = vpop.permute.xlu0 %2355 }
 0x3cc   : > { %v2354_v44 = vpop.permute.xlu1 %2353  ;;  %v2361_v26 = vsel %vm2357_vm8, %v2356_v54, %v2350_v59  ;;  %v2380_v20 = vadd.f32 %v2376_v57, %v2345_v63  ;;  %v7074_v57 = vld [vmem:[#allocation41_spill] sm:$0xff]  ;;  %v2419_v63 = vmul.f32 %v6186_v19, %v7076_v30 }
 0x3cd   : > { %v2359_v42 = vsel %vm2357_vm8, %v2352_v28, %v2354_v44  ;;  %v2358_v53 = vsel %vm2357_vm8, %v2354_v44, %v2356_v54  ;;  %v2379_v62 = vmul.f32 %v2375_v11, %v2361_v26  ;;  %v2409_v26 = vmul.f32 %v6194_v55, %v7072_v45 }
 0x3ce   : > { %v2377_v56 = vmul.f32 %v2375_v11, %v2359_v42  ;;  %v2378_v43 = vmul.f32 %v2375_v11, %v2358_v53  ;;  %v2399_v11 = vmul.f32 %v6184_v4, %v7068_v16  ;;  %v2408_v4 = vmul.f32 %v6194_v55, %v7074_v57 }
 0x3cf   : > { %v2365_v49 = vpop.permute.xlu0 %2364  ;;  %v2383_v34 = vadd.f32 %v2379_v62, %v2348_v48  ;;  %v2417_v62 = vmul.f32 %v6186_v19, %v7077_v32 }
 0x3d0   : > { %v2363_v7 = vpop.permute.xlu1 %2362  ;;  %v2381_v27 = vadd.f32 %v2377_v56, %v2346_v24  ;;  %v2382_v50 = vadd.f32 %v2378_v43, %v2347_v10  ;;  %v7082_v24 = vld [vmem:[#allocation24_spill] sm:$0xff] }
 0x3d1   : > { %v2372_v17 = vsel %vm2357_vm8, %v2363_v7, %v2365_v49 }
 0x3d2   : > { %v2386_v15 = vmul.f32 %v2385_v36, %v2372_v17  ;;  %v7079_v17 = vld [vmem:[#allocation18_spill] sm:$0xff] }
 0x3d3   : > { %v2369_v23 = vpop.permute.xlu0 %2368  ;;  %v2436_v55 = vmul.f32 %v6188_v41, %v7079_v17 }
 0x3d4   : > { %v2390_v51 = vadd.f32 %v2386_v15, %v2380_v20  ;;  %v2373_v6 = vsel %vm2357_vm8, %v2369_v23, %v2363_v7  ;;  %v2367_v28 = vpop.permute.xlu1 %2366  ;;  %v7078_v7 = vld [vmem:[#allocation139_spill] sm:$0xff] }
 0x3d5   : > { %v2389_v61 = vmul.f32 %v2385_v36, %v2373_v6  ;;  %v2370_v59 = vsel %vm2357_vm8, %v2367_v28, %v2369_v23  ;;  %v2371_v46 = vsel %vm2357_vm8, %v2365_v49, %v2367_v28  ;;  %v2418_v9 = vmul.f32 %v6186_v19, %v7078_v7  ;;  %v7083_v19 = vld [vmem:[#allocation46_spill] sm:$0xff] }
 0x3d6   : > { %v2400_v8 = vadd.f32 %v2396_v29, %v2390_v51  ;;  %v2387_v0 = vmul.f32 %v2385_v36, %v2371_v46  ;;  %v2388_v12 = vmul.f32 %v2385_v36, %v2370_v59  ;;  %v2429_v29 = vmul.f32 %v6199_v22, %v7080_v25  ;;  %v7085_v59 = vld [vmem:[#allocation44_spill] sm:$0xff] }
 0x3d7   : > { %v2393_v54 = vadd.f32 %v2389_v61, %v2383_v34  ;;  %v6249_v18 = vpop.permute.xlu0 %2456  ;;  %v2428_v23 = vmul.f32 %v6199_v22, %v7082_v24  ;;  %v2446_v34 = vmul.f32 %v6235_v31, %v7083_v19  ;;  %v2437_v46 = vmul.f32 %v6188_v41, %v7085_v59 }
 0x3d8   : > { %v2410_v13 = vadd.f32 %v2406_v37, %v2400_v8  ;;  %v2391_v44 = vadd.f32 %v2387_v0, %v2381_v27  ;;  %v2392_v21 = vadd.f32 %v2388_v12, %v2382_v50  ;;  %v6253_v52 = vpop.permute.xlu1 %2454  ;;  %v2427_v37 = vmul.f32 %v6199_v22, %v7081_v39  ;;  %v7084_v27 = vld [vmem:[#allocation42_spill] sm:$0xff]  ;;  %v7086_v0 = vld [vmem:[#allocation43_spill] sm:$0xff] }
 0x3d9   : > { %v2403_v42 = vadd.f32 %v2399_v11, %v2393_v54  ;;  %v2439_v61 = vmul.f32 %v6188_v41, %v7084_v27  ;;  %v2438_v12 = vmul.f32 %v6188_v41, %v7086_v0  ;;  %v7088_v54 = vld [vmem:[#allocation149_spill] sm:$0xff]  ;;  %v2465_v32 = vsel %vm2462_vm9, %v6253_v52, %v6249_v18 }
 0x3da   : > { %v2420_v53 = vadd.f32 %v2416_v5, %v2410_v13  ;;  %v2401_v49 = vadd.f32 %v2397_v60, %v2391_v44  ;;  %v2402_v36 = vadd.f32 %v2398_v47, %v2392_v21  ;;  %v7087_v60 = vld [vmem:[#allocation48_spill] sm:$0xff]  ;;  %v2447_v14 = vmul.f32 %v6235_v31, %v7088_v54  ;;  %v7089_v5 = vld [vmem:[#allocation26_spill] sm:$0xff] }
 0x3db   : > { %v2413_v3 = vadd.f32 %v2409_v26, %v2403_v42  ;;  %v2461_v56 = vpop.permute.xlu0 %2460  ;;  %v2449_v58 = vmul.f32 %v6235_v31, %v7087_v60  ;;  %v2448_v13 = vmul.f32 %v6235_v31, %v7089_v5 }
 0x3dc   : > { %v2411_v48 = vadd.f32 %v2407_v40, %v2401_v49  ;;  %v2412_v20 = vadd.f32 %v2408_v4, %v2402_v36  ;;  %v2430_v43 = vadd.f32 %v2426_v33, %v2420_v53  ;;  %v2459_v15 = vpop.permute.xlu1 %2458  ;;  %v2466_v7 = vsel %vm2462_vm9, %v2461_v56, %v6253_v52 }
 0x3dd   : > { %v2423_v10 = vadd.f32 %v2419_v63, %v2413_v3  ;;  %v2480_v63 = vstv %s2876_s8  ;;  %v2464_v3 = vsel %vm2462_vm9, %v6249_v18, %v2459_v15 }
 0x3de   : > { %v2421_v51 = vadd.f32 %v2417_v62, %v2411_v48  ;;  %v2422_v6 = vadd.f32 %v2418_v9, %v2412_v20  ;;  %v2440_v28 = vadd.f32 %v2436_v55, %v2430_v43  ;;  %v2463_v9 = vsel %vm2462_vm9, %v2459_v15, %v2461_v56 }
 0x3df   : > { %v2433_v50 = vadd.f32 %v2429_v29, %v2423_v10  ;;  %v2470_v8 = vpop.permute.xlu0 %2469  ;;  %v2490_v55 = vstv %s2877_s9  ;;  %v2525_v48 = vstv %s2878_s10  ;;  %v2481_v20 = vmul.f32 %v2480_v63, %v2465_v32 }
 0x3e0   : > { %v2450_v16 = vadd.f32 %v2446_v34, %v2440_v28  ;;  %v2431_v22 = vadd.f32 %v2427_v37, %v2421_v51  ;;  %v2432_v11 = vadd.f32 %v2428_v23, %v2422_v6  ;;  %v2468_v38 = vpop.permute.xlu1 %2467  ;;  %v2535_v43 = vstv %s2879_s11 }
 0x3e1   : > { %v2443_v47 = vadd.f32 %v2439_v61, %v2433_v50  ;;  %v2477_v52 = vsel %vm2462_vm9, %v2468_v38, %v2470_v8  ;;  %v2484_v18 = vmul.f32 %v2480_v63, %v2466_v7  ;;  %v2482_v15 = vmul.f32 %v2480_v63, %v2464_v3 }
 0x3e2   : > { %v2441_v44 = vadd.f32 %v2437_v46, %v2431_v22  ;;  %v2442_v21 = vadd.f32 %v2438_v12, %v2432_v11  ;;  %v2483_v25 = vmul.f32 %v2480_v63, %v2463_v9  ;;  %v2485_v39 = vadd.f32 %v2481_v20, %v2450_v16 }
 0x3e3   : > { %v2453_v45 = vadd.f32 %v2449_v58, %v2443_v47  ;;  %v2474_v26 = vpop.permute.xlu0 %2473  ;;  %v2491_v34 = vmul.f32 %v2490_v55, %v2477_v52  ;;  %v2570_v22 = vstv %s6316_s12  ;;  %v2580_v11 = vstv %s6320_s13 }
 0x3e4   : > { %v2451_v2 = vadd.f32 %v2447_v14, %v2441_v44  ;;  %v2452_v41 = vadd.f32 %v2448_v13, %v2442_v21  ;;  %v2472_v40 = vpop.permute.xlu1 %2471  ;;  %v2478_v56 = vsel %vm2462_vm9, %v2474_v26, %v2468_v38  ;;  %v2615_v13 = vstv %s6327_s14 }
 0x3e5   : > { %v2475_v37 = vsel %vm2462_vm9, %v2472_v40, %v2474_v26  ;;  %v2476_v24 = vsel %vm2462_vm9, %v2470_v8, %v2472_v40  ;;  %v2488_v19 = vadd.f32 %v2484_v18, %v2453_v45  ;;  %v2494_v51 = vmul.f32 %v2490_v55, %v2478_v56 }
 0x3e6   : > { %v2486_v28 = vadd.f32 %v2482_v15, %v2451_v2  ;;  %v2487_v27 = vadd.f32 %v2483_v25, %v2452_v41  ;;  %v2492_v46 = vmul.f32 %v2490_v55, %v2476_v24  ;;  %v2493_v50 = vmul.f32 %v2490_v55, %v2475_v37 }
 0x3e7   : > { %v2502_v57 = vpop.permute.xlu0 %2501  ;;  %v2495_v60 = vadd.f32 %v2491_v34, %v2485_v39  ;;  %v2498_v14 = vadd.f32 %v2494_v51, %v2488_v19  ;;  %v6355_v44 = vstv %s6329_s15 }
 0x3e8   : > { %v2500_v4 = vpop.permute.xlu1 %2499  ;;  %v2496_v21 = vadd.f32 %v2492_v46, %v2486_v28  ;;  %v2497_v45 = vadd.f32 %v2493_v50, %v2487_v27 }
 0x3e9   : > { %v2510_v23 = vsel %vm2507_vm10, %v2500_v4, %v2502_v57 }
 0x3ea   : > { %v2526_v8 = vmul.f32 %v2525_v48, %v2510_v23 }
 0x3eb   : > { %v2506_v42 = vpop.permute.xlu0 %2505 }
 0x3ec   : > { %v2504_v35 = vpop.permute.xlu1 %2503  ;;  %v2511_v6 = vsel %vm2507_vm10, %v2506_v42, %v2500_v4  ;;  %v2530_v26 = vadd.f32 %v2526_v8, %v2495_v60 }
 0x3ed   : > { %v2508_v61 = vsel %vm2507_vm10, %v2504_v35, %v2506_v42  ;;  %v2509_v59 = vsel %vm2507_vm10, %v2502_v57, %v2504_v35  ;;  %v2529_v16 = vmul.f32 %v2525_v48, %v2511_v6 }
 0x3ee   : > { %v2527_v58 = vmul.f32 %v2525_v48, %v2509_v59  ;;  %v2528_v47 = vmul.f32 %v2525_v48, %v2508_v61 }
 0x3ef   : > { %v6291_v33 = vpop.permute.xlu0 %2514  ;;  %v2533_v40 = vadd.f32 %v2529_v16, %v2498_v14 }
 0x3f0   : > { %v2513_v53 = vpop.permute.xlu1 %2512  ;;  %v2532_v63 = vadd.f32 %v2528_v47, %v2497_v45 }
 0x3f1   : > { %v2522_v0 = vsel %vm2507_vm10, %v2513_v53, %v6291_v33 }
 0x3f2   : > { %v2536_v5 = vmul.f32 %v2535_v43, %v2522_v0 }
 0x3f3   : > { %v6293_v49 = vpop.permute.xlu0 %2518 }
 0x3f4   : > { %v6295_v36 = vpop.permute.xlu1 %2516  ;;  %v2523_v54 = vsel %vm2507_vm10, %v6293_v49, %v2513_v53  ;;  %v2531_v53 = vadd.f32 %v2527_v58, %v2496_v21  ;;  %v2540_v9 = vadd.f32 %v2536_v5, %v2530_v26 }
 0x3f5   : > { %v2539_v57 = vmul.f32 %v2535_v43, %v2523_v54  ;;  %v2520_v4 = vsel %vm2507_vm10, %v6295_v36, %v6293_v49  ;;  %v2521_v42 = vsel %vm2507_vm10, %v6291_v33, %v6295_v36 }
 0x3f6   : > { %v2537_v36 = vmul.f32 %v2535_v43, %v2521_v42  ;;  %v2538_v55 = vmul.f32 %v2535_v43, %v2520_v4 }
 0x3f7   : > { %v6297_v31 = vpop.permute.xlu0 %2546  ;;  %v2543_v52 = vadd.f32 %v2539_v57, %v2533_v40 }
 0x3f8   : > { %v6300_v30 = vpop.permute.xlu1 %2544  ;;  %v2542_v19 = vadd.f32 %v2538_v55, %v2532_v63 }
 0x3f9   : > { %v2555_v2 = vsel %vm2552_vm11, %v6300_v30, %v6297_v31 }
 0x3fa   : > { %v2571_v3 = vmul.f32 %v2570_v22, %v2555_v2 }
 0x3fb   : > { %v6306_v62 = vpop.permute.xlu0 %2550 }
 0x3fc   : > { %v6318_v17 = vpop.permute.xlu1 %2548  ;;  %v2556_v32 = vsel %vm2552_vm11, %v6306_v62, %v6300_v30  ;;  %v2575_v43 = vadd.f32 %v2571_v3, %v2540_v9 }
 0x3fd   : > { %v2553_v49 = vsel %vm2552_vm11, %v6318_v17, %v6306_v62  ;;  %v2554_v33 = vsel %vm2552_vm11, %v6297_v31, %v6318_v17  ;;  %v2574_v56 = vmul.f32 %v2570_v22, %v2556_v32 }
 0x3fe   : > { %v2572_v25 = vmul.f32 %v2570_v22, %v2554_v33  ;;  %v2573_v39 = vmul.f32 %v2570_v22, %v2553_v49 }
 0x3ff   : > { %v2560_v29 = vpop.permute.xlu0 %2559  ;;  %v2578_v6 = vadd.f32 %v2574_v56, %v2543_v52  ;;  %v7090_v56 = vld [vmem:[#allocation5_spill] sm:$0xff] }
 0x400   : > { %v2558_v10 = vpop.permute.xlu1 %2557  ;;  %v2577_v50 = vadd.f32 %v2573_v39, %v2542_v19  ;;  %v7092_v39 = vld [vmem:[#allocation6_spill] sm:$0xff]  ;;  %v7094_v19 = vld [vmem:[#allocation13_spill] sm:$0xff] }
 0x401   : > { %v2567_v7 = vsel %vm2552_vm11, %v2558_v10, %v2560_v29 }
 0x402   : > { %v2581_v18 = vmul.f32 %v2580_v11, %v2567_v7 }
 0x403   : > { %v2564_v12 = vpop.permute.xlu0 %2563 }
 0x404   : > { %v2562_v38 = vpop.permute.xlu1 %2561  ;;  %v2568_v30 = vsel %vm2552_vm11, %v2564_v12, %v2558_v10  ;;  %v2541_v10 = vadd.f32 %v2537_v36, %v2531_v53  ;;  %v2585_v28 = vadd.f32 %v2581_v18, %v2575_v43 }
 0x405   : > { %v2566_v62 = vsel %vm2552_vm11, %v2560_v29, %v2562_v38  ;;  %v2565_v31 = vsel %vm2552_vm11, %v2562_v38, %v2564_v12  ;;  %v2584_v37 = vmul.f32 %v2580_v11, %v2568_v30 }
 0x406   : > { %v2582_v34 = vmul.f32 %v2580_v11, %v2566_v62  ;;  %v2583_v27 = vmul.f32 %v2580_v11, %v2565_v31  ;;  %v2576_v46 = vadd.f32 %v2572_v25, %v2541_v10 }
 0x407   : > { %v2592_v41 = vpop.permute.xlu0 %2591  ;;  %v2588_v12 = vadd.f32 %v2584_v37, %v2578_v6  ;;  %v7096_v6 = vld [vmem:[#allocation17_spill] sm:$0xff] }
 0x408   : > { %v2590_v35 = vpop.permute.xlu1 %2589  ;;  %v2586_v60 = vadd.f32 %v2582_v34, %v2576_v46  ;;  %v2587_v47 = vadd.f32 %v2583_v27, %v2577_v50  ;;  %v7098_v46 = vld [vmem:[#allocation7_spill] sm:$0xff] }
 0x409   : > { %v2600_v48 = vsel %vm2597_vm12, %v2590_v35, %v2592_v41 }
 0x40a   : > { %v2616_v24 = vmul.f32 %v2615_v13, %v2600_v48 }
 0x40b   : > { %v2596_v20 = vpop.permute.xlu0 %2595 }
 0x40c   : > { %v2594_v15 = vpop.permute.xlu1 %2593  ;;  %v2601_v17 = vsel %vm2597_vm12, %v2596_v20, %v2590_v35  ;;  %v2620_v16 = vadd.f32 %v2616_v24, %v2585_v28 }
 0x40d   : > { %v2599_v23 = vsel %vm2597_vm12, %v2592_v41, %v2594_v15  ;;  %v2598_v29 = vsel %vm2597_vm12, %v2594_v15, %v2596_v20  ;;  %v2619_v61 = vmul.f32 %v2615_v13, %v2601_v17  ;;  %v7091_v15 = vld [vmem:[#allocation10_spill] sm:$0xff] }
 0x40e   : > { %v2617_v8 = vmul.f32 %v2615_v13, %v2599_v23  ;;  %v2618_v22 = vmul.f32 %v2615_v13, %v2598_v29  ;;  %v7093_v17 = vld [vmem:[#allocation14_spill] sm:$0xff]  ;;  %v7095_v29 = vld [vmem:[#allocation9_spill] sm:$0xff] }
 0x40f   : > { %v2605_v51 = vpop.permute.xlu0 %2604  ;;  %v2623_v54 = vadd.f32 %v2619_v61, %v2588_v12  ;;  %v7097_v61 = vld [vmem:[#allocation11_spill] sm:$0xff]  ;;  %v7100_v12 = vld [vmem:[#allocation12_spill] sm:$0xff] }
 0x410   : > { %v2603_v59 = vpop.permute.xlu1 %2602  ;;  %v2621_v21 = vadd.f32 %v2617_v8, %v2586_v60  ;;  %v2622_v2 = vadd.f32 %v2618_v22, %v2587_v47  ;;  %v7099_v8 = vld [vmem:[#allocation15_spill] sm:$0xff]  ;;  %v7101_v22 = vld [vmem:[#allocation8_spill] sm:$0xff] }
 0x411   : > { %v2612_v0 = vsel %vm2597_vm12, %v2603_v59, %v2605_v51  ;;  %v7102_v60 = vld [vmem:[#allocation16_spill] sm:$0xff] }
 0x412   : > { %v2626_v38 = vmul.f32 %v6355_v44, %v2612_v0 }
 0x413   : > { %v2609_v58 = vpop.permute.xlu0 %2608 }
 0x414   : > { %v2630_v14 = vadd.f32 %v2626_v38, %v2620_v16  ;;  %v2613_v11 = vsel %vm2597_vm12, %v2609_v58, %v2603_v59  ;;  %v2607_v5 = vpop.permute.xlu1 %2606 }
 0x415   : > { %v2629_v45 = vmul.f32 %v6355_v44, %v2613_v11  ;;  %v2610_v26 = vsel %vm2597_vm12, %v2607_v5, %v2609_v58  ;;  %v2611_v13 = vsel %vm2597_vm12, %v2605_v51, %v2607_v5 }
 0x416   : > { %v2634_v41 = vsub.f32 0.0, %v2630_v14  ;;  %v2627_v40 = vmul.f32 %v6355_v44, %v2611_v13  ;;  %v2628_v57 = vmul.f32 %v6355_v44, %v2610_v26 }
 0x417   : > { %v2633_v4 = vadd.f32 %v2629_v45, %v2623_v54 }
 0x418   : > { %v2638_v42 = vmul.f32 1.442695, %v2634_v41  ;;  %v2631_v35 = vadd.f32 %v2627_v40, %v2621_v21  ;;  %v2632_v53 = vadd.f32 %v2628_v57, %v2622_v2 }
 0x419   : > { %v2637_v63 = vsub.f32 0.0, %v2633_v4 }
 0x41a   : > { %2968 = vpow2.f32 %v2638_v42  ;;  %v2635_v32 = vsub.f32 0.0, %v2631_v35  ;;  %v2636_v7 = vsub.f32 0.0, %v2632_v53 }
 0x41b   : > { %v2644_v9 = vmul.f32 1.442695, %v2637_v63 }
 0x41c   : > { %v2640_v3 = vmul.f32 1.442695, %v2635_v32  ;;  %v2642_v49 = vmul.f32 1.442695, %v2636_v7 }
 0x41d   : > { %2970 = vpow2.f32 %v2644_v9 }
 0x41e   : > { %2972 = vpow2.f32 %v2640_v3 }
 0x41f   : > { %2974 = vpow2.f32 %v2642_v49 }
 0x424   : > { %v2969_v1 = vpop.eup %2968 }
 0x425   : > { %v2646_v33 = vadd.f32 1.0, %v2969_v1 }
 0x427   : > { %v2971_v36 = vpop.eup %2970  ;;  %2976 = vrcp.f32 %v2646_v33 }
 0x428   : > { %v2973_v44 = vpop.eup %2972  ;;  %v2649_v55 = vadd.f32 1.0, %v2971_v36 }
 0x429   : > { %v2975_v30 = vpop.eup %2974  ;;  %v2647_v48 = vadd.f32 1.0, %v2973_v44 }
 0x42a   : > { %2978 = vrcp.f32 %v2649_v55  ;;  %v2648_v20 = vadd.f32 1.0, %v2975_v30 }
 0x42b   : > { %2980 = vrcp.f32 %v2647_v48 }
 0x42c   : > { %2982 = vrcp.f32 %v2648_v20 }
 0x431   : > { %v2977_v52 = vpop.eup %2976 }
 0x432   : > { %v2661_v18 = vrot.slane %v2977_v52, %v7090_v56 }
 0x434   : > { %v2979_v62 = vpop.eup %2978  ;;  %v2674_v25 = vmul.f32 %v2661_v18, %v7091_v15  ;;  %v2678_v31 = vmul.f32 %v2661_v18, %v7092_v39  ;;  %v2682_v43 = vmul.f32 %v2661_v18, %v7093_v17 }
 0x435   : > { %v2981_v37 = vpop.eup %2980  ;;  %v2673_v24 = vrot.slane %v2979_v62, %v7090_v56 }
 0x436   : > { %v2983_v23 = vpop.eup %2982  ;;  %2686 = vst [vmem:[%s285_s19] sm:$0xff] %v2674_v25  ;;  %2690 = vst [vmem:[%s285_s19 + $0x20] sm:$0xff] %v2678_v31  ;;  %v2665_v10 = vrot.slane %v2981_v37, %v7090_v56 }
 0x437   : > { %2694 = vst [vmem:[%s285_s19 + $0x40] sm:$0xff] %v2682_v43  ;;  %v2677_v34 = vmul.f32 %v2673_v24, %v7094_v19  ;;  %v2681_v51 = vmul.f32 %v2673_v24, %v7095_v29  ;;  %v2685_v28 = vmul.f32 %v2673_v24, %v7096_v6  ;;  %v2669_v27 = vrot.slane %v2983_v23, %v7090_v56 }
 0x438   : > { %v2675_v59 = vmul.f32 %v2665_v10, %v7097_v61  ;;  %v2679_v50 = vmul.f32 %v2665_v10, %v7098_v46  ;;  %v2683_v0 = vmul.f32 %v2665_v10, %v7099_v8 }
 0x439   : > { %2689 = vst [vmem:[%s285_s19 + $0x18] sm:$0xff] %v2677_v34  ;;  %2693 = vst [vmem:[%s285_s19 + $0x38] sm:$0xff] %v2681_v51  ;;  %v2676_v16 = vmul.f32 %v2669_v27, %v7100_v12  ;;  %v2680_v38 = vmul.f32 %v2669_v27, %v7101_v22  ;;  %v2684_v58 = vmul.f32 %v2669_v27, %v7102_v60 }
 0x43a   : > { %2697 = vst [vmem:[%s285_s19 + $0x58] sm:$0xff] %v2685_v28  ;;  %2687 = vst [vmem:[%s285_s19 + $0x8] sm:$0xff] %v2675_v59 }
 0x43b   : > { %2691 = vst [vmem:[%s285_s19 + $0x28] sm:$0xff] %v2679_v50  ;;  %2695 = vst [vmem:[%s285_s19 + $0x48] sm:$0xff] %v2683_v0 }
 0x43c   : > { %2688 = vst [vmem:[%s285_s19 + $0x10] sm:$0xff] %v2676_v16  ;;  %2692 = vst [vmem:[%s285_s19 + $0x30] sm:$0xff] %v2680_v38 }
 0x43d   : > { %2696 = vst [vmem:[%s285_s19 + $0x50] sm:$0xff] %v2684_v58 }
 0x43e PF: > { %s17_s21 = sadd.s32 1, %s3009_s21  }
 0x43f   : > { %p14_p1 = scmp.ge.s32.totalorder %s17_s21, 4  }
 0x441   :  { %16 = sbr.rel (!%p14_p1) target bundleno = 1 (0x1), region = 82 }
 0x448   :  { %2719 = vsyncpa [#allocation3], 1 }
 0x449   :  { %2721 = vsyncpa [#allocation3 + $0x1], 1 }

</bundles_post_ra>
